<compile_context>
chip_gen: v6e
topology: v6e:2x2x1
jax: 0.10.0
libtpu: 0.0.40
codegen_flags: <defaults>
</compile_context>

<pallas_src>
import functools

import jax
import jax.numpy as jnp
from jax.experimental import pallas as pl
from jax.experimental.pallas import tpu as pltpu

LN_EPS = 1e-5


def _layernorm(x, gamma, beta):
    # x: (T, D) f32; gamma/beta: (1, D) f32
    mu = jnp.mean(x, axis=-1, keepdims=True)
    var = jnp.mean((x - mu) ** 2, axis=-1, keepdims=True)
    return (x - mu) * jax.lax.rsqrt(var + LN_EPS) * gamma + beta


def encoder_layer_kernel(
    x_ref,
    wq_ref, bq_ref, wkv_ref, bkv_ref, wo_ref, bo_ref,
    g1_ref, be1_ref,
    w1_ref, bf1_ref, w2_ref, bf2_ref,
    g2_ref, be2_ref,
    o_ref,
    k_scr, v_scr, ctx_scr,
    *, num_heads, seq_tile, head_batched,
):
    S = x_ref.shape[1]
    D = x_ref.shape[2]
    TS = seq_tile
    H = num_heads
    dh = D // H
    scale = 1.0 / (dh ** 0.5)
    cdt = wq_ref.dtype                       # matmul-input dtype (bf16 for MXU peak)

    g1 = g1_ref[...].astype(jnp.float32)     # (1, D)
    be1 = be1_ref[...].astype(jnp.float32)   # (1, D)

    t = pl.program_id(1)

    # ---- K/V over the FULL sequence: computed once per batch element (t == 0)
    #      and persisted in head-major VMEM scratch across all query tiles.
    @pl.when(t == 0)
    def _():
        x_full = x_ref[0].astype(jnp.float32)               # (S, D)
        n_full = _layernorm(x_full, g1, be1)
        kv = jnp.dot(n_full.astype(cdt), wkv_ref[...],
                     preferred_element_type=jnp.float32) \
            + bkv_ref[...].astype(jnp.float32)               # (S, 2D)
        if head_batched:
            k_scr[...] = kv[:, :D].reshape(S, H, dh).transpose(1, 0, 2).astype(cdt)
            v_scr[...] = kv[:, D:].reshape(S, H, dh).transpose(1, 0, 2).astype(cdt)
        else:
            for h in range(H):
                k_scr[h] = kv[:, h * dh:(h + 1) * dh].astype(cdt)
                v_scr[h] = kv[:, D + h * dh:D + (h + 1) * dh].astype(cdt)

    # ---- queries for this tile's rows only
    if TS == S:
        x_tile = x_ref[0].astype(jnp.float32)                # (TS, D)
    else:
        row0 = pl.multiple_of(t * TS, TS)
        x_tile = x_ref[0, pl.ds(row0, TS), :].astype(jnp.float32)
    n_tile = _layernorm(x_tile, g1, be1)
    q = jnp.dot(n_tile.astype(cdt), wq_ref[...],
                preferred_element_type=jnp.float32) + bq_ref[...].astype(jnp.float32)

    # ---- multi-head self-attention (deferred softmax normalisation)
    if head_batched:
        q3 = q.astype(cdt).reshape(TS, H, dh).transpose(1, 0, 2)       # (H, TS, dh)
        s = jnp.einsum("hqd,hkd->hqk", q3, k_scr[...],
                       preferred_element_type=jnp.float32) * scale     # (H, TS, S)
        m = jnp.max(s, axis=-1, keepdims=True)
        p = jnp.exp(s - m)
        l = jnp.sum(p, axis=-1, keepdims=True)                          # (H, TS, 1)
        ctx = jnp.einsum("hqk,hkd->hqd", p.astype(cdt), v_scr[...],
                         preferred_element_type=jnp.float32)            # (H, TS, dh)
        ctx = ctx * pl.reciprocal(l, approx=True)
        ctx2d = ctx.transpose(1, 0, 2).reshape(TS, D).astype(cdt)       # lane-dense (TS, D)
    else:
        # Known-good fallback: per-head loop with column slices.
        for h in range(H):
            qh = q[:, h * dh:(h + 1) * dh].astype(cdt)                  # (TS, dh)
            kh = k_scr[h]                                               # (S, dh)
            vh = v_scr[h]                                               # (S, dh)
            s = jnp.dot(qh, kh.T, preferred_element_type=jnp.float32) * scale
            m = jnp.max(s, axis=-1, keepdims=True)
            p = jnp.exp(s - m)
            l = jnp.sum(p, axis=-1, keepdims=True)
            oh = jnp.dot(p.astype(cdt), vh, preferred_element_type=jnp.float32)
            ctx_scr[:, h * dh:(h + 1) * dh] = oh * pl.reciprocal(l, approx=True)
        ctx2d = ctx_scr[...].astype(cdt)

    # One full-K (TS, D) @ (D, D) output projection.
    attn = jnp.dot(ctx2d, wo_ref[...],
                   preferred_element_type=jnp.float32) + bo_ref[...].astype(jnp.float32)

    x1 = x_tile + attn                                                  # residual (dropout1 = identity)

    # ---- sublayer 2: pre-norm feed-forward (Linear -> ReLU -> Linear)
    # TODO(synk): FeedForwardBlock source not given; assumed Linear->ReLU->Linear.
    n2 = _layernorm(x1, g2_ref[...].astype(jnp.float32), be2_ref[...].astype(jnp.float32))
    h1 = jnp.dot(n2.astype(cdt), w1_ref[...],
                 preferred_element_type=jnp.float32) + bf1_ref[...].astype(jnp.float32)
    h1 = jnp.maximum(h1, 0.0)                                           # ReLU
    ff = jnp.dot(h1.astype(cdt), w2_ref[...],
                 preferred_element_type=jnp.float32) + bf2_ref[...].astype(jnp.float32)

    o_ref[0] = (x1 + ff).astype(o_ref.dtype)                            # residual (dropout2 = identity)


def _pick_seq_tile(S, max_tile=512):
    """Largest query tile (<= max_tile) dividing S; keeps (TS,S)/(TS,F) slabs bounded."""
    if S <= max_tile:
        return S
    for ts in (512, 256, 128, 64, 32, 16, 8):
        if ts <= max_tile and S % ts == 0:
            return ts
    # TODO(synk): pad S to a multiple of 8 instead of falling back to full-seq tiles.
    return S


def encoder_layer(x, params, num_heads, *, seq_tile=None,
                  compute_dtype=jnp.bfloat16,
                  head_batched=True, single_buffer_weights=True):
    B, S, D = x.shape
    F = params["w1"].shape[1]
    assert D % num_heads == 0
    dh = D // num_heads

    TS = _pick_seq_tile(S) if seq_tile is None else seq_tile
    assert S % TS == 0, "seq_tile must divide seq_len"
    n_tiles = S // TS

    cdt = jnp.dtype(compute_dtype)
    # bf16 matmul operands (f32 accumulation inside the kernel); biases/LN stay f32.
    wq = params["wq"].astype(cdt)
    wkv = jnp.concatenate([params["wk"], params["wv"]], axis=1).astype(cdt)   # (D, 2D)
    wo = params["wo"].astype(cdt)
    w1 = params["w1"].astype(cdt)
    w2 = params["w2"].astype(cdt)
    bkv = jnp.concatenate([params["bk"], params["bv"]], axis=1)               # (1, 2D)

    # Grid-invariant operands (weights / biases / LN params): single-buffer them
    # so Pallas doesn't allocate 2x VMEM for blocks that never change.
    if single_buffer_weights:
        def wspec(shape):
            return pl.BlockSpec(shape, lambda b, t: (0, 0),
                                pipeline_mode=pl.Buffered(1))
    else:
        def wspec(shape):
            return pl.BlockSpec(shape, lambda b, t: (0, 0))

    # TODO(synk): for very large F on v7x (64 MiB VMEM), tile W1/W2 over an
    # F-reduction axis with an h1/ff accumulator instead of full-F blocks.
    in_specs = [
        pl.BlockSpec((1, S, D), lambda b, t: (b, 0, 0)),   # x (full seq: K/V need it)
        wspec((D, D)), wspec((1, D)),                      # Wq, bq
        wspec((D, 2 * D)), wspec((1, 2 * D)),              # Wkv, bkv
        wspec((D, D)), wspec((1, D)),                      # Wo, bo
        wspec((1, D)), wspec((1, D)),                      # ln1 gamma, beta
        wspec((D, F)), wspec((1, F)),                      # ffn W1, b1
        wspec((F, D)), wspec((1, D)),                      # ffn W2, b2
        wspec((1, D)), wspec((1, D)),                      # ln2 gamma, beta
    ]
    out_specs = pl.BlockSpec((1, TS, D), lambda b, t: (b, t, 0))

    # ---- VMEM budget: generation-aware cap (v5e/v6e: 128 MiB, v7x: 64 MiB),
    #      12 MiB headroom for Mosaic internal scratch / semaphores.
    try:
        vmem_cap = int(pltpu.get_tpu_info().vmem_capacity_bytes)
    except Exception:
        vmem_cap = 64 * 2**20
    vmem_ceiling = max(32 * 2**20, vmem_cap - 12 * 2**20)

    bufs = 1 if single_buffer_weights else 2
    weight_bytes = (D * D + 2 * D * D + D * D + D * F + F * D) * cdt.itemsize
    bias_bytes = (8 * D + 2 * D + F) * 4
    scratch_bytes = 2 * S * D * cdt.itemsize + TS * D * 4
    x_io_bytes = 2 * (S * D + TS * D) * x.dtype.itemsize
    act_bytes = 4 * (3 * S * D                  # x_full, n_full, kv halves
                     + 2 * S * D                # kv (S, 2D) temporary
                     + 4 * TS * D               # q, ctx, x1, n2
                     + 2 * num_heads * TS * S   # scores + probs
                     + TS * F)                  # h1
    need = bufs * (weight_bytes + bias_bytes) + act_bytes + scratch_bytes \
        + x_io_bytes + (4 << 20)
    vmem_limit = int(min(vmem_ceiling, max(32 * 2**20, need)))

    # ---- advisory cost estimate for the XLA scheduler
    flops = int(2 * B * S * D * (3 * D)          # q + kv projections
                + 4 * B * S * S * D              # scores + context
                + 2 * B * S * D * D              # output projection
                + 4 * B * S * D * F)             # FFN
    transcendentals = int(B * num_heads * S * (S + 1) + 4 * B * S)
    bytes_accessed = int(2 * B * S * D * x.dtype.itemsize + weight_bytes + bias_bytes)
    cost = pl.CostEstimate(flops=flops, transcendentals=transcendentals,
                           bytes_accessed=bytes_accessed)

    kernel = functools.partial(encoder_layer_kernel, num_heads=num_heads,
                               seq_tile=TS, head_batched=head_batched)

    return pl.pallas_call(
        kernel,
        out_shape=jax.ShapeDtypeStruct((B, S, D), x.dtype),
        grid_spec=pltpu.PrefetchScalarGridSpec(
            num_scalar_prefetch=0,
            grid=(B, n_tiles),
            in_specs=in_specs,
            out_specs=out_specs,
            scratch_shapes=[
                pltpu.VMEM((num_heads, S, dh), cdt),      # K (persisted across tiles)
                pltpu.VMEM((num_heads, S, dh), cdt),      # V (persisted across tiles)
                pltpu.VMEM((TS, D), jnp.float32),         # ctx (per-head fallback path)
            ],
        ),
        compiler_params=pltpu.CompilerParams(
            # Batch axis megacore-parallel; tile axis must stay sequential
            # ("arbitrary") so the K/V scratch written at t==0 is valid for t>0.
            dimension_semantics=("parallel", "arbitrary"),
            vmem_limit_bytes=vmem_limit,
        ),
        cost_estimate=cost,
    )(
        x,
        wq, params["bq"], wkv, bkv,
        wo, params["bo"],
        params["ln1_g"], params["ln1_b"],
        w1, params["b1"], w2, params["b2"],
        params["ln2_g"], params["ln2_b"],
    )


def encoder_layer_ref(x, params, num_heads):
    """Pure-JAX f32 reference of the same pre-norm encoder layer (for checking)."""
    B, S, D = x.shape
    dh = D // num_heads
    xf = x.astype(jnp.float32)

    def ln(v, g, b):
        mu = jnp.mean(v, axis=-1, keepdims=True)
        var = jnp.mean((v - mu) ** 2, axis=-1, keepdims=True)
        return (v - mu) * jax.lax.rsqrt(var + LN_EPS) * g[0] + b[0]

    nx = ln(xf, params["ln1_g"], params["ln1_b"])
    q = nx @ params["wq"] + params["bq"][0]
    k = nx @ params["wk"] + params["bk"][0]
    v = nx @ params["wv"] + params["bv"][0]
    q = q.reshape(B, S, num_heads, dh).transpose(0, 2, 1, 3)
    k = k.reshape(B, S, num_heads, dh).transpose(0, 2, 1, 3)
    v = v.reshape(B, S, num_heads, dh).transpose(0, 2, 1, 3)
    s = jnp.einsum("bhqd,bhkd->bhqk", q, k) / (dh ** 0.5)
    p = jax.nn.softmax(s, axis=-1)
    o = jnp.einsum("bhqk,bhkd->bhqd", p, v).transpose(0, 2, 1, 3).reshape(B, S, D)
    attn = o @ params["wo"] + params["bo"][0]
    x1 = xf + attn
    n2 = ln(x1, params["ln2_g"], params["ln2_b"])
    h1 = jnp.maximum(n2 @ params["w1"] + params["b1"][0], 0.0)
    ff = h1 @ params["w2"] + params["b2"][0]
    return (x1 + ff).astype(x.dtype)


def init_params(key, embed_dim, ff_dim):
    ks = jax.random.split(key, 12)
    s = 0.02
    D, F = embed_dim, ff_dim
    return {
        "wq": jax.random.normal(ks[0], (D, D), jnp.float32) * s,
        "bq": jax.random.normal(ks[1], (1, D), jnp.float32) * s,
        "wk": jax.random.normal(ks[2], (D, D), jnp.float32) * s,
        "bk": jax.random.normal(ks[3], (1, D), jnp.float32) * s,
        "wv": jax.random.normal(ks[4], (D, D), jnp.float32) * s,
        "bv": jax.random.normal(ks[5], (1, D), jnp.float32) * s,
        "wo": jax.random.normal(ks[6], (D, D), jnp.float32) * s,
        "bo": jax.random.normal(ks[7], (1, D), jnp.float32) * s,
        "ln1_g": jnp.ones((1, D), jnp.float32),
        "ln1_b": jnp.zeros((1, D), jnp.float32),
        "w1": jax.random.normal(ks[8], (D, F), jnp.float32) * s,
        "b1": jax.random.normal(ks[9], (1, F), jnp.float32) * s,
        "w2": jax.random.normal(ks[10], (F, D), jnp.float32) * s,
        "b2": jax.random.normal(ks[11], (1, D), jnp.float32) * s,
        "ln2_g": jnp.ones((1, D), jnp.float32),
        "ln2_b": jnp.zeros((1, D), jnp.float32),
    }


if __name__ == "__main__":
    # Small shapes consistent with forward: x [batch, seq, embed]
    B, S, D, H, F = 2, 8, 32, 4, 64
    key = jax.random.PRNGKey(0)
    kx, kp = jax.random.split(key)
    x = jax.random.normal(kx, (B, S, D), jnp.float32)
    params = init_params(kp, D, F)

    out = None
    # Preferred config first (head-batched attention, single-buffered weights);
    # progressively drop options this JAX/Mosaic version might reject.
    for kwargs in (
        dict(head_batched=True, single_buffer_weights=True),
        dict(head_batched=True, single_buffer_weights=False),
        dict(head_batched=False, single_buffer_weights=True),
        dict(head_batched=False, single_buffer_weights=False),
    ):
        try:
            out = jax.block_until_ready(encoder_layer(x, params, num_heads=H, **kwargs))
            break
        except Exception:
            out = None
    if out is None:
        # Last resort: simplest config with f32 matmuls.
        out = jax.block_until_ready(
            encoder_layer(x, params, num_heads=H, compute_dtype=jnp.float32,
                          head_batched=False, single_buffer_weights=False))

    ref = encoder_layer_ref(x, params, num_heads=H)
    assert out.shape == (B, S, D)
    # bf16 matmul inputs (f32 accumulation) vs f32 reference -> bf16-level tolerance.
    assert jnp.allclose(out, ref, atol=2e-2, rtol=2e-2), "mismatch vs JAX reference"
    print("KERNEL_OK")
</pallas_src>

<mosaic_0001>
module attributes {stable_mosaic.version = 11 : i64} {
  func.func @encoder_layer_kernel(%arg0: i32, %arg1: i32, %arg2: memref<1x8x32xf32, #tpu.memory_space<vmem>>, %arg3: memref<32x32xbf16, #tpu.memory_space<vmem>>, %arg4: memref<1x32xf32, #tpu.memory_space<vmem>>, %arg5: memref<32x64xbf16, #tpu.memory_space<vmem>>, %arg6: memref<1x64xf32, #tpu.memory_space<vmem>>, %arg7: memref<32x32xbf16, #tpu.memory_space<vmem>>, %arg8: memref<1x32xf32, #tpu.memory_space<vmem>>, %arg9: memref<1x32xf32, #tpu.memory_space<vmem>>, %arg10: memref<1x32xf32, #tpu.memory_space<vmem>>, %arg11: memref<32x64xbf16, #tpu.memory_space<vmem>>, %arg12: memref<1x64xf32, #tpu.memory_space<vmem>>, %arg13: memref<64x32xbf16, #tpu.memory_space<vmem>>, %arg14: memref<1x32xf32, #tpu.memory_space<vmem>>, %arg15: memref<1x32xf32, #tpu.memory_space<vmem>>, %arg16: memref<1x32xf32, #tpu.memory_space<vmem>>, %arg17: memref<1x8x32xf32, #tpu.memory_space<vmem>>, %arg18: memref<4x8x8xbf16, #tpu.memory_space<vmem>>, %arg19: memref<4x8x8xbf16, #tpu.memory_space<vmem>>, %arg20: memref<8x32xf32, #tpu.memory_space<vmem>>) attributes {dimension_semantics = [#tpu.dimension_semantics<parallel>, #tpu.dimension_semantics<arbitrary>], iteration_bounds = array<i64: 2, 1>, scalar_prefetch = 0 : i64, scratch_operands = 3 : i64, tpu.core_type = #tpu.core_type<tc>, window_params = [{transform_indices = @transform_0, window_bounds = array<i64: 1, 8, 32>}, {pipeline_mode = #tpu.pipeline_mode<synchronous>, transform_indices = @transform_1, window_bounds = array<i64: 32, 32>}, {pipeline_mode = #tpu.pipeline_mode<synchronous>, transform_indices = @transform_2, window_bounds = array<i64: 1, 32>}, {pipeline_mode = #tpu.pipeline_mode<synchronous>, transform_indices = @transform_3, window_bounds = array<i64: 32, 64>}, {pipeline_mode = #tpu.pipeline_mode<synchronous>, transform_indices = @transform_4, window_bounds = array<i64: 1, 64>}, {pipeline_mode = #tpu.pipeline_mode<synchronous>, transform_indices = @transform_5, window_bounds = array<i64: 32, 32>}, {pipeline_mode = #tpu.pipeline_mode<synchronous>, transform_indices = @transform_6, window_bounds = array<i64: 1, 32>}, {pipeline_mode = #tpu.pipeline_mode<synchronous>, transform_indices = @transform_7, window_bounds = array<i64: 1, 32>}, {pipeline_mode = #tpu.pipeline_mode<synchronous>, transform_indices = @transform_8, window_bounds = array<i64: 1, 32>}, {pipeline_mode = #tpu.pipeline_mode<synchronous>, transform_indices = @transform_9, window_bounds = array<i64: 32, 64>}, {pipeline_mode = #tpu.pipeline_mode<synchronous>, transform_indices = @transform_10, window_bounds = array<i64: 1, 64>}, {pipeline_mode = #tpu.pipeline_mode<synchronous>, transform_indices = @transform_11, window_bounds = array<i64: 64, 32>}, {pipeline_mode = #tpu.pipeline_mode<synchronous>, transform_indices = @transform_12, window_bounds = array<i64: 1, 32>}, {pipeline_mode = #tpu.pipeline_mode<synchronous>, transform_indices = @transform_13, window_bounds = array<i64: 1, 32>}, {pipeline_mode = #tpu.pipeline_mode<synchronous>, transform_indices = @transform_14, window_bounds = array<i64: 1, 32>}, {transform_indices = @transform_15, window_bounds = array<i64: 1, 8, 32>}]} {
    %c0 = arith.constant 0 : index
    %c0_0 = arith.constant 0 : index
    %0 = vector.load %arg9[%c0, %c0_0] : memref<1x32xf32, #tpu.memory_space<vmem>>, vector<1x32xf32>
    %c0_1 = arith.constant 0 : index
    %c0_2 = arith.constant 0 : index
    %1 = vector.load %arg10[%c0_1, %c0_2] : memref<1x32xf32, #tpu.memory_space<vmem>>, vector<1x32xf32>
    %c0_i32 = arith.constant 0 : i32
    %2 = arith.cmpi eq, %arg1, %c0_i32 : i32
    %3 = arith.extui %2 : i1 to i32
    %c0_i32_3 = arith.constant 0 : i32
    %4 = arith.cmpi ne, %3, %c0_i32_3 : i32
    scf.if %4 {
      %c0_55 = arith.constant 0 : index
      %c0_56 = arith.constant 0 : index
      %c0_57 = arith.constant 0 : index
      %106 = vector.load %arg2[%c0_55, %c0_56, %c0_57] : memref<1x8x32xf32, #tpu.memory_space<vmem>>, vector<1x8x32xf32>
      %107 = vector.shape_cast %106 : vector<1x8x32xf32> to vector<8x32xf32>
      %cst_58 = arith.constant dense<0.000000e+00> : vector<8xf32>
      %108 = vector.multi_reduction <add>, %107, %cst_58 [1] : vector<8x32xf32> to vector<8xf32>
      %109 = vector.shape_cast %108 : vector<8xf32> to vector<8x1xf32>
      %cst_59 = arith.constant 3.200000e+01 : f32
      %110 = vector.broadcast %cst_59 : f32 to vector<8x1xf32>
      %111 = arith.divf %109, %110 : vector<8x1xf32>
      %112 = vector.broadcast %111 : vector<8x1xf32> to vector<8x32xf32>
      %113 = arith.subf %107, %112 : vector<8x32xf32>
      %114 = arith.mulf %113, %113 : vector<8x32xf32>
      %cst_60 = arith.constant dense<0.000000e+00> : vector<8xf32>
      %115 = vector.multi_reduction <add>, %114, %cst_60 [1] : vector<8x32xf32> to vector<8xf32>
      %116 = vector.shape_cast %115 : vector<8xf32> to vector<8x1xf32>
      %cst_61 = arith.constant 3.200000e+01 : f32
      %117 = vector.broadcast %cst_61 : f32 to vector<8x1xf32>
      %118 = arith.divf %116, %117 : vector<8x1xf32>
      %119 = vector.broadcast %111 : vector<8x1xf32> to vector<8x32xf32>
      %120 = arith.subf %107, %119 : vector<8x32xf32>
      %cst_62 = arith.constant 9.99999974E-6 : f32
      %121 = vector.broadcast %cst_62 : f32 to vector<8x1xf32>
      %122 = arith.addf %118, %121 : vector<8x1xf32>
      %123 = math.rsqrt %122 : vector<8x1xf32>
      %124 = vector.broadcast %123 : vector<8x1xf32> to vector<8x32xf32>
      %125 = arith.mulf %120, %124 : vector<8x32xf32>
      %126 = vector.broadcast %0 : vector<1x32xf32> to vector<8x32xf32>
      %127 = arith.mulf %125, %126 : vector<8x32xf32>
      %128 = vector.broadcast %1 : vector<1x32xf32> to vector<8x32xf32>
      %129 = arith.addf %127, %128 : vector<8x32xf32>
      %130 = arith.truncf %129 : vector<8x32xf32> to vector<8x32xbf16>
      %c0_63 = arith.constant 0 : index
      %c0_64 = arith.constant 0 : index
      %131 = vector.load %arg5[%c0_63, %c0_64] : memref<32x64xbf16, #tpu.memory_space<vmem>>, vector<32x64xbf16>
      %cst_65 = arith.constant dense<0.000000e+00> : vector<8x64xf32>
      %132 = tpu.matmul %130, %131, %cst_65 {dimension_numbers = #tpu.dot_dimension_numbers<[1], [0], [0], [1], [0, 0, 1, 1], [], []>} : vector<8x32xbf16>, vector<32x64xbf16>, vector<8x64xf32> -> vector<8x64xf32>
      %c0_66 = arith.constant 0 : index
      %c0_67 = arith.constant 0 : index
      %133 = vector.load %arg6[%c0_66, %c0_67] : memref<1x64xf32, #tpu.memory_space<vmem>>, vector<1x64xf32>
      %134 = vector.broadcast %133 : vector<1x64xf32> to vector<8x64xf32>
      %135 = arith.addf %132, %134 : vector<8x64xf32>
      %136 = vector.extract_strided_slice %135 {offsets = [0, 0], sizes = [8, 32], strides = [1, 1]} : vector<8x64xf32> to vector<8x32xf32>
      %137 = vector.shape_cast %136 : vector<8x32xf32> to vector<8x4x8xf32>
      %138 = tpu.transpose %137, [1, 0, 2] : vector<8x4x8xf32> -> vector<4x8x8xf32>
      %139 = arith.truncf %138 : vector<4x8x8xf32> to vector<4x8x8xbf16>
      %c0_68 = arith.constant 0 : index
      %c0_69 = arith.constant 0 : index
      %c0_70 = arith.constant 0 : index
      %140 = vector.load %arg18[%c0_68, %c0_69, %c0_70] : memref<4x8x8xbf16, #tpu.memory_space<vmem>>, vector<4x8x8xbf16>
      tpu.vector_store %arg18[%c0_68, %c0_69, %c0_70], %139 {strides = array<i32>} : memref<4x8x8xbf16, #tpu.memory_space<vmem>>, vector<4x8x8xbf16>,
      %141 = vector.extract_strided_slice %135 {offsets = [0, 32], sizes = [8, 32], strides = [1, 1]} : vector<8x64xf32> to vector<8x32xf32>
      %142 = vector.shape_cast %141 : vector<8x32xf32> to vector<8x4x8xf32>
      %143 = tpu.transpose %142, [1, 0, 2] : vector<8x4x8xf32> -> vector<4x8x8xf32>
      %144 = arith.truncf %143 : vector<4x8x8xf32> to vector<4x8x8xbf16>
      %c0_71 = arith.constant 0 : index
      %c0_72 = arith.constant 0 : index
      %c0_73 = arith.constant 0 : index
      %145 = vector.load %arg19[%c0_71, %c0_72, %c0_73] : memref<4x8x8xbf16, #tpu.memory_space<vmem>>, vector<4x8x8xbf16>
      tpu.vector_store %arg19[%c0_71, %c0_72, %c0_73], %144 {strides = array<i32>} : memref<4x8x8xbf16, #tpu.memory_space<vmem>>, vector<4x8x8xbf16>,
    } else {
    }
    %c0_4 = arith.constant 0 : index
    %c0_5 = arith.constant 0 : index
    %c0_6 = arith.constant 0 : index
    %5 = vector.load %arg2[%c0_4, %c0_5, %c0_6] : memref<1x8x32xf32, #tpu.memory_space<vmem>>, vector<1x8x32xf32>
    %6 = vector.shape_cast %5 : vector<1x8x32xf32> to vector<8x32xf32>
    %cst = arith.constant dense<0.000000e+00> : vector<8xf32>
    %7 = vector.multi_reduction <add>, %6, %cst [1] : vector<8x32xf32> to vector<8xf32>
    %8 = vector.shape_cast %7 : vector<8xf32> to vector<8x1xf32>
    %cst_7 = arith.constant 3.200000e+01 : f32
    %9 = vector.broadcast %cst_7 : f32 to vector<8x1xf32>
    %10 = arith.divf %8, %9 : vector<8x1xf32>
    %11 = vector.broadcast %10 : vector<8x1xf32> to vector<8x32xf32>
    %12 = arith.subf %6, %11 : vector<8x32xf32>
    %13 = arith.mulf %12, %12 : vector<8x32xf32>
    %cst_8 = arith.constant dense<0.000000e+00> : vector<8xf32>
    %14 = vector.multi_reduction <add>, %13, %cst_8 [1] : vector<8x32xf32> to vector<8xf32>
    %15 = vector.shape_cast %14 : vector<8xf32> to vector<8x1xf32>
    %cst_9 = arith.constant 3.200000e+01 : f32
    %16 = vector.broadcast %cst_9 : f32 to vector<8x1xf32>
    %17 = arith.divf %15, %16 : vector<8x1xf32>
    %18 = vector.broadcast %10 : vector<8x1xf32> to vector<8x32xf32>
    %19 = arith.subf %6, %18 : vector<8x32xf32>
    %cst_10 = arith.constant 9.99999974E-6 : f32
    %20 = vector.broadcast %cst_10 : f32 to vector<8x1xf32>
    %21 = arith.addf %17, %20 : vector<8x1xf32>
    %22 = math.rsqrt %21 : vector<8x1xf32>
    %23 = vector.broadcast %22 : vector<8x1xf32> to vector<8x32xf32>
    %24 = arith.mulf %19, %23 : vector<8x32xf32>
    %25 = vector.broadcast %0 : vector<1x32xf32> to vector<8x32xf32>
    %26 = arith.mulf %24, %25 : vector<8x32xf32>
    %27 = vector.broadcast %1 : vector<1x32xf32> to vector<8x32xf32>
    %28 = arith.addf %26, %27 : vector<8x32xf32>
    %29 = arith.truncf %28 : vector<8x32xf32> to vector<8x32xbf16>
    %c0_11 = arith.constant 0 : index
    %c0_12 = arith.constant 0 : index
    %30 = vector.load %arg3[%c0_11, %c0_12] : memref<32x32xbf16, #tpu.memory_space<vmem>>, vector<32x32xbf16>
    %cst_13 = arith.constant dense<0.000000e+00> : vector<8x32xf32>
    %31 = tpu.matmul %29, %30, %cst_13 {dimension_numbers = #tpu.dot_dimension_numbers<[1], [0], [0], [1], [0, 0, 1, 1], [], []>} : vector<8x32xbf16>, vector<32x32xbf16>, vector<8x32xf32> -> vector<8x32xf32>
    %c0_14 = arith.constant 0 : index
    %c0_15 = arith.constant 0 : index
    %32 = vector.load %arg4[%c0_14, %c0_15] : memref<1x32xf32, #tpu.memory_space<vmem>>, vector<1x32xf32>
    %33 = vector.broadcast %32 : vector<1x32xf32> to vector<8x32xf32>
    %34 = arith.addf %31, %33 : vector<8x32xf32>
    %35 = arith.truncf %34 : vector<8x32xf32> to vector<8x32xbf16>
    %36 = vector.shape_cast %35 : vector<8x32xbf16> to vector<8x4x8xbf16>
    %37 = tpu.transpose %36, [1, 0, 2] : vector<8x4x8xbf16> -> vector<4x8x8xbf16>
    %c0_16 = arith.constant 0 : index
    %c0_17 = arith.constant 0 : index
    %c0_18 = arith.constant 0 : index
    %38 = vector.load %arg18[%c0_16, %c0_17, %c0_18] : memref<4x8x8xbf16, #tpu.memory_space<vmem>>, vector<4x8x8xbf16>
    "tpu.trace_start"() <{level = 10 : i32, message = "hqd,hkd->hqk"}> : () -> ()
    %cst_19 = arith.constant dense<0.000000e+00> : vector<4x8x8xf32>
    %39 = tpu.matmul %37, %38, %cst_19 {dimension_numbers = #tpu.dot_dimension_numbers<[2], [2], [1], [1], [0, 0, 0, 1, 1, 1], [0], [0]>} : vector<4x8x8xbf16>, vector<4x8x8xbf16>, vector<4x8x8xf32> -> vector<4x8x8xf32>
    "tpu.trace_stop"() : () -> ()
    %cst_20 = arith.constant 0.353553385 : f32
    %40 = vector.broadcast %cst_20 : f32 to vector<4x8x8xf32>
    %41 = arith.mulf %39, %40 : vector<4x8x8xf32>
    %cst_21 = arith.constant dense<0xFF800000> : vector<4x8xf32>
    %42 = vector.multi_reduction <maximumf>, %41, %cst_21 [2] : vector<4x8x8xf32> to vector<4x8xf32>
    %43 = vector.shape_cast %42 : vector<4x8xf32> to vector<4x8x1xf32>
    %44 = vector.broadcast %43 : vector<4x8x1xf32> to vector<4x8x8xf32>
    %45 = arith.subf %41, %44 : vector<4x8x8xf32>
    %46 = math.exp %45 : vector<4x8x8xf32>
    %cst_22 = arith.constant dense<0.000000e+00> : vector<4x8xf32>
    %47 = vector.multi_reduction <add>, %46, %cst_22 [2] : vector<4x8x8xf32> to vector<4x8xf32>
    %48 = vector.shape_cast %47 : vector<4x8xf32> to vector<4x8x1xf32>
    %49 = arith.truncf %46 : vector<4x8x8xf32> to vector<4x8x8xbf16>
    %c0_23 = arith.constant 0 : index
    %c0_24 = arith.constant 0 : index
    %c0_25 = arith.constant 0 : index
    %50 = vector.load %arg19[%c0_23, %c0_24, %c0_25] : memref<4x8x8xbf16, #tpu.memory_space<vmem>>, vector<4x8x8xbf16>
    "tpu.trace_start"() <{level = 10 : i32, message = "hqk,hkd->hqd"}> : () -> ()
    %cst_26 = arith.constant dense<0.000000e+00> : vector<4x8x8xf32>
    %51 = tpu.matmul %49, %50, %cst_26 {dimension_numbers = #tpu.dot_dimension_numbers<[2], [1], [1], [2], [0, 0, 0, 1, 1, 2], [0], [0]>} : vector<4x8x8xbf16>, vector<4x8x8xbf16>, vector<4x8x8xf32> -> vector<4x8x8xf32>
    "tpu.trace_stop"() : () -> ()
    %52 = tpu.reciprocal %48 {approx = true} : vector<4x8x1xf32> -> vector<4x8x1xf32>
    %53 = vector.broadcast %52 : vector<4x8x1xf32> to vector<4x8x8xf32>
    %54 = arith.mulf %51, %53 : vector<4x8x8xf32>
    %55 = tpu.transpose %54, [1, 0, 2] : vector<4x8x8xf32> -> vector<8x4x8xf32>
    %56 = vector.shape_cast %55 : vector<8x4x8xf32> to vector<8x32xf32>
    %57 = arith.truncf %56 : vector<8x32xf32> to vector<8x32xbf16>
    %c0_27 = arith.constant 0 : index
    %c0_28 = arith.constant 0 : index
    %58 = vector.load %arg7[%c0_27, %c0_28] : memref<32x32xbf16, #tpu.memory_space<vmem>>, vector<32x32xbf16>
    %cst_29 = arith.constant dense<0.000000e+00> : vector<8x32xf32>
    %59 = tpu.matmul %57, %58, %cst_29 {dimension_numbers = #tpu.dot_dimension_numbers<[1], [0], [0], [1], [0, 0, 1, 1], [], []>} : vector<8x32xbf16>, vector<32x32xbf16>, vector<8x32xf32> -> vector<8x32xf32>
    %c0_30 = arith.constant 0 : index
    %c0_31 = arith.constant 0 : index
    %60 = vector.load %arg8[%c0_30, %c0_31] : memref<1x32xf32, #tpu.memory_space<vmem>>, vector<1x32xf32>
    %61 = vector.broadcast %60 : vector<1x32xf32> to vector<8x32xf32>
    %62 = arith.addf %59, %61 : vector<8x32xf32>
    %63 = arith.addf %6, %62 : vector<8x32xf32>
    %c0_32 = arith.constant 0 : index
    %c0_33 = arith.constant 0 : index
    %64 = vector.load %arg15[%c0_32, %c0_33] : memref<1x32xf32, #tpu.memory_space<vmem>>, vector<1x32xf32>
    %c0_34 = arith.constant 0 : index
    %c0_35 = arith.constant 0 : index
    %65 = vector.load %arg16[%c0_34, %c0_35] : memref<1x32xf32, #tpu.memory_space<vmem>>, vector<1x32xf32>
    %cst_36 = arith.constant dense<0.000000e+00> : vector<8xf32>
    %66 = vector.multi_reduction <add>, %63, %cst_36 [1] : vector<8x32xf32> to vector<8xf32>
    %67 = vector.shape_cast %66 : vector<8xf32> to vector<8x1xf32>
    %cst_37 = arith.constant 3.200000e+01 : f32
    %68 = vector.broadcast %cst_37 : f32 to vector<8x1xf32>
    %69 = arith.divf %67, %68 : vector<8x1xf32>
    %70 = vector.broadcast %69 : vector<8x1xf32> to vector<8x32xf32>
    %71 = arith.subf %63, %70 : vector<8x32xf32>
    %72 = arith.mulf %71, %71 : vector<8x32xf32>
    %cst_38 = arith.constant dense<0.000000e+00> : vector<8xf32>
    %73 = vector.multi_reduction <add>, %72, %cst_38 [1] : vector<8x32xf32> to vector<8xf32>
    %74 = vector.shape_cast %73 : vector<8xf32> to vector<8x1xf32>
    %cst_39 = arith.constant 3.200000e+01 : f32
    %75 = vector.broadcast %cst_39 : f32 to vector<8x1xf32>
    %76 = arith.divf %74, %75 : vector<8x1xf32>
    %77 = vector.broadcast %69 : vector<8x1xf32> to vector<8x32xf32>
    %78 = arith.subf %63, %77 : vector<8x32xf32>
    %cst_40 = arith.constant 9.99999974E-6 : f32
    %79 = vector.broadcast %cst_40 : f32 to vector<8x1xf32>
    %80 = arith.addf %76, %79 : vector<8x1xf32>
    %81 = math.rsqrt %80 : vector<8x1xf32>
    %82 = vector.broadcast %81 : vector<8x1xf32> to vector<8x32xf32>
    %83 = arith.mulf %78, %82 : vector<8x32xf32>
    %84 = vector.broadcast %64 : vector<1x32xf32> to vector<8x32xf32>
    %85 = arith.mulf %83, %84 : vector<8x32xf32>
    %86 = vector.broadcast %65 : vector<1x32xf32> to vector<8x32xf32>
    %87 = arith.addf %85, %86 : vector<8x32xf32>
    %88 = arith.truncf %87 : vector<8x32xf32> to vector<8x32xbf16>
    %c0_41 = arith.constant 0 : index
    %c0_42 = arith.constant 0 : index
    %89 = vector.load %arg11[%c0_41, %c0_42] : memref<32x64xbf16, #tpu.memory_space<vmem>>, vector<32x64xbf16>
    %cst_43 = arith.constant dense<0.000000e+00> : vector<8x64xf32>
    %90 = tpu.matmul %88, %89, %cst_43 {dimension_numbers = #tpu.dot_dimension_numbers<[1], [0], [0], [1], [0, 0, 1, 1], [], []>} : vector<8x32xbf16>, vector<32x64xbf16>, vector<8x64xf32> -> vector<8x64xf32>
    %c0_44 = arith.constant 0 : index
    %c0_45 = arith.constant 0 : index
    %91 = vector.load %arg12[%c0_44, %c0_45] : memref<1x64xf32, #tpu.memory_space<vmem>>, vector<1x64xf32>
    %92 = vector.broadcast %91 : vector<1x64xf32> to vector<8x64xf32>
    %93 = arith.addf %90, %92 : vector<8x64xf32>
    %cst_46 = arith.constant 0.000000e+00 : f32
    %94 = vector.broadcast %cst_46 : f32 to vector<8x64xf32>
    %95 = arith.maximumf %93, %94 : vector<8x64xf32>
    %96 = arith.truncf %95 : vector<8x64xf32> to vector<8x64xbf16>
    %c0_47 = arith.constant 0 : index
    %c0_48 = arith.constant 0 : index
    %97 = vector.load %arg13[%c0_47, %c0_48] : memref<64x32xbf16, #tpu.memory_space<vmem>>, vector<64x32xbf16>
    %cst_49 = arith.constant dense<0.000000e+00> : vector<8x32xf32>
    %98 = tpu.matmul %96, %97, %cst_49 {dimension_numbers = #tpu.dot_dimension_numbers<[1], [0], [0], [1], [0, 0, 1, 1], [], []>} : vector<8x64xbf16>, vector<64x32xbf16>, vector<8x32xf32> -> vector<8x32xf32>
    %c0_50 = arith.constant 0 : index
    %c0_51 = arith.constant 0 : index
    %99 = vector.load %arg14[%c0_50, %c0_51] : memref<1x32xf32, #tpu.memory_space<vmem>>, vector<1x32xf32>
    %100 = vector.broadcast %99 : vector<1x32xf32> to vector<8x32xf32>
    %101 = arith.addf %98, %100 : vector<8x32xf32>
    %102 = arith.addf %63, %101 : vector<8x32xf32>
    %c0_52 = arith.constant 0 : index
    %c0_53 = arith.constant 0 : index
    %c0_54 = arith.constant 0 : index
    %103 = vector.load %arg17[%c0_52, %c0_53, %c0_54] : memref<1x8x32xf32, #tpu.memory_space<vmem>>, vector<1x8x32xf32>
    %104 = vector.shape_cast %103 : vector<1x8x32xf32> to vector<8x32xf32>
    %105 = vector.shape_cast %102 : vector<8x32xf32> to vector<1x8x32xf32>
    tpu.vector_store %arg17[%c0_52, %c0_53, %c0_54], %105 {strides = array<i32>} : memref<1x8x32xf32, #tpu.memory_space<vmem>>, vector<1x8x32xf32>,
    return
  }
  func.func @transform_0(%arg0: i32, %arg1: i32) -> (i32, i32, i32) {
    %c0_i32 = arith.constant 0 : i32
    %c0_i32_0 = arith.constant 0 : i32
    %c0_i32_1 = arith.constant 0 : i32
    return %arg0, %c0_i32, %c0_i32_0 : i32, i32, i32
  }
  func.func @transform_1(%arg0: i32, %arg1: i32) -> (i32, i32) {
    %c0_i32 = arith.constant 0 : i32
    %c0_i32_0 = arith.constant 0 : i32
    %c0_i32_1 = arith.constant 0 : i32
    return %c0_i32, %c0_i32_0 : i32, i32
  }
  func.func @transform_2(%arg0: i32, %arg1: i32) -> (i32, i32) {
    %c0_i32 = arith.constant 0 : i32
    %c0_i32_0 = arith.constant 0 : i32
    %c0_i32_1 = arith.constant 0 : i32
    return %c0_i32, %c0_i32_0 : i32, i32
  }
  func.func @transform_3(%arg0: i32, %arg1: i32) -> (i32, i32) {
    %c0_i32 = arith.constant 0 : i32
    %c0_i32_0 = arith.constant 0 : i32
    %c0_i32_1 = arith.constant 0 : i32
    return %c0_i32, %c0_i32_0 : i32, i32
  }
  func.func @transform_4(%arg0: i32, %arg1: i32) -> (i32, i32) {
    %c0_i32 = arith.constant 0 : i32
    %c0_i32_0 = arith.constant 0 : i32
    %c0_i32_1 = arith.constant 0 : i32
    return %c0_i32, %c0_i32_0 : i32, i32
  }
  func.func @transform_5(%arg0: i32, %arg1: i32) -> (i32, i32) {
    %c0_i32 = arith.constant 0 : i32
    %c0_i32_0 = arith.constant 0 : i32
    %c0_i32_1 = arith.constant 0 : i32
    return %c0_i32, %c0_i32_0 : i32, i32
  }
  func.func @transform_6(%arg0: i32, %arg1: i32) -> (i32, i32) {
    %c0_i32 = arith.constant 0 : i32
    %c0_i32_0 = arith.constant 0 : i32
    %c0_i32_1 = arith.constant 0 : i32
    return %c0_i32, %c0_i32_0 : i32, i32
  }
  func.func @transform_7(%arg0: i32, %arg1: i32) -> (i32, i32) {
    %c0_i32 = arith.constant 0 : i32
    %c0_i32_0 = arith.constant 0 : i32
    %c0_i32_1 = arith.constant 0 : i32
    return %c0_i32, %c0_i32_0 : i32, i32
  }
  func.func @transform_8(%arg0: i32, %arg1: i32) -> (i32, i32) {
    %c0_i32 = arith.constant 0 : i32
    %c0_i32_0 = arith.constant 0 : i32
    %c0_i32_1 = arith.constant 0 : i32
    return %c0_i32, %c0_i32_0 : i32, i32
  }
  func.func @transform_9(%arg0: i32, %arg1: i32) -> (i32, i32) {
    %c0_i32 = arith.constant 0 : i32
    %c0_i32_0 = arith.constant 0 : i32
    %c0_i32_1 = arith.constant 0 : i32
    return %c0_i32, %c0_i32_0 : i32, i32
  }
  func.func @transform_10(%arg0: i32, %arg1: i32) -> (i32, i32) {
    %c0_i32 = arith.constant 0 : i32
    %c0_i32_0 = arith.constant 0 : i32
    %c0_i32_1 = arith.constant 0 : i32
    return %c0_i32, %c0_i32_0 : i32, i32
  }
  func.func @transform_11(%arg0: i32, %arg1: i32) -> (i32, i32) {
    %c0_i32 = arith.constant 0 : i32
    %c0_i32_0 = arith.constant 0 : i32
    %c0_i32_1 = arith.constant 0 : i32
    return %c0_i32, %c0_i32_0 : i32, i32
  }
  func.func @transform_12(%arg0: i32, %arg1: i32) -> (i32, i32) {
    %c0_i32 = arith.constant 0 : i32
    %c0_i32_0 = arith.constant 0 : i32
    %c0_i32_1 = arith.constant 0 : i32
    return %c0_i32, %c0_i32_0 : i32, i32
  }
  func.func @transform_13(%arg0: i32, %arg1: i32) -> (i32, i32) {
    %c0_i32 = arith.constant 0 : i32
    %c0_i32_0 = arith.constant 0 : i32
    %c0_i32_1 = arith.constant 0 : i32
    return %c0_i32, %c0_i32_0 : i32, i32
  }
  func.func @transform_14(%arg0: i32, %arg1: i32) -> (i32, i32) {
    %c0_i32 = arith.constant 0 : i32
    %c0_i32_0 = arith.constant 0 : i32
    %c0_i32_1 = arith.constant 0 : i32
    return %c0_i32, %c0_i32_0 : i32, i32
  }
  func.func @transform_15(%arg0: i32, %arg1: i32) -> (i32, i32, i32) {
    %c0_i32 = arith.constant 0 : i32
    %c0_i32_0 = arith.constant 0 : i32
    return %arg0, %arg1, %c0_i32 : i32, i32, i32
  }
}

module attributes {stable_mosaic.version = 11 : i64} {
  func.func @encoder_layer_kernel(%arg0: i32, %arg1: i32, %arg2: memref<1x8x32xf32, #tpu.memory_space<vmem>>, %arg3: memref<32x32xbf16, #tpu.memory_space<vmem>>, %arg4: memref<1x32xf32, #tpu.memory_space<vmem>>, %arg5: memref<32x64xbf16, #tpu.memory_space<vmem>>, %arg6: memref<1x64xf32, #tpu.memory_space<vmem>>, %arg7: memref<32x32xbf16, #tpu.memory_space<vmem>>, %arg8: memref<1x32xf32, #tpu.memory_space<vmem>>, %arg9: memref<1x32xf32, #tpu.memory_space<vmem>>, %arg10: memref<1x32xf32, #tpu.memory_space<vmem>>, %arg11: memref<32x64xbf16, #tpu.memory_space<vmem>>, %arg12: memref<1x64xf32, #tpu.memory_space<vmem>>, %arg13: memref<64x32xbf16, #tpu.memory_space<vmem>>, %arg14: memref<1x32xf32, #tpu.memory_space<vmem>>, %arg15: memref<1x32xf32, #tpu.memory_space<vmem>>, %arg16: memref<1x32xf32, #tpu.memory_space<vmem>>, %arg17: memref<1x8x32xf32, #tpu.memory_space<vmem>>, %arg18: memref<4x8x8xbf16, #tpu.memory_space<vmem>>, %arg19: memref<4x8x8xbf16, #tpu.memory_space<vmem>>, %arg20: memref<8x32xf32, #tpu.memory_space<vmem>>) attributes {dimension_semantics = [#tpu.dimension_semantics<parallel>, #tpu.dimension_semantics<arbitrary>], iteration_bounds = array<i64: 2, 1>, scalar_prefetch = 0 : i64, scratch_operands = 3 : i64, tpu.core_type = #tpu.core_type<tc>, window_params = [{transform_indices = @transform_0, window_bounds = array<i64: 1, 8, 32>}, {pipeline_mode = #tpu.pipeline_mode<synchronous>, transform_indices = @transform_1, window_bounds = array<i64: 32, 32>}, {pipeline_mode = #tpu.pipeline_mode<synchronous>, transform_indices = @transform_2, window_bounds = array<i64: 1, 32>}, {pipeline_mode = #tpu.pipeline_mode<synchronous>, transform_indices = @transform_3, window_bounds = array<i64: 32, 64>}, {pipeline_mode = #tpu.pipeline_mode<synchronous>, transform_indices = @transform_4, window_bounds = array<i64: 1, 64>}, {pipeline_mode = #tpu.pipeline_mode<synchronous>, transform_indices = @transform_5, window_bounds = array<i64: 32, 32>}, {pipeline_mode = #tpu.pipeline_mode<synchronous>, transform_indices = @transform_6, window_bounds = array<i64: 1, 32>}, {pipeline_mode = #tpu.pipeline_mode<synchronous>, transform_indices = @transform_7, window_bounds = array<i64: 1, 32>}, {pipeline_mode = #tpu.pipeline_mode<synchronous>, transform_indices = @transform_8, window_bounds = array<i64: 1, 32>}, {pipeline_mode = #tpu.pipeline_mode<synchronous>, transform_indices = @transform_9, window_bounds = array<i64: 32, 64>}, {pipeline_mode = #tpu.pipeline_mode<synchronous>, transform_indices = @transform_10, window_bounds = array<i64: 1, 64>}, {pipeline_mode = #tpu.pipeline_mode<synchronous>, transform_indices = @transform_11, window_bounds = array<i64: 64, 32>}, {pipeline_mode = #tpu.pipeline_mode<synchronous>, transform_indices = @transform_12, window_bounds = array<i64: 1, 32>}, {pipeline_mode = #tpu.pipeline_mode<synchronous>, transform_indices = @transform_13, window_bounds = array<i64: 1, 32>}, {pipeline_mode = #tpu.pipeline_mode<synchronous>, transform_indices = @transform_14, window_bounds = array<i64: 1, 32>}, {transform_indices = @transform_15, window_bounds = array<i64: 1, 8, 32>}]} {
    %c0 = arith.constant 0 : index
    %c0_0 = arith.constant 0 : index
    %0 = vector.load %arg9[%c0, %c0_0] : memref<1x32xf32, #tpu.memory_space<vmem>>, vector<1x32xf32>
    %c0_1 = arith.constant 0 : index
    %c0_2 = arith.constant 0 : index
    %1 = vector.load %arg10[%c0_1, %c0_2] : memref<1x32xf32, #tpu.memory_space<vmem>>, vector<1x32xf32>
    %c0_i32 = arith.constant 0 : i32
    %2 = arith.cmpi eq, %arg1, %c0_i32 : i32
    %3 = arith.extui %2 : i1 to i32
    %c0_i32_3 = arith.constant 0 : i32
    %4 = arith.cmpi ne, %3, %c0_i32_3 : i32
    scf.if %4 {
      %c0_55 = arith.constant 0 : index
      %c0_56 = arith.constant 0 : index
      %c0_57 = arith.constant 0 : index
      %106 = vector.load %arg2[%c0_55, %c0_56, %c0_57] : memref<1x8x32xf32, #tpu.memory_space<vmem>>, vector<1x8x32xf32>
      %107 = vector.shape_cast %106 : vector<1x8x32xf32> to vector<8x32xf32>
      %cst_58 = arith.constant dense<0.000000e+00> : vector<8xf32>
      %108 = vector.multi_reduction <add>, %107, %cst_58 [1] : vector<8x32xf32> to vector<8xf32>
      %109 = vector.shape_cast %108 : vector<8xf32> to vector<8x1xf32>
      %cst_59 = arith.constant 3.200000e+01 : f32
      %110 = vector.broadcast %cst_59 : f32 to vector<8x1xf32>
      %111 = arith.divf %109, %110 : vector<8x1xf32>
      %112 = vector.broadcast %111 : vector<8x1xf32> to vector<8x32xf32>
      %113 = arith.subf %107, %112 : vector<8x32xf32>
      %114 = arith.mulf %113, %113 : vector<8x32xf32>
      %cst_60 = arith.constant dense<0.000000e+00> : vector<8xf32>
      %115 = vector.multi_reduction <add>, %114, %cst_60 [1] : vector<8x32xf32> to vector<8xf32>
      %116 = vector.shape_cast %115 : vector<8xf32> to vector<8x1xf32>
      %cst_61 = arith.constant 3.200000e+01 : f32
      %117 = vector.broadcast %cst_61 : f32 to vector<8x1xf32>
      %118 = arith.divf %116, %117 : vector<8x1xf32>
      %119 = vector.broadcast %111 : vector<8x1xf32> to vector<8x32xf32>
      %120 = arith.subf %107, %119 : vector<8x32xf32>
      %cst_62 = arith.constant 9.99999974E-6 : f32
      %121 = vector.broadcast %cst_62 : f32 to vector<8x1xf32>
      %122 = arith.addf %118, %121 : vector<8x1xf32>
      %123 = math.rsqrt %122 : vector<8x1xf32>
      %124 = vector.broadcast %123 : vector<8x1xf32> to vector<8x32xf32>
      %125 = arith.mulf %120, %124 : vector<8x32xf32>
      %126 = vector.broadcast %0 : vector<1x32xf32> to vector<8x32xf32>
      %127 = arith.mulf %125, %126 : vector<8x32xf32>
      %128 = vector.broadcast %1 : vector<1x32xf32> to vector<8x32xf32>
      %129 = arith.addf %127, %128 : vector<8x32xf32>
      %130 = arith.truncf %129 : vector<8x32xf32> to vector<8x32xbf16>
      %c0_63 = arith.constant 0 : index
      %c0_64 = arith.constant 0 : index
      %131 = vector.load %arg5[%c0_63, %c0_64] : memref<32x64xbf16, #tpu.memory_space<vmem>>, vector<32x64xbf16>
      %cst_65 = arith.constant dense<0.000000e+00> : vector<8x64xf32>
      %132 = tpu.matmul %130, %131, %cst_65 {dimension_numbers = #tpu.dot_dimension_numbers<[1], [0], [0], [1], [0, 0, 1, 1], [], []>} : vector<8x32xbf16>, vector<32x64xbf16>, vector<8x64xf32> -> vector<8x64xf32>
      %c0_66 = arith.constant 0 : index
      %c0_67 = arith.constant 0 : index
      %133 = vector.load %arg6[%c0_66, %c0_67] : memref<1x64xf32, #tpu.memory_space<vmem>>, vector<1x64xf32>
      %134 = vector.broadcast %133 : vector<1x64xf32> to vector<8x64xf32>
      %135 = arith.addf %132, %134 : vector<8x64xf32>
      %136 = vector.extract_strided_slice %135 {offsets = [0, 0], sizes = [8, 32], strides = [1, 1]} : vector<8x64xf32> to vector<8x32xf32>
      %137 = vector.shape_cast %136 : vector<8x32xf32> to vector<8x4x8xf32>
      %138 = tpu.transpose %137, [1, 0, 2] : vector<8x4x8xf32> -> vector<4x8x8xf32>
      %139 = arith.truncf %138 : vector<4x8x8xf32> to vector<4x8x8xbf16>
      %c0_68 = arith.constant 0 : index
      %c0_69 = arith.constant 0 : index
      %c0_70 = arith.constant 0 : index
      %140 = vector.load %arg18[%c0_68, %c0_69, %c0_70] : memref<4x8x8xbf16, #tpu.memory_space<vmem>>, vector<4x8x8xbf16>
      tpu.vector_store %arg18[%c0_68, %c0_69, %c0_70], %139 {strides = array<i32>} : memref<4x8x8xbf16, #tpu.memory_space<vmem>>, vector<4x8x8xbf16>,
      %141 = vector.extract_strided_slice %135 {offsets = [0, 32], sizes = [8, 32], strides = [1, 1]} : vector<8x64xf32> to vector<8x32xf32>
      %142 = vector.shape_cast %141 : vector<8x32xf32> to vector<8x4x8xf32>
      %143 = tpu.transpose %142, [1, 0, 2] : vector<8x4x8xf32> -> vector<4x8x8xf32>
      %144 = arith.truncf %143 : vector<4x8x8xf32> to vector<4x8x8xbf16>
      %c0_71 = arith.constant 0 : index
      %c0_72 = arith.constant 0 : index
      %c0_73 = arith.constant 0 : index
      %145 = vector.load %arg19[%c0_71, %c0_72, %c0_73] : memref<4x8x8xbf16, #tpu.memory_space<vmem>>, vector<4x8x8xbf16>
      tpu.vector_store %arg19[%c0_71, %c0_72, %c0_73], %144 {strides = array<i32>} : memref<4x8x8xbf16, #tpu.memory_space<vmem>>, vector<4x8x8xbf16>,
    } else {
    }
    %c0_4 = arith.constant 0 : index
    %c0_5 = arith.constant 0 : index
    %c0_6 = arith.constant 0 : index
    %5 = vector.load %arg2[%c0_4, %c0_5, %c0_6] : memref<1x8x32xf32, #tpu.memory_space<vmem>>, vector<1x8x32xf32>
    %6 = vector.shape_cast %5 : vector<1x8x32xf32> to vector<8x32xf32>
    %cst = arith.constant dense<0.000000e+00> : vector<8xf32>
    %7 = vector.multi_reduction <add>, %6, %cst [1] : vector<8x32xf32> to vector<8xf32>
    %8 = vector.shape_cast %7 : vector<8xf32> to vector<8x1xf32>
    %cst_7 = arith.constant 3.200000e+01 : f32
    %9 = vector.broadcast %cst_7 : f32 to vector<8x1xf32>
    %10 = arith.divf %8, %9 : vector<8x1xf32>
    %11 = vector.broadcast %10 : vector<8x1xf32> to vector<8x32xf32>
    %12 = arith.subf %6, %11 : vector<8x32xf32>
    %13 = arith.mulf %12, %12 : vector<8x32xf32>
    %cst_8 = arith.constant dense<0.000000e+00> : vector<8xf32>
    %14 = vector.multi_reduction <add>, %13, %cst_8 [1] : vector<8x32xf32> to vector<8xf32>
    %15 = vector.shape_cast %14 : vector<8xf32> to vector<8x1xf32>
    %cst_9 = arith.constant 3.200000e+01 : f32
    %16 = vector.broadcast %cst_9 : f32 to vector<8x1xf32>
    %17 = arith.divf %15, %16 : vector<8x1xf32>
    %18 = vector.broadcast %10 : vector<8x1xf32> to vector<8x32xf32>
    %19 = arith.subf %6, %18 : vector<8x32xf32>
    %cst_10 = arith.constant 9.99999974E-6 : f32
    %20 = vector.broadcast %cst_10 : f32 to vector<8x1xf32>
    %21 = arith.addf %17, %20 : vector<8x1xf32>
    %22 = math.rsqrt %21 : vector<8x1xf32>
    %23 = vector.broadcast %22 : vector<8x1xf32> to vector<8x32xf32>
    %24 = arith.mulf %19, %23 : vector<8x32xf32>
    %25 = vector.broadcast %0 : vector<1x32xf32> to vector<8x32xf32>
    %26 = arith.mulf %24, %25 : vector<8x32xf32>
    %27 = vector.broadcast %1 : vector<1x32xf32> to vector<8x32xf32>
    %28 = arith.addf %26, %27 : vector<8x32xf32>
    %29 = arith.truncf %28 : vector<8x32xf32> to vector<8x32xbf16>
    %c0_11 = arith.constant 0 : index
    %c0_12 = arith.constant 0 : index
    %30 = vector.load %arg3[%c0_11, %c0_12] : memref<32x32xbf16, #tpu.memory_space<vmem>>, vector<32x32xbf16>
    %cst_13 = arith.constant dense<0.000000e+00> : vector<8x32xf32>
    %31 = tpu.matmul %29, %30, %cst_13 {dimension_numbers = #tpu.dot_dimension_numbers<[1], [0], [0], [1], [0, 0, 1, 1], [], []>} : vector<8x32xbf16>, vector<32x32xbf16>, vector<8x32xf32> -> vector<8x32xf32>
    %c0_14 = arith.constant 0 : index
    %c0_15 = arith.constant 0 : index
    %32 = vector.load %arg4[%c0_14, %c0_15] : memref<1x32xf32, #tpu.memory_space<vmem>>, vector<1x32xf32>
    %33 = vector.broadcast %32 : vector<1x32xf32> to vector<8x32xf32>
    %34 = arith.addf %31, %33 : vector<8x32xf32>
    %35 = arith.truncf %34 : vector<8x32xf32> to vector<8x32xbf16>
    %36 = vector.shape_cast %35 : vector<8x32xbf16> to vector<8x4x8xbf16>
    %37 = tpu.transpose %36, [1, 0, 2] : vector<8x4x8xbf16> -> vector<4x8x8xbf16>
    %c0_16 = arith.constant 0 : index
    %c0_17 = arith.constant 0 : index
    %c0_18 = arith.constant 0 : index
    %38 = vector.load %arg18[%c0_16, %c0_17, %c0_18] : memref<4x8x8xbf16, #tpu.memory_space<vmem>>, vector<4x8x8xbf16>
    "tpu.trace_start"() <{level = 10 : i32, message = "hqd,hkd->hqk"}> : () -> ()
    %cst_19 = arith.constant dense<0.000000e+00> : vector<4x8x8xf32>
    %39 = tpu.matmul %37, %38, %cst_19 {dimension_numbers = #tpu.dot_dimension_numbers<[2], [2], [1], [1], [0, 0, 0, 1, 1, 1], [0], [0]>} : vector<4x8x8xbf16>, vector<4x8x8xbf16>, vector<4x8x8xf32> -> vector<4x8x8xf32>
    "tpu.trace_stop"() : () -> ()
    %cst_20 = arith.constant 0.353553385 : f32
    %40 = vector.broadcast %cst_20 : f32 to vector<4x8x8xf32>
    %41 = arith.mulf %39, %40 : vector<4x8x8xf32>
    %cst_21 = arith.constant dense<0xFF800000> : vector<4x8xf32>
    %42 = vector.multi_reduction <maximumf>, %41, %cst_21 [2] : vector<4x8x8xf32> to vector<4x8xf32>
    %43 = vector.shape_cast %42 : vector<4x8xf32> to vector<4x8x1xf32>
    %44 = vector.broadcast %43 : vector<4x8x1xf32> to vector<4x8x8xf32>
    %45 = arith.subf %41, %44 : vector<4x8x8xf32>
    %46 = math.exp %45 : vector<4x8x8xf32>
    %cst_22 = arith.constant dense<0.000000e+00> : vector<4x8xf32>
    %47 = vector.multi_reduction <add>, %46, %cst_22 [2] : vector<4x8x8xf32> to vector<4x8xf32>
    %48 = vector.shape_cast %47 : vector<4x8xf32> to vector<4x8x1xf32>
    %49 = arith.truncf %46 : vector<4x8x8xf32> to vector<4x8x8xbf16>
    %c0_23 = arith.constant 0 : index
    %c0_24 = arith.constant 0 : index
    %c0_25 = arith.constant 0 : index
    %50 = vector.load %arg19[%c0_23, %c0_24, %c0_25] : memref<4x8x8xbf16, #tpu.memory_space<vmem>>, vector<4x8x8xbf16>
    "tpu.trace_start"() <{level = 10 : i32, message = "hqk,hkd->hqd"}> : () -> ()
    %cst_26 = arith.constant dense<0.000000e+00> : vector<4x8x8xf32>
    %51 = tpu.matmul %49, %50, %cst_26 {dimension_numbers = #tpu.dot_dimension_numbers<[2], [1], [1], [2], [0, 0, 0, 1, 1, 2], [0], [0]>} : vector<4x8x8xbf16>, vector<4x8x8xbf16>, vector<4x8x8xf32> -> vector<4x8x8xf32>
    "tpu.trace_stop"() : () -> ()
    %52 = tpu.reciprocal %48 {approx = true} : vector<4x8x1xf32> -> vector<4x8x1xf32>
    %53 = vector.broadcast %52 : vector<4x8x1xf32> to vector<4x8x8xf32>
    %54 = arith.mulf %51, %53 : vector<4x8x8xf32>
    %55 = tpu.transpose %54, [1, 0, 2] : vector<4x8x8xf32> -> vector<8x4x8xf32>
    %56 = vector.shape_cast %55 : vector<8x4x8xf32> to vector<8x32xf32>
    %57 = arith.truncf %56 : vector<8x32xf32> to vector<8x32xbf16>
    %c0_27 = arith.constant 0 : index
    %c0_28 = arith.constant 0 : index
    %58 = vector.load %arg7[%c0_27, %c0_28] : memref<32x32xbf16, #tpu.memory_space<vmem>>, vector<32x32xbf16>
    %cst_29 = arith.constant dense<0.000000e+00> : vector<8x32xf32>
    %59 = tpu.matmul %57, %58, %cst_29 {dimension_numbers = #tpu.dot_dimension_numbers<[1], [0], [0], [1], [0, 0, 1, 1], [], []>} : vector<8x32xbf16>, vector<32x32xbf16>, vector<8x32xf32> -> vector<8x32xf32>
    %c0_30 = arith.constant 0 : index
    %c0_31 = arith.constant 0 : index
    %60 = vector.load %arg8[%c0_30, %c0_31] : memref<1x32xf32, #tpu.memory_space<vmem>>, vector<1x32xf32>
    %61 = vector.broadcast %60 : vector<1x32xf32> to vector<8x32xf32>
    %62 = arith.addf %59, %61 : vector<8x32xf32>
    %63 = arith.addf %6, %62 : vector<8x32xf32>
    %c0_32 = arith.constant 0 : index
    %c0_33 = arith.constant 0 : index
    %64 = vector.load %arg15[%c0_32, %c0_33] : memref<1x32xf32, #tpu.memory_space<vmem>>, vector<1x32xf32>
    %c0_34 = arith.constant 0 : index
    %c0_35 = arith.constant 0 : index
    %65 = vector.load %arg16[%c0_34, %c0_35] : memref<1x32xf32, #tpu.memory_space<vmem>>, vector<1x32xf32>
    %cst_36 = arith.constant dense<0.000000e+00> : vector<8xf32>
    %66 = vector.multi_reduction <add>, %63, %cst_36 [1] : vector<8x32xf32> to vector<8xf32>
    %67 = vector.shape_cast %66 : vector<8xf32> to vector<8x1xf32>
    %cst_37 = arith.constant 3.200000e+01 : f32
    %68 = vector.broadcast %cst_37 : f32 to vector<8x1xf32>
    %69 = arith.divf %67, %68 : vector<8x1xf32>
    %70 = vector.broadcast %69 : vector<8x1xf32> to vector<8x32xf32>
    %71 = arith.subf %63, %70 : vector<8x32xf32>
    %72 = arith.mulf %71, %71 : vector<8x32xf32>
    %cst_38 = arith.constant dense<0.000000e+00> : vector<8xf32>
    %73 = vector.multi_reduction <add>, %72, %cst_38 [1] : vector<8x32xf32> to vector<8xf32>
    %74 = vector.shape_cast %73 : vector<8xf32> to vector<8x1xf32>
    %cst_39 = arith.constant 3.200000e+01 : f32
    %75 = vector.broadcast %cst_39 : f32 to vector<8x1xf32>
    %76 = arith.divf %74, %75 : vector<8x1xf32>
    %77 = vector.broadcast %69 : vector<8x1xf32> to vector<8x32xf32>
    %78 = arith.subf %63, %77 : vector<8x32xf32>
    %cst_40 = arith.constant 9.99999974E-6 : f32
    %79 = vector.broadcast %cst_40 : f32 to vector<8x1xf32>
    %80 = arith.addf %76, %79 : vector<8x1xf32>
    %81 = math.rsqrt %80 : vector<8x1xf32>
    %82 = vector.broadcast %81 : vector<8x1xf32> to vector<8x32xf32>
    %83 = arith.mulf %78, %82 : vector<8x32xf32>
    %84 = vector.broadcast %64 : vector<1x32xf32> to vector<8x32xf32>
    %85 = arith.mulf %83, %84 : vector<8x32xf32>
    %86 = vector.broadcast %65 : vector<1x32xf32> to vector<8x32xf32>
    %87 = arith.addf %85, %86 : vector<8x32xf32>
    %88 = arith.truncf %87 : vector<8x32xf32> to vector<8x32xbf16>
    %c0_41 = arith.constant 0 : index
    %c0_42 = arith.constant 0 : index
    %89 = vector.load %arg11[%c0_41, %c0_42] : memref<32x64xbf16, #tpu.memory_space<vmem>>, vector<32x64xbf16>
    %cst_43 = arith.constant dense<0.000000e+00> : vector<8x64xf32>
    %90 = tpu.matmul %88, %89, %cst_43 {dimension_numbers = #tpu.dot_dimension_numbers<[1], [0], [0], [1], [0, 0, 1, 1], [], []>} : vector<8x32xbf16>, vector<32x64xbf16>, vector<8x64xf32> -> vector<8x64xf32>
    %c0_44 = arith.constant 0 : index
    %c0_45 = arith.constant 0 : index
    %91 = vector.load %arg12[%c0_44, %c0_45] : memref<1x64xf32, #tpu.memory_space<vmem>>, vector<1x64xf32>
    %92 = vector.broadcast %91 : vector<1x64xf32> to vector<8x64xf32>
    %93 = arith.addf %90, %92 : vector<8x64xf32>
    %cst_46 = arith.constant 0.000000e+00 : f32
    %94 = vector.broadcast %cst_46 : f32 to vector<8x64xf32>
    %95 = arith.maximumf %93, %94 : vector<8x64xf32>
    %96 = arith.truncf %95 : vector<8x64xf32> to vector<8x64xbf16>
    %c0_47 = arith.constant 0 : index
    %c0_48 = arith.constant 0 : index
    %97 = vector.load %arg13[%c0_47, %c0_48] : memref<64x32xbf16, #tpu.memory_space<vmem>>, vector<64x32xbf16>
    %cst_49 = arith.constant dense<0.000000e+00> : vector<8x32xf32>
    %98 = tpu.matmul %96, %97, %cst_49 {dimension_numbers = #tpu.dot_dimension_numbers<[1], [0], [0], [1], [0, 0, 1, 1], [], []>} : vector<8x64xbf16>, vector<64x32xbf16>, vector<8x32xf32> -> vector<8x32xf32>
    %c0_50 = arith.constant 0 : index
    %c0_51 = arith.constant 0 : index
    %99 = vector.load %arg14[%c0_50, %c0_51] : memref<1x32xf32, #tpu.memory_space<vmem>>, vector<1x32xf32>
    %100 = vector.broadcast %99 : vector<1x32xf32> to vector<8x32xf32>
    %101 = arith.addf %98, %100 : vector<8x32xf32>
    %102 = arith.addf %63, %101 : vector<8x32xf32>
    %c0_52 = arith.constant 0 : index
    %c0_53 = arith.constant 0 : index
    %c0_54 = arith.constant 0 : index
    %103 = vector.load %arg17[%c0_52, %c0_53, %c0_54] : memref<1x8x32xf32, #tpu.memory_space<vmem>>, vector<1x8x32xf32>
    %104 = vector.shape_cast %103 : vector<1x8x32xf32> to vector<8x32xf32>
    %105 = vector.shape_cast %102 : vector<8x32xf32> to vector<1x8x32xf32>
    tpu.vector_store %arg17[%c0_52, %c0_53, %c0_54], %105 {strides = array<i32>} : memref<1x8x32xf32, #tpu.memory_space<vmem>>, vector<1x8x32xf32>,
    return
  }
  func.func @transform_0(%arg0: i32, %arg1: i32) -> (i32, i32, i32) {
    %c0_i32 = arith.constant 0 : i32
    %c0_i32_0 = arith.constant 0 : i32
    %c0_i32_1 = arith.constant 0 : i32
    return %arg0, %c0_i32, %c0_i32_0 : i32, i32, i32
  }
  func.func @transform_1(%arg0: i32, %arg1: i32) -> (i32, i32) {
    %c0_i32 = arith.constant 0 : i32
    %c0_i32_0 = arith.constant 0 : i32
    %c0_i32_1 = arith.constant 0 : i32
    return %c0_i32, %c0_i32_0 : i32, i32
  }
  func.func @transform_2(%arg0: i32, %arg1: i32) -> (i32, i32) {
    %c0_i32 = arith.constant 0 : i32
    %c0_i32_0 = arith.constant 0 : i32
    %c0_i32_1 = arith.constant 0 : i32
    return %c0_i32, %c0_i32_0 : i32, i32
  }
  func.func @transform_3(%arg0: i32, %arg1: i32) -> (i32, i32) {
    %c0_i32 = arith.constant 0 : i32
    %c0_i32_0 = arith.constant 0 : i32
    %c0_i32_1 = arith.constant 0 : i32
    return %c0_i32, %c0_i32_0 : i32, i32
  }
  func.func @transform_4(%arg0: i32, %arg1: i32) -> (i32, i32) {
    %c0_i32 = arith.constant 0 : i32
    %c0_i32_0 = arith.constant 0 : i32
    %c0_i32_1 = arith.constant 0 : i32
    return %c0_i32, %c0_i32_0 : i32, i32
  }
  func.func @transform_5(%arg0: i32, %arg1: i32) -> (i32, i32) {
    %c0_i32 = arith.constant 0 : i32
    %c0_i32_0 = arith.constant 0 : i32
    %c0_i32_1 = arith.constant 0 : i32
    return %c0_i32, %c0_i32_0 : i32, i32
  }
  func.func @transform_6(%arg0: i32, %arg1: i32) -> (i32, i32) {
    %c0_i32 = arith.constant 0 : i32
    %c0_i32_0 = arith.constant 0 : i32
    %c0_i32_1 = arith.constant 0 : i32
    return %c0_i32, %c0_i32_0 : i32, i32
  }
  func.func @transform_7(%arg0: i32, %arg1: i32) -> (i32, i32) {
    %c0_i32 = arith.constant 0 : i32
    %c0_i32_0 = arith.constant 0 : i32
    %c0_i32_1 = arith.constant 0 : i32
    return %c0_i32, %c0_i32_0 : i32, i32
  }
  func.func @transform_8(%arg0: i32, %arg1: i32) -> (i32, i32) {
    %c0_i32 = arith.constant 0 : i32
    %c0_i32_0 = arith.constant 0 : i32
    %c0_i32_1 = arith.constant 0 : i32
    return %c0_i32, %c0_i32_0 : i32, i32
  }
  func.func @transform_9(%arg0: i32, %arg1: i32) -> (i32, i32) {
    %c0_i32 = arith.constant 0 : i32
    %c0_i32_0 = arith.constant 0 : i32
    %c0_i32_1 = arith.constant 0 : i32
    return %c0_i32, %c0_i32_0 : i32, i32
  }
  func.func @transform_10(%arg0: i32, %arg1: i32) -> (i32, i32) {
    %c0_i32 = arith.constant 0 : i32
    %c0_i32_0 = arith.constant 0 : i32
    %c0_i32_1 = arith.constant 0 : i32
    return %c0_i32, %c0_i32_0 : i32, i32
  }
  func.func @transform_11(%arg0: i32, %arg1: i32) -> (i32, i32) {
    %c0_i32 = arith.constant 0 : i32
    %c0_i32_0 = arith.constant 0 : i32
    %c0_i32_1 = arith.constant 0 : i32
    return %c0_i32, %c0_i32_0 : i32, i32
  }
  func.func @transform_12(%arg0: i32, %arg1: i32) -> (i32, i32) {
    %c0_i32 = arith.constant 0 : i32
    %c0_i32_0 = arith.constant 0 : i32
    %c0_i32_1 = arith.constant 0 : i32
    return %c0_i32, %c0_i32_0 : i32, i32
  }
  func.func @transform_13(%arg0: i32, %arg1: i32) -> (i32, i32) {
    %c0_i32 = arith.constant 0 : i32
    %c0_i32_0 = arith.constant 0 : i32
    %c0_i32_1 = arith.constant 0 : i32
    return %c0_i32, %c0_i32_0 : i32, i32
  }
  func.func @transform_14(%arg0: i32, %arg1: i32) -> (i32, i32) {
    %c0_i32 = arith.constant 0 : i32
    %c0_i32_0 = arith.constant 0 : i32
    %c0_i32_1 = arith.constant 0 : i32
    return %c0_i32, %c0_i32_0 : i32, i32
  }
  func.func @transform_15(%arg0: i32, %arg1: i32) -> (i32, i32, i32) {
    %c0_i32 = arith.constant 0 : i32
    %c0_i32_0 = arith.constant 0 : i32
    return %arg0, %arg1, %c0_i32 : i32, i32, i32
  }
}

module attributes {stable_mosaic.version = 11 : i64} {
  func.func @encoder_layer_kernel(%arg0: i32, %arg1: i32, %arg2: memref<1x8x32xf32, #tpu.memory_space<vmem>>, %arg3: memref<32x32xbf16, #tpu.memory_space<vmem>>, %arg4: memref<1x32xf32, #tpu.memory_space<vmem>>, %arg5: memref<32x64xbf16, #tpu.memory_space<vmem>>, %arg6: memref<1x64xf32, #tpu.memory_space<vmem>>, %arg7: memref<32x32xbf16, #tpu.memory_space<vmem>>, %arg8: memref<1x32xf32, #tpu.memory_space<vmem>>, %arg9: memref<1x32xf32, #tpu.memory_space<vmem>>, %arg10: memref<1x32xf32, #tpu.memory_space<vmem>>, %arg11: memref<32x64xbf16, #tpu.memory_space<vmem>>, %arg12: memref<1x64xf32, #tpu.memory_space<vmem>>, %arg13: memref<64x32xbf16, #tpu.memory_space<vmem>>, %arg14: memref<1x32xf32, #tpu.memory_space<vmem>>, %arg15: memref<1x32xf32, #tpu.memory_space<vmem>>, %arg16: memref<1x32xf32, #tpu.memory_space<vmem>>, %arg17: memref<1x8x32xf32, #tpu.memory_space<vmem>>, %arg18: memref<4x8x8xbf16, #tpu.memory_space<vmem>>, %arg19: memref<4x8x8xbf16, #tpu.memory_space<vmem>>, %arg20: memref<8x32xf32, #tpu.memory_space<vmem>>) attributes {dimension_semantics = [#tpu.dimension_semantics<parallel>, #tpu.dimension_semantics<arbitrary>], iteration_bounds = array<i64: 2, 1>, scalar_prefetch = 0 : i64, scratch_operands = 3 : i64, tpu.core_type = #tpu.core_type<tc>, window_params = [{transform_indices = @transform_0, window_bounds = array<i64: 1, 8, 32>}, {pipeline_mode = #tpu.pipeline_mode<synchronous>, transform_indices = @transform_1, window_bounds = array<i64: 32, 32>}, {pipeline_mode = #tpu.pipeline_mode<synchronous>, transform_indices = @transform_2, window_bounds = array<i64: 1, 32>}, {pipeline_mode = #tpu.pipeline_mode<synchronous>, transform_indices = @transform_3, window_bounds = array<i64: 32, 64>}, {pipeline_mode = #tpu.pipeline_mode<synchronous>, transform_indices = @transform_4, window_bounds = array<i64: 1, 64>}, {pipeline_mode = #tpu.pipeline_mode<synchronous>, transform_indices = @transform_5, window_bounds = array<i64: 32, 32>}, {pipeline_mode = #tpu.pipeline_mode<synchronous>, transform_indices = @transform_6, window_bounds = array<i64: 1, 32>}, {pipeline_mode = #tpu.pipeline_mode<synchronous>, transform_indices = @transform_7, window_bounds = array<i64: 1, 32>}, {pipeline_mode = #tpu.pipeline_mode<synchronous>, transform_indices = @transform_8, window_bounds = array<i64: 1, 32>}, {pipeline_mode = #tpu.pipeline_mode<synchronous>, transform_indices = @transform_9, window_bounds = array<i64: 32, 64>}, {pipeline_mode = #tpu.pipeline_mode<synchronous>, transform_indices = @transform_10, window_bounds = array<i64: 1, 64>}, {pipeline_mode = #tpu.pipeline_mode<synchronous>, transform_indices = @transform_11, window_bounds = array<i64: 64, 32>}, {pipeline_mode = #tpu.pipeline_mode<synchronous>, transform_indices = @transform_12, window_bounds = array<i64: 1, 32>}, {pipeline_mode = #tpu.pipeline_mode<synchronous>, transform_indices = @transform_13, window_bounds = array<i64: 1, 32>}, {pipeline_mode = #tpu.pipeline_mode<synchronous>, transform_indices = @transform_14, window_bounds = array<i64: 1, 32>}, {transform_indices = @transform_15, window_bounds = array<i64: 1, 8, 32>}]} {
    %c0 = arith.constant 0 : index
    %c0_0 = arith.constant 0 : index
    %0 = vector.load %arg9[%c0, %c0_0] : memref<1x32xf32, #tpu.memory_space<vmem>>, vector<1x32xf32>
    %c0_1 = arith.constant 0 : index
    %c0_2 = arith.constant 0 : index
    %1 = vector.load %arg10[%c0_1, %c0_2] : memref<1x32xf32, #tpu.memory_space<vmem>>, vector<1x32xf32>
    %c0_i32 = arith.constant 0 : i32
    %2 = arith.cmpi eq, %arg1, %c0_i32 : i32
    %3 = arith.extui %2 : i1 to i32
    %c0_i32_3 = arith.constant 0 : i32
    %4 = arith.cmpi ne, %3, %c0_i32_3 : i32
    scf.if %4 {
      %c0_92 = arith.constant 0 : index
      %c0_93 = arith.constant 0 : index
      %c0_94 = arith.constant 0 : index
      %177 = vector.load %arg2[%c0_92, %c0_93, %c0_94] : memref<1x8x32xf32, #tpu.memory_space<vmem>>, vector<1x8x32xf32>
      %178 = vector.shape_cast %177 : vector<1x8x32xf32> to vector<8x32xf32>
      %cst_95 = arith.constant dense<0.000000e+00> : vector<8xf32>
      %179 = vector.multi_reduction <add>, %178, %cst_95 [1] : vector<8x32xf32> to vector<8xf32>
      %180 = vector.shape_cast %179 : vector<8xf32> to vector<8x1xf32>
      %cst_96 = arith.constant 3.200000e+01 : f32
      %181 = vector.broadcast %cst_96 : f32 to vector<8x1xf32>
      %182 = arith.divf %180, %181 : vector<8x1xf32>
      %183 = vector.broadcast %182 : vector<8x1xf32> to vector<8x32xf32>
      %184 = arith.subf %178, %183 : vector<8x32xf32>
      %185 = arith.mulf %184, %184 : vector<8x32xf32>
      %cst_97 = arith.constant dense<0.000000e+00> : vector<8xf32>
      %186 = vector.multi_reduction <add>, %185, %cst_97 [1] : vector<8x32xf32> to vector<8xf32>
      %187 = vector.shape_cast %186 : vector<8xf32> to vector<8x1xf32>
      %cst_98 = arith.constant 3.200000e+01 : f32
      %188 = vector.broadcast %cst_98 : f32 to vector<8x1xf32>
      %189 = arith.divf %187, %188 : vector<8x1xf32>
      %190 = vector.broadcast %182 : vector<8x1xf32> to vector<8x32xf32>
      %191 = arith.subf %178, %190 : vector<8x32xf32>
      %cst_99 = arith.constant 9.99999974E-6 : f32
      %192 = vector.broadcast %cst_99 : f32 to vector<8x1xf32>
      %193 = arith.addf %189, %192 : vector<8x1xf32>
      %194 = math.rsqrt %193 : vector<8x1xf32>
      %195 = vector.broadcast %194 : vector<8x1xf32> to vector<8x32xf32>
      %196 = arith.mulf %191, %195 : vector<8x32xf32>
      %197 = vector.broadcast %0 : vector<1x32xf32> to vector<8x32xf32>
      %198 = arith.mulf %196, %197 : vector<8x32xf32>
      %199 = vector.broadcast %1 : vector<1x32xf32> to vector<8x32xf32>
      %200 = arith.addf %198, %199 : vector<8x32xf32>
      %201 = arith.truncf %200 : vector<8x32xf32> to vector<8x32xbf16>
      %c0_100 = arith.constant 0 : index
      %c0_101 = arith.constant 0 : index
      %202 = vector.load %arg5[%c0_100, %c0_101] : memref<32x64xbf16, #tpu.memory_space<vmem>>, vector<32x64xbf16>
      %cst_102 = arith.constant dense<0.000000e+00> : vector<8x64xf32>
      %203 = tpu.matmul %201, %202, %cst_102 {dimension_numbers = #tpu.dot_dimension_numbers<[1], [0], [0], [1], [0, 0, 1, 1], [], []>} : vector<8x32xbf16>, vector<32x64xbf16>, vector<8x64xf32> -> vector<8x64xf32>
      %c0_103 = arith.constant 0 : index
      %c0_104 = arith.constant 0 : index
      %204 = vector.load %arg6[%c0_103, %c0_104] : memref<1x64xf32, #tpu.memory_space<vmem>>, vector<1x64xf32>
      %205 = vector.broadcast %204 : vector<1x64xf32> to vector<8x64xf32>
      %206 = arith.addf %203, %205 : vector<8x64xf32>
      %207 = vector.extract_strided_slice %206 {offsets = [0, 0], sizes = [8, 8], strides = [1, 1]} : vector<8x64xf32> to vector<8x8xf32>
      %208 = arith.truncf %207 : vector<8x8xf32> to vector<8x8xbf16>
      %c0_105 = arith.constant 0 : index
      %c0_106 = arith.constant 0 : index
      %c0_107 = arith.constant 0 : index
      %209 = vector.load %arg18[%c0_105, %c0_106, %c0_107] : memref<4x8x8xbf16, #tpu.memory_space<vmem>>, vector<1x8x8xbf16>
      %210 = vector.shape_cast %209 : vector<1x8x8xbf16> to vector<8x8xbf16>
      %211 = vector.shape_cast %208 : vector<8x8xbf16> to vector<1x8x8xbf16>
      tpu.vector_store %arg18[%c0_105, %c0_106, %c0_107], %211 {strides = array<i32>} : memref<4x8x8xbf16, #tpu.memory_space<vmem>>, vector<1x8x8xbf16>,
      %212 = vector.extract_strided_slice %206 {offsets = [0, 32], sizes = [8, 8], strides = [1, 1]} : vector<8x64xf32> to vector<8x8xf32>
      %213 = arith.truncf %212 : vector<8x8xf32> to vector<8x8xbf16>
      %c0_108 = arith.constant 0 : index
      %c0_109 = arith.constant 0 : index
      %c0_110 = arith.constant 0 : index
      %214 = vector.load %arg19[%c0_108, %c0_109, %c0_110] : memref<4x8x8xbf16, #tpu.memory_space<vmem>>, vector<1x8x8xbf16>
      %215 = vector.shape_cast %214 : vector<1x8x8xbf16> to vector<8x8xbf16>
      %216 = vector.shape_cast %213 : vector<8x8xbf16> to vector<1x8x8xbf16>
      tpu.vector_store %arg19[%c0_108, %c0_109, %c0_110], %216 {strides = array<i32>} : memref<4x8x8xbf16, #tpu.memory_space<vmem>>, vector<1x8x8xbf16>,
      %217 = vector.extract_strided_slice %206 {offsets = [0, 8], sizes = [8, 8], strides = [1, 1]} : vector<8x64xf32> to vector<8x8xf32>
      %218 = arith.truncf %217 : vector<8x8xf32> to vector<8x8xbf16>
      %c1_111 = arith.constant 1 : index
      %c0_112 = arith.constant 0 : index
      %c0_113 = arith.constant 0 : index
      %219 = vector.load %arg18[%c1_111, %c0_112, %c0_113] : memref<4x8x8xbf16, #tpu.memory_space<vmem>>, vector<1x8x8xbf16>
      %220 = vector.shape_cast %219 : vector<1x8x8xbf16> to vector<8x8xbf16>
      %221 = vector.shape_cast %218 : vector<8x8xbf16> to vector<1x8x8xbf16>
      tpu.vector_store %arg18[%c1_111, %c0_112, %c0_113], %221 {strides = array<i32>} : memref<4x8x8xbf16, #tpu.memory_space<vmem>>, vector<1x8x8xbf16>,
      %222 = vector.extract_strided_slice %206 {offsets = [0, 40], sizes = [8, 8], strides = [1, 1]} : vector<8x64xf32> to vector<8x8xf32>
      %223 = arith.truncf %222 : vector<8x8xf32> to vector<8x8xbf16>
      %c1_114 = arith.constant 1 : index
      %c0_115 = arith.constant 0 : index
      %c0_116 = arith.constant 0 : index
      %224 = vector.load %arg19[%c1_114, %c0_115, %c0_116] : memref<4x8x8xbf16, #tpu.memory_space<vmem>>, vector<1x8x8xbf16>
      %225 = vector.shape_cast %224 : vector<1x8x8xbf16> to vector<8x8xbf16>
      %226 = vector.shape_cast %223 : vector<8x8xbf16> to vector<1x8x8xbf16>
      tpu.vector_store %arg19[%c1_114, %c0_115, %c0_116], %226 {strides = array<i32>} : memref<4x8x8xbf16, #tpu.memory_space<vmem>>, vector<1x8x8xbf16>,
      %227 = vector.extract_strided_slice %206 {offsets = [0, 16], sizes = [8, 8], strides = [1, 1]} : vector<8x64xf32> to vector<8x8xf32>
      %228 = arith.truncf %227 : vector<8x8xf32> to vector<8x8xbf16>
      %c2_117 = arith.constant 2 : index
      %c0_118 = arith.constant 0 : index
      %c0_119 = arith.constant 0 : index
      %229 = vector.load %arg18[%c2_117, %c0_118, %c0_119] : memref<4x8x8xbf16, #tpu.memory_space<vmem>>, vector<1x8x8xbf16>
      %230 = vector.shape_cast %229 : vector<1x8x8xbf16> to vector<8x8xbf16>
      %231 = vector.shape_cast %228 : vector<8x8xbf16> to vector<1x8x8xbf16>
      tpu.vector_store %arg18[%c2_117, %c0_118, %c0_119], %231 {strides = array<i32>} : memref<4x8x8xbf16, #tpu.memory_space<vmem>>, vector<1x8x8xbf16>,
      %232 = vector.extract_strided_slice %206 {offsets = [0, 48], sizes = [8, 8], strides = [1, 1]} : vector<8x64xf32> to vector<8x8xf32>
      %233 = arith.truncf %232 : vector<8x8xf32> to vector<8x8xbf16>
      %c2_120 = arith.constant 2 : index
      %c0_121 = arith.constant 0 : index
      %c0_122 = arith.constant 0 : index
      %234 = vector.load %arg19[%c2_120, %c0_121, %c0_122] : memref<4x8x8xbf16, #tpu.memory_space<vmem>>, vector<1x8x8xbf16>
      %235 = vector.shape_cast %234 : vector<1x8x8xbf16> to vector<8x8xbf16>
      %236 = vector.shape_cast %233 : vector<8x8xbf16> to vector<1x8x8xbf16>
      tpu.vector_store %arg19[%c2_120, %c0_121, %c0_122], %236 {strides = array<i32>} : memref<4x8x8xbf16, #tpu.memory_space<vmem>>, vector<1x8x8xbf16>,
      %237 = vector.extract_strided_slice %206 {offsets = [0, 24], sizes = [8, 8], strides = [1, 1]} : vector<8x64xf32> to vector<8x8xf32>
      %238 = arith.truncf %237 : vector<8x8xf32> to vector<8x8xbf16>
      %c3_123 = arith.constant 3 : index
      %c0_124 = arith.constant 0 : index
      %c0_125 = arith.constant 0 : index
      %239 = vector.load %arg18[%c3_123, %c0_124, %c0_125] : memref<4x8x8xbf16, #tpu.memory_space<vmem>>, vector<1x8x8xbf16>
      %240 = vector.shape_cast %239 : vector<1x8x8xbf16> to vector<8x8xbf16>
      %241 = vector.shape_cast %238 : vector<8x8xbf16> to vector<1x8x8xbf16>
      tpu.vector_store %arg18[%c3_123, %c0_124, %c0_125], %241 {strides = array<i32>} : memref<4x8x8xbf16, #tpu.memory_space<vmem>>, vector<1x8x8xbf16>,
      %242 = vector.extract_strided_slice %206 {offsets = [0, 56], sizes = [8, 8], strides = [1, 1]} : vector<8x64xf32> to vector<8x8xf32>
      %243 = arith.truncf %242 : vector<8x8xf32> to vector<8x8xbf16>
      %c3_126 = arith.constant 3 : index
      %c0_127 = arith.constant 0 : index
      %c0_128 = arith.constant 0 : index
      %244 = vector.load %arg19[%c3_126, %c0_127, %c0_128] : memref<4x8x8xbf16, #tpu.memory_space<vmem>>, vector<1x8x8xbf16>
      %245 = vector.shape_cast %244 : vector<1x8x8xbf16> to vector<8x8xbf16>
      %246 = vector.shape_cast %243 : vector<8x8xbf16> to vector<1x8x8xbf16>
      tpu.vector_store %arg19[%c3_126, %c0_127, %c0_128], %246 {strides = array<i32>} : memref<4x8x8xbf16, #tpu.memory_space<vmem>>, vector<1x8x8xbf16>,
    } else {
    }
    %c0_4 = arith.constant 0 : index
    %c0_5 = arith.constant 0 : index
    %c0_6 = arith.constant 0 : index
    %5 = vector.load %arg2[%c0_4, %c0_5, %c0_6] : memref<1x8x32xf32, #tpu.memory_space<vmem>>, vector<1x8x32xf32>
    %6 = vector.shape_cast %5 : vector<1x8x32xf32> to vector<8x32xf32>
    %cst = arith.constant dense<0.000000e+00> : vector<8xf32>
    %7 = vector.multi_reduction <add>, %6, %cst [1] : vector<8x32xf32> to vector<8xf32>
    %8 = vector.shape_cast %7 : vector<8xf32> to vector<8x1xf32>
    %cst_7 = arith.constant 3.200000e+01 : f32
    %9 = vector.broadcast %cst_7 : f32 to vector<8x1xf32>
    %10 = arith.divf %8, %9 : vector<8x1xf32>
    %11 = vector.broadcast %10 : vector<8x1xf32> to vector<8x32xf32>
    %12 = arith.subf %6, %11 : vector<8x32xf32>
    %13 = arith.mulf %12, %12 : vector<8x32xf32>
    %cst_8 = arith.constant dense<0.000000e+00> : vector<8xf32>
    %14 = vector.multi_reduction <add>, %13, %cst_8 [1] : vector<8x32xf32> to vector<8xf32>
    %15 = vector.shape_cast %14 : vector<8xf32> to vector<8x1xf32>
    %cst_9 = arith.constant 3.200000e+01 : f32
    %16 = vector.broadcast %cst_9 : f32 to vector<8x1xf32>
    %17 = arith.divf %15, %16 : vector<8x1xf32>
    %18 = vector.broadcast %10 : vector<8x1xf32> to vector<8x32xf32>
    %19 = arith.subf %6, %18 : vector<8x32xf32>
    %cst_10 = arith.constant 9.99999974E-6 : f32
    %20 = vector.broadcast %cst_10 : f32 to vector<8x1xf32>
    %21 = arith.addf %17, %20 : vector<8x1xf32>
    %22 = math.rsqrt %21 : vector<8x1xf32>
    %23 = vector.broadcast %22 : vector<8x1xf32> to vector<8x32xf32>
    %24 = arith.mulf %19, %23 : vector<8x32xf32>
    %25 = vector.broadcast %0 : vector<1x32xf32> to vector<8x32xf32>
    %26 = arith.mulf %24, %25 : vector<8x32xf32>
    %27 = vector.broadcast %1 : vector<1x32xf32> to vector<8x32xf32>
    %28 = arith.addf %26, %27 : vector<8x32xf32>
    %29 = arith.truncf %28 : vector<8x32xf32> to vector<8x32xbf16>
    %c0_11 = arith.constant 0 : index
    %c0_12 = arith.constant 0 : index
    %30 = vector.load %arg3[%c0_11, %c0_12] : memref<32x32xbf16, #tpu.memory_space<vmem>>, vector<32x32xbf16>
    %cst_13 = arith.constant dense<0.000000e+00> : vector<8x32xf32>
    %31 = tpu.matmul %29, %30, %cst_13 {dimension_numbers = #tpu.dot_dimension_numbers<[1], [0], [0], [1], [0, 0, 1, 1], [], []>} : vector<8x32xbf16>, vector<32x32xbf16>, vector<8x32xf32> -> vector<8x32xf32>
    %c0_14 = arith.constant 0 : index
    %c0_15 = arith.constant 0 : index
    %32 = vector.load %arg4[%c0_14, %c0_15] : memref<1x32xf32, #tpu.memory_space<vmem>>, vector<1x32xf32>
    %33 = vector.broadcast %32 : vector<1x32xf32> to vector<8x32xf32>
    %34 = arith.addf %31, %33 : vector<8x32xf32>
    %35 = vector.extract_strided_slice %34 {offsets = [0, 0], sizes = [8, 8], strides = [1, 1]} : vector<8x32xf32> to vector<8x8xf32>
    %36 = arith.truncf %35 : vector<8x8xf32> to vector<8x8xbf16>
    %c0_16 = arith.constant 0 : index
    %c0_17 = arith.constant 0 : index
    %c0_18 = arith.constant 0 : index
    %37 = vector.load %arg18[%c0_16, %c0_17, %c0_18] : memref<4x8x8xbf16, #tpu.memory_space<vmem>>, vector<1x8x8xbf16>
    %38 = vector.shape_cast %37 : vector<1x8x8xbf16> to vector<8x8xbf16>
    %c0_19 = arith.constant 0 : index
    %c0_20 = arith.constant 0 : index
    %c0_21 = arith.constant 0 : index
    %39 = vector.load %arg19[%c0_19, %c0_20, %c0_21] : memref<4x8x8xbf16, #tpu.memory_space<vmem>>, vector<1x8x8xbf16>
    %40 = vector.shape_cast %39 : vector<1x8x8xbf16> to vector<8x8xbf16>
    %41 = tpu.transpose %38, [1, 0] : vector<8x8xbf16> -> vector<8x8xbf16>
    %cst_22 = arith.constant dense<0.000000e+00> : vector<8x8xf32>
    %42 = tpu.matmul %36, %41, %cst_22 {dimension_numbers = #tpu.dot_dimension_numbers<[1], [0], [0], [1], [0, 0, 1, 1], [], []>} : vector<8x8xbf16>, vector<8x8xbf16>, vector<8x8xf32> -> vector<8x8xf32>
    %cst_23 = arith.constant 0.353553385 : f32
    %43 = vector.broadcast %cst_23 : f32 to vector<8x8xf32>
    %44 = arith.mulf %42, %43 : vector<8x8xf32>
    %cst_24 = arith.constant dense<0xFF800000> : vector<8xf32>
    %45 = vector.multi_reduction <maximumf>, %44, %cst_24 [1] : vector<8x8xf32> to vector<8xf32>
    %46 = vector.shape_cast %45 : vector<8xf32> to vector<8x1xf32>
    %47 = vector.broadcast %46 : vector<8x1xf32> to vector<8x8xf32>
    %48 = arith.subf %44, %47 : vector<8x8xf32>
    %49 = math.exp %48 : vector<8x8xf32>
    %cst_25 = arith.constant dense<0.000000e+00> : vector<8xf32>
    %50 = vector.multi_reduction <add>, %49, %cst_25 [1] : vector<8x8xf32> to vector<8xf32>
    %51 = vector.shape_cast %50 : vector<8xf32> to vector<8x1xf32>
    %52 = arith.truncf %49 : vector<8x8xf32> to vector<8x8xbf16>
    %cst_26 = arith.constant dense<0.000000e+00> : vector<8x8xf32>
    %53 = tpu.matmul %52, %40, %cst_26 {dimension_numbers = #tpu.dot_dimension_numbers<[1], [0], [0], [1], [0, 0, 1, 1], [], []>} : vector<8x8xbf16>, vector<8x8xbf16>, vector<8x8xf32> -> vector<8x8xf32>
    %54 = tpu.reciprocal %51 {approx = true} : vector<8x1xf32> -> vector<8x1xf32>
    %55 = vector.broadcast %54 : vector<8x1xf32> to vector<8x8xf32>
    %56 = arith.mulf %53, %55 : vector<8x8xf32>
    %c0_27 = arith.constant 0 : index
    %c0_28 = arith.constant 0 : index
    %57 = vector.load %arg20[%c0_27, %c0_28] : memref<8x32xf32, #tpu.memory_space<vmem>>, vector<8x8xf32>
    tpu.vector_store %arg20[%c0_27, %c0_28], %56 {strides = array<i32>} : memref<8x32xf32, #tpu.memory_space<vmem>>, vector<8x8xf32>,
    %58 = vector.extract_strided_slice %34 {offsets = [0, 8], sizes = [8, 8], strides = [1, 1]} : vector<8x32xf32> to vector<8x8xf32>
    %59 = arith.truncf %58 : vector<8x8xf32> to vector<8x8xbf16>
    %c1 = arith.constant 1 : index
    %c0_29 = arith.constant 0 : index
    %c0_30 = arith.constant 0 : index
    %60 = vector.load %arg18[%c1, %c0_29, %c0_30] : memref<4x8x8xbf16, #tpu.memory_space<vmem>>, vector<1x8x8xbf16>
    %61 = vector.shape_cast %60 : vector<1x8x8xbf16> to vector<8x8xbf16>
    %c1_31 = arith.constant 1 : index
    %c0_32 = arith.constant 0 : index
    %c0_33 = arith.constant 0 : index
    %62 = vector.load %arg19[%c1_31, %c0_32, %c0_33] : memref<4x8x8xbf16, #tpu.memory_space<vmem>>, vector<1x8x8xbf16>
    %63 = vector.shape_cast %62 : vector<1x8x8xbf16> to vector<8x8xbf16>
    %64 = tpu.transpose %61, [1, 0] : vector<8x8xbf16> -> vector<8x8xbf16>
    %cst_34 = arith.constant dense<0.000000e+00> : vector<8x8xf32>
    %65 = tpu.matmul %59, %64, %cst_34 {dimension_numbers = #tpu.dot_dimension_numbers<[1], [0], [0], [1], [0, 0, 1, 1], [], []>} : vector<8x8xbf16>, vector<8x8xbf16>, vector<8x8xf32> -> vector<8x8xf32>
    %cst_35 = arith.constant 0.353553385 : f32
    %66 = vector.broadcast %cst_35 : f32 to vector<8x8xf32>
    %67 = arith.mulf %65, %66 : vector<8x8xf32>
    %cst_36 = arith.constant dense<0xFF800000> : vector<8xf32>
    %68 = vector.multi_reduction <maximumf>, %67, %cst_36 [1] : vector<8x8xf32> to vector<8xf32>
    %69 = vector.shape_cast %68 : vector<8xf32> to vector<8x1xf32>
    %70 = vector.broadcast %69 : vector<8x1xf32> to vector<8x8xf32>
    %71 = arith.subf %67, %70 : vector<8x8xf32>
    %72 = math.exp %71 : vector<8x8xf32>
    %cst_37 = arith.constant dense<0.000000e+00> : vector<8xf32>
    %73 = vector.multi_reduction <add>, %72, %cst_37 [1] : vector<8x8xf32> to vector<8xf32>
    %74 = vector.shape_cast %73 : vector<8xf32> to vector<8x1xf32>
    %75 = arith.truncf %72 : vector<8x8xf32> to vector<8x8xbf16>
    %cst_38 = arith.constant dense<0.000000e+00> : vector<8x8xf32>
    %76 = tpu.matmul %75, %63, %cst_38 {dimension_numbers = #tpu.dot_dimension_numbers<[1], [0], [0], [1], [0, 0, 1, 1], [], []>} : vector<8x8xbf16>, vector<8x8xbf16>, vector<8x8xf32> -> vector<8x8xf32>
    %77 = tpu.reciprocal %74 {approx = true} : vector<8x1xf32> -> vector<8x1xf32>
    %78 = vector.broadcast %77 : vector<8x1xf32> to vector<8x8xf32>
    %79 = arith.mulf %76, %78 : vector<8x8xf32>
    %c0_39 = arith.constant 0 : index
    %c8 = arith.constant 8 : index
    %80 = vector.load %arg20[%c0_39, %c8] : memref<8x32xf32, #tpu.memory_space<vmem>>, vector<8x8xf32>
    tpu.vector_store %arg20[%c0_39, %c8], %79 {strides = array<i32>} : memref<8x32xf32, #tpu.memory_space<vmem>>, vector<8x8xf32>,
    %81 = vector.extract_strided_slice %34 {offsets = [0, 16], sizes = [8, 8], strides = [1, 1]} : vector<8x32xf32> to vector<8x8xf32>
    %82 = arith.truncf %81 : vector<8x8xf32> to vector<8x8xbf16>
    %c2 = arith.constant 2 : index
    %c0_40 = arith.constant 0 : index
    %c0_41 = arith.constant 0 : index
    %83 = vector.load %arg18[%c2, %c0_40, %c0_41] : memref<4x8x8xbf16, #tpu.memory_space<vmem>>, vector<1x8x8xbf16>
    %84 = vector.shape_cast %83 : vector<1x8x8xbf16> to vector<8x8xbf16>
    %c2_42 = arith.constant 2 : index
    %c0_43 = arith.constant 0 : index
    %c0_44 = arith.constant 0 : index
    %85 = vector.load %arg19[%c2_42, %c0_43, %c0_44] : memref<4x8x8xbf16, #tpu.memory_space<vmem>>, vector<1x8x8xbf16>
    %86 = vector.shape_cast %85 : vector<1x8x8xbf16> to vector<8x8xbf16>
    %87 = tpu.transpose %84, [1, 0] : vector<8x8xbf16> -> vector<8x8xbf16>
    %cst_45 = arith.constant dense<0.000000e+00> : vector<8x8xf32>
    %88 = tpu.matmul %82, %87, %cst_45 {dimension_numbers = #tpu.dot_dimension_numbers<[1], [0], [0], [1], [0, 0, 1, 1], [], []>} : vector<8x8xbf16>, vector<8x8xbf16>, vector<8x8xf32> -> vector<8x8xf32>
    %cst_46 = arith.constant 0.353553385 : f32
    %89 = vector.broadcast %cst_46 : f32 to vector<8x8xf32>
    %90 = arith.mulf %88, %89 : vector<8x8xf32>
    %cst_47 = arith.constant dense<0xFF800000> : vector<8xf32>
    %91 = vector.multi_reduction <maximumf>, %90, %cst_47 [1] : vector<8x8xf32> to vector<8xf32>
    %92 = vector.shape_cast %91 : vector<8xf32> to vector<8x1xf32>
    %93 = vector.broadcast %92 : vector<8x1xf32> to vector<8x8xf32>
    %94 = arith.subf %90, %93 : vector<8x8xf32>
    %95 = math.exp %94 : vector<8x8xf32>
    %cst_48 = arith.constant dense<0.000000e+00> : vector<8xf32>
    %96 = vector.multi_reduction <add>, %95, %cst_48 [1] : vector<8x8xf32> to vector<8xf32>
    %97 = vector.shape_cast %96 : vector<8xf32> to vector<8x1xf32>
    %98 = arith.truncf %95 : vector<8x8xf32> to vector<8x8xbf16>
    %cst_49 = arith.constant dense<0.000000e+00> : vector<8x8xf32>
    %99 = tpu.matmul %98, %86, %cst_49 {dimension_numbers = #tpu.dot_dimension_numbers<[1], [0], [0], [1], [0, 0, 1, 1], [], []>} : vector<8x8xbf16>, vector<8x8xbf16>, vector<8x8xf32> -> vector<8x8xf32>
    %100 = tpu.reciprocal %97 {approx = true} : vector<8x1xf32> -> vector<8x1xf32>
    %101 = vector.broadcast %100 : vector<8x1xf32> to vector<8x8xf32>
    %102 = arith.mulf %99, %101 : vector<8x8xf32>
    %c0_50 = arith.constant 0 : index
    %c16 = arith.constant 16 : index
    %103 = vector.load %arg20[%c0_50, %c16] : memref<8x32xf32, #tpu.memory_space<vmem>>, vector<8x8xf32>
    tpu.vector_store %arg20[%c0_50, %c16], %102 {strides = array<i32>} : memref<8x32xf32, #tpu.memory_space<vmem>>, vector<8x8xf32>,
    %104 = vector.extract_strided_slice %34 {offsets = [0, 24], sizes = [8, 8], strides = [1, 1]} : vector<8x32xf32> to vector<8x8xf32>
    %105 = arith.truncf %104 : vector<8x8xf32> to vector<8x8xbf16>
    %c3 = arith.constant 3 : index
    %c0_51 = arith.constant 0 : index
    %c0_52 = arith.constant 0 : index
    %106 = vector.load %arg18[%c3, %c0_51, %c0_52] : memref<4x8x8xbf16, #tpu.memory_space<vmem>>, vector<1x8x8xbf16>
    %107 = vector.shape_cast %106 : vector<1x8x8xbf16> to vector<8x8xbf16>
    %c3_53 = arith.constant 3 : index
    %c0_54 = arith.constant 0 : index
    %c0_55 = arith.constant 0 : index
    %108 = vector.load %arg19[%c3_53, %c0_54, %c0_55] : memref<4x8x8xbf16, #tpu.memory_space<vmem>>, vector<1x8x8xbf16>
    %109 = vector.shape_cast %108 : vector<1x8x8xbf16> to vector<8x8xbf16>
    %110 = tpu.transpose %107, [1, 0] : vector<8x8xbf16> -> vector<8x8xbf16>
    %cst_56 = arith.constant dense<0.000000e+00> : vector<8x8xf32>
    %111 = tpu.matmul %105, %110, %cst_56 {dimension_numbers = #tpu.dot_dimension_numbers<[1], [0], [0], [1], [0, 0, 1, 1], [], []>} : vector<8x8xbf16>, vector<8x8xbf16>, vector<8x8xf32> -> vector<8x8xf32>
    %cst_57 = arith.constant 0.353553385 : f32
    %112 = vector.broadcast %cst_57 : f32 to vector<8x8xf32>
    %113 = arith.mulf %111, %112 : vector<8x8xf32>
    %cst_58 = arith.constant dense<0xFF800000> : vector<8xf32>
    %114 = vector.multi_reduction <maximumf>, %113, %cst_58 [1] : vector<8x8xf32> to vector<8xf32>
    %115 = vector.shape_cast %114 : vector<8xf32> to vector<8x1xf32>
    %116 = vector.broadcast %115 : vector<8x1xf32> to vector<8x8xf32>
    %117 = arith.subf %113, %116 : vector<8x8xf32>
    %118 = math.exp %117 : vector<8x8xf32>
    %cst_59 = arith.constant dense<0.000000e+00> : vector<8xf32>
    %119 = vector.multi_reduction <add>, %118, %cst_59 [1] : vector<8x8xf32> to vector<8xf32>
    %120 = vector.shape_cast %119 : vector<8xf32> to vector<8x1xf32>
    %121 = arith.truncf %118 : vector<8x8xf32> to vector<8x8xbf16>
    %cst_60 = arith.constant dense<0.000000e+00> : vector<8x8xf32>
    %122 = tpu.matmul %121, %109, %cst_60 {dimension_numbers = #tpu.dot_dimension_numbers<[1], [0], [0], [1], [0, 0, 1, 1], [], []>} : vector<8x8xbf16>, vector<8x8xbf16>, vector<8x8xf32> -> vector<8x8xf32>
    %123 = tpu.reciprocal %120 {approx = true} : vector<8x1xf32> -> vector<8x1xf32>
    %124 = vector.broadcast %123 : vector<8x1xf32> to vector<8x8xf32>
    %125 = arith.mulf %122, %124 : vector<8x8xf32>
    %c0_61 = arith.constant 0 : index
    %c24 = arith.constant 24 : index
    %126 = vector.load %arg20[%c0_61, %c24] : memref<8x32xf32, #tpu.memory_space<vmem>>, vector<8x8xf32>
    tpu.vector_store %arg20[%c0_61, %c24], %125 {strides = array<i32>} : memref<8x32xf32, #tpu.memory_space<vmem>>, vector<8x8xf32>,
    %c0_62 = arith.constant 0 : index
    %c0_63 = arith.constant 0 : index
    %127 = vector.load %arg20[%c0_62, %c0_63] : memref<8x32xf32, #tpu.memory_space<vmem>>, vector<8x32xf32>
    %128 = arith.truncf %127 : vector<8x32xf32> to vector<8x32xbf16>
    %c0_64 = arith.constant 0 : index
    %c0_65 = arith.constant 0 : index
    %129 = vector.load %arg7[%c0_64, %c0_65] : memref<32x32xbf16, #tpu.memory_space<vmem>>, vector<32x32xbf16>
    %cst_66 = arith.constant dense<0.000000e+00> : vector<8x32xf32>
    %130 = tpu.matmul %128, %129, %cst_66 {dimension_numbers = #tpu.dot_dimension_numbers<[1], [0], [0], [1], [0, 0, 1, 1], [], []>} : vector<8x32xbf16>, vector<32x32xbf16>, vector<8x32xf32> -> vector<8x32xf32>
    %c0_67 = arith.constant 0 : index
    %c0_68 = arith.constant 0 : index
    %131 = vector.load %arg8[%c0_67, %c0_68] : memref<1x32xf32, #tpu.memory_space<vmem>>, vector<1x32xf32>
    %132 = vector.broadcast %131 : vector<1x32xf32> to vector<8x32xf32>
    %133 = arith.addf %130, %132 : vector<8x32xf32>
    %134 = arith.addf %6, %133 : vector<8x32xf32>
    %c0_69 = arith.constant 0 : index
    %c0_70 = arith.constant 0 : index
    %135 = vector.load %arg15[%c0_69, %c0_70] : memref<1x32xf32, #tpu.memory_space<vmem>>, vector<1x32xf32>
    %c0_71 = arith.constant 0 : index
    %c0_72 = arith.constant 0 : index
    %136 = vector.load %arg16[%c0_71, %c0_72] : memref<1x32xf32, #tpu.memory_space<vmem>>, vector<1x32xf32>
    %cst_73 = arith.constant dense<0.000000e+00> : vector<8xf32>
    %137 = vector.multi_reduction <add>, %134, %cst_73 [1] : vector<8x32xf32> to vector<8xf32>
    %138 = vector.shape_cast %137 : vector<8xf32> to vector<8x1xf32>
    %cst_74 = arith.constant 3.200000e+01 : f32
    %139 = vector.broadcast %cst_74 : f32 to vector<8x1xf32>
    %140 = arith.divf %138, %139 : vector<8x1xf32>
    %141 = vector.broadcast %140 : vector<8x1xf32> to vector<8x32xf32>
    %142 = arith.subf %134, %141 : vector<8x32xf32>
    %143 = arith.mulf %142, %142 : vector<8x32xf32>
    %cst_75 = arith.constant dense<0.000000e+00> : vector<8xf32>
    %144 = vector.multi_reduction <add>, %143, %cst_75 [1] : vector<8x32xf32> to vector<8xf32>
    %145 = vector.shape_cast %144 : vector<8xf32> to vector<8x1xf32>
    %cst_76 = arith.constant 3.200000e+01 : f32
    %146 = vector.broadcast %cst_76 : f32 to vector<8x1xf32>
    %147 = arith.divf %145, %146 : vector<8x1xf32>
    %148 = vector.broadcast %140 : vector<8x1xf32> to vector<8x32xf32>
    %149 = arith.subf %134, %148 : vector<8x32xf32>
    %cst_77 = arith.constant 9.99999974E-6 : f32
    %150 = vector.broadcast %cst_77 : f32 to vector<8x1xf32>
    %151 = arith.addf %147, %150 : vector<8x1xf32>
    %152 = math.rsqrt %151 : vector<8x1xf32>
    %153 = vector.broadcast %152 : vector<8x1xf32> to vector<8x32xf32>
    %154 = arith.mulf %149, %153 : vector<8x32xf32>
    %155 = vector.broadcast %135 : vector<1x32xf32> to vector<8x32xf32>
    %156 = arith.mulf %154, %155 : vector<8x32xf32>
    %157 = vector.broadcast %136 : vector<1x32xf32> to vector<8x32xf32>
    %158 = arith.addf %156, %157 : vector<8x32xf32>
    %159 = arith.truncf %158 : vector<8x32xf32> to vector<8x32xbf16>
    %c0_78 = arith.constant 0 : index
    %c0_79 = arith.constant 0 : index
    %160 = vector.load %arg11[%c0_78, %c0_79] : memref<32x64xbf16, #tpu.memory_space<vmem>>, vector<32x64xbf16>
    %cst_80 = arith.constant dense<0.000000e+00> : vector<8x64xf32>
    %161 = tpu.matmul %159, %160, %cst_80 {dimension_numbers = #tpu.dot_dimension_numbers<[1], [0], [0], [1], [0, 0, 1, 1], [], []>} : vector<8x32xbf16>, vector<32x64xbf16>, vector<8x64xf32> -> vector<8x64xf32>
    %c0_81 = arith.constant 0 : index
    %c0_82 = arith.constant 0 : index
    %162 = vector.load %arg12[%c0_81, %c0_82] : memref<1x64xf32, #tpu.memory_space<vmem>>, vector<1x64xf32>
    %163 = vector.broadcast %162 : vector<1x64xf32> to vector<8x64xf32>
    %164 = arith.addf %161, %163 : vector<8x64xf32>
    %cst_83 = arith.constant 0.000000e+00 : f32
    %165 = vector.broadcast %cst_83 : f32 to vector<8x64xf32>
    %166 = arith.maximumf %164, %165 : vector<8x64xf32>
    %167 = arith.truncf %166 : vector<8x64xf32> to vector<8x64xbf16>
    %c0_84 = arith.constant 0 : index
    %c0_85 = arith.constant 0 : index
    %168 = vector.load %arg13[%c0_84, %c0_85] : memref<64x32xbf16, #tpu.memory_space<vmem>>, vector<64x32xbf16>
    %cst_86 = arith.constant dense<0.000000e+00> : vector<8x32xf32>
    %169 = tpu.matmul %167, %168, %cst_86 {dimension_numbers = #tpu.dot_dimension_numbers<[1], [0], [0], [1], [0, 0, 1, 1], [], []>} : vector<8x64xbf16>, vector<64x32xbf16>, vector<8x32xf32> -> vector<8x32xf32>
    %c0_87 = arith.constant 0 : index
    %c0_88 = arith.constant 0 : index
    %170 = vector.load %arg14[%c0_87, %c0_88] : memref<1x32xf32, #tpu.memory_space<vmem>>, vector<1x32xf32>
    %171 = vector.broadcast %170 : vector<1x32xf32> to vector<8x32xf32>
    %172 = arith.addf %169, %171 : vector<8x32xf32>
    %173 = arith.addf %134, %172 : vector<8x32xf32>
    %c0_89 = arith.constant 0 : index
    %c0_90 = arith.constant 0 : index
    %c0_91 = arith.constant 0 : index
    %174 = vector.load %arg17[%c0_89, %c0_90, %c0_91] : memref<1x8x32xf32, #tpu.memory_space<vmem>>, vector<1x8x32xf32>
    %175 = vector.shape_cast %174 : vector<1x8x32xf32> to vector<8x32xf32>
    %176 = vector.shape_cast %173 : vector<8x32xf32> to vector<1x8x32xf32>
    tpu.vector_store %arg17[%c0_89, %c0_90, %c0_91], %176 {strides = array<i32>} : memref<1x8x32xf32, #tpu.memory_space<vmem>>, vector<1x8x32xf32>,
    return
  }
  func.func @transform_0(%arg0: i32, %arg1: i32) -> (i32, i32, i32) {
    %c0_i32 = arith.constant 0 : i32
    %c0_i32_0 = arith.constant 0 : i32
    %c0_i32_1 = arith.constant 0 : i32
    return %arg0, %c0_i32, %c0_i32_0 : i32, i32, i32
  }
  func.func @transform_1(%arg0: i32, %arg1: i32) -> (i32, i32) {
    %c0_i32 = arith.constant 0 : i32
    %c0_i32_0 = arith.constant 0 : i32
    %c0_i32_1 = arith.constant 0 : i32
    return %c0_i32, %c0_i32_0 : i32, i32
  }
  func.func @transform_2(%arg0: i32, %arg1: i32) -> (i32, i32) {
    %c0_i32 = arith.constant 0 : i32
    %c0_i32_0 = arith.constant 0 : i32
    %c0_i32_1 = arith.constant 0 : i32
    return %c0_i32, %c0_i32_0 : i32, i32
  }
  func.func @transform_3(%arg0: i32, %arg1: i32) -> (i32, i32) {
    %c0_i32 = arith.constant 0 : i32
    %c0_i32_0 = arith.constant 0 : i32
    %c0_i32_1 = arith.constant 0 : i32
    return %c0_i32, %c0_i32_0 : i32, i32
  }
  func.func @transform_4(%arg0: i32, %arg1: i32) -> (i32, i32) {
    %c0_i32 = arith.constant 0 : i32
    %c0_i32_0 = arith.constant 0 : i32
    %c0_i32_1 = arith.constant 0 : i32
    return %c0_i32, %c0_i32_0 : i32, i32
  }
  func.func @transform_5(%arg0: i32, %arg1: i32) -> (i32, i32) {
    %c0_i32 = arith.constant 0 : i32
    %c0_i32_0 = arith.constant 0 : i32
    %c0_i32_1 = arith.constant 0 : i32
    return %c0_i32, %c0_i32_0 : i32, i32
  }
  func.func @transform_6(%arg0: i32, %arg1: i32) -> (i32, i32) {
    %c0_i32 = arith.constant 0 : i32
    %c0_i32_0 = arith.constant 0 : i32
    %c0_i32_1 = arith.constant 0 : i32
    return %c0_i32, %c0_i32_0 : i32, i32
  }
  func.func @transform_7(%arg0: i32, %arg1: i32) -> (i32, i32) {
    %c0_i32 = arith.constant 0 : i32
    %c0_i32_0 = arith.constant 0 : i32
    %c0_i32_1 = arith.constant 0 : i32
    return %c0_i32, %c0_i32_0 : i32, i32
  }
  func.func @transform_8(%arg0: i32, %arg1: i32) -> (i32, i32) {
    %c0_i32 = arith.constant 0 : i32
    %c0_i32_0 = arith.constant 0 : i32
    %c0_i32_1 = arith.constant 0 : i32
    return %c0_i32, %c0_i32_0 : i32, i32
  }
  func.func @transform_9(%arg0: i32, %arg1: i32) -> (i32, i32) {
    %c0_i32 = arith.constant 0 : i32
    %c0_i32_0 = arith.constant 0 : i32
    %c0_i32_1 = arith.constant 0 : i32
    return %c0_i32, %c0_i32_0 : i32, i32
  }
  func.func @transform_10(%arg0: i32, %arg1: i32) -> (i32, i32) {
    %c0_i32 = arith.constant 0 : i32
    %c0_i32_0 = arith.constant 0 : i32
    %c0_i32_1 = arith.constant 0 : i32
    return %c0_i32, %c0_i32_0 : i32, i32
  }
  func.func @transform_11(%arg0: i32, %arg1: i32) -> (i32, i32) {
    %c0_i32 = arith.constant 0 : i32
    %c0_i32_0 = arith.constant 0 : i32
    %c0_i32_1 = arith.constant 0 : i32
    return %c0_i32, %c0_i32_0 : i32, i32
  }
  func.func @transform_12(%arg0: i32, %arg1: i32) -> (i32, i32) {
    %c0_i32 = arith.constant 0 : i32
    %c0_i32_0 = arith.constant 0 : i32
    %c0_i32_1 = arith.constant 0 : i32
    return %c0_i32, %c0_i32_0 : i32, i32
  }
  func.func @transform_13(%arg0: i32, %arg1: i32) -> (i32, i32) {
    %c0_i32 = arith.constant 0 : i32
    %c0_i32_0 = arith.constant 0 : i32
    %c0_i32_1 = arith.constant 0 : i32
    return %c0_i32, %c0_i32_0 : i32, i32
  }
  func.func @transform_14(%arg0: i32, %arg1: i32) -> (i32, i32) {
    %c0_i32 = arith.constant 0 : i32
    %c0_i32_0 = arith.constant 0 : i32
    %c0_i32_1 = arith.constant 0 : i32
    return %c0_i32, %c0_i32_0 : i32, i32
  }
  func.func @transform_15(%arg0: i32, %arg1: i32) -> (i32, i32, i32) {
    %c0_i32 = arith.constant 0 : i32
    %c0_i32_0 = arith.constant 0 : i32
    return %arg0, %arg1, %c0_i32 : i32, i32, i32
  }
}

module attributes {stable_mosaic.version = 11 : i64} {
  func.func @encoder_layer_kernel(%arg0: i32, %arg1: i32, %arg2: memref<1x8x32xf32, #tpu.memory_space<vmem>>, %arg3: memref<32x32xbf16, #tpu.memory_space<vmem>>, %arg4: memref<1x32xf32, #tpu.memory_space<vmem>>, %arg5: memref<32x64xbf16, #tpu.memory_space<vmem>>, %arg6: memref<1x64xf32, #tpu.memory_space<vmem>>, %arg7: memref<32x32xbf16, #tpu.memory_space<vmem>>, %arg8: memref<1x32xf32, #tpu.memory_space<vmem>>, %arg9: memref<1x32xf32, #tpu.memory_space<vmem>>, %arg10: memref<1x32xf32, #tpu.memory_space<vmem>>, %arg11: memref<32x64xbf16, #tpu.memory_space<vmem>>, %arg12: memref<1x64xf32, #tpu.memory_space<vmem>>, %arg13: memref<64x32xbf16, #tpu.memory_space<vmem>>, %arg14: memref<1x32xf32, #tpu.memory_space<vmem>>, %arg15: memref<1x32xf32, #tpu.memory_space<vmem>>, %arg16: memref<1x32xf32, #tpu.memory_space<vmem>>, %arg17: memref<1x8x32xf32, #tpu.memory_space<vmem>>, %arg18: memref<4x8x8xbf16, #tpu.memory_space<vmem>>, %arg19: memref<4x8x8xbf16, #tpu.memory_space<vmem>>, %arg20: memref<8x32xf32, #tpu.memory_space<vmem>>) attributes {dimension_semantics = [#tpu.dimension_semantics<parallel>, #tpu.dimension_semantics<arbitrary>], iteration_bounds = array<i64: 2, 1>, scalar_prefetch = 0 : i64, scratch_operands = 3 : i64, tpu.core_type = #tpu.core_type<tc>, window_params = [{transform_indices = @transform_0, window_bounds = array<i64: 1, 8, 32>}, {pipeline_mode = #tpu.pipeline_mode<synchronous>, transform_indices = @transform_1, window_bounds = array<i64: 32, 32>}, {pipeline_mode = #tpu.pipeline_mode<synchronous>, transform_indices = @transform_2, window_bounds = array<i64: 1, 32>}, {pipeline_mode = #tpu.pipeline_mode<synchronous>, transform_indices = @transform_3, window_bounds = array<i64: 32, 64>}, {pipeline_mode = #tpu.pipeline_mode<synchronous>, transform_indices = @transform_4, window_bounds = array<i64: 1, 64>}, {pipeline_mode = #tpu.pipeline_mode<synchronous>, transform_indices = @transform_5, window_bounds = array<i64: 32, 32>}, {pipeline_mode = #tpu.pipeline_mode<synchronous>, transform_indices = @transform_6, window_bounds = array<i64: 1, 32>}, {pipeline_mode = #tpu.pipeline_mode<synchronous>, transform_indices = @transform_7, window_bounds = array<i64: 1, 32>}, {pipeline_mode = #tpu.pipeline_mode<synchronous>, transform_indices = @transform_8, window_bounds = array<i64: 1, 32>}, {pipeline_mode = #tpu.pipeline_mode<synchronous>, transform_indices = @transform_9, window_bounds = array<i64: 32, 64>}, {pipeline_mode = #tpu.pipeline_mode<synchronous>, transform_indices = @transform_10, window_bounds = array<i64: 1, 64>}, {pipeline_mode = #tpu.pipeline_mode<synchronous>, transform_indices = @transform_11, window_bounds = array<i64: 64, 32>}, {pipeline_mode = #tpu.pipeline_mode<synchronous>, transform_indices = @transform_12, window_bounds = array<i64: 1, 32>}, {pipeline_mode = #tpu.pipeline_mode<synchronous>, transform_indices = @transform_13, window_bounds = array<i64: 1, 32>}, {pipeline_mode = #tpu.pipeline_mode<synchronous>, transform_indices = @transform_14, window_bounds = array<i64: 1, 32>}, {transform_indices = @transform_15, window_bounds = array<i64: 1, 8, 32>}]} {
    %c0 = arith.constant 0 : index
    %c0_0 = arith.constant 0 : index
    %0 = vector.load %arg9[%c0, %c0_0] : memref<1x32xf32, #tpu.memory_space<vmem>>, vector<1x32xf32>
    %c0_1 = arith.constant 0 : index
    %c0_2 = arith.constant 0 : index
    %1 = vector.load %arg10[%c0_1, %c0_2] : memref<1x32xf32, #tpu.memory_space<vmem>>, vector<1x32xf32>
    %c0_i32 = arith.constant 0 : i32
    %2 = arith.cmpi eq, %arg1, %c0_i32 : i32
    %3 = arith.extui %2 : i1 to i32
    %c0_i32_3 = arith.constant 0 : i32
    %4 = arith.cmpi ne, %3, %c0_i32_3 : i32
    scf.if %4 {
      %c0_92 = arith.constant 0 : index
      %c0_93 = arith.constant 0 : index
      %c0_94 = arith.constant 0 : index
      %177 = vector.load %arg2[%c0_92, %c0_93, %c0_94] : memref<1x8x32xf32, #tpu.memory_space<vmem>>, vector<1x8x32xf32>
      %178 = vector.shape_cast %177 : vector<1x8x32xf32> to vector<8x32xf32>
      %cst_95 = arith.constant dense<0.000000e+00> : vector<8xf32>
      %179 = vector.multi_reduction <add>, %178, %cst_95 [1] : vector<8x32xf32> to vector<8xf32>
      %180 = vector.shape_cast %179 : vector<8xf32> to vector<8x1xf32>
      %cst_96 = arith.constant 3.200000e+01 : f32
      %181 = vector.broadcast %cst_96 : f32 to vector<8x1xf32>
      %182 = arith.divf %180, %181 : vector<8x1xf32>
      %183 = vector.broadcast %182 : vector<8x1xf32> to vector<8x32xf32>
      %184 = arith.subf %178, %183 : vector<8x32xf32>
      %185 = arith.mulf %184, %184 : vector<8x32xf32>
      %cst_97 = arith.constant dense<0.000000e+00> : vector<8xf32>
      %186 = vector.multi_reduction <add>, %185, %cst_97 [1] : vector<8x32xf32> to vector<8xf32>
      %187 = vector.shape_cast %186 : vector<8xf32> to vector<8x1xf32>
      %cst_98 = arith.constant 3.200000e+01 : f32
      %188 = vector.broadcast %cst_98 : f32 to vector<8x1xf32>
      %189 = arith.divf %187, %188 : vector<8x1xf32>
      %190 = vector.broadcast %182 : vector<8x1xf32> to vector<8x32xf32>
      %191 = arith.subf %178, %190 : vector<8x32xf32>
      %cst_99 = arith.constant 9.99999974E-6 : f32
      %192 = vector.broadcast %cst_99 : f32 to vector<8x1xf32>
      %193 = arith.addf %189, %192 : vector<8x1xf32>
      %194 = math.rsqrt %193 : vector<8x1xf32>
      %195 = vector.broadcast %194 : vector<8x1xf32> to vector<8x32xf32>
      %196 = arith.mulf %191, %195 : vector<8x32xf32>
      %197 = vector.broadcast %0 : vector<1x32xf32> to vector<8x32xf32>
      %198 = arith.mulf %196, %197 : vector<8x32xf32>
      %199 = vector.broadcast %1 : vector<1x32xf32> to vector<8x32xf32>
      %200 = arith.addf %198, %199 : vector<8x32xf32>
      %201 = arith.truncf %200 : vector<8x32xf32> to vector<8x32xbf16>
      %c0_100 = arith.constant 0 : index
      %c0_101 = arith.constant 0 : index
      %202 = vector.load %arg5[%c0_100, %c0_101] : memref<32x64xbf16, #tpu.memory_space<vmem>>, vector<32x64xbf16>
      %cst_102 = arith.constant dense<0.000000e+00> : vector<8x64xf32>
      %203 = tpu.matmul %201, %202, %cst_102 {dimension_numbers = #tpu.dot_dimension_numbers<[1], [0], [0], [1], [0, 0, 1, 1], [], []>} : vector<8x32xbf16>, vector<32x64xbf16>, vector<8x64xf32> -> vector<8x64xf32>
      %c0_103 = arith.constant 0 : index
      %c0_104 = arith.constant 0 : index
      %204 = vector.load %arg6[%c0_103, %c0_104] : memref<1x64xf32, #tpu.memory_space<vmem>>, vector<1x64xf32>
      %205 = vector.broadcast %204 : vector<1x64xf32> to vector<8x64xf32>
      %206 = arith.addf %203, %205 : vector<8x64xf32>
      %207 = vector.extract_strided_slice %206 {offsets = [0, 0], sizes = [8, 8], strides = [1, 1]} : vector<8x64xf32> to vector<8x8xf32>
      %208 = arith.truncf %207 : vector<8x8xf32> to vector<8x8xbf16>
      %c0_105 = arith.constant 0 : index
      %c0_106 = arith.constant 0 : index
      %c0_107 = arith.constant 0 : index
      %209 = vector.load %arg18[%c0_105, %c0_106, %c0_107] : memref<4x8x8xbf16, #tpu.memory_space<vmem>>, vector<1x8x8xbf16>
      %210 = vector.shape_cast %209 : vector<1x8x8xbf16> to vector<8x8xbf16>
      %211 = vector.shape_cast %208 : vector<8x8xbf16> to vector<1x8x8xbf16>
      tpu.vector_store %arg18[%c0_105, %c0_106, %c0_107], %211 {strides = array<i32>} : memref<4x8x8xbf16, #tpu.memory_space<vmem>>, vector<1x8x8xbf16>,
      %212 = vector.extract_strided_slice %206 {offsets = [0, 32], sizes = [8, 8], strides = [1, 1]} : vector<8x64xf32> to vector<8x8xf32>
      %213 = arith.truncf %212 : vector<8x8xf32> to vector<8x8xbf16>
      %c0_108 = arith.constant 0 : index
      %c0_109 = arith.constant 0 : index
      %c0_110 = arith.constant 0 : index
      %214 = vector.load %arg19[%c0_108, %c0_109, %c0_110] : memref<4x8x8xbf16, #tpu.memory_space<vmem>>, vector<1x8x8xbf16>
      %215 = vector.shape_cast %214 : vector<1x8x8xbf16> to vector<8x8xbf16>
      %216 = vector.shape_cast %213 : vector<8x8xbf16> to vector<1x8x8xbf16>
      tpu.vector_store %arg19[%c0_108, %c0_109, %c0_110], %216 {strides = array<i32>} : memref<4x8x8xbf16, #tpu.memory_space<vmem>>, vector<1x8x8xbf16>,
      %217 = vector.extract_strided_slice %206 {offsets = [0, 8], sizes = [8, 8], strides = [1, 1]} : vector<8x64xf32> to vector<8x8xf32>
      %218 = arith.truncf %217 : vector<8x8xf32> to vector<8x8xbf16>
      %c1_111 = arith.constant 1 : index
      %c0_112 = arith.constant 0 : index
      %c0_113 = arith.constant 0 : index
      %219 = vector.load %arg18[%c1_111, %c0_112, %c0_113] : memref<4x8x8xbf16, #tpu.memory_space<vmem>>, vector<1x8x8xbf16>
      %220 = vector.shape_cast %219 : vector<1x8x8xbf16> to vector<8x8xbf16>
      %221 = vector.shape_cast %218 : vector<8x8xbf16> to vector<1x8x8xbf16>
      tpu.vector_store %arg18[%c1_111, %c0_112, %c0_113], %221 {strides = array<i32>} : memref<4x8x8xbf16, #tpu.memory_space<vmem>>, vector<1x8x8xbf16>,
      %222 = vector.extract_strided_slice %206 {offsets = [0, 40], sizes = [8, 8], strides = [1, 1]} : vector<8x64xf32> to vector<8x8xf32>
      %223 = arith.truncf %222 : vector<8x8xf32> to vector<8x8xbf16>
      %c1_114 = arith.constant 1 : index
      %c0_115 = arith.constant 0 : index
      %c0_116 = arith.constant 0 : index
      %224 = vector.load %arg19[%c1_114, %c0_115, %c0_116] : memref<4x8x8xbf16, #tpu.memory_space<vmem>>, vector<1x8x8xbf16>
      %225 = vector.shape_cast %224 : vector<1x8x8xbf16> to vector<8x8xbf16>
      %226 = vector.shape_cast %223 : vector<8x8xbf16> to vector<1x8x8xbf16>
      tpu.vector_store %arg19[%c1_114, %c0_115, %c0_116], %226 {strides = array<i32>} : memref<4x8x8xbf16, #tpu.memory_space<vmem>>, vector<1x8x8xbf16>,
      %227 = vector.extract_strided_slice %206 {offsets = [0, 16], sizes = [8, 8], strides = [1, 1]} : vector<8x64xf32> to vector<8x8xf32>
      %228 = arith.truncf %227 : vector<8x8xf32> to vector<8x8xbf16>
      %c2_117 = arith.constant 2 : index
      %c0_118 = arith.constant 0 : index
      %c0_119 = arith.constant 0 : index
      %229 = vector.load %arg18[%c2_117, %c0_118, %c0_119] : memref<4x8x8xbf16, #tpu.memory_space<vmem>>, vector<1x8x8xbf16>
      %230 = vector.shape_cast %229 : vector<1x8x8xbf16> to vector<8x8xbf16>
      %231 = vector.shape_cast %228 : vector<8x8xbf16> to vector<1x8x8xbf16>
      tpu.vector_store %arg18[%c2_117, %c0_118, %c0_119], %231 {strides = array<i32>} : memref<4x8x8xbf16, #tpu.memory_space<vmem>>, vector<1x8x8xbf16>,
      %232 = vector.extract_strided_slice %206 {offsets = [0, 48], sizes = [8, 8], strides = [1, 1]} : vector<8x64xf32> to vector<8x8xf32>
      %233 = arith.truncf %232 : vector<8x8xf32> to vector<8x8xbf16>
      %c2_120 = arith.constant 2 : index
      %c0_121 = arith.constant 0 : index
      %c0_122 = arith.constant 0 : index
      %234 = vector.load %arg19[%c2_120, %c0_121, %c0_122] : memref<4x8x8xbf16, #tpu.memory_space<vmem>>, vector<1x8x8xbf16>
      %235 = vector.shape_cast %234 : vector<1x8x8xbf16> to vector<8x8xbf16>
      %236 = vector.shape_cast %233 : vector<8x8xbf16> to vector<1x8x8xbf16>
      tpu.vector_store %arg19[%c2_120, %c0_121, %c0_122], %236 {strides = array<i32>} : memref<4x8x8xbf16, #tpu.memory_space<vmem>>, vector<1x8x8xbf16>,
      %237 = vector.extract_strided_slice %206 {offsets = [0, 24], sizes = [8, 8], strides = [1, 1]} : vector<8x64xf32> to vector<8x8xf32>
      %238 = arith.truncf %237 : vector<8x8xf32> to vector<8x8xbf16>
      %c3_123 = arith.constant 3 : index
      %c0_124 = arith.constant 0 : index
      %c0_125 = arith.constant 0 : index
      %239 = vector.load %arg18[%c3_123, %c0_124, %c0_125] : memref<4x8x8xbf16, #tpu.memory_space<vmem>>, vector<1x8x8xbf16>
      %240 = vector.shape_cast %239 : vector<1x8x8xbf16> to vector<8x8xbf16>
      %241 = vector.shape_cast %238 : vector<8x8xbf16> to vector<1x8x8xbf16>
      tpu.vector_store %arg18[%c3_123, %c0_124, %c0_125], %241 {strides = array<i32>} : memref<4x8x8xbf16, #tpu.memory_space<vmem>>, vector<1x8x8xbf16>,
      %242 = vector.extract_strided_slice %206 {offsets = [0, 56], sizes = [8, 8], strides = [1, 1]} : vector<8x64xf32> to vector<8x8xf32>
      %243 = arith.truncf %242 : vector<8x8xf32> to vector<8x8xbf16>
      %c3_126 = arith.constant 3 : index
      %c0_127 = arith.constant 0 : index
      %c0_128 = arith.constant 0 : index
      %244 = vector.load %arg19[%c3_126, %c0_127, %c0_128] : memref<4x8x8xbf16, #tpu.memory_space<vmem>>, vector<1x8x8xbf16>
      %245 = vector.shape_cast %244 : vector<1x8x8xbf16> to vector<8x8xbf16>
      %246 = vector.shape_cast %243 : vector<8x8xbf16> to vector<1x8x8xbf16>
      tpu.vector_store %arg19[%c3_126, %c0_127, %c0_128], %246 {strides = array<i32>} : memref<4x8x8xbf16, #tpu.memory_space<vmem>>, vector<1x8x8xbf16>,
    } else {
    }
    %c0_4 = arith.constant 0 : index
    %c0_5 = arith.constant 0 : index
    %c0_6 = arith.constant 0 : index
    %5 = vector.load %arg2[%c0_4, %c0_5, %c0_6] : memref<1x8x32xf32, #tpu.memory_space<vmem>>, vector<1x8x32xf32>
    %6 = vector.shape_cast %5 : vector<1x8x32xf32> to vector<8x32xf32>
    %cst = arith.constant dense<0.000000e+00> : vector<8xf32>
    %7 = vector.multi_reduction <add>, %6, %cst [1] : vector<8x32xf32> to vector<8xf32>
    %8 = vector.shape_cast %7 : vector<8xf32> to vector<8x1xf32>
    %cst_7 = arith.constant 3.200000e+01 : f32
    %9 = vector.broadcast %cst_7 : f32 to vector<8x1xf32>
    %10 = arith.divf %8, %9 : vector<8x1xf32>
    %11 = vector.broadcast %10 : vector<8x1xf32> to vector<8x32xf32>
    %12 = arith.subf %6, %11 : vector<8x32xf32>
    %13 = arith.mulf %12, %12 : vector<8x32xf32>
    %cst_8 = arith.constant dense<0.000000e+00> : vector<8xf32>
    %14 = vector.multi_reduction <add>, %13, %cst_8 [1] : vector<8x32xf32> to vector<8xf32>
    %15 = vector.shape_cast %14 : vector<8xf32> to vector<8x1xf32>
    %cst_9 = arith.constant 3.200000e+01 : f32
    %16 = vector.broadcast %cst_9 : f32 to vector<8x1xf32>
    %17 = arith.divf %15, %16 : vector<8x1xf32>
    %18 = vector.broadcast %10 : vector<8x1xf32> to vector<8x32xf32>
    %19 = arith.subf %6, %18 : vector<8x32xf32>
    %cst_10 = arith.constant 9.99999974E-6 : f32
    %20 = vector.broadcast %cst_10 : f32 to vector<8x1xf32>
    %21 = arith.addf %17, %20 : vector<8x1xf32>
    %22 = math.rsqrt %21 : vector<8x1xf32>
    %23 = vector.broadcast %22 : vector<8x1xf32> to vector<8x32xf32>
    %24 = arith.mulf %19, %23 : vector<8x32xf32>
    %25 = vector.broadcast %0 : vector<1x32xf32> to vector<8x32xf32>
    %26 = arith.mulf %24, %25 : vector<8x32xf32>
    %27 = vector.broadcast %1 : vector<1x32xf32> to vector<8x32xf32>
    %28 = arith.addf %26, %27 : vector<8x32xf32>
    %29 = arith.truncf %28 : vector<8x32xf32> to vector<8x32xbf16>
    %c0_11 = arith.constant 0 : index
    %c0_12 = arith.constant 0 : index
    %30 = vector.load %arg3[%c0_11, %c0_12] : memref<32x32xbf16, #tpu.memory_space<vmem>>, vector<32x32xbf16>
    %cst_13 = arith.constant dense<0.000000e+00> : vector<8x32xf32>
    %31 = tpu.matmul %29, %30, %cst_13 {dimension_numbers = #tpu.dot_dimension_numbers<[1], [0], [0], [1], [0, 0, 1, 1], [], []>} : vector<8x32xbf16>, vector<32x32xbf16>, vector<8x32xf32> -> vector<8x32xf32>
    %c0_14 = arith.constant 0 : index
    %c0_15 = arith.constant 0 : index
    %32 = vector.load %arg4[%c0_14, %c0_15] : memref<1x32xf32, #tpu.memory_space<vmem>>, vector<1x32xf32>
    %33 = vector.broadcast %32 : vector<1x32xf32> to vector<8x32xf32>
    %34 = arith.addf %31, %33 : vector<8x32xf32>
    %35 = vector.extract_strided_slice %34 {offsets = [0, 0], sizes = [8, 8], strides = [1, 1]} : vector<8x32xf32> to vector<8x8xf32>
    %36 = arith.truncf %35 : vector<8x8xf32> to vector<8x8xbf16>
    %c0_16 = arith.constant 0 : index
    %c0_17 = arith.constant 0 : index
    %c0_18 = arith.constant 0 : index
    %37 = vector.load %arg18[%c0_16, %c0_17, %c0_18] : memref<4x8x8xbf16, #tpu.memory_space<vmem>>, vector<1x8x8xbf16>
    %38 = vector.shape_cast %37 : vector<1x8x8xbf16> to vector<8x8xbf16>
    %c0_19 = arith.constant 0 : index
    %c0_20 = arith.constant 0 : index
    %c0_21 = arith.constant 0 : index
    %39 = vector.load %arg19[%c0_19, %c0_20, %c0_21] : memref<4x8x8xbf16, #tpu.memory_space<vmem>>, vector<1x8x8xbf16>
    %40 = vector.shape_cast %39 : vector<1x8x8xbf16> to vector<8x8xbf16>
    %41 = tpu.transpose %38, [1, 0] : vector<8x8xbf16> -> vector<8x8xbf16>
    %cst_22 = arith.constant dense<0.000000e+00> : vector<8x8xf32>
    %42 = tpu.matmul %36, %41, %cst_22 {dimension_numbers = #tpu.dot_dimension_numbers<[1], [0], [0], [1], [0, 0, 1, 1], [], []>} : vector<8x8xbf16>, vector<8x8xbf16>, vector<8x8xf32> -> vector<8x8xf32>
    %cst_23 = arith.constant 0.353553385 : f32
    %43 = vector.broadcast %cst_23 : f32 to vector<8x8xf32>
    %44 = arith.mulf %42, %43 : vector<8x8xf32>
    %cst_24 = arith.constant dense<0xFF800000> : vector<8xf32>
    %45 = vector.multi_reduction <maximumf>, %44, %cst_24 [1] : vector<8x8xf32> to vector<8xf32>
    %46 = vector.shape_cast %45 : vector<8xf32> to vector<8x1xf32>
    %47 = vector.broadcast %46 : vector<8x1xf32> to vector<8x8xf32>
    %48 = arith.subf %44, %47 : vector<8x8xf32>
    %49 = math.exp %48 : vector<8x8xf32>
    %cst_25 = arith.constant dense<0.000000e+00> : vector<8xf32>
    %50 = vector.multi_reduction <add>, %49, %cst_25 [1] : vector<8x8xf32> to vector<8xf32>
    %51 = vector.shape_cast %50 : vector<8xf32> to vector<8x1xf32>
    %52 = arith.truncf %49 : vector<8x8xf32> to vector<8x8xbf16>
    %cst_26 = arith.constant dense<0.000000e+00> : vector<8x8xf32>
    %53 = tpu.matmul %52, %40, %cst_26 {dimension_numbers = #tpu.dot_dimension_numbers<[1], [0], [0], [1], [0, 0, 1, 1], [], []>} : vector<8x8xbf16>, vector<8x8xbf16>, vector<8x8xf32> -> vector<8x8xf32>
    %54 = tpu.reciprocal %51 {approx = true} : vector<8x1xf32> -> vector<8x1xf32>
    %55 = vector.broadcast %54 : vector<8x1xf32> to vector<8x8xf32>
    %56 = arith.mulf %53, %55 : vector<8x8xf32>
    %c0_27 = arith.constant 0 : index
    %c0_28 = arith.constant 0 : index
    %57 = vector.load %arg20[%c0_27, %c0_28] : memref<8x32xf32, #tpu.memory_space<vmem>>, vector<8x8xf32>
    tpu.vector_store %arg20[%c0_27, %c0_28], %56 {strides = array<i32>} : memref<8x32xf32, #tpu.memory_space<vmem>>, vector<8x8xf32>,
    %58 = vector.extract_strided_slice %34 {offsets = [0, 8], sizes = [8, 8], strides = [1, 1]} : vector<8x32xf32> to vector<8x8xf32>
    %59 = arith.truncf %58 : vector<8x8xf32> to vector<8x8xbf16>
    %c1 = arith.constant 1 : index
    %c0_29 = arith.constant 0 : index
    %c0_30 = arith.constant 0 : index
    %60 = vector.load %arg18[%c1, %c0_29, %c0_30] : memref<4x8x8xbf16, #tpu.memory_space<vmem>>, vector<1x8x8xbf16>
    %61 = vector.shape_cast %60 : vector<1x8x8xbf16> to vector<8x8xbf16>
    %c1_31 = arith.constant 1 : index
    %c0_32 = arith.constant 0 : index
    %c0_33 = arith.constant 0 : index
    %62 = vector.load %arg19[%c1_31, %c0_32, %c0_33] : memref<4x8x8xbf16, #tpu.memory_space<vmem>>, vector<1x8x8xbf16>
    %63 = vector.shape_cast %62 : vector<1x8x8xbf16> to vector<8x8xbf16>
    %64 = tpu.transpose %61, [1, 0] : vector<8x8xbf16> -> vector<8x8xbf16>
    %cst_34 = arith.constant dense<0.000000e+00> : vector<8x8xf32>
    %65 = tpu.matmul %59, %64, %cst_34 {dimension_numbers = #tpu.dot_dimension_numbers<[1], [0], [0], [1], [0, 0, 1, 1], [], []>} : vector<8x8xbf16>, vector<8x8xbf16>, vector<8x8xf32> -> vector<8x8xf32>
    %cst_35 = arith.constant 0.353553385 : f32
    %66 = vector.broadcast %cst_35 : f32 to vector<8x8xf32>
    %67 = arith.mulf %65, %66 : vector<8x8xf32>
    %cst_36 = arith.constant dense<0xFF800000> : vector<8xf32>
    %68 = vector.multi_reduction <maximumf>, %67, %cst_36 [1] : vector<8x8xf32> to vector<8xf32>
    %69 = vector.shape_cast %68 : vector<8xf32> to vector<8x1xf32>
    %70 = vector.broadcast %69 : vector<8x1xf32> to vector<8x8xf32>
    %71 = arith.subf %67, %70 : vector<8x8xf32>
    %72 = math.exp %71 : vector<8x8xf32>
    %cst_37 = arith.constant dense<0.000000e+00> : vector<8xf32>
    %73 = vector.multi_reduction <add>, %72, %cst_37 [1] : vector<8x8xf32> to vector<8xf32>
    %74 = vector.shape_cast %73 : vector<8xf32> to vector<8x1xf32>
    %75 = arith.truncf %72 : vector<8x8xf32> to vector<8x8xbf16>
    %cst_38 = arith.constant dense<0.000000e+00> : vector<8x8xf32>
    %76 = tpu.matmul %75, %63, %cst_38 {dimension_numbers = #tpu.dot_dimension_numbers<[1], [0], [0], [1], [0, 0, 1, 1], [], []>} : vector<8x8xbf16>, vector<8x8xbf16>, vector<8x8xf32> -> vector<8x8xf32>
    %77 = tpu.reciprocal %74 {approx = true} : vector<8x1xf32> -> vector<8x1xf32>
    %78 = vector.broadcast %77 : vector<8x1xf32> to vector<8x8xf32>
    %79 = arith.mulf %76, %78 : vector<8x8xf32>
    %c0_39 = arith.constant 0 : index
    %c8 = arith.constant 8 : index
    %80 = vector.load %arg20[%c0_39, %c8] : memref<8x32xf32, #tpu.memory_space<vmem>>, vector<8x8xf32>
    tpu.vector_store %arg20[%c0_39, %c8], %79 {strides = array<i32>} : memref<8x32xf32, #tpu.memory_space<vmem>>, vector<8x8xf32>,
    %81 = vector.extract_strided_slice %34 {offsets = [0, 16], sizes = [8, 8], strides = [1, 1]} : vector<8x32xf32> to vector<8x8xf32>
    %82 = arith.truncf %81 : vector<8x8xf32> to vector<8x8xbf16>
    %c2 = arith.constant 2 : index
    %c0_40 = arith.constant 0 : index
    %c0_41 = arith.constant 0 : index
    %83 = vector.load %arg18[%c2, %c0_40, %c0_41] : memref<4x8x8xbf16, #tpu.memory_space<vmem>>, vector<1x8x8xbf16>
    %84 = vector.shape_cast %83 : vector<1x8x8xbf16> to vector<8x8xbf16>
    %c2_42 = arith.constant 2 : index
    %c0_43 = arith.constant 0 : index
    %c0_44 = arith.constant 0 : index
    %85 = vector.load %arg19[%c2_42, %c0_43, %c0_44] : memref<4x8x8xbf16, #tpu.memory_space<vmem>>, vector<1x8x8xbf16>
    %86 = vector.shape_cast %85 : vector<1x8x8xbf16> to vector<8x8xbf16>
    %87 = tpu.transpose %84, [1, 0] : vector<8x8xbf16> -> vector<8x8xbf16>
    %cst_45 = arith.constant dense<0.000000e+00> : vector<8x8xf32>
    %88 = tpu.matmul %82, %87, %cst_45 {dimension_numbers = #tpu.dot_dimension_numbers<[1], [0], [0], [1], [0, 0, 1, 1], [], []>} : vector<8x8xbf16>, vector<8x8xbf16>, vector<8x8xf32> -> vector<8x8xf32>
    %cst_46 = arith.constant 0.353553385 : f32
    %89 = vector.broadcast %cst_46 : f32 to vector<8x8xf32>
    %90 = arith.mulf %88, %89 : vector<8x8xf32>
    %cst_47 = arith.constant dense<0xFF800000> : vector<8xf32>
    %91 = vector.multi_reduction <maximumf>, %90, %cst_47 [1] : vector<8x8xf32> to vector<8xf32>
    %92 = vector.shape_cast %91 : vector<8xf32> to vector<8x1xf32>
    %93 = vector.broadcast %92 : vector<8x1xf32> to vector<8x8xf32>
    %94 = arith.subf %90, %93 : vector<8x8xf32>
    %95 = math.exp %94 : vector<8x8xf32>
    %cst_48 = arith.constant dense<0.000000e+00> : vector<8xf32>
    %96 = vector.multi_reduction <add>, %95, %cst_48 [1] : vector<8x8xf32> to vector<8xf32>
    %97 = vector.shape_cast %96 : vector<8xf32> to vector<8x1xf32>
    %98 = arith.truncf %95 : vector<8x8xf32> to vector<8x8xbf16>
    %cst_49 = arith.constant dense<0.000000e+00> : vector<8x8xf32>
    %99 = tpu.matmul %98, %86, %cst_49 {dimension_numbers = #tpu.dot_dimension_numbers<[1], [0], [0], [1], [0, 0, 1, 1], [], []>} : vector<8x8xbf16>, vector<8x8xbf16>, vector<8x8xf32> -> vector<8x8xf32>
    %100 = tpu.reciprocal %97 {approx = true} : vector<8x1xf32> -> vector<8x1xf32>
    %101 = vector.broadcast %100 : vector<8x1xf32> to vector<8x8xf32>
    %102 = arith.mulf %99, %101 : vector<8x8xf32>
    %c0_50 = arith.constant 0 : index
    %c16 = arith.constant 16 : index
    %103 = vector.load %arg20[%c0_50, %c16] : memref<8x32xf32, #tpu.memory_space<vmem>>, vector<8x8xf32>
    tpu.vector_store %arg20[%c0_50, %c16], %102 {strides = array<i32>} : memref<8x32xf32, #tpu.memory_space<vmem>>, vector<8x8xf32>,
    %104 = vector.extract_strided_slice %34 {offsets = [0, 24], sizes = [8, 8], strides = [1, 1]} : vector<8x32xf32> to vector<8x8xf32>
    %105 = arith.truncf %104 : vector<8x8xf32> to vector<8x8xbf16>
    %c3 = arith.constant 3 : index
    %c0_51 = arith.constant 0 : index
    %c0_52 = arith.constant 0 : index
    %106 = vector.load %arg18[%c3, %c0_51, %c0_52] : memref<4x8x8xbf16, #tpu.memory_space<vmem>>, vector<1x8x8xbf16>
    %107 = vector.shape_cast %106 : vector<1x8x8xbf16> to vector<8x8xbf16>
    %c3_53 = arith.constant 3 : index
    %c0_54 = arith.constant 0 : index
    %c0_55 = arith.constant 0 : index
    %108 = vector.load %arg19[%c3_53, %c0_54, %c0_55] : memref<4x8x8xbf16, #tpu.memory_space<vmem>>, vector<1x8x8xbf16>
    %109 = vector.shape_cast %108 : vector<1x8x8xbf16> to vector<8x8xbf16>
    %110 = tpu.transpose %107, [1, 0] : vector<8x8xbf16> -> vector<8x8xbf16>
    %cst_56 = arith.constant dense<0.000000e+00> : vector<8x8xf32>
    %111 = tpu.matmul %105, %110, %cst_56 {dimension_numbers = #tpu.dot_dimension_numbers<[1], [0], [0], [1], [0, 0, 1, 1], [], []>} : vector<8x8xbf16>, vector<8x8xbf16>, vector<8x8xf32> -> vector<8x8xf32>
    %cst_57 = arith.constant 0.353553385 : f32
    %112 = vector.broadcast %cst_57 : f32 to vector<8x8xf32>
    %113 = arith.mulf %111, %112 : vector<8x8xf32>
    %cst_58 = arith.constant dense<0xFF800000> : vector<8xf32>
    %114 = vector.multi_reduction <maximumf>, %113, %cst_58 [1] : vector<8x8xf32> to vector<8xf32>
    %115 = vector.shape_cast %114 : vector<8xf32> to vector<8x1xf32>
    %116 = vector.broadcast %115 : vector<8x1xf32> to vector<8x8xf32>
    %117 = arith.subf %113, %116 : vector<8x8xf32>
    %118 = math.exp %117 : vector<8x8xf32>
    %cst_59 = arith.constant dense<0.000000e+00> : vector<8xf32>
    %119 = vector.multi_reduction <add>, %118, %cst_59 [1] : vector<8x8xf32> to vector<8xf32>
    %120 = vector.shape_cast %119 : vector<8xf32> to vector<8x1xf32>
    %121 = arith.truncf %118 : vector<8x8xf32> to vector<8x8xbf16>
    %cst_60 = arith.constant dense<0.000000e+00> : vector<8x8xf32>
    %122 = tpu.matmul %121, %109, %cst_60 {dimension_numbers = #tpu.dot_dimension_numbers<[1], [0], [0], [1], [0, 0, 1, 1], [], []>} : vector<8x8xbf16>, vector<8x8xbf16>, vector<8x8xf32> -> vector<8x8xf32>
    %123 = tpu.reciprocal %120 {approx = true} : vector<8x1xf32> -> vector<8x1xf32>
    %124 = vector.broadcast %123 : vector<8x1xf32> to vector<8x8xf32>
    %125 = arith.mulf %122, %124 : vector<8x8xf32>
    %c0_61 = arith.constant 0 : index
    %c24 = arith.constant 24 : index
    %126 = vector.load %arg20[%c0_61, %c24] : memref<8x32xf32, #tpu.memory_space<vmem>>, vector<8x8xf32>
    tpu.vector_store %arg20[%c0_61, %c24], %125 {strides = array<i32>} : memref<8x32xf32, #tpu.memory_space<vmem>>, vector<8x8xf32>,
    %c0_62 = arith.constant 0 : index
    %c0_63 = arith.constant 0 : index
    %127 = vector.load %arg20[%c0_62, %c0_63] : memref<8x32xf32, #tpu.memory_space<vmem>>, vector<8x32xf32>
    %128 = arith.truncf %127 : vector<8x32xf32> to vector<8x32xbf16>
    %c0_64 = arith.constant 0 : index
    %c0_65 = arith.constant 0 : index
    %129 = vector.load %arg7[%c0_64, %c0_65] : memref<32x32xbf16, #tpu.memory_space<vmem>>, vector<32x32xbf16>
    %cst_66 = arith.constant dense<0.000000e+00> : vector<8x32xf32>
    %130 = tpu.matmul %128, %129, %cst_66 {dimension_numbers = #tpu.dot_dimension_numbers<[1], [0], [0], [1], [0, 0, 1, 1], [], []>} : vector<8x32xbf16>, vector<32x32xbf16>, vector<8x32xf32> -> vector<8x32xf32>
    %c0_67 = arith.constant 0 : index
    %c0_68 = arith.constant 0 : index
    %131 = vector.load %arg8[%c0_67, %c0_68] : memref<1x32xf32, #tpu.memory_space<vmem>>, vector<1x32xf32>
    %132 = vector.broadcast %131 : vector<1x32xf32> to vector<8x32xf32>
    %133 = arith.addf %130, %132 : vector<8x32xf32>
    %134 = arith.addf %6, %133 : vector<8x32xf32>
    %c0_69 = arith.constant 0 : index
    %c0_70 = arith.constant 0 : index
    %135 = vector.load %arg15[%c0_69, %c0_70] : memref<1x32xf32, #tpu.memory_space<vmem>>, vector<1x32xf32>
    %c0_71 = arith.constant 0 : index
    %c0_72 = arith.constant 0 : index
    %136 = vector.load %arg16[%c0_71, %c0_72] : memref<1x32xf32, #tpu.memory_space<vmem>>, vector<1x32xf32>
    %cst_73 = arith.constant dense<0.000000e+00> : vector<8xf32>
    %137 = vector.multi_reduction <add>, %134, %cst_73 [1] : vector<8x32xf32> to vector<8xf32>
    %138 = vector.shape_cast %137 : vector<8xf32> to vector<8x1xf32>
    %cst_74 = arith.constant 3.200000e+01 : f32
    %139 = vector.broadcast %cst_74 : f32 to vector<8x1xf32>
    %140 = arith.divf %138, %139 : vector<8x1xf32>
    %141 = vector.broadcast %140 : vector<8x1xf32> to vector<8x32xf32>
    %142 = arith.subf %134, %141 : vector<8x32xf32>
    %143 = arith.mulf %142, %142 : vector<8x32xf32>
    %cst_75 = arith.constant dense<0.000000e+00> : vector<8xf32>
    %144 = vector.multi_reduction <add>, %143, %cst_75 [1] : vector<8x32xf32> to vector<8xf32>
    %145 = vector.shape_cast %144 : vector<8xf32> to vector<8x1xf32>
    %cst_76 = arith.constant 3.200000e+01 : f32
    %146 = vector.broadcast %cst_76 : f32 to vector<8x1xf32>
    %147 = arith.divf %145, %146 : vector<8x1xf32>
    %148 = vector.broadcast %140 : vector<8x1xf32> to vector<8x32xf32>
    %149 = arith.subf %134, %148 : vector<8x32xf32>
    %cst_77 = arith.constant 9.99999974E-6 : f32
    %150 = vector.broadcast %cst_77 : f32 to vector<8x1xf32>
    %151 = arith.addf %147, %150 : vector<8x1xf32>
    %152 = math.rsqrt %151 : vector<8x1xf32>
    %153 = vector.broadcast %152 : vector<8x1xf32> to vector<8x32xf32>
    %154 = arith.mulf %149, %153 : vector<8x32xf32>
    %155 = vector.broadcast %135 : vector<1x32xf32> to vector<8x32xf32>
    %156 = arith.mulf %154, %155 : vector<8x32xf32>
    %157 = vector.broadcast %136 : vector<1x32xf32> to vector<8x32xf32>
    %158 = arith.addf %156, %157 : vector<8x32xf32>
    %159 = arith.truncf %158 : vector<8x32xf32> to vector<8x32xbf16>
    %c0_78 = arith.constant 0 : index
    %c0_79 = arith.constant 0 : index
    %160 = vector.load %arg11[%c0_78, %c0_79] : memref<32x64xbf16, #tpu.memory_space<vmem>>, vector<32x64xbf16>
    %cst_80 = arith.constant dense<0.000000e+00> : vector<8x64xf32>
    %161 = tpu.matmul %159, %160, %cst_80 {dimension_numbers = #tpu.dot_dimension_numbers<[1], [0], [0], [1], [0, 0, 1, 1], [], []>} : vector<8x32xbf16>, vector<32x64xbf16>, vector<8x64xf32> -> vector<8x64xf32>
    %c0_81 = arith.constant 0 : index
    %c0_82 = arith.constant 0 : index
    %162 = vector.load %arg12[%c0_81, %c0_82] : memref<1x64xf32, #tpu.memory_space<vmem>>, vector<1x64xf32>
    %163 = vector.broadcast %162 : vector<1x64xf32> to vector<8x64xf32>
    %164 = arith.addf %161, %163 : vector<8x64xf32>
    %cst_83 = arith.constant 0.000000e+00 : f32
    %165 = vector.broadcast %cst_83 : f32 to vector<8x64xf32>
    %166 = arith.maximumf %164, %165 : vector<8x64xf32>
    %167 = arith.truncf %166 : vector<8x64xf32> to vector<8x64xbf16>
    %c0_84 = arith.constant 0 : index
    %c0_85 = arith.constant 0 : index
    %168 = vector.load %arg13[%c0_84, %c0_85] : memref<64x32xbf16, #tpu.memory_space<vmem>>, vector<64x32xbf16>
    %cst_86 = arith.constant dense<0.000000e+00> : vector<8x32xf32>
    %169 = tpu.matmul %167, %168, %cst_86 {dimension_numbers = #tpu.dot_dimension_numbers<[1], [0], [0], [1], [0, 0, 1, 1], [], []>} : vector<8x64xbf16>, vector<64x32xbf16>, vector<8x32xf32> -> vector<8x32xf32>
    %c0_87 = arith.constant 0 : index
    %c0_88 = arith.constant 0 : index
    %170 = vector.load %arg14[%c0_87, %c0_88] : memref<1x32xf32, #tpu.memory_space<vmem>>, vector<1x32xf32>
    %171 = vector.broadcast %170 : vector<1x32xf32> to vector<8x32xf32>
    %172 = arith.addf %169, %171 : vector<8x32xf32>
    %173 = arith.addf %134, %172 : vector<8x32xf32>
    %c0_89 = arith.constant 0 : index
    %c0_90 = arith.constant 0 : index
    %c0_91 = arith.constant 0 : index
    %174 = vector.load %arg17[%c0_89, %c0_90, %c0_91] : memref<1x8x32xf32, #tpu.memory_space<vmem>>, vector<1x8x32xf32>
    %175 = vector.shape_cast %174 : vector<1x8x32xf32> to vector<8x32xf32>
    %176 = vector.shape_cast %173 : vector<8x32xf32> to vector<1x8x32xf32>
    tpu.vector_store %arg17[%c0_89, %c0_90, %c0_91], %176 {strides = array<i32>} : memref<1x8x32xf32, #tpu.memory_space<vmem>>, vector<1x8x32xf32>,
    return
  }
  func.func @transform_0(%arg0: i32, %arg1: i32) -> (i32, i32, i32) {
    %c0_i32 = arith.constant 0 : i32
    %c0_i32_0 = arith.constant 0 : i32
    %c0_i32_1 = arith.constant 0 : i32
    return %arg0, %c0_i32, %c0_i32_0 : i32, i32, i32
  }
  func.func @transform_1(%arg0: i32, %arg1: i32) -> (i32, i32) {
    %c0_i32 = arith.constant 0 : i32
    %c0_i32_0 = arith.constant 0 : i32
    %c0_i32_1 = arith.constant 0 : i32
    return %c0_i32, %c0_i32_0 : i32, i32
  }
  func.func @transform_2(%arg0: i32, %arg1: i32) -> (i32, i32) {
    %c0_i32 = arith.constant 0 : i32
    %c0_i32_0 = arith.constant 0 : i32
    %c0_i32_1 = arith.constant 0 : i32
    return %c0_i32, %c0_i32_0 : i32, i32
  }
  func.func @transform_3(%arg0: i32, %arg1: i32) -> (i32, i32) {
    %c0_i32 = arith.constant 0 : i32
    %c0_i32_0 = arith.constant 0 : i32
    %c0_i32_1 = arith.constant 0 : i32
    return %c0_i32, %c0_i32_0 : i32, i32
  }
  func.func @transform_4(%arg0: i32, %arg1: i32) -> (i32, i32) {
    %c0_i32 = arith.constant 0 : i32
    %c0_i32_0 = arith.constant 0 : i32
    %c0_i32_1 = arith.constant 0 : i32
    return %c0_i32, %c0_i32_0 : i32, i32
  }
  func.func @transform_5(%arg0: i32, %arg1: i32) -> (i32, i32) {
    %c0_i32 = arith.constant 0 : i32
    %c0_i32_0 = arith.constant 0 : i32
    %c0_i32_1 = arith.constant 0 : i32
    return %c0_i32, %c0_i32_0 : i32, i32
  }
  func.func @transform_6(%arg0: i32, %arg1: i32) -> (i32, i32) {
    %c0_i32 = arith.constant 0 : i32
    %c0_i32_0 = arith.constant 0 : i32
    %c0_i32_1 = arith.constant 0 : i32
    return %c0_i32, %c0_i32_0 : i32, i32
  }
  func.func @transform_7(%arg0: i32, %arg1: i32) -> (i32, i32) {
    %c0_i32 = arith.constant 0 : i32
    %c0_i32_0 = arith.constant 0 : i32
    %c0_i32_1 = arith.constant 0 : i32
    return %c0_i32, %c0_i32_0 : i32, i32
  }
  func.func @transform_8(%arg0: i32, %arg1: i32) -> (i32, i32) {
    %c0_i32 = arith.constant 0 : i32
    %c0_i32_0 = arith.constant 0 : i32
    %c0_i32_1 = arith.constant 0 : i32
    return %c0_i32, %c0_i32_0 : i32, i32
  }
  func.func @transform_9(%arg0: i32, %arg1: i32) -> (i32, i32) {
    %c0_i32 = arith.constant 0 : i32
    %c0_i32_0 = arith.constant 0 : i32
    %c0_i32_1 = arith.constant 0 : i32
    return %c0_i32, %c0_i32_0 : i32, i32
  }
  func.func @transform_10(%arg0: i32, %arg1: i32) -> (i32, i32) {
    %c0_i32 = arith.constant 0 : i32
    %c0_i32_0 = arith.constant 0 : i32
    %c0_i32_1 = arith.constant 0 : i32
    return %c0_i32, %c0_i32_0 : i32, i32
  }
  func.func @transform_11(%arg0: i32, %arg1: i32) -> (i32, i32) {
    %c0_i32 = arith.constant 0 : i32
    %c0_i32_0 = arith.constant 0 : i32
    %c0_i32_1 = arith.constant 0 : i32
    return %c0_i32, %c0_i32_0 : i32, i32
  }
  func.func @transform_12(%arg0: i32, %arg1: i32) -> (i32, i32) {
    %c0_i32 = arith.constant 0 : i32
    %c0_i32_0 = arith.constant 0 : i32
    %c0_i32_1 = arith.constant 0 : i32
    return %c0_i32, %c0_i32_0 : i32, i32
  }
  func.func @transform_13(%arg0: i32, %arg1: i32) -> (i32, i32) {
    %c0_i32 = arith.constant 0 : i32
    %c0_i32_0 = arith.constant 0 : i32
    %c0_i32_1 = arith.constant 0 : i32
    return %c0_i32, %c0_i32_0 : i32, i32
  }
  func.func @transform_14(%arg0: i32, %arg1: i32) -> (i32, i32) {
    %c0_i32 = arith.constant 0 : i32
    %c0_i32_0 = arith.constant 0 : i32
    %c0_i32_1 = arith.constant 0 : i32
    return %c0_i32, %c0_i32_0 : i32, i32
  }
  func.func @transform_15(%arg0: i32, %arg1: i32) -> (i32, i32, i32) {
    %c0_i32 = arith.constant 0 : i32
    %c0_i32_0 = arith.constant 0 : i32
    return %arg0, %arg1, %c0_i32 : i32, i32, i32
  }
}

module attributes {stable_mosaic.version = 11 : i64} {
  func.func @encoder_layer_kernel(%arg0: i32, %arg1: i32, %arg2: memref<1x8x32xf32, #tpu.memory_space<vmem>>, %arg3: memref<32x32xf32, #tpu.memory_space<vmem>>, %arg4: memref<1x32xf32, #tpu.memory_space<vmem>>, %arg5: memref<32x64xf32, #tpu.memory_space<vmem>>, %arg6: memref<1x64xf32, #tpu.memory_space<vmem>>, %arg7: memref<32x32xf32, #tpu.memory_space<vmem>>, %arg8: memref<1x32xf32, #tpu.memory_space<vmem>>, %arg9: memref<1x32xf32, #tpu.memory_space<vmem>>, %arg10: memref<1x32xf32, #tpu.memory_space<vmem>>, %arg11: memref<32x64xf32, #tpu.memory_space<vmem>>, %arg12: memref<1x64xf32, #tpu.memory_space<vmem>>, %arg13: memref<64x32xf32, #tpu.memory_space<vmem>>, %arg14: memref<1x32xf32, #tpu.memory_space<vmem>>, %arg15: memref<1x32xf32, #tpu.memory_space<vmem>>, %arg16: memref<1x32xf32, #tpu.memory_space<vmem>>, %arg17: memref<1x8x32xf32, #tpu.memory_space<vmem>>, %arg18: memref<4x8x8xf32, #tpu.memory_space<vmem>>, %arg19: memref<4x8x8xf32, #tpu.memory_space<vmem>>, %arg20: memref<8x32xf32, #tpu.memory_space<vmem>>) attributes {dimension_semantics = [#tpu.dimension_semantics<parallel>, #tpu.dimension_semantics<arbitrary>], iteration_bounds = array<i64: 2, 1>, scalar_prefetch = 0 : i64, scratch_operands = 3 : i64, tpu.core_type = #tpu.core_type<tc>, window_params = [{transform_indices = @transform_0, window_bounds = array<i64: 1, 8, 32>}, {pipeline_mode = #tpu.pipeline_mode<synchronous>, transform_indices = @transform_1, window_bounds = array<i64: 32, 32>}, {pipeline_mode = #tpu.pipeline_mode<synchronous>, transform_indices = @transform_2, window_bounds = array<i64: 1, 32>}, {pipeline_mode = #tpu.pipeline_mode<synchronous>, transform_indices = @transform_3, window_bounds = array<i64: 32, 64>}, {pipeline_mode = #tpu.pipeline_mode<synchronous>, transform_indices = @transform_4, window_bounds = array<i64: 1, 64>}, {pipeline_mode = #tpu.pipeline_mode<synchronous>, transform_indices = @transform_5, window_bounds = array<i64: 32, 32>}, {pipeline_mode = #tpu.pipeline_mode<synchronous>, transform_indices = @transform_6, window_bounds = array<i64: 1, 32>}, {pipeline_mode = #tpu.pipeline_mode<synchronous>, transform_indices = @transform_7, window_bounds = array<i64: 1, 32>}, {pipeline_mode = #tpu.pipeline_mode<synchronous>, transform_indices = @transform_8, window_bounds = array<i64: 1, 32>}, {pipeline_mode = #tpu.pipeline_mode<synchronous>, transform_indices = @transform_9, window_bounds = array<i64: 32, 64>}, {pipeline_mode = #tpu.pipeline_mode<synchronous>, transform_indices = @transform_10, window_bounds = array<i64: 1, 64>}, {pipeline_mode = #tpu.pipeline_mode<synchronous>, transform_indices = @transform_11, window_bounds = array<i64: 64, 32>}, {pipeline_mode = #tpu.pipeline_mode<synchronous>, transform_indices = @transform_12, window_bounds = array<i64: 1, 32>}, {pipeline_mode = #tpu.pipeline_mode<synchronous>, transform_indices = @transform_13, window_bounds = array<i64: 1, 32>}, {pipeline_mode = #tpu.pipeline_mode<synchronous>, transform_indices = @transform_14, window_bounds = array<i64: 1, 32>}, {transform_indices = @transform_15, window_bounds = array<i64: 1, 8, 32>}]} {
    %c0 = arith.constant 0 : index
    %c0_0 = arith.constant 0 : index
    %0 = vector.load %arg9[%c0, %c0_0] : memref<1x32xf32, #tpu.memory_space<vmem>>, vector<1x32xf32>
    %c0_1 = arith.constant 0 : index
    %c0_2 = arith.constant 0 : index
    %1 = vector.load %arg10[%c0_1, %c0_2] : memref<1x32xf32, #tpu.memory_space<vmem>>, vector<1x32xf32>
    %c0_i32 = arith.constant 0 : i32
    %2 = arith.cmpi eq, %arg1, %c0_i32 : i32
    %3 = arith.extui %2 : i1 to i32
    %c0_i32_3 = arith.constant 0 : i32
    %4 = arith.cmpi ne, %3, %c0_i32_3 : i32
    scf.if %4 {
      %c0_92 = arith.constant 0 : index
      %c0_93 = arith.constant 0 : index
      %c0_94 = arith.constant 0 : index
      %165 = vector.load %arg2[%c0_92, %c0_93, %c0_94] : memref<1x8x32xf32, #tpu.memory_space<vmem>>, vector<1x8x32xf32>
      %166 = vector.shape_cast %165 : vector<1x8x32xf32> to vector<8x32xf32>
      %cst_95 = arith.constant dense<0.000000e+00> : vector<8xf32>
      %167 = vector.multi_reduction <add>, %166, %cst_95 [1] : vector<8x32xf32> to vector<8xf32>
      %168 = vector.shape_cast %167 : vector<8xf32> to vector<8x1xf32>
      %cst_96 = arith.constant 3.200000e+01 : f32
      %169 = vector.broadcast %cst_96 : f32 to vector<8x1xf32>
      %170 = arith.divf %168, %169 : vector<8x1xf32>
      %171 = vector.broadcast %170 : vector<8x1xf32> to vector<8x32xf32>
      %172 = arith.subf %166, %171 : vector<8x32xf32>
      %173 = arith.mulf %172, %172 : vector<8x32xf32>
      %cst_97 = arith.constant dense<0.000000e+00> : vector<8xf32>
      %174 = vector.multi_reduction <add>, %173, %cst_97 [1] : vector<8x32xf32> to vector<8xf32>
      %175 = vector.shape_cast %174 : vector<8xf32> to vector<8x1xf32>
      %cst_98 = arith.constant 3.200000e+01 : f32
      %176 = vector.broadcast %cst_98 : f32 to vector<8x1xf32>
      %177 = arith.divf %175, %176 : vector<8x1xf32>
      %178 = vector.broadcast %170 : vector<8x1xf32> to vector<8x32xf32>
      %179 = arith.subf %166, %178 : vector<8x32xf32>
      %cst_99 = arith.constant 9.99999974E-6 : f32
      %180 = vector.broadcast %cst_99 : f32 to vector<8x1xf32>
      %181 = arith.addf %177, %180 : vector<8x1xf32>
      %182 = math.rsqrt %181 : vector<8x1xf32>
      %183 = vector.broadcast %182 : vector<8x1xf32> to vector<8x32xf32>
      %184 = arith.mulf %179, %183 : vector<8x32xf32>
      %185 = vector.broadcast %0 : vector<1x32xf32> to vector<8x32xf32>
      %186 = arith.mulf %184, %185 : vector<8x32xf32>
      %187 = vector.broadcast %1 : vector<1x32xf32> to vector<8x32xf32>
      %188 = arith.addf %186, %187 : vector<8x32xf32>
      %c0_100 = arith.constant 0 : index
      %c0_101 = arith.constant 0 : index
      %189 = vector.load %arg5[%c0_100, %c0_101] : memref<32x64xf32, #tpu.memory_space<vmem>>, vector<32x64xf32>
      %cst_102 = arith.constant dense<0.000000e+00> : vector<8x64xf32>
      %190 = tpu.matmul %188, %189, %cst_102 {dimension_numbers = #tpu.dot_dimension_numbers<[1], [0], [0], [1], [0, 0, 1, 1], [], []>} : vector<8x32xf32>, vector<32x64xf32>, vector<8x64xf32> -> vector<8x64xf32>
      %c0_103 = arith.constant 0 : index
      %c0_104 = arith.constant 0 : index
      %191 = vector.load %arg6[%c0_103, %c0_104] : memref<1x64xf32, #tpu.memory_space<vmem>>, vector<1x64xf32>
      %192 = vector.broadcast %191 : vector<1x64xf32> to vector<8x64xf32>
      %193 = arith.addf %190, %192 : vector<8x64xf32>
      %194 = vector.extract_strided_slice %193 {offsets = [0, 0], sizes = [8, 8], strides = [1, 1]} : vector<8x64xf32> to vector<8x8xf32>
      %c0_105 = arith.constant 0 : index
      %c0_106 = arith.constant 0 : index
      %c0_107 = arith.constant 0 : index
      %195 = vector.load %arg18[%c0_105, %c0_106, %c0_107] : memref<4x8x8xf32, #tpu.memory_space<vmem>>, vector<1x8x8xf32>
      %196 = vector.shape_cast %195 : vector<1x8x8xf32> to vector<8x8xf32>
      %197 = vector.shape_cast %194 : vector<8x8xf32> to vector<1x8x8xf32>
      tpu.vector_store %arg18[%c0_105, %c0_106, %c0_107], %197 {strides = array<i32>} : memref<4x8x8xf32, #tpu.memory_space<vmem>>, vector<1x8x8xf32>,
      %198 = vector.extract_strided_slice %193 {offsets = [0, 32], sizes = [8, 8], strides = [1, 1]} : vector<8x64xf32> to vector<8x8xf32>
      %c0_108 = arith.constant 0 : index
      %c0_109 = arith.constant 0 : index
      %c0_110 = arith.constant 0 : index
      %199 = vector.load %arg19[%c0_108, %c0_109, %c0_110] : memref<4x8x8xf32, #tpu.memory_space<vmem>>, vector<1x8x8xf32>
      %200 = vector.shape_cast %199 : vector<1x8x8xf32> to vector<8x8xf32>
      %201 = vector.shape_cast %198 : vector<8x8xf32> to vector<1x8x8xf32>
      tpu.vector_store %arg19[%c0_108, %c0_109, %c0_110], %201 {strides = array<i32>} : memref<4x8x8xf32, #tpu.memory_space<vmem>>, vector<1x8x8xf32>,
      %202 = vector.extract_strided_slice %193 {offsets = [0, 8], sizes = [8, 8], strides = [1, 1]} : vector<8x64xf32> to vector<8x8xf32>
      %c1_111 = arith.constant 1 : index
      %c0_112 = arith.constant 0 : index
      %c0_113 = arith.constant 0 : index
      %203 = vector.load %arg18[%c1_111, %c0_112, %c0_113] : memref<4x8x8xf32, #tpu.memory_space<vmem>>, vector<1x8x8xf32>
      %204 = vector.shape_cast %203 : vector<1x8x8xf32> to vector<8x8xf32>
      %205 = vector.shape_cast %202 : vector<8x8xf32> to vector<1x8x8xf32>
      tpu.vector_store %arg18[%c1_111, %c0_112, %c0_113], %205 {strides = array<i32>} : memref<4x8x8xf32, #tpu.memory_space<vmem>>, vector<1x8x8xf32>,
      %206 = vector.extract_strided_slice %193 {offsets = [0, 40], sizes = [8, 8], strides = [1, 1]} : vector<8x64xf32> to vector<8x8xf32>
      %c1_114 = arith.constant 1 : index
      %c0_115 = arith.constant 0 : index
      %c0_116 = arith.constant 0 : index
      %207 = vector.load %arg19[%c1_114, %c0_115, %c0_116] : memref<4x8x8xf32, #tpu.memory_space<vmem>>, vector<1x8x8xf32>
      %208 = vector.shape_cast %207 : vector<1x8x8xf32> to vector<8x8xf32>
      %209 = vector.shape_cast %206 : vector<8x8xf32> to vector<1x8x8xf32>
      tpu.vector_store %arg19[%c1_114, %c0_115, %c0_116], %209 {strides = array<i32>} : memref<4x8x8xf32, #tpu.memory_space<vmem>>, vector<1x8x8xf32>,
      %210 = vector.extract_strided_slice %193 {offsets = [0, 16], sizes = [8, 8], strides = [1, 1]} : vector<8x64xf32> to vector<8x8xf32>
      %c2_117 = arith.constant 2 : index
      %c0_118 = arith.constant 0 : index
      %c0_119 = arith.constant 0 : index
      %211 = vector.load %arg18[%c2_117, %c0_118, %c0_119] : memref<4x8x8xf32, #tpu.memory_space<vmem>>, vector<1x8x8xf32>
      %212 = vector.shape_cast %211 : vector<1x8x8xf32> to vector<8x8xf32>
      %213 = vector.shape_cast %210 : vector<8x8xf32> to vector<1x8x8xf32>
      tpu.vector_store %arg18[%c2_117, %c0_118, %c0_119], %213 {strides = array<i32>} : memref<4x8x8xf32, #tpu.memory_space<vmem>>, vector<1x8x8xf32>,
      %214 = vector.extract_strided_slice %193 {offsets = [0, 48], sizes = [8, 8], strides = [1, 1]} : vector<8x64xf32> to vector<8x8xf32>
      %c2_120 = arith.constant 2 : index
      %c0_121 = arith.constant 0 : index
      %c0_122 = arith.constant 0 : index
      %215 = vector.load %arg19[%c2_120, %c0_121, %c0_122] : memref<4x8x8xf32, #tpu.memory_space<vmem>>, vector<1x8x8xf32>
      %216 = vector.shape_cast %215 : vector<1x8x8xf32> to vector<8x8xf32>
      %217 = vector.shape_cast %214 : vector<8x8xf32> to vector<1x8x8xf32>
      tpu.vector_store %arg19[%c2_120, %c0_121, %c0_122], %217 {strides = array<i32>} : memref<4x8x8xf32, #tpu.memory_space<vmem>>, vector<1x8x8xf32>,
      %218 = vector.extract_strided_slice %193 {offsets = [0, 24], sizes = [8, 8], strides = [1, 1]} : vector<8x64xf32> to vector<8x8xf32>
      %c3_123 = arith.constant 3 : index
      %c0_124 = arith.constant 0 : index
      %c0_125 = arith.constant 0 : index
      %219 = vector.load %arg18[%c3_123, %c0_124, %c0_125] : memref<4x8x8xf32, #tpu.memory_space<vmem>>, vector<1x8x8xf32>
      %220 = vector.shape_cast %219 : vector<1x8x8xf32> to vector<8x8xf32>
      %221 = vector.shape_cast %218 : vector<8x8xf32> to vector<1x8x8xf32>
      tpu.vector_store %arg18[%c3_123, %c0_124, %c0_125], %221 {strides = array<i32>} : memref<4x8x8xf32, #tpu.memory_space<vmem>>, vector<1x8x8xf32>,
      %222 = vector.extract_strided_slice %193 {offsets = [0, 56], sizes = [8, 8], strides = [1, 1]} : vector<8x64xf32> to vector<8x8xf32>
      %c3_126 = arith.constant 3 : index
      %c0_127 = arith.constant 0 : index
      %c0_128 = arith.constant 0 : index
      %223 = vector.load %arg19[%c3_126, %c0_127, %c0_128] : memref<4x8x8xf32, #tpu.memory_space<vmem>>, vector<1x8x8xf32>
      %224 = vector.shape_cast %223 : vector<1x8x8xf32> to vector<8x8xf32>
      %225 = vector.shape_cast %222 : vector<8x8xf32> to vector<1x8x8xf32>
      tpu.vector_store %arg19[%c3_126, %c0_127, %c0_128], %225 {strides = array<i32>} : memref<4x8x8xf32, #tpu.memory_space<vmem>>, vector<1x8x8xf32>,
    } else {
    }
    %c0_4 = arith.constant 0 : index
    %c0_5 = arith.constant 0 : index
    %c0_6 = arith.constant 0 : index
    %5 = vector.load %arg2[%c0_4, %c0_5, %c0_6] : memref<1x8x32xf32, #tpu.memory_space<vmem>>, vector<1x8x32xf32>
    %6 = vector.shape_cast %5 : vector<1x8x32xf32> to vector<8x32xf32>
    %cst = arith.constant dense<0.000000e+00> : vector<8xf32>
    %7 = vector.multi_reduction <add>, %6, %cst [1] : vector<8x32xf32> to vector<8xf32>
    %8 = vector.shape_cast %7 : vector<8xf32> to vector<8x1xf32>
    %cst_7 = arith.constant 3.200000e+01 : f32
    %9 = vector.broadcast %cst_7 : f32 to vector<8x1xf32>
    %10 = arith.divf %8, %9 : vector<8x1xf32>
    %11 = vector.broadcast %10 : vector<8x1xf32> to vector<8x32xf32>
    %12 = arith.subf %6, %11 : vector<8x32xf32>
    %13 = arith.mulf %12, %12 : vector<8x32xf32>
    %cst_8 = arith.constant dense<0.000000e+00> : vector<8xf32>
    %14 = vector.multi_reduction <add>, %13, %cst_8 [1] : vector<8x32xf32> to vector<8xf32>
    %15 = vector.shape_cast %14 : vector<8xf32> to vector<8x1xf32>
    %cst_9 = arith.constant 3.200000e+01 : f32
    %16 = vector.broadcast %cst_9 : f32 to vector<8x1xf32>
    %17 = arith.divf %15, %16 : vector<8x1xf32>
    %18 = vector.broadcast %10 : vector<8x1xf32> to vector<8x32xf32>
    %19 = arith.subf %6, %18 : vector<8x32xf32>
    %cst_10 = arith.constant 9.99999974E-6 : f32
    %20 = vector.broadcast %cst_10 : f32 to vector<8x1xf32>
    %21 = arith.addf %17, %20 : vector<8x1xf32>
    %22 = math.rsqrt %21 : vector<8x1xf32>
    %23 = vector.broadcast %22 : vector<8x1xf32> to vector<8x32xf32>
    %24 = arith.mulf %19, %23 : vector<8x32xf32>
    %25 = vector.broadcast %0 : vector<1x32xf32> to vector<8x32xf32>
    %26 = arith.mulf %24, %25 : vector<8x32xf32>
    %27 = vector.broadcast %1 : vector<1x32xf32> to vector<8x32xf32>
    %28 = arith.addf %26, %27 : vector<8x32xf32>
    %c0_11 = arith.constant 0 : index
    %c0_12 = arith.constant 0 : index
    %29 = vector.load %arg3[%c0_11, %c0_12] : memref<32x32xf32, #tpu.memory_space<vmem>>, vector<32x32xf32>
    %cst_13 = arith.constant dense<0.000000e+00> : vector<8x32xf32>
    %30 = tpu.matmul %28, %29, %cst_13 {dimension_numbers = #tpu.dot_dimension_numbers<[1], [0], [0], [1], [0, 0, 1, 1], [], []>} : vector<8x32xf32>, vector<32x32xf32>, vector<8x32xf32> -> vector<8x32xf32>
    %c0_14 = arith.constant 0 : index
    %c0_15 = arith.constant 0 : index
    %31 = vector.load %arg4[%c0_14, %c0_15] : memref<1x32xf32, #tpu.memory_space<vmem>>, vector<1x32xf32>
    %32 = vector.broadcast %31 : vector<1x32xf32> to vector<8x32xf32>
    %33 = arith.addf %30, %32 : vector<8x32xf32>
    %34 = vector.extract_strided_slice %33 {offsets = [0, 0], sizes = [8, 8], strides = [1, 1]} : vector<8x32xf32> to vector<8x8xf32>
    %c0_16 = arith.constant 0 : index
    %c0_17 = arith.constant 0 : index
    %c0_18 = arith.constant 0 : index
    %35 = vector.load %arg18[%c0_16, %c0_17, %c0_18] : memref<4x8x8xf32, #tpu.memory_space<vmem>>, vector<1x8x8xf32>
    %36 = vector.shape_cast %35 : vector<1x8x8xf32> to vector<8x8xf32>
    %c0_19 = arith.constant 0 : index
    %c0_20 = arith.constant 0 : index
    %c0_21 = arith.constant 0 : index
    %37 = vector.load %arg19[%c0_19, %c0_20, %c0_21] : memref<4x8x8xf32, #tpu.memory_space<vmem>>, vector<1x8x8xf32>
    %38 = vector.shape_cast %37 : vector<1x8x8xf32> to vector<8x8xf32>
    %39 = tpu.transpose %36, [1, 0] : vector<8x8xf32> -> vector<8x8xf32>
    %cst_22 = arith.constant dense<0.000000e+00> : vector<8x8xf32>
    %40 = tpu.matmul %34, %39, %cst_22 {dimension_numbers = #tpu.dot_dimension_numbers<[1], [0], [0], [1], [0, 0, 1, 1], [], []>} : vector<8x8xf32>, vector<8x8xf32>, vector<8x8xf32> -> vector<8x8xf32>
    %cst_23 = arith.constant 0.353553385 : f32
    %41 = vector.broadcast %cst_23 : f32 to vector<8x8xf32>
    %42 = arith.mulf %40, %41 : vector<8x8xf32>
    %cst_24 = arith.constant dense<0xFF800000> : vector<8xf32>
    %43 = vector.multi_reduction <maximumf>, %42, %cst_24 [1] : vector<8x8xf32> to vector<8xf32>
    %44 = vector.shape_cast %43 : vector<8xf32> to vector<8x1xf32>
    %45 = vector.broadcast %44 : vector<8x1xf32> to vector<8x8xf32>
    %46 = arith.subf %42, %45 : vector<8x8xf32>
    %47 = math.exp %46 : vector<8x8xf32>
    %cst_25 = arith.constant dense<0.000000e+00> : vector<8xf32>
    %48 = vector.multi_reduction <add>, %47, %cst_25 [1] : vector<8x8xf32> to vector<8xf32>
    %49 = vector.shape_cast %48 : vector<8xf32> to vector<8x1xf32>
    %cst_26 = arith.constant dense<0.000000e+00> : vector<8x8xf32>
    %50 = tpu.matmul %47, %38, %cst_26 {dimension_numbers = #tpu.dot_dimension_numbers<[1], [0], [0], [1], [0, 0, 1, 1], [], []>} : vector<8x8xf32>, vector<8x8xf32>, vector<8x8xf32> -> vector<8x8xf32>
    %51 = tpu.reciprocal %49 {approx = true} : vector<8x1xf32> -> vector<8x1xf32>
    %52 = vector.broadcast %51 : vector<8x1xf32> to vector<8x8xf32>
    %53 = arith.mulf %50, %52 : vector<8x8xf32>
    %c0_27 = arith.constant 0 : index
    %c0_28 = arith.constant 0 : index
    %54 = vector.load %arg20[%c0_27, %c0_28] : memref<8x32xf32, #tpu.memory_space<vmem>>, vector<8x8xf32>
    tpu.vector_store %arg20[%c0_27, %c0_28], %53 {strides = array<i32>} : memref<8x32xf32, #tpu.memory_space<vmem>>, vector<8x8xf32>,
    %55 = vector.extract_strided_slice %33 {offsets = [0, 8], sizes = [8, 8], strides = [1, 1]} : vector<8x32xf32> to vector<8x8xf32>
    %c1 = arith.constant 1 : index
    %c0_29 = arith.constant 0 : index
    %c0_30 = arith.constant 0 : index
    %56 = vector.load %arg18[%c1, %c0_29, %c0_30] : memref<4x8x8xf32, #tpu.memory_space<vmem>>, vector<1x8x8xf32>
    %57 = vector.shape_cast %56 : vector<1x8x8xf32> to vector<8x8xf32>
    %c1_31 = arith.constant 1 : index
    %c0_32 = arith.constant 0 : index
    %c0_33 = arith.constant 0 : index
    %58 = vector.load %arg19[%c1_31, %c0_32, %c0_33] : memref<4x8x8xf32, #tpu.memory_space<vmem>>, vector<1x8x8xf32>
    %59 = vector.shape_cast %58 : vector<1x8x8xf32> to vector<8x8xf32>
    %60 = tpu.transpose %57, [1, 0] : vector<8x8xf32> -> vector<8x8xf32>
    %cst_34 = arith.constant dense<0.000000e+00> : vector<8x8xf32>
    %61 = tpu.matmul %55, %60, %cst_34 {dimension_numbers = #tpu.dot_dimension_numbers<[1], [0], [0], [1], [0, 0, 1, 1], [], []>} : vector<8x8xf32>, vector<8x8xf32>, vector<8x8xf32> -> vector<8x8xf32>
    %cst_35 = arith.constant 0.353553385 : f32
    %62 = vector.broadcast %cst_35 : f32 to vector<8x8xf32>
    %63 = arith.mulf %61, %62 : vector<8x8xf32>
    %cst_36 = arith.constant dense<0xFF800000> : vector<8xf32>
    %64 = vector.multi_reduction <maximumf>, %63, %cst_36 [1] : vector<8x8xf32> to vector<8xf32>
    %65 = vector.shape_cast %64 : vector<8xf32> to vector<8x1xf32>
    %66 = vector.broadcast %65 : vector<8x1xf32> to vector<8x8xf32>
    %67 = arith.subf %63, %66 : vector<8x8xf32>
    %68 = math.exp %67 : vector<8x8xf32>
    %cst_37 = arith.constant dense<0.000000e+00> : vector<8xf32>
    %69 = vector.multi_reduction <add>, %68, %cst_37 [1] : vector<8x8xf32> to vector<8xf32>
    %70 = vector.shape_cast %69 : vector<8xf32> to vector<8x1xf32>
    %cst_38 = arith.constant dense<0.000000e+00> : vector<8x8xf32>
    %71 = tpu.matmul %68, %59, %cst_38 {dimension_numbers = #tpu.dot_dimension_numbers<[1], [0], [0], [1], [0, 0, 1, 1], [], []>} : vector<8x8xf32>, vector<8x8xf32>, vector<8x8xf32> -> vector<8x8xf32>
    %72 = tpu.reciprocal %70 {approx = true} : vector<8x1xf32> -> vector<8x1xf32>
    %73 = vector.broadcast %72 : vector<8x1xf32> to vector<8x8xf32>
    %74 = arith.mulf %71, %73 : vector<8x8xf32>
    %c0_39 = arith.constant 0 : index
    %c8 = arith.constant 8 : index
    %75 = vector.load %arg20[%c0_39, %c8] : memref<8x32xf32, #tpu.memory_space<vmem>>, vector<8x8xf32>
    tpu.vector_store %arg20[%c0_39, %c8], %74 {strides = array<i32>} : memref<8x32xf32, #tpu.memory_space<vmem>>, vector<8x8xf32>,
    %76 = vector.extract_strided_slice %33 {offsets = [0, 16], sizes = [8, 8], strides = [1, 1]} : vector<8x32xf32> to vector<8x8xf32>
    %c2 = arith.constant 2 : index
    %c0_40 = arith.constant 0 : index
    %c0_41 = arith.constant 0 : index
    %77 = vector.load %arg18[%c2, %c0_40, %c0_41] : memref<4x8x8xf32, #tpu.memory_space<vmem>>, vector<1x8x8xf32>
    %78 = vector.shape_cast %77 : vector<1x8x8xf32> to vector<8x8xf32>
    %c2_42 = arith.constant 2 : index
    %c0_43 = arith.constant 0 : index
    %c0_44 = arith.constant 0 : index
    %79 = vector.load %arg19[%c2_42, %c0_43, %c0_44] : memref<4x8x8xf32, #tpu.memory_space<vmem>>, vector<1x8x8xf32>
    %80 = vector.shape_cast %79 : vector<1x8x8xf32> to vector<8x8xf32>
    %81 = tpu.transpose %78, [1, 0] : vector<8x8xf32> -> vector<8x8xf32>
    %cst_45 = arith.constant dense<0.000000e+00> : vector<8x8xf32>
    %82 = tpu.matmul %76, %81, %cst_45 {dimension_numbers = #tpu.dot_dimension_numbers<[1], [0], [0], [1], [0, 0, 1, 1], [], []>} : vector<8x8xf32>, vector<8x8xf32>, vector<8x8xf32> -> vector<8x8xf32>
    %cst_46 = arith.constant 0.353553385 : f32
    %83 = vector.broadcast %cst_46 : f32 to vector<8x8xf32>
    %84 = arith.mulf %82, %83 : vector<8x8xf32>
    %cst_47 = arith.constant dense<0xFF800000> : vector<8xf32>
    %85 = vector.multi_reduction <maximumf>, %84, %cst_47 [1] : vector<8x8xf32> to vector<8xf32>
    %86 = vector.shape_cast %85 : vector<8xf32> to vector<8x1xf32>
    %87 = vector.broadcast %86 : vector<8x1xf32> to vector<8x8xf32>
    %88 = arith.subf %84, %87 : vector<8x8xf32>
    %89 = math.exp %88 : vector<8x8xf32>
    %cst_48 = arith.constant dense<0.000000e+00> : vector<8xf32>
    %90 = vector.multi_reduction <add>, %89, %cst_48 [1] : vector<8x8xf32> to vector<8xf32>
    %91 = vector.shape_cast %90 : vector<8xf32> to vector<8x1xf32>
    %cst_49 = arith.constant dense<0.000000e+00> : vector<8x8xf32>
    %92 = tpu.matmul %89, %80, %cst_49 {dimension_numbers = #tpu.dot_dimension_numbers<[1], [0], [0], [1], [0, 0, 1, 1], [], []>} : vector<8x8xf32>, vector<8x8xf32>, vector<8x8xf32> -> vector<8x8xf32>
    %93 = tpu.reciprocal %91 {approx = true} : vector<8x1xf32> -> vector<8x1xf32>
    %94 = vector.broadcast %93 : vector<8x1xf32> to vector<8x8xf32>
    %95 = arith.mulf %92, %94 : vector<8x8xf32>
    %c0_50 = arith.constant 0 : index
    %c16 = arith.constant 16 : index
    %96 = vector.load %arg20[%c0_50, %c16] : memref<8x32xf32, #tpu.memory_space<vmem>>, vector<8x8xf32>
    tpu.vector_store %arg20[%c0_50, %c16], %95 {strides = array<i32>} : memref<8x32xf32, #tpu.memory_space<vmem>>, vector<8x8xf32>,
    %97 = vector.extract_strided_slice %33 {offsets = [0, 24], sizes = [8, 8], strides = [1, 1]} : vector<8x32xf32> to vector<8x8xf32>
    %c3 = arith.constant 3 : index
    %c0_51 = arith.constant 0 : index
    %c0_52 = arith.constant 0 : index
    %98 = vector.load %arg18[%c3, %c0_51, %c0_52] : memref<4x8x8xf32, #tpu.memory_space<vmem>>, vector<1x8x8xf32>
    %99 = vector.shape_cast %98 : vector<1x8x8xf32> to vector<8x8xf32>
    %c3_53 = arith.constant 3 : index
    %c0_54 = arith.constant 0 : index
    %c0_55 = arith.constant 0 : index
    %100 = vector.load %arg19[%c3_53, %c0_54, %c0_55] : memref<4x8x8xf32, #tpu.memory_space<vmem>>, vector<1x8x8xf32>
    %101 = vector.shape_cast %100 : vector<1x8x8xf32> to vector<8x8xf32>
    %102 = tpu.transpose %99, [1, 0] : vector<8x8xf32> -> vector<8x8xf32>
    %cst_56 = arith.constant dense<0.000000e+00> : vector<8x8xf32>
    %103 = tpu.matmul %97, %102, %cst_56 {dimension_numbers = #tpu.dot_dimension_numbers<[1], [0], [0], [1], [0, 0, 1, 1], [], []>} : vector<8x8xf32>, vector<8x8xf32>, vector<8x8xf32> -> vector<8x8xf32>
    %cst_57 = arith.constant 0.353553385 : f32
    %104 = vector.broadcast %cst_57 : f32 to vector<8x8xf32>
    %105 = arith.mulf %103, %104 : vector<8x8xf32>
    %cst_58 = arith.constant dense<0xFF800000> : vector<8xf32>
    %106 = vector.multi_reduction <maximumf>, %105, %cst_58 [1] : vector<8x8xf32> to vector<8xf32>
    %107 = vector.shape_cast %106 : vector<8xf32> to vector<8x1xf32>
    %108 = vector.broadcast %107 : vector<8x1xf32> to vector<8x8xf32>
    %109 = arith.subf %105, %108 : vector<8x8xf32>
    %110 = math.exp %109 : vector<8x8xf32>
    %cst_59 = arith.constant dense<0.000000e+00> : vector<8xf32>
    %111 = vector.multi_reduction <add>, %110, %cst_59 [1] : vector<8x8xf32> to vector<8xf32>
    %112 = vector.shape_cast %111 : vector<8xf32> to vector<8x1xf32>
    %cst_60 = arith.constant dense<0.000000e+00> : vector<8x8xf32>
    %113 = tpu.matmul %110, %101, %cst_60 {dimension_numbers = #tpu.dot_dimension_numbers<[1], [0], [0], [1], [0, 0, 1, 1], [], []>} : vector<8x8xf32>, vector<8x8xf32>, vector<8x8xf32> -> vector<8x8xf32>
    %114 = tpu.reciprocal %112 {approx = true} : vector<8x1xf32> -> vector<8x1xf32>
    %115 = vector.broadcast %114 : vector<8x1xf32> to vector<8x8xf32>
    %116 = arith.mulf %113, %115 : vector<8x8xf32>
    %c0_61 = arith.constant 0 : index
    %c24 = arith.constant 24 : index
    %117 = vector.load %arg20[%c0_61, %c24] : memref<8x32xf32, #tpu.memory_space<vmem>>, vector<8x8xf32>
    tpu.vector_store %arg20[%c0_61, %c24], %116 {strides = array<i32>} : memref<8x32xf32, #tpu.memory_space<vmem>>, vector<8x8xf32>,
    %c0_62 = arith.constant 0 : index
    %c0_63 = arith.constant 0 : index
    %118 = vector.load %arg20[%c0_62, %c0_63] : memref<8x32xf32, #tpu.memory_space<vmem>>, vector<8x32xf32>
    %c0_64 = arith.constant 0 : index
    %c0_65 = arith.constant 0 : index
    %119 = vector.load %arg7[%c0_64, %c0_65] : memref<32x32xf32, #tpu.memory_space<vmem>>, vector<32x32xf32>
    %cst_66 = arith.constant dense<0.000000e+00> : vector<8x32xf32>
    %120 = tpu.matmul %118, %119, %cst_66 {dimension_numbers = #tpu.dot_dimension_numbers<[1], [0], [0], [1], [0, 0, 1, 1], [], []>} : vector<8x32xf32>, vector<32x32xf32>, vector<8x32xf32> -> vector<8x32xf32>
    %c0_67 = arith.constant 0 : index
    %c0_68 = arith.constant 0 : index
    %121 = vector.load %arg8[%c0_67, %c0_68] : memref<1x32xf32, #tpu.memory_space<vmem>>, vector<1x32xf32>
    %122 = vector.broadcast %121 : vector<1x32xf32> to vector<8x32xf32>
    %123 = arith.addf %120, %122 : vector<8x32xf32>
    %124 = arith.addf %6, %123 : vector<8x32xf32>
    %c0_69 = arith.constant 0 : index
    %c0_70 = arith.constant 0 : index
    %125 = vector.load %arg15[%c0_69, %c0_70] : memref<1x32xf32, #tpu.memory_space<vmem>>, vector<1x32xf32>
    %c0_71 = arith.constant 0 : index
    %c0_72 = arith.constant 0 : index
    %126 = vector.load %arg16[%c0_71, %c0_72] : memref<1x32xf32, #tpu.memory_space<vmem>>, vector<1x32xf32>
    %cst_73 = arith.constant dense<0.000000e+00> : vector<8xf32>
    %127 = vector.multi_reduction <add>, %124, %cst_73 [1] : vector<8x32xf32> to vector<8xf32>
    %128 = vector.shape_cast %127 : vector<8xf32> to vector<8x1xf32>
    %cst_74 = arith.constant 3.200000e+01 : f32
    %129 = vector.broadcast %cst_74 : f32 to vector<8x1xf32>
    %130 = arith.divf %128, %129 : vector<8x1xf32>
    %131 = vector.broadcast %130 : vector<8x1xf32> to vector<8x32xf32>
    %132 = arith.subf %124, %131 : vector<8x32xf32>
    %133 = arith.mulf %132, %132 : vector<8x32xf32>
    %cst_75 = arith.constant dense<0.000000e+00> : vector<8xf32>
    %134 = vector.multi_reduction <add>, %133, %cst_75 [1] : vector<8x32xf32> to vector<8xf32>
    %135 = vector.shape_cast %134 : vector<8xf32> to vector<8x1xf32>
    %cst_76 = arith.constant 3.200000e+01 : f32
    %136 = vector.broadcast %cst_76 : f32 to vector<8x1xf32>
    %137 = arith.divf %135, %136 : vector<8x1xf32>
    %138 = vector.broadcast %130 : vector<8x1xf32> to vector<8x32xf32>
    %139 = arith.subf %124, %138 : vector<8x32xf32>
    %cst_77 = arith.constant 9.99999974E-6 : f32
    %140 = vector.broadcast %cst_77 : f32 to vector<8x1xf32>
    %141 = arith.addf %137, %140 : vector<8x1xf32>
    %142 = math.rsqrt %141 : vector<8x1xf32>
    %143 = vector.broadcast %142 : vector<8x1xf32> to vector<8x32xf32>
    %144 = arith.mulf %139, %143 : vector<8x32xf32>
    %145 = vector.broadcast %125 : vector<1x32xf32> to vector<8x32xf32>
    %146 = arith.mulf %144, %145 : vector<8x32xf32>
    %147 = vector.broadcast %126 : vector<1x32xf32> to vector<8x32xf32>
    %148 = arith.addf %146, %147 : vector<8x32xf32>
    %c0_78 = arith.constant 0 : index
    %c0_79 = arith.constant 0 : index
    %149 = vector.load %arg11[%c0_78, %c0_79] : memref<32x64xf32, #tpu.memory_space<vmem>>, vector<32x64xf32>
    %cst_80 = arith.constant dense<0.000000e+00> : vector<8x64xf32>
    %150 = tpu.matmul %148, %149, %cst_80 {dimension_numbers = #tpu.dot_dimension_numbers<[1], [0], [0], [1], [0, 0, 1, 1], [], []>} : vector<8x32xf32>, vector<32x64xf32>, vector<8x64xf32> -> vector<8x64xf32>
    %c0_81 = arith.constant 0 : index
    %c0_82 = arith.constant 0 : index
    %151 = vector.load %arg12[%c0_81, %c0_82] : memref<1x64xf32, #tpu.memory_space<vmem>>, vector<1x64xf32>
    %152 = vector.broadcast %151 : vector<1x64xf32> to vector<8x64xf32>
    %153 = arith.addf %150, %152 : vector<8x64xf32>
    %cst_83 = arith.constant 0.000000e+00 : f32
    %154 = vector.broadcast %cst_83 : f32 to vector<8x64xf32>
    %155 = arith.maximumf %153, %154 : vector<8x64xf32>
    %c0_84 = arith.constant 0 : index
    %c0_85 = arith.constant 0 : index
    %156 = vector.load %arg13[%c0_84, %c0_85] : memref<64x32xf32, #tpu.memory_space<vmem>>, vector<64x32xf32>
    %cst_86 = arith.constant dense<0.000000e+00> : vector<8x32xf32>
    %157 = tpu.matmul %155, %156, %cst_86 {dimension_numbers = #tpu.dot_dimension_numbers<[1], [0], [0], [1], [0, 0, 1, 1], [], []>} : vector<8x64xf32>, vector<64x32xf32>, vector<8x32xf32> -> vector<8x32xf32>
    %c0_87 = arith.constant 0 : index
    %c0_88 = arith.constant 0 : index
    %158 = vector.load %arg14[%c0_87, %c0_88] : memref<1x32xf32, #tpu.memory_space<vmem>>, vector<1x32xf32>
    %159 = vector.broadcast %158 : vector<1x32xf32> to vector<8x32xf32>
    %160 = arith.addf %157, %159 : vector<8x32xf32>
    %161 = arith.addf %124, %160 : vector<8x32xf32>
    %c0_89 = arith.constant 0 : index
    %c0_90 = arith.constant 0 : index
    %c0_91 = arith.constant 0 : index
    %162 = vector.load %arg17[%c0_89, %c0_90, %c0_91] : memref<1x8x32xf32, #tpu.memory_space<vmem>>, vector<1x8x32xf32>
    %163 = vector.shape_cast %162 : vector<1x8x32xf32> to vector<8x32xf32>
    %164 = vector.shape_cast %161 : vector<8x32xf32> to vector<1x8x32xf32>
    tpu.vector_store %arg17[%c0_89, %c0_90, %c0_91], %164 {strides = array<i32>} : memref<1x8x32xf32, #tpu.memory_space<vmem>>, vector<1x8x32xf32>,
    return
  }
  func.func @transform_0(%arg0: i32, %arg1: i32) -> (i32, i32, i32) {
    %c0_i32 = arith.constant 0 : i32
    %c0_i32_0 = arith.constant 0 : i32
    %c0_i32_1 = arith.constant 0 : i32
    return %arg0, %c0_i32, %c0_i32_0 : i32, i32, i32
  }
  func.func @transform_1(%arg0: i32, %arg1: i32) -> (i32, i32) {
    %c0_i32 = arith.constant 0 : i32
    %c0_i32_0 = arith.constant 0 : i32
    %c0_i32_1 = arith.constant 0 : i32
    return %c0_i32, %c0_i32_0 : i32, i32
  }
  func.func @transform_2(%arg0: i32, %arg1: i32) -> (i32, i32) {
    %c0_i32 = arith.constant 0 : i32
    %c0_i32_0 = arith.constant 0 : i32
    %c0_i32_1 = arith.constant 0 : i32
    return %c0_i32, %c0_i32_0 : i32, i32
  }
  func.func @transform_3(%arg0: i32, %arg1: i32) -> (i32, i32) {
    %c0_i32 = arith.constant 0 : i32
    %c0_i32_0 = arith.constant 0 : i32
    %c0_i32_1 = arith.constant 0 : i32
    return %c0_i32, %c0_i32_0 : i32, i32
  }
  func.func @transform_4(%arg0: i32, %arg1: i32) -> (i32, i32) {
    %c0_i32 = arith.constant 0 : i32
    %c0_i32_0 = arith.constant 0 : i32
    %c0_i32_1 = arith.constant 0 : i32
    return %c0_i32, %c0_i32_0 : i32, i32
  }
  func.func @transform_5(%arg0: i32, %arg1: i32) -> (i32, i32) {
    %c0_i32 = arith.constant 0 : i32
    %c0_i32_0 = arith.constant 0 : i32
    %c0_i32_1 = arith.constant 0 : i32
    return %c0_i32, %c0_i32_0 : i32, i32
  }
  func.func @transform_6(%arg0: i32, %arg1: i32) -> (i32, i32) {
    %c0_i32 = arith.constant 0 : i32
    %c0_i32_0 = arith.constant 0 : i32
    %c0_i32_1 = arith.constant 0 : i32
    return %c0_i32, %c0_i32_0 : i32, i32
  }
  func.func @transform_7(%arg0: i32, %arg1: i32) -> (i32, i32) {
    %c0_i32 = arith.constant 0 : i32
    %c0_i32_0 = arith.constant 0 : i32
    %c0_i32_1 = arith.constant 0 : i32
    return %c0_i32, %c0_i32_0 : i32, i32
  }
  func.func @transform_8(%arg0: i32, %arg1: i32) -> (i32, i32) {
    %c0_i32 = arith.constant 0 : i32
    %c0_i32_0 = arith.constant 0 : i32
    %c0_i32_1 = arith.constant 0 : i32
    return %c0_i32, %c0_i32_0 : i32, i32
  }
  func.func @transform_9(%arg0: i32, %arg1: i32) -> (i32, i32) {
    %c0_i32 = arith.constant 0 : i32
    %c0_i32_0 = arith.constant 0 : i32
    %c0_i32_1 = arith.constant 0 : i32
    return %c0_i32, %c0_i32_0 : i32, i32
  }
  func.func @transform_10(%arg0: i32, %arg1: i32) -> (i32, i32) {
    %c0_i32 = arith.constant 0 : i32
    %c0_i32_0 = arith.constant 0 : i32
    %c0_i32_1 = arith.constant 0 : i32
    return %c0_i32, %c0_i32_0 : i32, i32
  }
  func.func @transform_11(%arg0: i32, %arg1: i32) -> (i32, i32) {
    %c0_i32 = arith.constant 0 : i32
    %c0_i32_0 = arith.constant 0 : i32
    %c0_i32_1 = arith.constant 0 : i32
    return %c0_i32, %c0_i32_0 : i32, i32
  }
  func.func @transform_12(%arg0: i32, %arg1: i32) -> (i32, i32) {
    %c0_i32 = arith.constant 0 : i32
    %c0_i32_0 = arith.constant 0 : i32
    %c0_i32_1 = arith.constant 0 : i32
    return %c0_i32, %c0_i32_0 : i32, i32
  }
  func.func @transform_13(%arg0: i32, %arg1: i32) -> (i32, i32) {
    %c0_i32 = arith.constant 0 : i32
    %c0_i32_0 = arith.constant 0 : i32
    %c0_i32_1 = arith.constant 0 : i32
    return %c0_i32, %c0_i32_0 : i32, i32
  }
  func.func @transform_14(%arg0: i32, %arg1: i32) -> (i32, i32) {
    %c0_i32 = arith.constant 0 : i32
    %c0_i32_0 = arith.constant 0 : i32
    %c0_i32_1 = arith.constant 0 : i32
    return %c0_i32, %c0_i32_0 : i32, i32
  }
  func.func @transform_15(%arg0: i32, %arg1: i32) -> (i32, i32, i32) {
    %c0_i32 = arith.constant 0 : i32
    %c0_i32_0 = arith.constant 0 : i32
    return %arg0, %arg1, %c0_i32 : i32, i32, i32
  }
}

</mosaic_0001>

<bundles_post_ra>
// kernel: tpu_custom_call.1
= control target key start
LH: loop header
LB: loop body
LE: loop exit
PB: predicated region body
PF: predicated region fallthrough
CT: control target
= control target key end

     0   :  { %s3206_s0 = inlined_call_operand.vmem [shape: f32[2,8,32], index: 0, kind: input, shape index: {}]   ;;  %s3207_s1 = inlined_call_operand.vmem [shape: bf16[32,32], index: 1, kind: input, shape index: {}]   ;;  %s3208_s2 = inlined_call_operand.vmem [shape: f32[1,32], index: 2, kind: input, shape index: {}]   ;;  %s3209_s3 = inlined_call_operand.vmem [shape: bf16[32,64], index: 3, kind: input, shape index: {}]   ;;  %s3210_s4 = inlined_call_operand.vmem [shape: f32[1,64], index: 4, kind: input, shape index: {}]   ;;  %s3211_s5 = inlined_call_operand.hbm [shape: bf16[32,32], index: 5, kind: input, shape index: {}]   ;;  %s3212_s6 = inlined_call_operand.vmem [shape: f32[1,32], index: 6, kind: input, shape index: {}]   ;;  %s3213_s7 = inlined_call_operand.vmem [shape: f32[1,32], index: 7, kind: input, shape index: {}]   ;;  %s3214_s8 = inlined_call_operand.hbm [shape: f32[1,32], index: 8, kind: input, shape index: {}]   ;;  %s3215_s9 = inlined_call_operand.hbm [shape: bf16[32,64], index: 9, kind: input, shape index: {}]   ;;  %s3216_s10 = inlined_call_operand.hbm [shape: f32[1,64], index: 10, kind: input, shape index: {}]   ;;  %s3217_s11 = inlined_call_operand.vmem [shape: bf16[64,32], index: 11, kind: input, shape index: {}]   ;;  %s3218_s12 = inlined_call_operand.vmem [shape: f32[1,32], index: 12, kind: input, shape index: {}]   ;;  %s3219_s13 = inlined_call_operand.vmem [shape: f32[1,32], index: 13, kind: input, shape index: {}]   ;;  %s3220_s14 = inlined_call_operand.vmem [shape: f32[1,32], index: 14, kind: input, shape index: {}]   ;;  %s3221_s15 = inlined_call_operand.hbm [shape: f32[2,8,32], index: 15, kind: output, shape index: {}]  }
   0x1   :  { %3234 = sst [smem:[#allocation25_spill]] %s3214_s8 }
   0x2   :  { %3235 = sst [smem:[#allocation26_spill]] %s3221_s15 }
   0x3   :  { %20 = vsyncpa [#allocation6], 0 }
   0x4   :  { %21 = vsyncpa [#allocation9], 0 }
   0x5   :  { %22 = vsyncpa [#allocation12], 0 }
   0x6   :  { %23 = vsyncpa [#allocation7], 0 }
   0x7   :  { %25 = vsyncpa [#allocation7 + $0x1], 0  ;;  %s2819_s18 = smov 0   ;;  %s2821_s19 = smov 0  }
   0x8   :  { %s2823_s20 = smov 0   ;;  %s2825_s21 = smov 0  }
   0x9   :  { %s2827_s22 = smov 0   ;;  %s2829_s23 = smov 0  }
   0xa LB: > { %3236 = sst [smem:[#allocation18_spill]] %s2698_s18  ;;  %s2198_s24 = sadd.s32 4294967295, %s2718_s23   ;;  %s2718_s23 = sphi %s2829_s23, %s31_s23   ;;  %s2714_s22 = sphi %s2827_s22, %s3260_s22   ;;  %s2710_s21 = sphi %s2825_s21, %s3259_s21   ;;  %s2706_s20 = sphi %s2823_s20, %s3258_s20   ;;  %s2702_s19 = sphi %s2821_s19, %s3262_s19   ;;  %s2698_s18 = sphi %s2819_s18, %s3261_s18  }
   0xb   : > { %3237 = sst [smem:[#allocation19_spill]] %s2706_s20  ;;  %s2199_s25 = sadd.s32 4294967294, %s2718_s23  }
   0xc   : > { %3238 = sst [smem:[#allocation20_spill]] %s2714_s22  ;;  %s43_s26 = sadd.s32 1, %s2714_s22 }
   0xd   : > { %3239 = sst [smem:[#allocation21_spill]] %s2718_s23  ;;  %s372_s27 = sadd.s32 1, %s2706_s20 }
   0xe   : > { %p45_p0 = scmp.ge.s32.totalorder %s43_s26, 2  ;;  %p382_p1 = scmp.ne.s32.totalorder %s2706_s20, %s2702_s19 }
   0xf   : > { %p383_p2 = scmp.eq.s32.totalorder %s2198_s24, 1  ;;  %p388_p3 = scmp.ne.s32.totalorder %s2702_s19, %s2698_s18 }
  0x10   : > { %s3264_s26 = smov (%p45_p0, %s43_s26), 0  ;;  %p389_p5 = scmp.eq.s32.totalorder %s2199_s25, 1 }
  0x11   : > { %3240 = sst [smem:[#allocation22_spill]] %s3264_s26  ;;  %p2859_p4 = por %p383_p2, %p382_p1 }
  0x12   : > { %s367_s29 = ssub.s32 %s2714_s22, %s3264_s26  ;;  %p2200_p6 = scmp.ge.s32.totalorder %s2718_s23, 1 }
  0x13   : > { %s3241_s28 = scalar_select %p2859_p4, 1, 0 }
  0x14   : > { %p370_p7 = scmp.eq.s32.totalorder %s367_s29, 0  ;;  %p2866_p8 = por %p389_p5, %p388_p3 }
  0x15   : > { %p396_p9 = scmp.lt.s32.totalorder %s2718_s23, 3  ;;  %p2878_p11 = scmp.eq.s32.totalorder %s2198_s24, 0 }
  0x16   : > { %s3242_s30 = scalar_select %p2866_p8, 1, 0 }
  0x17   : > { %s2872_s16 = scalar_select %p370_p7, %s2706_s20, %s372_s27  }
  0x18   : > { %3243 = sst [smem:[#allocation23_spill]] %s3242_s30  ;;  %p2874_p10 = pnand %p2200_p6, %p396_p9 }
  0x19   : > { %3244 = sst [smem:[#allocation24_spill]] %s2872_s16  ;;  %s2720_s25 = smov [#allocation8]  }
  0x1a   : > { %s3245_s17 = scalar_select %p2874_p10, 1, 0 }
  0x1b   : > { %s3246_s18 = scalar_select %p2878_p11, 1, 0 }
  0x1c   : > { %p2400_p12 = pneg %p2874_p10  ;;  %s440_s29 = sshll.u32 %s2720_s25, 4  ;;  %s441_s29 = int_to_ptr.vmem [resolvable:$true] %s440_s29 }
  0x1d   : > { %s2721_s27 = smov [#allocation5]   ;;  %s2537_s24 = scalar_lea.vmem %s441_s29, 16 }
  0x1e   : > { %p2886_p13 = pnand %p2878_p11, %p2400_p12  ;;  %s420_s22 = sshll.u32 %s2721_s27, 4  ;;  %s421_s22 = int_to_ptr.vmem [resolvable:$true] %s420_s22 }
  0x1f   : > { %p2538_p1 = scmp.ne.s32.totalorder %s441_s29, %s2537_s24  ;;  %s2544_s25 = scalar_lea.vmem %s441_s29, 32 }
  0x20   : > { %p2528_p0 = pneg %p2886_p13  ;;  %p2545_p5 = scmp.lt.s32.totalorder %s441_s29, %s441_s29 }
  0x21   : > { %p2546_p6 = scmp.lt.s32.totalorder %s2544_s25, %s2537_s24 }
  0x22   : > { %p2540_p2 = pnand %p2538_p1, %p2528_p0 }
  0x23   : > { %p2547_p7 = por %p2546_p6, %p2545_p5 }
  0x24   : > { %p2541_p3 = pneg %p2540_p2 }
  0x26   : > { %p2548_p9 = pnand %p2547_p7, %p2541_p3 }
  0x28   : > { %2551 = shalt.err (!%p2548_p9)
}
  0x29   : > { %s3248_s8 = sld [smem:[#allocation25_spill]]  ;;  %s2563_s27 = scalar_lea.vmem %s421_s22, 256 }
  0x2a   : > { %p2564_p12 = scmp.ne.s32.totalorder %s421_s22, %s2563_s27  ;;  %p2571_p2 = scmp.lt.s32.totalorder %s421_s22, %s421_s22 }
  0x2b   : > { %p2572_p4 = scmp.lt.s32.totalorder %s2563_s27, %s2563_s27 }
  0x2c   : > { %p2566_p8 = pnand %p2564_p12, %p2528_p0 }
  0x2d   : > { %p2573_p11 = por %p2572_p4, %p2571_p2 }
  0x2e   : > { %p2567_p1 = pneg %p2566_p8 }
  0x2f   : > { %2406 = dma.hbm_to_vmem [thread:$0]  (!%p2886_p13), %s3248_s8, 16, %s441_s29, [#allocation9]  }
  0x30   : > { %p2574_p10 = pnand %p2573_p11, %p2567_p1 }
  0x32   : > { %2577 = shalt.err (!%p2574_p10)
}
  0x33   : > { %s2722_s24 = smov 64   ;;  %s2723_s25 = smov 4  }
  0x34   : > { %2403 = dma.hbm_to_vmem [thread:$0]  (!%p2886_p13), %s3211_s5, 256, %s421_s22, [#allocation6], %s2722_s24, %s2722_s24, %s2723_s25  }
  0x35   : > { %s2724_s16 = smov [#allocation10]   ;;  %s2725_s8 = smov [#allocation11]  }
  0x36   : > { %s450_s29 = sshll.u32 %s2724_s16, 4  ;;  %s464_s23 = sshll.u32 %s2725_s8, 4  ;;  %s451_s29 = int_to_ptr.vmem [resolvable:$true] %s450_s29  ;;  %s465_s23 = int_to_ptr.vmem [resolvable:$true] %s464_s23 }
  0x37   : > { %s2589_s15 = scalar_lea.vmem %s451_s29, 256  ;;  %p2597_p11 = scmp.lt.s32.totalorder %s451_s29, %s451_s29 }
  0x38   : > { %p2590_p8 = scmp.ne.s32.totalorder %s451_s29, %s2589_s15  ;;  %p2598_p3 = scmp.lt.s32.totalorder %s2589_s15, %s2589_s15 }
  0x3a   : > { %p2592_p4 = pnand %p2590_p8, %p2528_p0  ;;  %p2599_p5 = por %p2598_p3, %p2597_p11 }
  0x3c   : > { %p2593_p10 = pneg %p2592_p4 }
  0x3e   : > { %p2600_p6 = pnand %p2599_p5, %p2593_p10 }
  0x40   : > { %2603 = shalt.err (!%p2600_p6)
}
  0x41   : > { %2409 = dma.hbm_to_vmem [thread:$0]  (!%p2886_p13), %s3215_s9, 256, %s451_s29, [#allocation9], %s2722_s24, %s2722_s24, %s2723_s25  }
  0x42   : > { %s2615_s8 = scalar_lea.vmem %s465_s23, 16  ;;  %s2622_s27 = scalar_lea.vmem %s465_s23, 32 }
  0x43   : > { %p2616_p7 = scmp.ne.s32.totalorder %s465_s23, %s2615_s8  ;;  %p2623_p1 = scmp.lt.s32.totalorder %s465_s23, %s465_s23 }
  0x44   : > { %p2624_p2 = scmp.lt.s32.totalorder %s2622_s27, %s2615_s8 }
  0x45   : > { %p2618_p9 = pnand %p2616_p7, %p2528_p0 }
  0x46   : > { %p2625_p8 = por %p2624_p2, %p2623_p1 }
  0x47   : > { %p2619_p12 = pneg %p2618_p9 }
  0x49   : > { %p2626_p4 = pnand %p2625_p8, %p2619_p12 }
  0x4b   : > { %2629 = shalt.err (!%p2626_p4)
}
  0x4c   : > { %2412 = dma.hbm_to_vmem [thread:$0]  (!%p2886_p13), %s3216_s10, 16, %s465_s23, [#allocation12]  }
  0x4d   : > { %p3249_p10 = scmp.ne.s32.totalorder %s3245_s17, 0 }
  0x4e   : > { %p3250_p11 = scmp.ne.s32.totalorder (!%p3249_p10), %s3246_s18, 0 }
  0x4f   : > { %496 = sbr.rel (%p3249_p10) target bundleno = 2374 (0x946), region = 80 }
  0x54   : > { %2681 = dma.done.wait (%p3250_p11), [#allocation6], 256  }
  0x55   : > { %2683 = vsyncadd (%p3250_p11), [#allocation6], 4294967040 }
  0x56   : > { %2685 = dma.done.wait (%p3250_p11), [#allocation9], 272  }
  0x57   : > { %2687 = vsyncadd (%p3250_p11), [#allocation9], 4294967024 }
  0x58   : > { %2689 = dma.done.wait (%p3250_p11), [#allocation12], 16  }
  0x59   : > { %2691 = vsyncadd (%p3250_p11), [#allocation12], 4294967280  ;;  %p555_p13 = scmp.lt.s32.totalorder %s2710_s21, 1  ;;  %vm567_vm0 = vcmask 261120   ;;  %v2492_v12 = vld [vmem:[%s3209_s3 + $0x8] sm:$0xff]   ;;  %v2726_v13 = vmov 0.0   ;;  %v583_v48 = vlaneseq }
  0x5a   : > { %2290 = vmatprep.subr.bf16.mxu1 %v2726_v13  ;;  %vm2727_vm1 = vmmov 0   ;;  %v2493_v14 = vld [vmem:[%s3209_s3] sm:$0xff]   ;;  %2306 = vmatprep.subr.bf16.mxu0 %v2726_v13  ;;  %v2256_v24 = vld [vmem:[#allocation8] ss:$0 sm:$0xff]  ;;  %v2494_v29 = vld [vmem:[%s3207_s1 + $0x8] sm:$0xff]   ;;  %s2728_s24 = smov 112  }
  0x5b   : > { %s556_s23 = scalar_select %p555_p13, %s2710_s21, 1  ;;  %2294 = vmatprep.mubr.msk.bf16.mxu1 %vm2727_vm1, %v2726_v13  ;;  %2291 = vmatpush3.bf16.msra.mxu1 %v2492_v12  ;;  %v2255_v22 = vld [vmem:[%s3213_s7] ss:$0 sm:$0xff]  ;;  %v2732_v49 = vmov 1983009808   ;;  %v584_v55 = vshrl.u32 %v583_v48, 7 }
  0x5c   : > { %2292 = vmatprep.subr.bf16.mxu1 %v2726_v13  ;;  %2308 = vmatprep.mubr.msk.bf16.mxu0 %vm2727_vm1, %v2726_v13  ;;  %v2495_v32 = vld [vmem:[%s3207_s1] sm:$0xff]   ;;  %s2730_s29 = smov 104   ;;  %s2731_s30 = smov 96   ;;  %v676_v50 = vunpack.c.l.s4 %v2732_v49  ;;  %v2733_v51 = vmov 1934713408   ;;  %vm813_vm2 = vcmask 60416  }
  0x5d   : > { %s2212_s26 = sshll.u32 %s556_s23, 3  ;;  %v2213_v35 = vld [vmem:[%s3210_s4] ss:$0 sm:$0xff]  ;;  %v708_v52 = vunpack.c.l.s4 %v2733_v51  ;;  %vm1244_vm3 = vcmask 64512   ;;  %vm1480_vm4 = vcmask 1043456   ;;  %s2735_s22 = smov 16  }
  0x5e   : > { %s558_s25 = scalar_lea.vmem %s3206_s0, %s2212_s26  ;;  %v2221_v41 = vld [vmem:[%s3208_s2] ss:$0 sm:$0xff]  ;;  %v677_v56 = vunpack.c.0.s8 %v676_v50  ;;  %s2736_s8 = smov 8   ;;  %vm1819_vm5 = vcmask 130048   ;;  %vm1821_vm6 = vcmask 195584   ;;  %vm2028_vm7 = vcmask 523264  }
  0x5f   : > { %v2943_v0 = vld [vmem:[%s558_s25] sm:$0xff]  ;;  %2293 = vmatpush3.bf16.msra.mxu1 %v2493_v14  ;;  %s2729_s25 = smov 120   ;;  %v709_v57 = vunpack.c.0.s8 %v708_v52  ;;  %s2737_s27 = smov 24  }
  0x60   : > { %v568_v1 = vsel %vm567_vm0, %v2943_v0, 0.0  ;;  %2298 = vmatprep.subr.bf16.mxu1 %v2726_v13  ;;  %v2988_v61 = vsub.s32 %v677_v56, %v584_v55  ;;  %s552_s15 = sand.u32 1, %s2702_s19   ;;  %s2252_s17 = sshll.u32 %s2710_s21, 7 }
  0x61   : > { %569 = vadd.xlane.f32.xlu0 %v568_v1  ;;  %s2211_s20 = sshll.u32 %s552_s15, 3  ;;  %s2075_s21 = scalar_lea.sflag [#allocation7], %s552_s15 }
  0x62   : > { %p3252_p3 = scmp.ne.s32.totalorder %s3241_s28, 0 }
  0x65   : > { %977 = vadd.xlane.f32.xlu0 %v568_v1  ;;  %v2990_v1 = vsub.s32 %v709_v57, %v584_v55 }
  0xea   : > { %v570_v2 = vpop.xlane.xlu0 %569 }
  0xeb   : > { %v572_v3 = vmul.f32 0.03125, %v570_v2 }
  0xed   : > { %v573_v4 = vsub.f32 %v2943_v0, %v572_v3 }
  0xee   : > { %v978_v5 = vpop.xlane.xlu0 %977 }
  0xef   : > { %v980_v6 = vmul.f32 0.03125, %v978_v5  ;;  %v574_v7 = vmul.f32 %v573_v4, %v573_v4 }
  0xf1   : > { %v981_v8 = vsub.f32 %v2943_v0, %v980_v6  ;;  %v575_v9 = vsel %vm567_vm0, %v574_v7, 0.0 }
  0xf2   : > { %576 = vadd.xlane.f32.xlu1 %v575_v9 }
  0xf3   : > { %v982_v10 = vmul.f32 %v981_v8, %v981_v8 }
  0xf5   : > { %v983_v11 = vsel %vm567_vm0, %v982_v10, 0.0 }
  0xf6   : > { %984 = vadd.xlane.f32.xlu1 %v983_v11 }
 0x17b   : > { %v577_v15 = vpop.xlane.xlu1 %576 }
 0x17c   : > { %v578_v16 = vmul.f32 0.03125, %v577_v15 }
 0x17e   : > { %v579_v17 = vadd.f32 1e-05, %v578_v16 }
 0x17f   : > { %v985_v18 = vpop.xlane.xlu1 %984 }
 0x180   : > { %2504 = vrsqrt.f32 %v579_v17  ;;  %v986_v19 = vmul.f32 0.03125, %v985_v18 }
 0x182   : > { %v987_v20 = vadd.f32 1e-05, %v986_v19 }
 0x184   : > { %2506 = vrsqrt.f32 %v987_v20 }
 0x18d   : > { %v2505_v21 = vpop.eup %2504 }
 0x18e   : > { %v581_v23 = vmul.f32 %v2505_v21, %v573_v4 }
 0x190   : > { %v588_v25 = vmul.f32 %v2255_v22, %v581_v23 }
 0x191   : > { %v2507_v26 = vpop.eup %2506 }
 0x192   : > { %v595_v27 = vadd.f32 %v2256_v24, %v588_v25  ;;  %v989_v28 = vmul.f32 %v2507_v26, %v981_v8 }
 0x194   : > { %v596_v30 = vpack.c.bf16 %v595_v27, %v595_v27  ;;  %v996_v31 = vmul.f32 %v2255_v22, %v989_v28 }
 0x196   : > { %2295 = vmatmul.mubr.msk.bf16.vlgmr.msra.gmra.mxu1 %vm567_vm0, %v596_v30  ;;  %v1003_v33 = vadd.f32 %v2256_v24, %v996_v31 }
 0x197   : > { %2299 = vmatpush3.bf16.msra.mxu1 %v2494_v29  ;;  %2302 = vmatprep.mubr.msk.bf16.mxu1 %vm2727_vm1, %v2726_v13 }
 0x198   : > { %2300 = vmatprep.subr.bf16.mxu1 %v2726_v13  ;;  %v1004_v34 = vpack.c.bf16 %v1003_v33, %v1003_v33 }
 0x19b   : > { %2301 = vmatpush3.bf16.msra.mxu1 %v2495_v32 }
 0x19c   : > { %2312 = vmatprep.subr.bf16.mxu1 %v2726_v13 }
 0x19e   : > { %2303 = vmatmul.mubr.msk.bf16.vlgmr.msra.gmra.mxu1 %vm567_vm0, %v1004_v34 }
 0x19f   : > { %2314 = vmatprep.mubr.msk.bf16.mxu1 %vm2727_vm1, %v2726_v13 }
 0x256   : > { %v657_v36 = vpop.f32.mrf.mxu1 }
 0x257   : > { %v658_v37 = vadd.f32 %v2213_v35, %v657_v36 }
 0x258   : > { %v2296_v38 = vpop.f32.mrf.mxu1 }
 0x259   : > { %667 = vrot.lane.b32.xlu1 %v658_v37, %s2728_s24  ;;  %664 = vrot.lane.b32.xlu0 %v658_v37, %s2729_s25 }
 0x25a   : > { %v660_v39 = vpop.f32.mrf.mxu1 }
 0x25c   : > { %v2297_v40 = vpop.f32.mrf.mxu1 }
 0x25d   : > { %670 = vrot.lane.b32.xlu1 %v658_v37, %s2730_s29 }
 0x25e   : > { %v1065_v42 = vpop.f32.mrf.mxu1 }
 0x25f   : > { %v1066_v43 = vadd.f32 %v2221_v41, %v1065_v42  ;;  %v2734_v42 = vmov 0  }
 0x260   : > { %v2304_v44 = vpop.f32.mrf.mxu1 }
 0x261   : > { %v1071_v45 = vpack.c.bf16 %v1066_v43, %v1066_v43 }
 0x262   : > { %v1068_v46 = vpop.f32.mrf.mxu1 }
 0x263   : > { %1075 = vrot.lane.b32.xlu0 %v1071_v45, %s2728_s24  ;;  %1073 = vrot.lane.b32.xlu1 %v1071_v45, %s2729_s25  ;;  %v1085_v17 = vrot.slane %v1071_v45, %v2988_v61  ;;  %s554_s24 = scalar_lea.vmem [#allocation13], %s2211_s20 }
 0x264   : > { %v2305_v47 = vpop.f32.mrf.mxu1  ;;  %s2089_s25 = sshll.u32 %s554_s24, 4  ;;  %s3161_s25 = int_to_ptr.vmem [resolvable:$true] %s2089_s25 }
 0x267   : > { %818 = vrot.lane.b32.xlu0 %v658_v37, %s2731_s30  ;;  %1077 = vrot.lane.b32.xlu1 %v1071_v45, %s2730_s29  ;;  %s3251_s29 = sld [smem:[#allocation26_spill]] }
 0x2cb   : > { %v668_v53 = vpop.permute.xlu1 %667  ;;  %v665_v54 = vpop.permute.xlu0 %664 }
 0x2cc   : > { %822 = vrot.lane.b32.xlu0 %v668_v53, %s2731_s30  ;;  %820 = vrot.lane.b32.xlu1 %v665_v54, %s2731_s30  ;;  %v673_v58 = vcombine.low %v658_v37, %v668_v53  ;;  %v674_v59 = vcombine.high %v658_v37, %v668_v53 }
 0x2ce   : > { %v681_v2 = vrot.slane %v673_v58, %v2988_v61  ;;  %v688_v3 = vrot.slane %v674_v59, %v2988_v61 }
 0x2cf   : > { %v671_v60 = vpop.permute.xlu1 %670 }
 0x2d0   : > { %v689_v62 = vcombine.low %v665_v54, %v671_v60  ;;  %v690_v63 = vcombine.high %v665_v54, %v671_v60  ;;  %824 = vrot.lane.b32.xlu1 %v671_v60, %s2731_s30  ;;  %s3159_s30 = scalar_lea.hbm %s3251_s29, %s2252_s17 }
 0x2d2   : > { %v697_v4 = vrot.slane %v689_v62, %v2988_v61  ;;  %v704_v5 = vrot.slane %v690_v63, %v2988_v61 }
 0x2d4   : > { %v705_v6 = vcombine.low %v681_v2, %v697_v4  ;;  %v706_v7 = vcombine.high %v681_v2, %v697_v4  ;;  %v721_v8 = vcombine.low %v688_v3, %v704_v5  ;;  %v722_v9 = vcombine.high %v688_v3, %v704_v5 }
 0x2d5   : > { %v1076_v10 = vpop.permute.xlu0 %1075  ;;  %v1074_v11 = vpop.permute.xlu1 %1073 }
 0x2d6   : > { %v713_v12 = vrot.slane %v705_v6, %v2990_v1  ;;  %v720_v14 = vrot.slane %v706_v7, %v2990_v1  ;;  %v729_v15 = vrot.slane %v721_v8, %v2990_v1  ;;  %v736_v16 = vrot.slane %v722_v9, %v2990_v1 }
 0x2d7   : > { %v1093_v18 = vrot.slane %v1076_v10, %v2988_v61  ;;  %v1119_v37 = vrot.slane %v1074_v11, %v2988_v61 }
 0x2d8   : > { %v741_v19 = vcombine.low %v713_v12, %v720_v14  ;;  %v2217_v20 = vcombine.high %v713_v12, %v720_v14  ;;  %v757_v21 = vcombine.low %v729_v15, %v736_v16  ;;  %v2218_v22 = vcombine.high %v729_v15, %v736_v16 }
 0x2d9   : > { %v1094_v23 = vcombine.low %v1085_v17, %v1093_v18  ;;  %v1095_v24 = vcombine.high %v1085_v17, %v1093_v18  ;;  %v1078_v25 = vpop.permute.xlu1 %1077 }
 0x2da   : > { %v748_v26 = vrot.slane %v741_v19, %v2988_v61  ;;  %v756_v27 = vrot.slane %v2217_v20, %v2988_v61  ;;  %v764_v28 = vrot.slane %v757_v21, %v2988_v61  ;;  %v772_v29 = vrot.slane %v2218_v22, %v2988_v61 }
 0x2db   : > { %v1102_v30 = vrot.slane %v1094_v23, %v2990_v1  ;;  %v1127_v31 = vrot.slane %v1078_v25, %v2988_v61  ;;  %v1109_v36 = vrot.slane %v1095_v24, %v2990_v1 }
 0x2dc   : > { %v773_v32 = vcombine.low %v748_v26, %v756_v27  ;;  %v774_v33 = vcombine.high %v748_v26, %v756_v27  ;;  %v789_v34 = vcombine.low %v764_v28, %v772_v29  ;;  %v790_v35 = vcombine.high %v764_v28, %v772_v29 }
 0x2dd   : > { %v1110_v43 = vcombine.high %v1102_v30, %v2734_v42  ;;  %v1128_v44 = vcombine.low %v1119_v37, %v1127_v31  ;;  %v1129_v45 = vcombine.high %v1119_v37, %v1127_v31  ;;  %v1111_v50 = vcombine.high %v1109_v36, %v2734_v42 }
 0x2de   : > { %v781_v38 = vrot.slane %v773_v32, %v2990_v1  ;;  %v788_v39 = vrot.slane %v774_v33, %v2990_v1  ;;  %v797_v40 = vrot.slane %v789_v34, %v2990_v1  ;;  %v804_v41 = vrot.slane %v790_v35, %v2990_v1 }
 0x2df   : > { %v1150_v51 = vshrl.u32 %v1102_v30, 16  ;;  %v1136_v52 = vrot.slane %v1128_v44, %v2990_v1  ;;  %v1143_v53 = vrot.slane %v1129_v45, %v2990_v1  ;;  %v1158_v63 = vshrl.u32 %v1110_v43, 16 }
 0x2e0   : > { %v805_v46 = vcombine.low %v781_v38, %v797_v40  ;;  %v806_v47 = vcombine.high %v781_v38, %v797_v40  ;;  %v807_v48 = vcombine.low %v788_v39, %v804_v41  ;;  %v808_v49 = vcombine.high %v788_v39, %v804_v41 }
 0x2e1   : > { %v1144_v58 = vcombine.high %v1136_v52, %v2734_v42  ;;  %v1145_v59 = vcombine.high %v1143_v53, %v2734_v42  ;;  %v1148_v60 = vpack.i.b16 %v1136_v52, %v1102_v30  ;;  %v1151_v62 = vshrl.u32 %v1136_v52, 16 }
 0x2e2   : > { %v809_v54 = vpack.c.bf16 %v805_v46, %v805_v46  ;;  %v810_v55 = vpack.c.bf16 %v806_v47, %v806_v47  ;;  %v811_v56 = vpack.c.bf16 %v807_v48, %v807_v48  ;;  %v812_v57 = vpack.c.bf16 %v808_v49, %v808_v49 }
 0x2e3   : > { %v1166_v2 = vshrl.u32 %v1109_v36, 16  ;;  %v1164_v3 = vpack.i.b16 %v1143_v53, %v1109_v36  ;;  %v1167_v4 = vshrl.u32 %v1143_v53, 16  ;;  %v1152_v5 = vpack.i.b16 %v1151_v62, %v1150_v51 }
 0x2e4   : > { %814 = vst.msk [vmem:[#allocation2] sm:$0xf] %vm813_vm2, %v809_v54  ;;  %815 = vst.msk [vmem:[#allocation2 + $0x4] sm:$0xf] %vm813_vm2, %v810_v55  ;;  %v1156_v6 = vpack.i.b16 %v1144_v58, %v1110_v43  ;;  %v1159_v7 = vshrl.u32 %v1144_v58, 16  ;;  %v1172_v8 = vpack.i.b16 %v1145_v59, %v1111_v50  ;;  %v1174_v9 = vshrl.u32 %v1111_v50, 16 }
 0x2e5   : > { %816 = vst.msk [vmem:[#allocation2 + $0x8] sm:$0xf] %vm813_vm2, %v811_v56  ;;  %817 = vst.msk [vmem:[#allocation2 + $0xc] sm:$0xf] %vm813_vm2, %v812_v57  ;;  %v1168_v10 = vpack.i.b16 %v1167_v4, %v1166_v2  ;;  %v1175_v11 = vshrl.u32 %v1145_v59, 16  ;;  %v1178_v12 = vcombine.low %v1148_v60, %v1164_v3 }
 0x2e6   : > { %v1160_v14 = vpack.i.b16 %v1159_v7, %v1158_v63  ;;  %v1186_v15 = vcombine.low %v1156_v6, %v1172_v8 }
 0x2e7   : > { %v1176_v16 = vpack.i.b16 %v1175_v11, %v1174_v9  ;;  %v1203_v17 = vcombine.low %v1152_v5, %v1168_v10  ;;  %v1185_v18 = vrot.slane %v1178_v12, %v2988_v61 }
 0x2e8   : > { %v1193_v19 = vrot.slane %v1186_v15, %v2988_v61 }
 0x2e9   : > { %v1211_v20 = vcombine.low %v1160_v14, %v1176_v16  ;;  %v1210_v24 = vrot.slane %v1203_v17, %v2988_v61 }
 0x2ea   : > { %v1194_v23 = vcombine.low %v1185_v18, %v1193_v19 }
 0x2eb   : > { %v1240_v21 = vld [vmem:[#allocation2] sm:$0xf]  ;;  %v1241_v22 = vld [vmem:[#allocation2 + $0x4] sm:$0xf]  ;;  %v1218_v27 = vrot.slane %v1211_v20, %v2988_v61 }
 0x2ec   : > { %v1249_v25 = vsel %vm1244_vm3, %v1240_v21, 0  ;;  %v1295_v26 = vsel %vm1244_vm3, %v1241_v22, 0  ;;  %v1201_v28 = vrot.slane %v1194_v23, %v2990_v1  ;;  %v1242_v31 = vld [vmem:[#allocation2 + $0x8] sm:$0xf]  ;;  %v1243_v35 = vld [vmem:[#allocation2 + $0xc] sm:$0xf] }
 0x2ed   : > { %2307 = vmatpush3.bf16.xpose.msra.mxu0 %v1249_v25  ;;  %2313 = vmatpush3.bf16.xpose.msra.mxu1 %v1295_v26  ;;  %v1219_v29 = vcombine.low %v1210_v24, %v1218_v27  ;;  %v1341_v37 = vsel %vm1244_vm3, %v1242_v31, 0  ;;  %v1387_v39 = vsel %vm1244_vm3, %v1243_v35, 0 }
 0x2ee   : > { %2318 = vmatprep.subr.bf16.mxu0 %v2726_v13  ;;  %2324 = vmatprep.subr.bf16.mxu1 %v2726_v13  ;;  %v1231_v33 = vshrl.u32 %v1201_v28, 16  ;;  %v1202_v40 = vcombine.high %v1201_v28, %v2734_v42 }
 0x2ef   : > { %v1226_v30 = vrot.slane %v1219_v29, %v2990_v1 }
 0x2f0   : > { %v1237_v44 = vshrl.u32 %v1202_v40, 16 }
 0x2f1   : > { %v1230_v32 = vpack.i.b16 %v1226_v30, %v1201_v28  ;;  %v1232_v34 = vshrl.u32 %v1226_v30, 16  ;;  %v1227_v38 = vcombine.high %v1226_v30, %v2734_v42  ;;  %v819_v42 = vpop.permute.xlu0 %818 }
 0x2f3   : > { %v1233_v36 = vpack.i.b16 %v1232_v34, %v1231_v33  ;;  %v1238_v41 = vshrl.u32 %v1227_v38, 16  ;;  %v1236_v43 = vpack.i.b16 %v1227_v38, %v1202_v40 }
 0x2f4   : > { %2309 = vmatmul.mubr.msk.bf16.vlgmr.msra.gmra.mxu0 %vm1244_vm3, %v1230_v32 }
 0x2f5   : > { %2319 = vmatpush3.bf16.xpose.msra.mxu0 %v1341_v37  ;;  %2320 = vmatprep.mubr.msk.bf16.mxu0 %vm2727_vm1, %v2726_v13  ;;  %v1239_v45 = vpack.i.b16 %v1238_v41, %v1237_v44 }
 0x2f6   : > { %2315 = vmatmul.mubr.msk.bf16.vlgmr.msra.gmra.mxu1 %vm1244_vm3, %v1233_v36  ;;  %2330 = vmatprep.subr.bf16.mxu0 %v2726_v13 }
 0x2f7   : > { %2325 = vmatpush3.bf16.xpose.msra.mxu1 %v1387_v39  ;;  %2326 = vmatprep.mubr.msk.bf16.mxu1 %vm2727_vm1, %v2726_v13 }
 0x2f8   : > { %2336 = vmatprep.subr.bf16.mxu1 %v2726_v13 }
 0x2fc   : > { %2321 = vmatmul.mubr.msk.bf16.vlgmr.msra.gmra.mxu0 %vm1244_vm3, %v1236_v43 }
 0x2fd   : > { %2332 = vmatprep.mubr.msk.bf16.mxu0 %vm2727_vm1, %v2726_v13 }
 0x2fe   : > { %2327 = vmatmul.mubr.msk.bf16.vlgmr.msra.gmra.mxu1 %vm1244_vm3, %v1239_v45 }
 0x2ff   : > { %2338 = vmatprep.mubr.msk.bf16.mxu1 %vm2727_vm1, %v2726_v13 }
 0x33e   : > { %v823_v46 = vpop.permute.xlu0 %822  ;;  %v821_v47 = vpop.permute.xlu1 %820 }
 0x33f   : > { %v830_v48 = vcombine.low %v819_v42, %v823_v46  ;;  %v831_v49 = vcombine.high %v819_v42, %v823_v46 }
 0x341   : > { %v838_v53 = vrot.slane %v830_v48, %v2988_v61  ;;  %v845_v54 = vrot.slane %v831_v49, %v2988_v61 }
 0x342   : > { %v825_v50 = vpop.permute.xlu1 %824 }
 0x343   : > { %v846_v51 = vcombine.low %v821_v47, %v825_v50  ;;  %v847_v52 = vcombine.high %v821_v47, %v825_v50 }
 0x345   : > { %v854_v55 = vrot.slane %v846_v51, %v2988_v61  ;;  %v861_v56 = vrot.slane %v847_v52, %v2988_v61 }
 0x347   : > { %v862_v57 = vcombine.low %v838_v53, %v854_v55  ;;  %v863_v58 = vcombine.high %v838_v53, %v854_v55  ;;  %v878_v59 = vcombine.low %v845_v54, %v861_v56  ;;  %v879_v60 = vcombine.high %v845_v54, %v861_v56 }
 0x349   : > { %v870_v62 = vrot.slane %v862_v57, %v2990_v1  ;;  %v877_v63 = vrot.slane %v863_v58, %v2990_v1  ;;  %v886_v2 = vrot.slane %v878_v59, %v2990_v1  ;;  %v893_v3 = vrot.slane %v879_v60, %v2990_v1 }
 0x34b   : > { %v898_v4 = vcombine.low %v870_v62, %v877_v63  ;;  %v2219_v5 = vcombine.high %v870_v62, %v877_v63  ;;  %v914_v6 = vcombine.low %v886_v2, %v893_v3  ;;  %v2220_v7 = vcombine.high %v886_v2, %v893_v3 }
 0x34d   : > { %v905_v8 = vrot.slane %v898_v4, %v2988_v61  ;;  %v913_v9 = vrot.slane %v2219_v5, %v2988_v61  ;;  %v921_v10 = vrot.slane %v914_v6, %v2988_v61  ;;  %v929_v11 = vrot.slane %v2220_v7, %v2988_v61 }
 0x34f   : > { %v930_v12 = vcombine.low %v905_v8, %v913_v9  ;;  %v931_v14 = vcombine.high %v905_v8, %v913_v9  ;;  %v946_v15 = vcombine.low %v921_v10, %v929_v11  ;;  %v947_v16 = vcombine.high %v921_v10, %v929_v11 }
 0x351   : > { %v938_v17 = vrot.slane %v930_v12, %v2990_v1  ;;  %v945_v18 = vrot.slane %v931_v14, %v2990_v1  ;;  %v954_v19 = vrot.slane %v946_v15, %v2990_v1  ;;  %v961_v20 = vrot.slane %v947_v16, %v2990_v1 }
 0x353   : > { %v962_v21 = vcombine.low %v938_v17, %v954_v19  ;;  %v963_v22 = vcombine.high %v938_v17, %v954_v19  ;;  %v964_v23 = vcombine.low %v945_v18, %v961_v20  ;;  %v965_v24 = vcombine.high %v945_v18, %v961_v20 }
 0x355   : > { %v966_v25 = vpack.c.bf16 %v962_v21, %v962_v21  ;;  %v967_v26 = vpack.c.bf16 %v963_v22, %v963_v22  ;;  %v968_v27 = vpack.c.bf16 %v964_v23, %v964_v23  ;;  %v969_v28 = vpack.c.bf16 %v965_v24, %v965_v24 }
 0x357   : > { %970 = vst.msk [vmem:[#allocation3] sm:$0xf] %vm813_vm2, %v966_v25  ;;  %971 = vst.msk [vmem:[#allocation3 + $0x4] sm:$0xf] %vm813_vm2, %v967_v26 }
 0x358   : > { %972 = vst.msk [vmem:[#allocation3 + $0x8] sm:$0xf] %vm813_vm2, %v968_v27  ;;  %973 = vst.msk [vmem:[#allocation3 + $0xc] sm:$0xf] %vm813_vm2, %v969_v28 }
 0x35e   : > { %v1473_v29 = vld [vmem:[#allocation3] sm:$0xf]  ;;  %v1474_v30 = vld [vmem:[#allocation3 + $0x4] sm:$0xf] }
 0x35f   : > { %v1482_v31 = vsel %vm1480_vm4, %v1473_v29, 0  ;;  %v1528_v32 = vsel %vm1480_vm4, %v1474_v30, 0  ;;  %v1475_v9 = vld [vmem:[#allocation3 + $0x8] sm:$0xf]  ;;  %v1476_v14 = vld [vmem:[#allocation3 + $0xc] sm:$0xf] }
 0x360   : > { %2331 = vmatpush3.bf16.msra.mxu0 %v1482_v31  ;;  %2337 = vmatpush3.bf16.msra.mxu1 %v1528_v32  ;;  %v1574_v17 = vsel %vm1480_vm4, %v1475_v9, 0  ;;  %v1620_v18 = vsel %vm1480_vm4, %v1476_v14, 0 }
 0x361   : > { %2342 = vmatprep.subr.bf16.mxu0 %v2726_v13  ;;  %2348 = vmatprep.subr.bf16.mxu1 %v2726_v13 }
 0x3b4   : > { %v1285_v33 = vpop.f32.mrf.mxu0 }
 0x3b5   : > { %v1429_v34 = vmul.f32 0.35355338, %v1285_v33 }
 0x3b6   : > { %v1331_v35 = vpop.f32.mrf.mxu1  ;;  %v2310_v36 = vpop.f32.mrf.mxu0 }
 0x3b7   : > { %v1430_v37 = vmul.f32 0.35355338, %v1331_v35  ;;  %v1433_v38 = vsel %vm1244_vm3, %v1429_v34, -inf }
 0x3b8   : > { %v2316_v39 = vpop.f32.mrf.mxu1  ;;  %1434 = vmax.xlane.f32.xlu0 %v1433_v38  ;;  %v1288_v40 = vpop.f32.mrf.mxu0 }
 0x3b9   : > { %v1436_v41 = vsel %vm1244_vm3, %v1430_v37, -inf }
 0x3ba   : > { %1437 = vmax.xlane.f32.xlu1 %v1436_v41  ;;  %v1334_v43 = vpop.f32.mrf.mxu1  ;;  %v2311_v44 = vpop.f32.mrf.mxu0 }
 0x3bc   : > { %v2317_v45 = vpop.f32.mrf.mxu1  ;;  %v1377_v42 = vpop.f32.mrf.mxu0 }
 0x3bd   : > { %v1431_v46 = vmul.f32 0.35355338, %v1377_v42 }
 0x3be   : > { %v1423_v47 = vpop.f32.mrf.mxu1  ;;  %v2322_v48 = vpop.f32.mrf.mxu0 }
 0x3bf   : > { %v1432_v49 = vmul.f32 0.35355338, %v1423_v47  ;;  %v1439_v50 = vsel %vm1244_vm3, %v1431_v46, -inf }
 0x3c0   : > { %v2328_v51 = vpop.f32.mrf.mxu1  ;;  %1440 = vmax.xlane.f32.xlu0 %v1439_v50  ;;  %v1380_v52 = vpop.f32.mrf.mxu0 }
 0x3c1   : > { %v1442_v55 = vsel %vm1244_vm3, %v1432_v49, -inf }
 0x3c2   : > { %v1426_v53 = vpop.f32.mrf.mxu1  ;;  %v2323_v54 = vpop.f32.mrf.mxu0 }
 0x3c4   : > { %v2329_v56 = vpop.f32.mrf.mxu1  ;;  %1443 = vmax.xlane.f32.xlu0 %v1442_v55 }
 0x441   : > { %v1435_v57 = vpop.xlane.xlu0 %1434 }
 0x442   : > { %v1445_v58 = vsub.f32 %v1429_v34, %v1435_v57 }
 0x443   : > { %v1438_v59 = vpop.xlane.xlu1 %1437 }
 0x444   : > { %v1449_v60 = vmul.f32 1.442695, %v1445_v58  ;;  %v1446_v62 = vsub.f32 %v1430_v37, %v1438_v59 }
 0x446   : > { %2508 = vpow2.f32 %v1449_v60  ;;  %v1451_v63 = vmul.f32 1.442695, %v1446_v62 }
 0x448   : > { %2510 = vpow2.f32 %v1451_v63 }
 0x449   : > { %v1441_v2 = vpop.xlane.xlu0 %1440 }
 0x44a   : > { %v1447_v3 = vsub.f32 %v1431_v46, %v1441_v2 }
 0x44c   : > { %v1453_v4 = vmul.f32 1.442695, %v1447_v3 }
 0x44d   : > { %v1444_v5 = vpop.xlane.xlu0 %1443 }
 0x44e   : > { %2512 = vpow2.f32 %v1453_v4  ;;  %v1448_v6 = vsub.f32 %v1432_v49, %v1444_v5  ;;  %v2496_v4 = vld [vmem:[#allocation5 + $0x8] sm:$0xff]  }
 0x450   : > { %v1455_v7 = vmul.f32 1.442695, %v1448_v6 }
 0x452   : > { %2514 = vpow2.f32 %v1455_v7 }
 0x453   : > { %v2509_v8 = vpop.eup %2508 }
 0x454   : > { %v1457_v10 = vsel %vm1244_vm3, %v2509_v8, 0.0  ;;  %v1469_v11 = vpack.c.bf16 %v2509_v8, %v2509_v8 }
 0x455   : > { %v2511_v12 = vpop.eup %2510  ;;  %1458 = vadd.xlane.f32.xlu0 %v1457_v10 }
 0x456   : > { %v1460_v15 = vsel %vm1244_vm3, %v2511_v12, 0.0  ;;  %2333 = vmatmul.mubr.msk.bf16.vlgmr.msra.gmra.mxu0 %vm1244_vm3, %v1469_v11  ;;  %v1470_v16 = vpack.c.bf16 %v2511_v12, %v2511_v12 }
 0x457   : > { %1461 = vadd.xlane.f32.xlu1 %v1460_v15  ;;  %2343 = vmatpush3.bf16.msra.mxu0 %v1574_v17 }
 0x458   : > { %2339 = vmatmul.mubr.msk.bf16.vlgmr.msra.gmra.mxu1 %vm1244_vm3, %v1470_v16  ;;  %2344 = vmatprep.mubr.msk.bf16.mxu0 %vm2727_vm1, %v2726_v13 }
 0x459   : > { %2349 = vmatpush3.bf16.msra.mxu1 %v1620_v18  ;;  %2350 = vmatprep.mubr.msk.bf16.mxu1 %vm2727_vm1, %v2726_v13  ;;  %v2497_v18 = vld [vmem:[#allocation5] sm:$0xff]  }
 0x45a   : > { %2354 = vmatprep.subr.bf16.mxu0 %v2726_v13  ;;  %2362 = vmatprep.subr.bf16.mxu1 %v2726_v13 }
 0x45b   : > { %v2513_v19 = vpop.eup %2512 }
 0x45c   : > { %v1463_v20 = vsel %vm1244_vm3, %v2513_v19, 0.0  ;;  %v1471_v21 = vpack.c.bf16 %v2513_v19, %v2513_v19 }
 0x45d   : > { %1464 = vadd.xlane.f32.xlu0 %v1463_v20 }
 0x45e   : > { %2345 = vmatmul.mubr.msk.bf16.vlgmr.msra.gmra.mxu0 %vm1244_vm3, %v1471_v21 }
 0x45f   : > { %v2515_v22 = vpop.eup %2514  ;;  %2358 = vmatprep.mubr.msk.bf16.mxu0 %vm2727_vm1, %v2726_v13  ;;  %2355 = vmatpush3.bf16.msra.mxu0 %v2496_v4 }
 0x460   : > { %v1466_v23 = vsel %vm1244_vm3, %v2515_v22, 0.0  ;;  %v1472_v24 = vpack.c.bf16 %v2515_v22, %v2515_v22  ;;  %2356 = vmatprep.subr.bf16.mxu0 %v2726_v13 }
 0x461   : > { %1467 = vadd.xlane.f32.xlu1 %v1466_v23 }
 0x462   : > { %2351 = vmatmul.mubr.msk.bf16.vlgmr.msra.gmra.mxu1 %vm1244_vm3, %v1472_v24 }
 0x463   : > { %2366 = vmatprep.mubr.msk.bf16.mxu1 %vm2727_vm1, %v2726_v13  ;;  %2357 = vmatpush3.bf16.msra.mxu0 %v2497_v18 }
 0x464   : > { %2370 = vmatprep.subr.bf16.mxu0 %v2726_v13 }
 0x4de   : > { %v1459_v25 = vpop.xlane.xlu0 %1458 }
 0x4e0   : > { %v1462_v26 = vpop.xlane.xlu1 %1461 }
 0x4e6   : > { %v1465_v27 = vpop.xlane.xlu0 %1464 }
 0x4e7   : > { %2516 = vrcp.f32 %v1465_v27 }
 0x4e8   : > { %2518 = vrcp.f32 %v1459_v25 }
 0x4e9   : > { %2520 = vrcp.f32 %v1462_v26 }
 0x4ea   : > { %v1468_v28 = vpop.xlane.xlu1 %1467 }
 0x4eb   : > { %2522 = vrcp.f32 %v1468_v28 }
 0x4f4   : > { %v2517_v36 = vpop.eup %2516 }
 0x4f5   : > { %v2519_v40 = vpop.eup %2518 }
 0x4f6   : > { %v2521_v43 = vpop.eup %2520 }
 0x4f8   : > { %v2523_v45 = vpop.eup %2522 }
 0x516   : > { %v1518_v29 = vpop.f32.mrf.mxu0 }
 0x517   : > { %v1666_v44 = vmul.f32 %v2519_v40, %v1518_v29 }
 0x518   : > { %v1564_v30 = vpop.f32.mrf.mxu1  ;;  %v2334_v31 = vpop.f32.mrf.mxu0 }
 0x519   : > { %v1667_v47 = vmul.f32 %v2521_v43, %v1564_v30 }
 0x51a   : > { %v2340_v32 = vpop.f32.mrf.mxu1  ;;  %v1521_v33 = vpop.f32.mrf.mxu0 }
 0x51c   : > { %v1567_v34 = vpop.f32.mrf.mxu1  ;;  %v2335_v35 = vpop.f32.mrf.mxu0 }
 0x51e   : > { %v2341_v37 = vpop.f32.mrf.mxu1  ;;  %v1610_v38 = vpop.f32.mrf.mxu0 }
 0x51f   : > { %v1668_v39 = vmul.f32 %v2517_v36, %v1610_v38  ;;  %v2235_v36 = vld [vmem:[%s3212_s6] ss:$0 sm:$0xff] }
 0x520   : > { %v2346_v41 = vpop.f32.mrf.mxu0 }
 0x521   : > { %v1670_v48 = vcombine.low %v1666_v44, %v1668_v39  ;;  %v1671_v49 = vcombine.high %v1666_v44, %v1668_v39 }
 0x522   : > { %v1613_v42 = vpop.f32.mrf.mxu0  ;;  %v1656_v46 = vpop.f32.mrf.mxu1 }
 0x523   : > { %v1669_v50 = vmul.f32 %v2523_v45, %v1656_v46  ;;  %v1678_v56 = vrot.slane %v1670_v48, %v2988_v61  ;;  %v1685_v57 = vrot.slane %v1671_v49, %v2988_v61  ;;  %v2498_v49 = vld [vmem:[#allocation10 + $0x8] sm:$0xff]  }
 0x524   : > { %v2347_v51 = vpop.f32.mrf.mxu0  ;;  %v2352_v52 = vpop.f32.mrf.mxu1  ;;  %2363 = vmatpush3.bf16.msra.mxu1 %v2498_v49 }
 0x525   : > { %v1686_v53 = vcombine.low %v1667_v47, %v1669_v50  ;;  %v1687_v54 = vcombine.high %v1667_v47, %v1669_v50  ;;  %v2499_v50 = vld [vmem:[#allocation10] sm:$0xff]   ;;  %2364 = vmatprep.subr.bf16.mxu1 %v2726_v13 }
 0x526   : > { %v1659_v55 = vpop.f32.mrf.mxu1  ;;  %v2501_v51 = vld [vmem:[%s3217_s11 + $0x10] sm:$0xff]  }
 0x527   : > { %v1694_v58 = vrot.slane %v1686_v53, %v2988_v61  ;;  %v1701_v59 = vrot.slane %v1687_v54, %v2988_v61 }
 0x528   : > { %v2353_v60 = vpop.f32.mrf.mxu1  ;;  %2365 = vmatpush3.bf16.msra.mxu1 %v2499_v50 }
 0x529   : > { %v1702_v62 = vcombine.low %v1678_v56, %v1694_v58  ;;  %v1703_v63 = vcombine.high %v1678_v56, %v1694_v58  ;;  %v1718_v2 = vcombine.low %v1685_v57, %v1701_v59  ;;  %v1719_v3 = vcombine.high %v1685_v57, %v1701_v59  ;;  %v2239_v56 = vld [vmem:[%s3219_s13] ss:$0 sm:$0xff] }
 0x52a   : > { %v2240_v58 = vld [vmem:[%s3220_s14] ss:$0 sm:$0xff] }
 0x52b   : > { %v1710_v5 = vrot.slane %v1702_v62, %v2990_v1  ;;  %v1717_v6 = vrot.slane %v1703_v63, %v2990_v1  ;;  %v1726_v7 = vrot.slane %v1718_v2, %v2990_v1  ;;  %v1733_v8 = vrot.slane %v1719_v3, %v2990_v1  ;;  %v2502_v63 = vld [vmem:[%s3217_s11 + $0x8] sm:$0xff]   ;;  %v2503_v2 = vld [vmem:[%s3217_s11] sm:$0xff]  }
 0x52c   : > { %v2241_v3 = vld [vmem:[#allocation11] ss:$0 sm:$0xff] }
 0x52d   : > { %v1738_v9 = vcombine.low %v1710_v5, %v1717_v6  ;;  %v2233_v10 = vcombine.high %v1710_v5, %v1717_v6  ;;  %v1754_v11 = vcombine.low %v1726_v7, %v1733_v8  ;;  %v2234_v12 = vcombine.high %v1726_v7, %v1733_v8 }
 0x52f   : > { %v1745_v14 = vrot.slane %v1738_v9, %v2988_v61  ;;  %v1753_v15 = vrot.slane %v2233_v10, %v2988_v61  ;;  %v1761_v16 = vrot.slane %v1754_v11, %v2988_v61  ;;  %v1769_v17 = vrot.slane %v2234_v12, %v2988_v61 }
 0x531   : > { %v1771_v19 = vcombine.high %v1745_v14, %v1753_v15  ;;  %v1787_v20 = vcombine.high %v1761_v16, %v1769_v17  ;;  %v1770_v21 = vcombine.low %v1745_v14, %v1753_v15  ;;  %v1786_v22 = vcombine.low %v1761_v16, %v1769_v17 }
 0x533   : > { %v1785_v23 = vrot.slane %v1771_v19, %v2990_v1  ;;  %v1801_v24 = vrot.slane %v1787_v20, %v2990_v1  ;;  %v1778_v25 = vrot.slane %v1770_v21, %v2990_v1  ;;  %v1794_v26 = vrot.slane %v1786_v22, %v2990_v1 }
 0x535   : > { %v1804_v27 = vcombine.low %v1785_v23, %v1801_v24  ;;  %v1803_v28 = vcombine.high %v1778_v25, %v1794_v26  ;;  %v1802_v29 = vcombine.low %v1778_v25, %v1794_v26  ;;  %v1805_v61 = vcombine.high %v1785_v23, %v1801_v24 }
 0x537   : > { %1811 = vrot.lane.b32.xlu1 %v1804_v27, %s2735_s22  ;;  %1807 = vrot.lane.b32.xlu0 %v1803_v28, %s2736_s8  ;;  %s2630_s22 = scalar_lea.vmem %s3161_s25, 128  ;;  %s2738_s8 = smov [#allocation13]  }
 0x538   : > { %p2631_p0 = scmp.ne.s32.totalorder %s3161_s25, %s2630_s22 }
 0x53a   : > { %p2632_p5 = pnand %p2631_p0, %p3252_p3 }
 0x53b   : > { %1815 = vrot.lane.b32.xlu1 %v1805_v61, %s2737_s27  ;;  %s2634_s27 = sshll.u32 %s2738_s8, 4  ;;  %s2635_s27 = int_to_ptr.vmem [resolvable:$false] %s2634_s27 }
 0x53c   : > { %p2633_p6 = pneg %p2632_p5  ;;  %s2636_s20 = scalar_lea.vmem %s2635_s27, 256 }
 0x53d   : > { %p2637_p7 = scmp.lt.s32.totalorder %s3161_s25, %s2635_s27  ;;  %p2638_p9 = scmp.lt.s32.totalorder %s2636_s20, %s2630_s22 }
 0x53f   : > { %p2639_p12 = por %p2638_p9, %p2637_p7 }
 0x541   : > { %p2640_p1 = pnand %p2639_p12, %p2633_p6 }
 0x5a9   : > { %v1812_v30 = vpop.permute.xlu1 %1811  ;;  %v1808_v31 = vpop.permute.xlu0 %1807 }
 0x5aa   : > { %v1818_v32 = vsel %vm1244_vm3, %v1802_v29, %v1808_v31 }
 0x5ab   : > { %v1820_v34 = vsel %vm1819_vm5, %v1818_v32, %v1812_v30 }
 0x5ad   : > { %v1816_v33 = vpop.permute.xlu1 %1815 }
 0x5ae   : > { %v1822_v35 = vsel %vm1821_vm6, %v1820_v34, %v1816_v33 }
 0x5af   : > { %v1823_v1 = vpack.c.bf16 %v1822_v35, %v1822_v35 }
 0x5b1   : > { %2359 = vmatmul.mubr.msk.bf16.vlgmr.msra.gmra.mxu0 %vm567_vm0, %v1823_v1 }
 0x5b2   : > { %2378 = vmatprep.mubr.msk.bf16.mxu0 %vm2727_vm1, %v2726_v13 }
 0x671   : > { %v1884_v37 = vpop.f32.mrf.mxu0 }
 0x672   : > { %v1885_v38 = vadd.f32 %v2235_v36, %v1884_v37 }
 0x673   : > { %v2360_v39 = vpop.f32.mrf.mxu0 }
 0x674   : > { %v1890_v40 = vadd.f32 %v1885_v38, %v2943_v0  ;;  %v2500_v0 = vld [vmem:[%s3217_s11 + $0x18] sm:$0xff]  }
 0x675   : > { %v1887_v41 = vpop.f32.mrf.mxu0  ;;  %2371 = vmatpush3.bf16.msra.mxu0 %v2500_v0 }
 0x676   : > { %v1893_v43 = vsel %vm567_vm0, %v1890_v40, 0.0  ;;  %2372 = vmatprep.subr.bf16.mxu0 %v2726_v13 }
 0x677   : > { %1894 = vadd.xlane.f32.xlu1 %v1893_v43  ;;  %v2361_v44 = vpop.f32.mrf.mxu0 }
 0x679   : > { %2373 = vmatpush3.bf16.msra.mxu0 %v2501_v51 }
 0x67a   : > { %2374 = vmatprep.subr.bf16.mxu0 %v2726_v13 }
 0x67d   : > { %2375 = vmatpush3.bf16.msra.mxu0 %v2502_v63 }
 0x67e   : > { %2376 = vmatprep.subr.bf16.mxu0 %v2726_v13  ;;  %v2245_v13 = vld [vmem:[%s3218_s12] ss:$0 sm:$0xff] }
 0x681   : > { %2377 = vmatpush3.bf16.msra.mxu0 %v2503_v2 }
 0x700   : > { %v1895_v45 = vpop.xlane.xlu1 %1894 }
 0x701   : > { %v1896_v42 = vmul.f32 0.03125, %v1895_v45 }
 0x703   : > { %v1897_v46 = vsub.f32 %v1890_v40, %v1896_v42 }
 0x705   : > { %v1898_v47 = vmul.f32 %v1897_v46, %v1897_v46 }
 0x707   : > { %v1899_v48 = vsel %vm567_vm0, %v1898_v47, 0.0 }
 0x708   : > { %1900 = vadd.xlane.f32.xlu0 %v1899_v48 }
 0x791   : > { %v1901_v52 = vpop.xlane.xlu0 %1900 }
 0x792   : > { %v1902_v53 = vmul.f32 0.03125, %v1901_v52 }
 0x794   : > { %v1903_v54 = vadd.f32 1e-05, %v1902_v53 }
 0x796   : > { %2524 = vrsqrt.f32 %v1903_v54 }
 0x7a3   : > { %v2525_v55 = vpop.eup %2524 }
 0x7a4   : > { %v1905_v57 = vmul.f32 %v2525_v55, %v1897_v46 }
 0x7a6   : > { %v1912_v59 = vmul.f32 %v2239_v56, %v1905_v57 }
 0x7a8   : > { %v1919_v60 = vadd.f32 %v2240_v58, %v1912_v59 }
 0x7aa   : > { %v1920_v62 = vpack.c.bf16 %v1919_v60, %v1919_v60 }
 0x7ac   : > { %2367 = vmatmul.mubr.msk.bf16.vlgmr.msra.gmra.mxu1 %vm567_vm0, %v1920_v62 }
 0x86c   : > { %v1981_v4 = vpop.f32.mrf.mxu1 }
 0x86d   : > { %v1982_v5 = vadd.f32 %v2241_v3, %v1981_v4 }
 0x86e   : > { %v2368_v6 = vpop.f32.mrf.mxu1 }
 0x86f   : > { %v1987_v7 = vmax.f32 %v1982_v5, 0.0 }
 0x870   : > { %v1984_v8 = vpop.f32.mrf.mxu1 }
 0x871   : > { %v1988_v9 = vpack.c.bf16 %v1987_v7, %v1987_v7 }
 0x872   : > { %v2369_v10 = vpop.f32.mrf.mxu1 }
 0x873   : > { %2379 = vmatmul.mubr.msk.bf16.vlgmr.msra.gmra.mxu0 %vm2028_vm7, %v1988_v9 }
 0x933   : > { %v2066_v11 = vpop.f32.mrf.mxu0 }
 0x934   : > { %v2067_v12 = vadd.f32 %v2245_v13, %v2066_v11 }
 0x935   : > { %v2380_v14 = vpop.f32.mrf.mxu0 }
 0x936   : > { %v2072_v15 = vadd.f32 %v2067_v12, %v1890_v40 }
 0x937   : > { %v2069_v16 = vpop.f32.mrf.mxu0 }
 0x938   : > { %2073 = vst.msk [vmem:[%s554_s24] sm:$0xff] %vm567_vm0, %v2072_v15 }
 0x939   : > { %v2381_v17 = vpop.f32.mrf.mxu0 }
 0x93a   : > { %2643 = shalt.err (!%p2640_p1)
}
 0x93b   : > { %s2644_s23 = scalar_lea.hbm %s3159_s30, 128  ;;  %s2648_s17 = scalar_lea.hbm %s3251_s29, 256 }
 0x93c   : > { %p2645_p2 = scmp.ne.s32.totalorder %s3159_s30, %s2644_s23  ;;  %p2649_p10 = scmp.lt.s32.totalorder %s3159_s30, %s3251_s29 }
 0x93d   : > { %p2650_p11 = scmp.lt.s32.totalorder %s2648_s17, %s2644_s23 }
 0x93e   : > { %p2646_p8 = pnand %p2645_p2, %p3252_p3 }
 0x93f   : > { %p2651_p13 = por %p2650_p11, %p2649_p10 }
 0x940   : > { %p2647_p4 = pneg %p2646_p8 }
 0x942   : > { %p2652_p0 = pnand %p2651_p13, %p2647_p4 }
 0x944   : > { %2655 = shalt.err (!%p2652_p0)
}
 0x945   : > { %2398 = dma.vmem_to_hbm [thread:$0]  (%p3252_p3), %s3161_s25, 128, %s3159_s30, %s2075_s21  }
 0x946 PF: > { %s3253_s16 = sld [smem:[#allocation21_spill]] }
 0x947   : > { %s3254_s22 = sld [smem:[#allocation18_spill]] }
 0x948   : > { %s3255_s8 = sld [smem:[#allocation23_spill]] }
 0x94c   : > { %p2425_p5 = scmp.ge.s32.totalorder %s3253_s16, 2 }
 0x94d   : > { %s2101_s27 = sand.u32 1, %s3254_s22  }
 0x94e   : > { %p3256_p6 = scmp.ne.s32.totalorder %s3255_s8, 0  ;;  %s2102_s20 = scalar_lea.sflag [#allocation7], %s2101_s27 }
 0x950   : > { %p2414_p7 = pnand %p2425_p5, %p3256_p6 }
 0x952   : > { %p2415_p9 = pneg %p2414_p7 }
 0x954   : > { %2693 = dma.done.wait (%p2415_p9), %s2102_s20, 128  }
 0x955   : > { %2695 = vsyncadd (%p2415_p9), %s2102_s20, 4294967168  ;;  %s31_s23 = sadd.s32 1, %s3253_s16   ;;  %s3257_s28 = sld [smem:[#allocation19_spill]] }
 0x956   : > { %p28_p12 = scmp.ge.s32.totalorder %s31_s23, 4   ;;  %s3258_s20 = sld [smem:[#allocation24_spill]] }
 0x957   : > { %s3259_s21 = sld [smem:[#allocation20_spill]]  ;;  %s3261_s18 = smov %s2702_s19 }
 0x958   : > { %s3260_s22 = sld [smem:[#allocation22_spill]]  ;;  %30 = sbr.rel (!%p28_p12) target bundleno = 10 (0xa), region = 136 }
 0x95b   : > { %s3262_s19 = smov %s3257_s28 }
 0x95d   :  { %2107 = vsyncpa [#allocation6], 1 }
 0x95e   :  { %2109 = vsyncpa [#allocation6 + $0x1], 1 }
 0x95f   :  { %2110 = vsyncpa [#allocation9], 1 }
 0x960   :  { %2111 = vsyncpa [#allocation12], 1 }
 0x961   :  { %2112 = vsyncpa [#allocation7], 1 }
 0x962   :  { %2114 = vsyncpa [#allocation7 + $0x1], 1 }

// kernel: tpu_custom_call.1
= control target key start
LH: loop header
LB: loop body
LE: loop exit
PB: predicated region body
PF: predicated region fallthrough
CT: control target
= control target key end

     0   :  { %s3206_s0 = inlined_call_operand.vmem [shape: f32[2,8,32], index: 0, kind: input, shape index: {}]   ;;  %s3207_s1 = inlined_call_operand.vmem [shape: bf16[32,32], index: 1, kind: input, shape index: {}]   ;;  %s3208_s2 = inlined_call_operand.vmem [shape: f32[1,32], index: 2, kind: input, shape index: {}]   ;;  %s3209_s3 = inlined_call_operand.vmem [shape: bf16[32,64], index: 3, kind: input, shape index: {}]   ;;  %s3210_s4 = inlined_call_operand.vmem [shape: f32[1,64], index: 4, kind: input, shape index: {}]   ;;  %s3211_s5 = inlined_call_operand.hbm [shape: bf16[32,32], index: 5, kind: input, shape index: {}]   ;;  %s3212_s6 = inlined_call_operand.vmem [shape: f32[1,32], index: 6, kind: input, shape index: {}]   ;;  %s3213_s7 = inlined_call_operand.vmem [shape: f32[1,32], index: 7, kind: input, shape index: {}]   ;;  %s3214_s8 = inlined_call_operand.hbm [shape: f32[1,32], index: 8, kind: input, shape index: {}]   ;;  %s3215_s9 = inlined_call_operand.hbm [shape: bf16[32,64], index: 9, kind: input, shape index: {}]   ;;  %s3216_s10 = inlined_call_operand.hbm [shape: f32[1,64], index: 10, kind: input, shape index: {}]   ;;  %s3217_s11 = inlined_call_operand.vmem [shape: bf16[64,32], index: 11, kind: input, shape index: {}]   ;;  %s3218_s12 = inlined_call_operand.vmem [shape: f32[1,32], index: 12, kind: input, shape index: {}]   ;;  %s3219_s13 = inlined_call_operand.vmem [shape: f32[1,32], index: 13, kind: input, shape index: {}]   ;;  %s3220_s14 = inlined_call_operand.vmem [shape: f32[1,32], index: 14, kind: input, shape index: {}]   ;;  %s3221_s15 = inlined_call_operand.hbm [shape: f32[2,8,32], index: 15, kind: output, shape index: {}]  }
   0x1   :  { %3234 = sst [smem:[#allocation25_spill]] %s3214_s8 }
   0x2   :  { %3235 = sst [smem:[#allocation26_spill]] %s3221_s15 }
   0x3   :  { %20 = vsyncpa [#allocation6], 0 }
   0x4   :  { %21 = vsyncpa [#allocation9], 0 }
   0x5   :  { %22 = vsyncpa [#allocation12], 0 }
   0x6   :  { %23 = vsyncpa [#allocation7], 0 }
   0x7   :  { %25 = vsyncpa [#allocation7 + $0x1], 0  ;;  %s2819_s18 = smov 0   ;;  %s2821_s19 = smov 0  }
   0x8   :  { %s2823_s20 = smov 0   ;;  %s2825_s21 = smov 0  }
   0x9   :  { %s2827_s22 = smov 0   ;;  %s2829_s23 = smov 0  }
   0xa LB: > { %3236 = sst [smem:[#allocation18_spill]] %s2698_s18  ;;  %s2198_s24 = sadd.s32 4294967295, %s2718_s23   ;;  %s2718_s23 = sphi %s2829_s23, %s31_s23   ;;  %s2714_s22 = sphi %s2827_s22, %s3260_s22   ;;  %s2710_s21 = sphi %s2825_s21, %s3259_s21   ;;  %s2706_s20 = sphi %s2823_s20, %s3258_s20   ;;  %s2702_s19 = sphi %s2821_s19, %s3262_s19   ;;  %s2698_s18 = sphi %s2819_s18, %s3261_s18  }
   0xb   : > { %3237 = sst [smem:[#allocation19_spill]] %s2706_s20  ;;  %s2199_s25 = sadd.s32 4294967294, %s2718_s23  }
   0xc   : > { %3238 = sst [smem:[#allocation20_spill]] %s2714_s22  ;;  %s43_s26 = sadd.s32 1, %s2714_s22 }
   0xd   : > { %3239 = sst [smem:[#allocation21_spill]] %s2718_s23  ;;  %s372_s27 = sadd.s32 1, %s2706_s20 }
   0xe   : > { %p45_p0 = scmp.ge.s32.totalorder %s43_s26, 2  ;;  %p382_p1 = scmp.ne.s32.totalorder %s2706_s20, %s2702_s19 }
   0xf   : > { %p383_p2 = scmp.eq.s32.totalorder %s2198_s24, 1  ;;  %p388_p3 = scmp.ne.s32.totalorder %s2702_s19, %s2698_s18 }
  0x10   : > { %s3264_s26 = smov (%p45_p0, %s43_s26), 0  ;;  %p389_p5 = scmp.eq.s32.totalorder %s2199_s25, 1 }
  0x11   : > { %3240 = sst [smem:[#allocation22_spill]] %s3264_s26  ;;  %p2859_p4 = por %p383_p2, %p382_p1 }
  0x12   : > { %s367_s29 = ssub.s32 %s2714_s22, %s3264_s26  ;;  %p2200_p6 = scmp.ge.s32.totalorder %s2718_s23, 1 }
  0x13   : > { %s3241_s28 = scalar_select %p2859_p4, 1, 0 }
  0x14   : > { %p370_p7 = scmp.eq.s32.totalorder %s367_s29, 0  ;;  %p2866_p8 = por %p389_p5, %p388_p3 }
  0x15   : > { %p396_p9 = scmp.lt.s32.totalorder %s2718_s23, 3  ;;  %p2878_p11 = scmp.eq.s32.totalorder %s2198_s24, 0 }
  0x16   : > { %s3242_s30 = scalar_select %p2866_p8, 1, 0 }
  0x17   : > { %s2872_s16 = scalar_select %p370_p7, %s2706_s20, %s372_s27  }
  0x18   : > { %3243 = sst [smem:[#allocation23_spill]] %s3242_s30  ;;  %p2874_p10 = pnand %p2200_p6, %p396_p9 }
  0x19   : > { %3244 = sst [smem:[#allocation24_spill]] %s2872_s16  ;;  %s2720_s25 = smov [#allocation8]  }
  0x1a   : > { %s3245_s17 = scalar_select %p2874_p10, 1, 0 }
  0x1b   : > { %s3246_s18 = scalar_select %p2878_p11, 1, 0 }
  0x1c   : > { %p2400_p12 = pneg %p2874_p10  ;;  %s440_s29 = sshll.u32 %s2720_s25, 4  ;;  %s441_s29 = int_to_ptr.vmem [resolvable:$true] %s440_s29 }
  0x1d   : > { %s2721_s27 = smov [#allocation5]   ;;  %s2537_s24 = scalar_lea.vmem %s441_s29, 16 }
  0x1e   : > { %p2886_p13 = pnand %p2878_p11, %p2400_p12  ;;  %s420_s22 = sshll.u32 %s2721_s27, 4  ;;  %s421_s22 = int_to_ptr.vmem [resolvable:$true] %s420_s22 }
  0x1f   : > { %p2538_p1 = scmp.ne.s32.totalorder %s441_s29, %s2537_s24  ;;  %s2544_s25 = scalar_lea.vmem %s441_s29, 32 }
  0x20   : > { %p2528_p0 = pneg %p2886_p13  ;;  %p2545_p5 = scmp.lt.s32.totalorder %s441_s29, %s441_s29 }
  0x21   : > { %p2546_p6 = scmp.lt.s32.totalorder %s2544_s25, %s2537_s24 }
  0x22   : > { %p2540_p2 = pnand %p2538_p1, %p2528_p0 }
  0x23   : > { %p2547_p7 = por %p2546_p6, %p2545_p5 }
  0x24   : > { %p2541_p3 = pneg %p2540_p2 }
  0x26   : > { %p2548_p9 = pnand %p2547_p7, %p2541_p3 }
  0x28   : > { %2551 = shalt.err (!%p2548_p9)
}
  0x29   : > { %s3248_s8 = sld [smem:[#allocation25_spill]]  ;;  %s2563_s27 = scalar_lea.vmem %s421_s22, 256 }
  0x2a   : > { %p2564_p12 = scmp.ne.s32.totalorder %s421_s22, %s2563_s27  ;;  %p2571_p2 = scmp.lt.s32.totalorder %s421_s22, %s421_s22 }
  0x2b   : > { %p2572_p4 = scmp.lt.s32.totalorder %s2563_s27, %s2563_s27 }
  0x2c   : > { %p2566_p8 = pnand %p2564_p12, %p2528_p0 }
  0x2d   : > { %p2573_p11 = por %p2572_p4, %p2571_p2 }
  0x2e   : > { %p2567_p1 = pneg %p2566_p8 }
  0x2f   : > { %2406 = dma.hbm_to_vmem [thread:$0]  (!%p2886_p13), %s3248_s8, 16, %s441_s29, [#allocation9]  }
  0x30   : > { %p2574_p10 = pnand %p2573_p11, %p2567_p1 }
  0x32   : > { %2577 = shalt.err (!%p2574_p10)
}
  0x33   : > { %s2722_s24 = smov 64   ;;  %s2723_s25 = smov 4  }
  0x34   : > { %2403 = dma.hbm_to_vmem [thread:$0]  (!%p2886_p13), %s3211_s5, 256, %s421_s22, [#allocation6], %s2722_s24, %s2722_s24, %s2723_s25  }
  0x35   : > { %s2724_s16 = smov [#allocation10]   ;;  %s2725_s8 = smov [#allocation11]  }
  0x36   : > { %s450_s29 = sshll.u32 %s2724_s16, 4  ;;  %s464_s23 = sshll.u32 %s2725_s8, 4  ;;  %s451_s29 = int_to_ptr.vmem [resolvable:$true] %s450_s29  ;;  %s465_s23 = int_to_ptr.vmem [resolvable:$true] %s464_s23 }
  0x37   : > { %s2589_s15 = scalar_lea.vmem %s451_s29, 256  ;;  %p2597_p11 = scmp.lt.s32.totalorder %s451_s29, %s451_s29 }
  0x38   : > { %p2590_p8 = scmp.ne.s32.totalorder %s451_s29, %s2589_s15  ;;  %p2598_p3 = scmp.lt.s32.totalorder %s2589_s15, %s2589_s15 }
  0x3a   : > { %p2592_p4 = pnand %p2590_p8, %p2528_p0  ;;  %p2599_p5 = por %p2598_p3, %p2597_p11 }
  0x3c   : > { %p2593_p10 = pneg %p2592_p4 }
  0x3e   : > { %p2600_p6 = pnand %p2599_p5, %p2593_p10 }
  0x40   : > { %2603 = shalt.err (!%p2600_p6)
}
  0x41   : > { %2409 = dma.hbm_to_vmem [thread:$0]  (!%p2886_p13), %s3215_s9, 256, %s451_s29, [#allocation9], %s2722_s24, %s2722_s24, %s2723_s25  }
  0x42   : > { %s2615_s8 = scalar_lea.vmem %s465_s23, 16  ;;  %s2622_s27 = scalar_lea.vmem %s465_s23, 32 }
  0x43   : > { %p2616_p7 = scmp.ne.s32.totalorder %s465_s23, %s2615_s8  ;;  %p2623_p1 = scmp.lt.s32.totalorder %s465_s23, %s465_s23 }
  0x44   : > { %p2624_p2 = scmp.lt.s32.totalorder %s2622_s27, %s2615_s8 }
  0x45   : > { %p2618_p9 = pnand %p2616_p7, %p2528_p0 }
  0x46   : > { %p2625_p8 = por %p2624_p2, %p2623_p1 }
  0x47   : > { %p2619_p12 = pneg %p2618_p9 }
  0x49   : > { %p2626_p4 = pnand %p2625_p8, %p2619_p12 }
  0x4b   : > { %2629 = shalt.err (!%p2626_p4)
}
  0x4c   : > { %2412 = dma.hbm_to_vmem [thread:$0]  (!%p2886_p13), %s3216_s10, 16, %s465_s23, [#allocation12]  }
  0x4d   : > { %p3249_p10 = scmp.ne.s32.totalorder %s3245_s17, 0 }
  0x4e   : > { %p3250_p11 = scmp.ne.s32.totalorder (!%p3249_p10), %s3246_s18, 0 }
  0x4f   : > { %496 = sbr.rel (%p3249_p10) target bundleno = 2374 (0x946), region = 80 }
  0x54   : > { %2681 = dma.done.wait (%p3250_p11), [#allocation6], 256  }
  0x55   : > { %2683 = vsyncadd (%p3250_p11), [#allocation6], 4294967040 }
  0x56   : > { %2685 = dma.done.wait (%p3250_p11), [#allocation9], 272  }
  0x57   : > { %2687 = vsyncadd (%p3250_p11), [#allocation9], 4294967024 }
  0x58   : > { %2689 = dma.done.wait (%p3250_p11), [#allocation12], 16  }
  0x59   : > { %2691 = vsyncadd (%p3250_p11), [#allocation12], 4294967280  ;;  %p555_p13 = scmp.lt.s32.totalorder %s2710_s21, 1  ;;  %vm567_vm0 = vcmask 261120   ;;  %v2492_v12 = vld [vmem:[%s3209_s3 + $0x8] sm:$0xff]   ;;  %v2726_v13 = vmov 0.0   ;;  %v583_v48 = vlaneseq }
  0x5a   : > { %2290 = vmatprep.subr.bf16.mxu1 %v2726_v13  ;;  %vm2727_vm1 = vmmov 0   ;;  %v2493_v14 = vld [vmem:[%s3209_s3] sm:$0xff]   ;;  %2306 = vmatprep.subr.bf16.mxu0 %v2726_v13  ;;  %v2256_v24 = vld [vmem:[#allocation8] ss:$0 sm:$0xff]  ;;  %v2494_v29 = vld [vmem:[%s3207_s1 + $0x8] sm:$0xff]   ;;  %s2728_s24 = smov 112  }
  0x5b   : > { %s556_s23 = scalar_select %p555_p13, %s2710_s21, 1  ;;  %2294 = vmatprep.mubr.msk.bf16.mxu1 %vm2727_vm1, %v2726_v13  ;;  %2291 = vmatpush3.bf16.msra.mxu1 %v2492_v12  ;;  %v2255_v22 = vld [vmem:[%s3213_s7] ss:$0 sm:$0xff]  ;;  %v2732_v49 = vmov 1983009808   ;;  %v584_v55 = vshrl.u32 %v583_v48, 7 }
  0x5c   : > { %2292 = vmatprep.subr.bf16.mxu1 %v2726_v13  ;;  %2308 = vmatprep.mubr.msk.bf16.mxu0 %vm2727_vm1, %v2726_v13  ;;  %v2495_v32 = vld [vmem:[%s3207_s1] sm:$0xff]   ;;  %s2730_s29 = smov 104   ;;  %s2731_s30 = smov 96   ;;  %v676_v50 = vunpack.c.l.s4 %v2732_v49  ;;  %v2733_v51 = vmov 1934713408   ;;  %vm813_vm2 = vcmask 60416  }
  0x5d   : > { %s2212_s26 = sshll.u32 %s556_s23, 3  ;;  %v2213_v35 = vld [vmem:[%s3210_s4] ss:$0 sm:$0xff]  ;;  %v708_v52 = vunpack.c.l.s4 %v2733_v51  ;;  %vm1244_vm3 = vcmask 64512   ;;  %vm1480_vm4 = vcmask 1043456   ;;  %s2735_s22 = smov 16  }
  0x5e   : > { %s558_s25 = scalar_lea.vmem %s3206_s0, %s2212_s26  ;;  %v2221_v41 = vld [vmem:[%s3208_s2] ss:$0 sm:$0xff]  ;;  %v677_v56 = vunpack.c.0.s8 %v676_v50  ;;  %s2736_s8 = smov 8   ;;  %vm1819_vm5 = vcmask 130048   ;;  %vm1821_vm6 = vcmask 195584   ;;  %vm2028_vm7 = vcmask 523264  }
  0x5f   : > { %v2943_v0 = vld [vmem:[%s558_s25] sm:$0xff]  ;;  %2293 = vmatpush3.bf16.msra.mxu1 %v2493_v14  ;;  %s2729_s25 = smov 120   ;;  %v709_v57 = vunpack.c.0.s8 %v708_v52  ;;  %s2737_s27 = smov 24  }
  0x60   : > { %v568_v1 = vsel %vm567_vm0, %v2943_v0, 0.0  ;;  %2298 = vmatprep.subr.bf16.mxu1 %v2726_v13  ;;  %v2988_v61 = vsub.s32 %v677_v56, %v584_v55  ;;  %s552_s15 = sand.u32 1, %s2702_s19   ;;  %s2252_s17 = sshll.u32 %s2710_s21, 7 }
  0x61   : > { %569 = vadd.xlane.f32.xlu0 %v568_v1  ;;  %s2211_s20 = sshll.u32 %s552_s15, 3  ;;  %s2075_s21 = scalar_lea.sflag [#allocation7], %s552_s15 }
  0x62   : > { %p3252_p3 = scmp.ne.s32.totalorder %s3241_s28, 0 }
  0x65   : > { %977 = vadd.xlane.f32.xlu0 %v568_v1  ;;  %v2990_v1 = vsub.s32 %v709_v57, %v584_v55 }
  0xea   : > { %v570_v2 = vpop.xlane.xlu0 %569 }
  0xeb   : > { %v572_v3 = vmul.f32 0.03125, %v570_v2 }
  0xed   : > { %v573_v4 = vsub.f32 %v2943_v0, %v572_v3 }
  0xee   : > { %v978_v5 = vpop.xlane.xlu0 %977 }
  0xef   : > { %v980_v6 = vmul.f32 0.03125, %v978_v5  ;;  %v574_v7 = vmul.f32 %v573_v4, %v573_v4 }
  0xf1   : > { %v981_v8 = vsub.f32 %v2943_v0, %v980_v6  ;;  %v575_v9 = vsel %vm567_vm0, %v574_v7, 0.0 }
  0xf2   : > { %576 = vadd.xlane.f32.xlu1 %v575_v9 }
  0xf3   : > { %v982_v10 = vmul.f32 %v981_v8, %v981_v8 }
  0xf5   : > { %v983_v11 = vsel %vm567_vm0, %v982_v10, 0.0 }
  0xf6   : > { %984 = vadd.xlane.f32.xlu1 %v983_v11 }
 0x17b   : > { %v577_v15 = vpop.xlane.xlu1 %576 }
 0x17c   : > { %v578_v16 = vmul.f32 0.03125, %v577_v15 }
 0x17e   : > { %v579_v17 = vadd.f32 1e-05, %v578_v16 }
 0x17f   : > { %v985_v18 = vpop.xlane.xlu1 %984 }
 0x180   : > { %2504 = vrsqrt.f32 %v579_v17  ;;  %v986_v19 = vmul.f32 0.03125, %v985_v18 }
 0x182   : > { %v987_v20 = vadd.f32 1e-05, %v986_v19 }
 0x184   : > { %2506 = vrsqrt.f32 %v987_v20 }
 0x18d   : > { %v2505_v21 = vpop.eup %2504 }
 0x18e   : > { %v581_v23 = vmul.f32 %v2505_v21, %v573_v4 }
 0x190   : > { %v588_v25 = vmul.f32 %v2255_v22, %v581_v23 }
 0x191   : > { %v2507_v26 = vpop.eup %2506 }
 0x192   : > { %v595_v27 = vadd.f32 %v2256_v24, %v588_v25  ;;  %v989_v28 = vmul.f32 %v2507_v26, %v981_v8 }
 0x194   : > { %v596_v30 = vpack.c.bf16 %v595_v27, %v595_v27  ;;  %v996_v31 = vmul.f32 %v2255_v22, %v989_v28 }
 0x196   : > { %2295 = vmatmul.mubr.msk.bf16.vlgmr.msra.gmra.mxu1 %vm567_vm0, %v596_v30  ;;  %v1003_v33 = vadd.f32 %v2256_v24, %v996_v31 }
 0x197   : > { %2299 = vmatpush3.bf16.msra.mxu1 %v2494_v29  ;;  %2302 = vmatprep.mubr.msk.bf16.mxu1 %vm2727_vm1, %v2726_v13 }
 0x198   : > { %2300 = vmatprep.subr.bf16.mxu1 %v2726_v13  ;;  %v1004_v34 = vpack.c.bf16 %v1003_v33, %v1003_v33 }
 0x19b   : > { %2301 = vmatpush3.bf16.msra.mxu1 %v2495_v32 }
 0x19c   : > { %2312 = vmatprep.subr.bf16.mxu1 %v2726_v13 }
 0x19e   : > { %2303 = vmatmul.mubr.msk.bf16.vlgmr.msra.gmra.mxu1 %vm567_vm0, %v1004_v34 }
 0x19f   : > { %2314 = vmatprep.mubr.msk.bf16.mxu1 %vm2727_vm1, %v2726_v13 }
 0x256   : > { %v657_v36 = vpop.f32.mrf.mxu1 }
 0x257   : > { %v658_v37 = vadd.f32 %v2213_v35, %v657_v36 }
 0x258   : > { %v2296_v38 = vpop.f32.mrf.mxu1 }
 0x259   : > { %667 = vrot.lane.b32.xlu1 %v658_v37, %s2728_s24  ;;  %664 = vrot.lane.b32.xlu0 %v658_v37, %s2729_s25 }
 0x25a   : > { %v660_v39 = vpop.f32.mrf.mxu1 }
 0x25c   : > { %v2297_v40 = vpop.f32.mrf.mxu1 }
 0x25d   : > { %670 = vrot.lane.b32.xlu1 %v658_v37, %s2730_s29 }
 0x25e   : > { %v1065_v42 = vpop.f32.mrf.mxu1 }
 0x25f   : > { %v1066_v43 = vadd.f32 %v2221_v41, %v1065_v42  ;;  %v2734_v42 = vmov 0  }
 0x260   : > { %v2304_v44 = vpop.f32.mrf.mxu1 }
 0x261   : > { %v1071_v45 = vpack.c.bf16 %v1066_v43, %v1066_v43 }
 0x262   : > { %v1068_v46 = vpop.f32.mrf.mxu1 }
 0x263   : > { %1075 = vrot.lane.b32.xlu0 %v1071_v45, %s2728_s24  ;;  %1073 = vrot.lane.b32.xlu1 %v1071_v45, %s2729_s25  ;;  %v1085_v17 = vrot.slane %v1071_v45, %v2988_v61  ;;  %s554_s24 = scalar_lea.vmem [#allocation13], %s2211_s20 }
 0x264   : > { %v2305_v47 = vpop.f32.mrf.mxu1  ;;  %s2089_s25 = sshll.u32 %s554_s24, 4  ;;  %s3161_s25 = int_to_ptr.vmem [resolvable:$true] %s2089_s25 }
 0x267   : > { %818 = vrot.lane.b32.xlu0 %v658_v37, %s2731_s30  ;;  %1077 = vrot.lane.b32.xlu1 %v1071_v45, %s2730_s29  ;;  %s3251_s29 = sld [smem:[#allocation26_spill]] }
 0x2cb   : > { %v668_v53 = vpop.permute.xlu1 %667  ;;  %v665_v54 = vpop.permute.xlu0 %664 }
 0x2cc   : > { %822 = vrot.lane.b32.xlu0 %v668_v53, %s2731_s30  ;;  %820 = vrot.lane.b32.xlu1 %v665_v54, %s2731_s30  ;;  %v673_v58 = vcombine.low %v658_v37, %v668_v53  ;;  %v674_v59 = vcombine.high %v658_v37, %v668_v53 }
 0x2ce   : > { %v681_v2 = vrot.slane %v673_v58, %v2988_v61  ;;  %v688_v3 = vrot.slane %v674_v59, %v2988_v61 }
 0x2cf   : > { %v671_v60 = vpop.permute.xlu1 %670 }
 0x2d0   : > { %v689_v62 = vcombine.low %v665_v54, %v671_v60  ;;  %v690_v63 = vcombine.high %v665_v54, %v671_v60  ;;  %824 = vrot.lane.b32.xlu1 %v671_v60, %s2731_s30  ;;  %s3159_s30 = scalar_lea.hbm %s3251_s29, %s2252_s17 }
 0x2d2   : > { %v697_v4 = vrot.slane %v689_v62, %v2988_v61  ;;  %v704_v5 = vrot.slane %v690_v63, %v2988_v61 }
 0x2d4   : > { %v705_v6 = vcombine.low %v681_v2, %v697_v4  ;;  %v706_v7 = vcombine.high %v681_v2, %v697_v4  ;;  %v721_v8 = vcombine.low %v688_v3, %v704_v5  ;;  %v722_v9 = vcombine.high %v688_v3, %v704_v5 }
 0x2d5   : > { %v1076_v10 = vpop.permute.xlu0 %1075  ;;  %v1074_v11 = vpop.permute.xlu1 %1073 }
 0x2d6   : > { %v713_v12 = vrot.slane %v705_v6, %v2990_v1  ;;  %v720_v14 = vrot.slane %v706_v7, %v2990_v1  ;;  %v729_v15 = vrot.slane %v721_v8, %v2990_v1  ;;  %v736_v16 = vrot.slane %v722_v9, %v2990_v1 }
 0x2d7   : > { %v1093_v18 = vrot.slane %v1076_v10, %v2988_v61  ;;  %v1119_v37 = vrot.slane %v1074_v11, %v2988_v61 }
 0x2d8   : > { %v741_v19 = vcombine.low %v713_v12, %v720_v14  ;;  %v2217_v20 = vcombine.high %v713_v12, %v720_v14  ;;  %v757_v21 = vcombine.low %v729_v15, %v736_v16  ;;  %v2218_v22 = vcombine.high %v729_v15, %v736_v16 }
 0x2d9   : > { %v1094_v23 = vcombine.low %v1085_v17, %v1093_v18  ;;  %v1095_v24 = vcombine.high %v1085_v17, %v1093_v18  ;;  %v1078_v25 = vpop.permute.xlu1 %1077 }
 0x2da   : > { %v748_v26 = vrot.slane %v741_v19, %v2988_v61  ;;  %v756_v27 = vrot.slane %v2217_v20, %v2988_v61  ;;  %v764_v28 = vrot.slane %v757_v21, %v2988_v61  ;;  %v772_v29 = vrot.slane %v2218_v22, %v2988_v61 }
 0x2db   : > { %v1102_v30 = vrot.slane %v1094_v23, %v2990_v1  ;;  %v1127_v31 = vrot.slane %v1078_v25, %v2988_v61  ;;  %v1109_v36 = vrot.slane %v1095_v24, %v2990_v1 }
 0x2dc   : > { %v773_v32 = vcombine.low %v748_v26, %v756_v27  ;;  %v774_v33 = vcombine.high %v748_v26, %v756_v27  ;;  %v789_v34 = vcombine.low %v764_v28, %v772_v29  ;;  %v790_v35 = vcombine.high %v764_v28, %v772_v29 }
 0x2dd   : > { %v1110_v43 = vcombine.high %v1102_v30, %v2734_v42  ;;  %v1128_v44 = vcombine.low %v1119_v37, %v1127_v31  ;;  %v1129_v45 = vcombine.high %v1119_v37, %v1127_v31  ;;  %v1111_v50 = vcombine.high %v1109_v36, %v2734_v42 }
 0x2de   : > { %v781_v38 = vrot.slane %v773_v32, %v2990_v1  ;;  %v788_v39 = vrot.slane %v774_v33, %v2990_v1  ;;  %v797_v40 = vrot.slane %v789_v34, %v2990_v1  ;;  %v804_v41 = vrot.slane %v790_v35, %v2990_v1 }
 0x2df   : > { %v1150_v51 = vshrl.u32 %v1102_v30, 16  ;;  %v1136_v52 = vrot.slane %v1128_v44, %v2990_v1  ;;  %v1143_v53 = vrot.slane %v1129_v45, %v2990_v1  ;;  %v1158_v63 = vshrl.u32 %v1110_v43, 16 }
 0x2e0   : > { %v805_v46 = vcombine.low %v781_v38, %v797_v40  ;;  %v806_v47 = vcombine.high %v781_v38, %v797_v40  ;;  %v807_v48 = vcombine.low %v788_v39, %v804_v41  ;;  %v808_v49 = vcombine.high %v788_v39, %v804_v41 }
 0x2e1   : > { %v1144_v58 = vcombine.high %v1136_v52, %v2734_v42  ;;  %v1145_v59 = vcombine.high %v1143_v53, %v2734_v42  ;;  %v1148_v60 = vpack.i.b16 %v1136_v52, %v1102_v30  ;;  %v1151_v62 = vshrl.u32 %v1136_v52, 16 }
 0x2e2   : > { %v809_v54 = vpack.c.bf16 %v805_v46, %v805_v46  ;;  %v810_v55 = vpack.c.bf16 %v806_v47, %v806_v47  ;;  %v811_v56 = vpack.c.bf16 %v807_v48, %v807_v48  ;;  %v812_v57 = vpack.c.bf16 %v808_v49, %v808_v49 }
 0x2e3   : > { %v1166_v2 = vshrl.u32 %v1109_v36, 16  ;;  %v1164_v3 = vpack.i.b16 %v1143_v53, %v1109_v36  ;;  %v1167_v4 = vshrl.u32 %v1143_v53, 16  ;;  %v1152_v5 = vpack.i.b16 %v1151_v62, %v1150_v51 }
 0x2e4   : > { %814 = vst.msk [vmem:[#allocation2] sm:$0xf] %vm813_vm2, %v809_v54  ;;  %815 = vst.msk [vmem:[#allocation2 + $0x4] sm:$0xf] %vm813_vm2, %v810_v55  ;;  %v1156_v6 = vpack.i.b16 %v1144_v58, %v1110_v43  ;;  %v1159_v7 = vshrl.u32 %v1144_v58, 16  ;;  %v1172_v8 = vpack.i.b16 %v1145_v59, %v1111_v50  ;;  %v1174_v9 = vshrl.u32 %v1111_v50, 16 }
 0x2e5   : > { %816 = vst.msk [vmem:[#allocation2 + $0x8] sm:$0xf] %vm813_vm2, %v811_v56  ;;  %817 = vst.msk [vmem:[#allocation2 + $0xc] sm:$0xf] %vm813_vm2, %v812_v57  ;;  %v1168_v10 = vpack.i.b16 %v1167_v4, %v1166_v2  ;;  %v1175_v11 = vshrl.u32 %v1145_v59, 16  ;;  %v1178_v12 = vcombine.low %v1148_v60, %v1164_v3 }
 0x2e6   : > { %v1160_v14 = vpack.i.b16 %v1159_v7, %v1158_v63  ;;  %v1186_v15 = vcombine.low %v1156_v6, %v1172_v8 }
 0x2e7   : > { %v1176_v16 = vpack.i.b16 %v1175_v11, %v1174_v9  ;;  %v1203_v17 = vcombine.low %v1152_v5, %v1168_v10  ;;  %v1185_v18 = vrot.slane %v1178_v12, %v2988_v61 }
 0x2e8   : > { %v1193_v19 = vrot.slane %v1186_v15, %v2988_v61 }
 0x2e9   : > { %v1211_v20 = vcombine.low %v1160_v14, %v1176_v16  ;;  %v1210_v24 = vrot.slane %v1203_v17, %v2988_v61 }
 0x2ea   : > { %v1194_v23 = vcombine.low %v1185_v18, %v1193_v19 }
 0x2eb   : > { %v1240_v21 = vld [vmem:[#allocation2] sm:$0xf]  ;;  %v1241_v22 = vld [vmem:[#allocation2 + $0x4] sm:$0xf]  ;;  %v1218_v27 = vrot.slane %v1211_v20, %v2988_v61 }
 0x2ec   : > { %v1249_v25 = vsel %vm1244_vm3, %v1240_v21, 0  ;;  %v1295_v26 = vsel %vm1244_vm3, %v1241_v22, 0  ;;  %v1201_v28 = vrot.slane %v1194_v23, %v2990_v1  ;;  %v1242_v31 = vld [vmem:[#allocation2 + $0x8] sm:$0xf]  ;;  %v1243_v35 = vld [vmem:[#allocation2 + $0xc] sm:$0xf] }
 0x2ed   : > { %2307 = vmatpush3.bf16.xpose.msra.mxu0 %v1249_v25  ;;  %2313 = vmatpush3.bf16.xpose.msra.mxu1 %v1295_v26  ;;  %v1219_v29 = vcombine.low %v1210_v24, %v1218_v27  ;;  %v1341_v37 = vsel %vm1244_vm3, %v1242_v31, 0  ;;  %v1387_v39 = vsel %vm1244_vm3, %v1243_v35, 0 }
 0x2ee   : > { %2318 = vmatprep.subr.bf16.mxu0 %v2726_v13  ;;  %2324 = vmatprep.subr.bf16.mxu1 %v2726_v13  ;;  %v1231_v33 = vshrl.u32 %v1201_v28, 16  ;;  %v1202_v40 = vcombine.high %v1201_v28, %v2734_v42 }
 0x2ef   : > { %v1226_v30 = vrot.slane %v1219_v29, %v2990_v1 }
 0x2f0   : > { %v1237_v44 = vshrl.u32 %v1202_v40, 16 }
 0x2f1   : > { %v1230_v32 = vpack.i.b16 %v1226_v30, %v1201_v28  ;;  %v1232_v34 = vshrl.u32 %v1226_v30, 16  ;;  %v1227_v38 = vcombine.high %v1226_v30, %v2734_v42  ;;  %v819_v42 = vpop.permute.xlu0 %818 }
 0x2f3   : > { %v1233_v36 = vpack.i.b16 %v1232_v34, %v1231_v33  ;;  %v1238_v41 = vshrl.u32 %v1227_v38, 16  ;;  %v1236_v43 = vpack.i.b16 %v1227_v38, %v1202_v40 }
 0x2f4   : > { %2309 = vmatmul.mubr.msk.bf16.vlgmr.msra.gmra.mxu0 %vm1244_vm3, %v1230_v32 }
 0x2f5   : > { %2319 = vmatpush3.bf16.xpose.msra.mxu0 %v1341_v37  ;;  %2320 = vmatprep.mubr.msk.bf16.mxu0 %vm2727_vm1, %v2726_v13  ;;  %v1239_v45 = vpack.i.b16 %v1238_v41, %v1237_v44 }
 0x2f6   : > { %2315 = vmatmul.mubr.msk.bf16.vlgmr.msra.gmra.mxu1 %vm1244_vm3, %v1233_v36  ;;  %2330 = vmatprep.subr.bf16.mxu0 %v2726_v13 }
 0x2f7   : > { %2325 = vmatpush3.bf16.xpose.msra.mxu1 %v1387_v39  ;;  %2326 = vmatprep.mubr.msk.bf16.mxu1 %vm2727_vm1, %v2726_v13 }
 0x2f8   : > { %2336 = vmatprep.subr.bf16.mxu1 %v2726_v13 }
 0x2fc   : > { %2321 = vmatmul.mubr.msk.bf16.vlgmr.msra.gmra.mxu0 %vm1244_vm3, %v1236_v43 }
 0x2fd   : > { %2332 = vmatprep.mubr.msk.bf16.mxu0 %vm2727_vm1, %v2726_v13 }
 0x2fe   : > { %2327 = vmatmul.mubr.msk.bf16.vlgmr.msra.gmra.mxu1 %vm1244_vm3, %v1239_v45 }
 0x2ff   : > { %2338 = vmatprep.mubr.msk.bf16.mxu1 %vm2727_vm1, %v2726_v13 }
 0x33e   : > { %v823_v46 = vpop.permute.xlu0 %822  ;;  %v821_v47 = vpop.permute.xlu1 %820 }
 0x33f   : > { %v830_v48 = vcombine.low %v819_v42, %v823_v46  ;;  %v831_v49 = vcombine.high %v819_v42, %v823_v46 }
 0x341   : > { %v838_v53 = vrot.slane %v830_v48, %v2988_v61  ;;  %v845_v54 = vrot.slane %v831_v49, %v2988_v61 }
 0x342   : > { %v825_v50 = vpop.permute.xlu1 %824 }
 0x343   : > { %v846_v51 = vcombine.low %v821_v47, %v825_v50  ;;  %v847_v52 = vcombine.high %v821_v47, %v825_v50 }
 0x345   : > { %v854_v55 = vrot.slane %v846_v51, %v2988_v61  ;;  %v861_v56 = vrot.slane %v847_v52, %v2988_v61 }
 0x347   : > { %v862_v57 = vcombine.low %v838_v53, %v854_v55  ;;  %v863_v58 = vcombine.high %v838_v53, %v854_v55  ;;  %v878_v59 = vcombine.low %v845_v54, %v861_v56  ;;  %v879_v60 = vcombine.high %v845_v54, %v861_v56 }
 0x349   : > { %v870_v62 = vrot.slane %v862_v57, %v2990_v1  ;;  %v877_v63 = vrot.slane %v863_v58, %v2990_v1  ;;  %v886_v2 = vrot.slane %v878_v59, %v2990_v1  ;;  %v893_v3 = vrot.slane %v879_v60, %v2990_v1 }
 0x34b   : > { %v898_v4 = vcombine.low %v870_v62, %v877_v63  ;;  %v2219_v5 = vcombine.high %v870_v62, %v877_v63  ;;  %v914_v6 = vcombine.low %v886_v2, %v893_v3  ;;  %v2220_v7 = vcombine.high %v886_v2, %v893_v3 }
 0x34d   : > { %v905_v8 = vrot.slane %v898_v4, %v2988_v61  ;;  %v913_v9 = vrot.slane %v2219_v5, %v2988_v61  ;;  %v921_v10 = vrot.slane %v914_v6, %v2988_v61  ;;  %v929_v11 = vrot.slane %v2220_v7, %v2988_v61 }
 0x34f   : > { %v930_v12 = vcombine.low %v905_v8, %v913_v9  ;;  %v931_v14 = vcombine.high %v905_v8, %v913_v9  ;;  %v946_v15 = vcombine.low %v921_v10, %v929_v11  ;;  %v947_v16 = vcombine.high %v921_v10, %v929_v11 }
 0x351   : > { %v938_v17 = vrot.slane %v930_v12, %v2990_v1  ;;  %v945_v18 = vrot.slane %v931_v14, %v2990_v1  ;;  %v954_v19 = vrot.slane %v946_v15, %v2990_v1  ;;  %v961_v20 = vrot.slane %v947_v16, %v2990_v1 }
 0x353   : > { %v962_v21 = vcombine.low %v938_v17, %v954_v19  ;;  %v963_v22 = vcombine.high %v938_v17, %v954_v19  ;;  %v964_v23 = vcombine.low %v945_v18, %v961_v20  ;;  %v965_v24 = vcombine.high %v945_v18, %v961_v20 }
 0x355   : > { %v966_v25 = vpack.c.bf16 %v962_v21, %v962_v21  ;;  %v967_v26 = vpack.c.bf16 %v963_v22, %v963_v22  ;;  %v968_v27 = vpack.c.bf16 %v964_v23, %v964_v23  ;;  %v969_v28 = vpack.c.bf16 %v965_v24, %v965_v24 }
 0x357   : > { %970 = vst.msk [vmem:[#allocation3] sm:$0xf] %vm813_vm2, %v966_v25  ;;  %971 = vst.msk [vmem:[#allocation3 + $0x4] sm:$0xf] %vm813_vm2, %v967_v26 }
 0x358   : > { %972 = vst.msk [vmem:[#allocation3 + $0x8] sm:$0xf] %vm813_vm2, %v968_v27  ;;  %973 = vst.msk [vmem:[#allocation3 + $0xc] sm:$0xf] %vm813_vm2, %v969_v28 }
 0x35e   : > { %v1473_v29 = vld [vmem:[#allocation3] sm:$0xf]  ;;  %v1474_v30 = vld [vmem:[#allocation3 + $0x4] sm:$0xf] }
 0x35f   : > { %v1482_v31 = vsel %vm1480_vm4, %v1473_v29, 0  ;;  %v1528_v32 = vsel %vm1480_vm4, %v1474_v30, 0  ;;  %v1475_v9 = vld [vmem:[#allocation3 + $0x8] sm:$0xf]  ;;  %v1476_v14 = vld [vmem:[#allocation3 + $0xc] sm:$0xf] }
 0x360   : > { %2331 = vmatpush3.bf16.msra.mxu0 %v1482_v31  ;;  %2337 = vmatpush3.bf16.msra.mxu1 %v1528_v32  ;;  %v1574_v17 = vsel %vm1480_vm4, %v1475_v9, 0  ;;  %v1620_v18 = vsel %vm1480_vm4, %v1476_v14, 0 }
 0x361   : > { %2342 = vmatprep.subr.bf16.mxu0 %v2726_v13  ;;  %2348 = vmatprep.subr.bf16.mxu1 %v2726_v13 }
 0x3b4   : > { %v1285_v33 = vpop.f32.mrf.mxu0 }
 0x3b5   : > { %v1429_v34 = vmul.f32 0.35355338, %v1285_v33 }
 0x3b6   : > { %v1331_v35 = vpop.f32.mrf.mxu1  ;;  %v2310_v36 = vpop.f32.mrf.mxu0 }
 0x3b7   : > { %v1430_v37 = vmul.f32 0.35355338, %v1331_v35  ;;  %v1433_v38 = vsel %vm1244_vm3, %v1429_v34, -inf }
 0x3b8   : > { %v2316_v39 = vpop.f32.mrf.mxu1  ;;  %1434 = vmax.xlane.f32.xlu0 %v1433_v38  ;;  %v1288_v40 = vpop.f32.mrf.mxu0 }
 0x3b9   : > { %v1436_v41 = vsel %vm1244_vm3, %v1430_v37, -inf }
 0x3ba   : > { %1437 = vmax.xlane.f32.xlu1 %v1436_v41  ;;  %v1334_v43 = vpop.f32.mrf.mxu1  ;;  %v2311_v44 = vpop.f32.mrf.mxu0 }
 0x3bc   : > { %v2317_v45 = vpop.f32.mrf.mxu1  ;;  %v1377_v42 = vpop.f32.mrf.mxu0 }
 0x3bd   : > { %v1431_v46 = vmul.f32 0.35355338, %v1377_v42 }
 0x3be   : > { %v1423_v47 = vpop.f32.mrf.mxu1  ;;  %v2322_v48 = vpop.f32.mrf.mxu0 }
 0x3bf   : > { %v1432_v49 = vmul.f32 0.35355338, %v1423_v47  ;;  %v1439_v50 = vsel %vm1244_vm3, %v1431_v46, -inf }
 0x3c0   : > { %v2328_v51 = vpop.f32.mrf.mxu1  ;;  %1440 = vmax.xlane.f32.xlu0 %v1439_v50  ;;  %v1380_v52 = vpop.f32.mrf.mxu0 }
 0x3c1   : > { %v1442_v55 = vsel %vm1244_vm3, %v1432_v49, -inf }
 0x3c2   : > { %v1426_v53 = vpop.f32.mrf.mxu1  ;;  %v2323_v54 = vpop.f32.mrf.mxu0 }
 0x3c4   : > { %v2329_v56 = vpop.f32.mrf.mxu1  ;;  %1443 = vmax.xlane.f32.xlu0 %v1442_v55 }
 0x441   : > { %v1435_v57 = vpop.xlane.xlu0 %1434 }
 0x442   : > { %v1445_v58 = vsub.f32 %v1429_v34, %v1435_v57 }
 0x443   : > { %v1438_v59 = vpop.xlane.xlu1 %1437 }
 0x444   : > { %v1449_v60 = vmul.f32 1.442695, %v1445_v58  ;;  %v1446_v62 = vsub.f32 %v1430_v37, %v1438_v59 }
 0x446   : > { %2508 = vpow2.f32 %v1449_v60  ;;  %v1451_v63 = vmul.f32 1.442695, %v1446_v62 }
 0x448   : > { %2510 = vpow2.f32 %v1451_v63 }
 0x449   : > { %v1441_v2 = vpop.xlane.xlu0 %1440 }
 0x44a   : > { %v1447_v3 = vsub.f32 %v1431_v46, %v1441_v2 }
 0x44c   : > { %v1453_v4 = vmul.f32 1.442695, %v1447_v3 }
 0x44d   : > { %v1444_v5 = vpop.xlane.xlu0 %1443 }
 0x44e   : > { %2512 = vpow2.f32 %v1453_v4  ;;  %v1448_v6 = vsub.f32 %v1432_v49, %v1444_v5  ;;  %v2496_v4 = vld [vmem:[#allocation5 + $0x8] sm:$0xff]  }
 0x450   : > { %v1455_v7 = vmul.f32 1.442695, %v1448_v6 }
 0x452   : > { %2514 = vpow2.f32 %v1455_v7 }
 0x453   : > { %v2509_v8 = vpop.eup %2508 }
 0x454   : > { %v1457_v10 = vsel %vm1244_vm3, %v2509_v8, 0.0  ;;  %v1469_v11 = vpack.c.bf16 %v2509_v8, %v2509_v8 }
 0x455   : > { %v2511_v12 = vpop.eup %2510  ;;  %1458 = vadd.xlane.f32.xlu0 %v1457_v10 }
 0x456   : > { %v1460_v15 = vsel %vm1244_vm3, %v2511_v12, 0.0  ;;  %2333 = vmatmul.mubr.msk.bf16.vlgmr.msra.gmra.mxu0 %vm1244_vm3, %v1469_v11  ;;  %v1470_v16 = vpack.c.bf16 %v2511_v12, %v2511_v12 }
 0x457   : > { %1461 = vadd.xlane.f32.xlu1 %v1460_v15  ;;  %2343 = vmatpush3.bf16.msra.mxu0 %v1574_v17 }
 0x458   : > { %2339 = vmatmul.mubr.msk.bf16.vlgmr.msra.gmra.mxu1 %vm1244_vm3, %v1470_v16  ;;  %2344 = vmatprep.mubr.msk.bf16.mxu0 %vm2727_vm1, %v2726_v13 }
 0x459   : > { %2349 = vmatpush3.bf16.msra.mxu1 %v1620_v18  ;;  %2350 = vmatprep.mubr.msk.bf16.mxu1 %vm2727_vm1, %v2726_v13  ;;  %v2497_v18 = vld [vmem:[#allocation5] sm:$0xff]  }
 0x45a   : > { %2354 = vmatprep.subr.bf16.mxu0 %v2726_v13  ;;  %2362 = vmatprep.subr.bf16.mxu1 %v2726_v13 }
 0x45b   : > { %v2513_v19 = vpop.eup %2512 }
 0x45c   : > { %v1463_v20 = vsel %vm1244_vm3, %v2513_v19, 0.0  ;;  %v1471_v21 = vpack.c.bf16 %v2513_v19, %v2513_v19 }
 0x45d   : > { %1464 = vadd.xlane.f32.xlu0 %v1463_v20 }
 0x45e   : > { %2345 = vmatmul.mubr.msk.bf16.vlgmr.msra.gmra.mxu0 %vm1244_vm3, %v1471_v21 }
 0x45f   : > { %v2515_v22 = vpop.eup %2514  ;;  %2358 = vmatprep.mubr.msk.bf16.mxu0 %vm2727_vm1, %v2726_v13  ;;  %2355 = vmatpush3.bf16.msra.mxu0 %v2496_v4 }
 0x460   : > { %v1466_v23 = vsel %vm1244_vm3, %v2515_v22, 0.0  ;;  %v1472_v24 = vpack.c.bf16 %v2515_v22, %v2515_v22  ;;  %2356 = vmatprep.subr.bf16.mxu0 %v2726_v13 }
 0x461   : > { %1467 = vadd.xlane.f32.xlu1 %v1466_v23 }
 0x462   : > { %2351 = vmatmul.mubr.msk.bf16.vlgmr.msra.gmra.mxu1 %vm1244_vm3, %v1472_v24 }
 0x463   : > { %2366 = vmatprep.mubr.msk.bf16.mxu1 %vm2727_vm1, %v2726_v13  ;;  %2357 = vmatpush3.bf16.msra.mxu0 %v2497_v18 }
 0x464   : > { %2370 = vmatprep.subr.bf16.mxu0 %v2726_v13 }
 0x4de   : > { %v1459_v25 = vpop.xlane.xlu0 %1458 }
 0x4e0   : > { %v1462_v26 = vpop.xlane.xlu1 %1461 }
 0x4e6   : > { %v1465_v27 = vpop.xlane.xlu0 %1464 }
 0x4e7   : > { %2516 = vrcp.f32 %v1465_v27 }
 0x4e8   : > { %2518 = vrcp.f32 %v1459_v25 }
 0x4e9   : > { %2520 = vrcp.f32 %v1462_v26 }
 0x4ea   : > { %v1468_v28 = vpop.xlane.xlu1 %1467 }
 0x4eb   : > { %2522 = vrcp.f32 %v1468_v28 }
 0x4f4   : > { %v2517_v36 = vpop.eup %2516 }
 0x4f5   : > { %v2519_v40 = vpop.eup %2518 }
 0x4f6   : > { %v2521_v43 = vpop.eup %2520 }
 0x4f8   : > { %v2523_v45 = vpop.eup %2522 }
 0x516   : > { %v1518_v29 = vpop.f32.mrf.mxu0 }
 0x517   : > { %v1666_v44 = vmul.f32 %v2519_v40, %v1518_v29 }
 0x518   : > { %v1564_v30 = vpop.f32.mrf.mxu1  ;;  %v2334_v31 = vpop.f32.mrf.mxu0 }
 0x519   : > { %v1667_v47 = vmul.f32 %v2521_v43, %v1564_v30 }
 0x51a   : > { %v2340_v32 = vpop.f32.mrf.mxu1  ;;  %v1521_v33 = vpop.f32.mrf.mxu0 }
 0x51c   : > { %v1567_v34 = vpop.f32.mrf.mxu1  ;;  %v2335_v35 = vpop.f32.mrf.mxu0 }
 0x51e   : > { %v2341_v37 = vpop.f32.mrf.mxu1  ;;  %v1610_v38 = vpop.f32.mrf.mxu0 }
 0x51f   : > { %v1668_v39 = vmul.f32 %v2517_v36, %v1610_v38  ;;  %v2235_v36 = vld [vmem:[%s3212_s6] ss:$0 sm:$0xff] }
 0x520   : > { %v2346_v41 = vpop.f32.mrf.mxu0 }
 0x521   : > { %v1670_v48 = vcombine.low %v1666_v44, %v1668_v39  ;;  %v1671_v49 = vcombine.high %v1666_v44, %v1668_v39 }
 0x522   : > { %v1613_v42 = vpop.f32.mrf.mxu0  ;;  %v1656_v46 = vpop.f32.mrf.mxu1 }
 0x523   : > { %v1669_v50 = vmul.f32 %v2523_v45, %v1656_v46  ;;  %v1678_v56 = vrot.slane %v1670_v48, %v2988_v61  ;;  %v1685_v57 = vrot.slane %v1671_v49, %v2988_v61  ;;  %v2498_v49 = vld [vmem:[#allocation10 + $0x8] sm:$0xff]  }
 0x524   : > { %v2347_v51 = vpop.f32.mrf.mxu0  ;;  %v2352_v52 = vpop.f32.mrf.mxu1  ;;  %2363 = vmatpush3.bf16.msra.mxu1 %v2498_v49 }
 0x525   : > { %v1686_v53 = vcombine.low %v1667_v47, %v1669_v50  ;;  %v1687_v54 = vcombine.high %v1667_v47, %v1669_v50  ;;  %v2499_v50 = vld [vmem:[#allocation10] sm:$0xff]   ;;  %2364 = vmatprep.subr.bf16.mxu1 %v2726_v13 }
 0x526   : > { %v1659_v55 = vpop.f32.mrf.mxu1  ;;  %v2501_v51 = vld [vmem:[%s3217_s11 + $0x10] sm:$0xff]  }
 0x527   : > { %v1694_v58 = vrot.slane %v1686_v53, %v2988_v61  ;;  %v1701_v59 = vrot.slane %v1687_v54, %v2988_v61 }
 0x528   : > { %v2353_v60 = vpop.f32.mrf.mxu1  ;;  %2365 = vmatpush3.bf16.msra.mxu1 %v2499_v50 }
 0x529   : > { %v1702_v62 = vcombine.low %v1678_v56, %v1694_v58  ;;  %v1703_v63 = vcombine.high %v1678_v56, %v1694_v58  ;;  %v1718_v2 = vcombine.low %v1685_v57, %v1701_v59  ;;  %v1719_v3 = vcombine.high %v1685_v57, %v1701_v59  ;;  %v2239_v56 = vld [vmem:[%s3219_s13] ss:$0 sm:$0xff] }
 0x52a   : > { %v2240_v58 = vld [vmem:[%s3220_s14] ss:$0 sm:$0xff] }
 0x52b   : > { %v1710_v5 = vrot.slane %v1702_v62, %v2990_v1  ;;  %v1717_v6 = vrot.slane %v1703_v63, %v2990_v1  ;;  %v1726_v7 = vrot.slane %v1718_v2, %v2990_v1  ;;  %v1733_v8 = vrot.slane %v1719_v3, %v2990_v1  ;;  %v2502_v63 = vld [vmem:[%s3217_s11 + $0x8] sm:$0xff]   ;;  %v2503_v2 = vld [vmem:[%s3217_s11] sm:$0xff]  }
 0x52c   : > { %v2241_v3 = vld [vmem:[#allocation11] ss:$0 sm:$0xff] }
 0x52d   : > { %v1738_v9 = vcombine.low %v1710_v5, %v1717_v6  ;;  %v2233_v10 = vcombine.high %v1710_v5, %v1717_v6  ;;  %v1754_v11 = vcombine.low %v1726_v7, %v1733_v8  ;;  %v2234_v12 = vcombine.high %v1726_v7, %v1733_v8 }
 0x52f   : > { %v1745_v14 = vrot.slane %v1738_v9, %v2988_v61  ;;  %v1753_v15 = vrot.slane %v2233_v10, %v2988_v61  ;;  %v1761_v16 = vrot.slane %v1754_v11, %v2988_v61  ;;  %v1769_v17 = vrot.slane %v2234_v12, %v2988_v61 }
 0x531   : > { %v1771_v19 = vcombine.high %v1745_v14, %v1753_v15  ;;  %v1787_v20 = vcombine.high %v1761_v16, %v1769_v17  ;;  %v1770_v21 = vcombine.low %v1745_v14, %v1753_v15  ;;  %v1786_v22 = vcombine.low %v1761_v16, %v1769_v17 }
 0x533   : > { %v1785_v23 = vrot.slane %v1771_v19, %v2990_v1  ;;  %v1801_v24 = vrot.slane %v1787_v20, %v2990_v1  ;;  %v1778_v25 = vrot.slane %v1770_v21, %v2990_v1  ;;  %v1794_v26 = vrot.slane %v1786_v22, %v2990_v1 }
 0x535   : > { %v1804_v27 = vcombine.low %v1785_v23, %v1801_v24  ;;  %v1803_v28 = vcombine.high %v1778_v25, %v1794_v26  ;;  %v1802_v29 = vcombine.low %v1778_v25, %v1794_v26  ;;  %v1805_v61 = vcombine.high %v1785_v23, %v1801_v24 }
 0x537   : > { %1811 = vrot.lane.b32.xlu1 %v1804_v27, %s2735_s22  ;;  %1807 = vrot.lane.b32.xlu0 %v1803_v28, %s2736_s8  ;;  %s2630_s22 = scalar_lea.vmem %s3161_s25, 128  ;;  %s2738_s8 = smov [#allocation13]  }
 0x538   : > { %p2631_p0 = scmp.ne.s32.totalorder %s3161_s25, %s2630_s22 }
 0x53a   : > { %p2632_p5 = pnand %p2631_p0, %p3252_p3 }
 0x53b   : > { %1815 = vrot.lane.b32.xlu1 %v1805_v61, %s2737_s27  ;;  %s2634_s27 = sshll.u32 %s2738_s8, 4  ;;  %s2635_s27 = int_to_ptr.vmem [resolvable:$false] %s2634_s27 }
 0x53c   : > { %p2633_p6 = pneg %p2632_p5  ;;  %s2636_s20 = scalar_lea.vmem %s2635_s27, 256 }
 0x53d   : > { %p2637_p7 = scmp.lt.s32.totalorder %s3161_s25, %s2635_s27  ;;  %p2638_p9 = scmp.lt.s32.totalorder %s2636_s20, %s2630_s22 }
 0x53f   : > { %p2639_p12 = por %p2638_p9, %p2637_p7 }
 0x541   : > { %p2640_p1 = pnand %p2639_p12, %p2633_p6 }
 0x5a9   : > { %v1812_v30 = vpop.permute.xlu1 %1811  ;;  %v1808_v31 = vpop.permute.xlu0 %1807 }
 0x5aa   : > { %v1818_v32 = vsel %vm1244_vm3, %v1802_v29, %v1808_v31 }
 0x5ab   : > { %v1820_v34 = vsel %vm1819_vm5, %v1818_v32, %v1812_v30 }
 0x5ad   : > { %v1816_v33 = vpop.permute.xlu1 %1815 }
 0x5ae   : > { %v1822_v35 = vsel %vm1821_vm6, %v1820_v34, %v1816_v33 }
 0x5af   : > { %v1823_v1 = vpack.c.bf16 %v1822_v35, %v1822_v35 }
 0x5b1   : > { %2359 = vmatmul.mubr.msk.bf16.vlgmr.msra.gmra.mxu0 %vm567_vm0, %v1823_v1 }
 0x5b2   : > { %2378 = vmatprep.mubr.msk.bf16.mxu0 %vm2727_vm1, %v2726_v13 }
 0x671   : > { %v1884_v37 = vpop.f32.mrf.mxu0 }
 0x672   : > { %v1885_v38 = vadd.f32 %v2235_v36, %v1884_v37 }
 0x673   : > { %v2360_v39 = vpop.f32.mrf.mxu0 }
 0x674   : > { %v1890_v40 = vadd.f32 %v1885_v38, %v2943_v0  ;;  %v2500_v0 = vld [vmem:[%s3217_s11 + $0x18] sm:$0xff]  }
 0x675   : > { %v1887_v41 = vpop.f32.mrf.mxu0  ;;  %2371 = vmatpush3.bf16.msra.mxu0 %v2500_v0 }
 0x676   : > { %v1893_v43 = vsel %vm567_vm0, %v1890_v40, 0.0  ;;  %2372 = vmatprep.subr.bf16.mxu0 %v2726_v13 }
 0x677   : > { %1894 = vadd.xlane.f32.xlu1 %v1893_v43  ;;  %v2361_v44 = vpop.f32.mrf.mxu0 }
 0x679   : > { %2373 = vmatpush3.bf16.msra.mxu0 %v2501_v51 }
 0x67a   : > { %2374 = vmatprep.subr.bf16.mxu0 %v2726_v13 }
 0x67d   : > { %2375 = vmatpush3.bf16.msra.mxu0 %v2502_v63 }
 0x67e   : > { %2376 = vmatprep.subr.bf16.mxu0 %v2726_v13  ;;  %v2245_v13 = vld [vmem:[%s3218_s12] ss:$0 sm:$0xff] }
 0x681   : > { %2377 = vmatpush3.bf16.msra.mxu0 %v2503_v2 }
 0x700   : > { %v1895_v45 = vpop.xlane.xlu1 %1894 }
 0x701   : > { %v1896_v42 = vmul.f32 0.03125, %v1895_v45 }
 0x703   : > { %v1897_v46 = vsub.f32 %v1890_v40, %v1896_v42 }
 0x705   : > { %v1898_v47 = vmul.f32 %v1897_v46, %v1897_v46 }
 0x707   : > { %v1899_v48 = vsel %vm567_vm0, %v1898_v47, 0.0 }
 0x708   : > { %1900 = vadd.xlane.f32.xlu0 %v1899_v48 }
 0x791   : > { %v1901_v52 = vpop.xlane.xlu0 %1900 }
 0x792   : > { %v1902_v53 = vmul.f32 0.03125, %v1901_v52 }
 0x794   : > { %v1903_v54 = vadd.f32 1e-05, %v1902_v53 }
 0x796   : > { %2524 = vrsqrt.f32 %v1903_v54 }
 0x7a3   : > { %v2525_v55 = vpop.eup %2524 }
 0x7a4   : > { %v1905_v57 = vmul.f32 %v2525_v55, %v1897_v46 }
 0x7a6   : > { %v1912_v59 = vmul.f32 %v2239_v56, %v1905_v57 }
 0x7a8   : > { %v1919_v60 = vadd.f32 %v2240_v58, %v1912_v59 }
 0x7aa   : > { %v1920_v62 = vpack.c.bf16 %v1919_v60, %v1919_v60 }
 0x7ac   : > { %2367 = vmatmul.mubr.msk.bf16.vlgmr.msra.gmra.mxu1 %vm567_vm0, %v1920_v62 }
 0x86c   : > { %v1981_v4 = vpop.f32.mrf.mxu1 }
 0x86d   : > { %v1982_v5 = vadd.f32 %v2241_v3, %v1981_v4 }
 0x86e   : > { %v2368_v6 = vpop.f32.mrf.mxu1 }
 0x86f   : > { %v1987_v7 = vmax.f32 %v1982_v5, 0.0 }
 0x870   : > { %v1984_v8 = vpop.f32.mrf.mxu1 }
 0x871   : > { %v1988_v9 = vpack.c.bf16 %v1987_v7, %v1987_v7 }
 0x872   : > { %v2369_v10 = vpop.f32.mrf.mxu1 }
 0x873   : > { %2379 = vmatmul.mubr.msk.bf16.vlgmr.msra.gmra.mxu0 %vm2028_vm7, %v1988_v9 }
 0x933   : > { %v2066_v11 = vpop.f32.mrf.mxu0 }
 0x934   : > { %v2067_v12 = vadd.f32 %v2245_v13, %v2066_v11 }
 0x935   : > { %v2380_v14 = vpop.f32.mrf.mxu0 }
 0x936   : > { %v2072_v15 = vadd.f32 %v2067_v12, %v1890_v40 }
 0x937   : > { %v2069_v16 = vpop.f32.mrf.mxu0 }
 0x938   : > { %2073 = vst.msk [vmem:[%s554_s24] sm:$0xff] %vm567_vm0, %v2072_v15 }
 0x939   : > { %v2381_v17 = vpop.f32.mrf.mxu0 }
 0x93a   : > { %2643 = shalt.err (!%p2640_p1)
}
 0x93b   : > { %s2644_s23 = scalar_lea.hbm %s3159_s30, 128  ;;  %s2648_s17 = scalar_lea.hbm %s3251_s29, 256 }
 0x93c   : > { %p2645_p2 = scmp.ne.s32.totalorder %s3159_s30, %s2644_s23  ;;  %p2649_p10 = scmp.lt.s32.totalorder %s3159_s30, %s3251_s29 }
 0x93d   : > { %p2650_p11 = scmp.lt.s32.totalorder %s2648_s17, %s2644_s23 }
 0x93e   : > { %p2646_p8 = pnand %p2645_p2, %p3252_p3 }
 0x93f   : > { %p2651_p13 = por %p2650_p11, %p2649_p10 }
 0x940   : > { %p2647_p4 = pneg %p2646_p8 }
 0x942   : > { %p2652_p0 = pnand %p2651_p13, %p2647_p4 }
 0x944   : > { %2655 = shalt.err (!%p2652_p0)
}
 0x945   : > { %2398 = dma.vmem_to_hbm [thread:$0]  (%p3252_p3), %s3161_s25, 128, %s3159_s30, %s2075_s21  }
 0x946 PF: > { %s3253_s16 = sld [smem:[#allocation21_spill]] }
 0x947   : > { %s3254_s22 = sld [smem:[#allocation18_spill]] }
 0x948   : > { %s3255_s8 = sld [smem:[#allocation23_spill]] }
 0x94c   : > { %p2425_p5 = scmp.ge.s32.totalorder %s3253_s16, 2 }
 0x94d   : > { %s2101_s27 = sand.u32 1, %s3254_s22  }
 0x94e   : > { %p3256_p6 = scmp.ne.s32.totalorder %s3255_s8, 0  ;;  %s2102_s20 = scalar_lea.sflag [#allocation7], %s2101_s27 }
 0x950   : > { %p2414_p7 = pnand %p2425_p5, %p3256_p6 }
 0x952   : > { %p2415_p9 = pneg %p2414_p7 }
 0x954   : > { %2693 = dma.done.wait (%p2415_p9), %s2102_s20, 128  }
 0x955   : > { %2695 = vsyncadd (%p2415_p9), %s2102_s20, 4294967168  ;;  %s31_s23 = sadd.s32 1, %s3253_s16   ;;  %s3257_s28 = sld [smem:[#allocation19_spill]] }
 0x956   : > { %p28_p12 = scmp.ge.s32.totalorder %s31_s23, 4   ;;  %s3258_s20 = sld [smem:[#allocation24_spill]] }
 0x957   : > { %s3259_s21 = sld [smem:[#allocation20_spill]]  ;;  %s3261_s18 = smov %s2702_s19 }
 0x958   : > { %s3260_s22 = sld [smem:[#allocation22_spill]]  ;;  %30 = sbr.rel (!%p28_p12) target bundleno = 10 (0xa), region = 136 }
 0x95b   : > { %s3262_s19 = smov %s3257_s28 }
 0x95d   :  { %2107 = vsyncpa [#allocation6], 1 }
 0x95e   :  { %2109 = vsyncpa [#allocation6 + $0x1], 1 }
 0x95f   :  { %2110 = vsyncpa [#allocation9], 1 }
 0x960   :  { %2111 = vsyncpa [#allocation12], 1 }
 0x961   :  { %2112 = vsyncpa [#allocation7], 1 }
 0x962   :  { %2114 = vsyncpa [#allocation7 + $0x1], 1 }

// kernel: tpu_custom_call.1
= control target key start
LH: loop header
LB: loop body
LE: loop exit
PB: predicated region body
PF: predicated region fallthrough
CT: control target
= control target key end

     0   :  { %s2581_s0 = inlined_call_operand.vmem [shape: f32[2,8,32], index: 0, kind: input, shape index: {}]   ;;  %s2582_s1 = inlined_call_operand.vmem [shape: bf16[32,32], index: 1, kind: input, shape index: {}]   ;;  %s2583_s2 = inlined_call_operand.vmem [shape: f32[1,32], index: 2, kind: input, shape index: {}]   ;;  %s2584_s3 = inlined_call_operand.vmem [shape: bf16[32,64], index: 3, kind: input, shape index: {}]   ;;  %s2585_s4 = inlined_call_operand.vmem [shape: f32[1,64], index: 4, kind: input, shape index: {}]   ;;  %s2586_s5 = inlined_call_operand.hbm [shape: bf16[32,32], index: 5, kind: input, shape index: {}]   ;;  %s2587_s6 = inlined_call_operand.vmem [shape: f32[1,32], index: 6, kind: input, shape index: {}]   ;;  %s2588_s7 = inlined_call_operand.vmem [shape: f32[1,32], index: 7, kind: input, shape index: {}]   ;;  %s2589_s8 = inlined_call_operand.hbm [shape: f32[1,32], index: 8, kind: input, shape index: {}]   ;;  %s2590_s9 = inlined_call_operand.hbm [shape: bf16[32,64], index: 9, kind: input, shape index: {}]   ;;  %s2591_s10 = inlined_call_operand.hbm [shape: f32[1,64], index: 10, kind: input, shape index: {}]   ;;  %s2592_s11 = inlined_call_operand.vmem [shape: bf16[64,32], index: 11, kind: input, shape index: {}]   ;;  %s2593_s12 = inlined_call_operand.vmem [shape: f32[1,32], index: 12, kind: input, shape index: {}]   ;;  %s2594_s13 = inlined_call_operand.vmem [shape: f32[1,32], index: 13, kind: input, shape index: {}]   ;;  %s2595_s14 = inlined_call_operand.vmem [shape: f32[1,32], index: 14, kind: input, shape index: {}]   ;;  %s2596_s15 = inlined_call_operand.hbm [shape: f32[2,8,32], index: 15, kind: output, shape index: {}]  }
   0x1   :  { %2609 = sst [smem:[#allocation25_spill]] %s2589_s8 }
   0x2   :  { %2610 = sst [smem:[#allocation26_spill]] %s2596_s15 }
   0x3   :  { %20 = vsyncpa [#allocation6], 0 }
   0x4   :  { %21 = vsyncpa [#allocation9], 0 }
   0x5   :  { %22 = vsyncpa [#allocation12], 0 }
   0x6   :  { %23 = vsyncpa [#allocation7], 0 }
   0x7   :  { %25 = vsyncpa [#allocation7 + $0x1], 0  ;;  %s2256_s18 = smov 0   ;;  %s2258_s19 = smov 0  }
   0x8   :  { %s2260_s20 = smov 0   ;;  %s2262_s21 = smov 0  }
   0x9   :  { %s2264_s22 = smov 0   ;;  %s2266_s23 = smov 0  }
   0xa LB: > { %2611 = sst [smem:[#allocation18_spill]] %s2135_s18  ;;  %s1639_s24 = sadd.s32 4294967295, %s2155_s23   ;;  %s2155_s23 = sphi %s2266_s23, %s31_s23   ;;  %s2151_s22 = sphi %s2264_s22, %s2635_s22   ;;  %s2147_s21 = sphi %s2262_s21, %s2634_s21   ;;  %s2143_s20 = sphi %s2260_s20, %s2633_s20   ;;  %s2139_s19 = sphi %s2258_s19, %s2637_s19   ;;  %s2135_s18 = sphi %s2256_s18, %s2636_s18  }
   0xb   : > { %2612 = sst [smem:[#allocation19_spill]] %s2143_s20  ;;  %s1640_s25 = sadd.s32 4294967294, %s2155_s23  }
   0xc   : > { %2613 = sst [smem:[#allocation20_spill]] %s2151_s22  ;;  %s43_s26 = sadd.s32 1, %s2151_s22 }
   0xd   : > { %2614 = sst [smem:[#allocation21_spill]] %s2155_s23  ;;  %s372_s27 = sadd.s32 1, %s2143_s20 }
   0xe   : > { %p45_p0 = scmp.ge.s32.totalorder %s43_s26, 2  ;;  %p382_p1 = scmp.ne.s32.totalorder %s2143_s20, %s2139_s19 }
   0xf   : > { %p383_p2 = scmp.eq.s32.totalorder %s1639_s24, 1  ;;  %p388_p3 = scmp.ne.s32.totalorder %s2139_s19, %s2135_s18 }
  0x10   : > { %s2639_s26 = smov (%p45_p0, %s43_s26), 0  ;;  %p389_p5 = scmp.eq.s32.totalorder %s1640_s25, 1 }
  0x11   : > { %2615 = sst [smem:[#allocation22_spill]] %s2639_s26  ;;  %p2296_p4 = por %p383_p2, %p382_p1 }
  0x12   : > { %s367_s29 = ssub.s32 %s2151_s22, %s2639_s26  ;;  %p1641_p6 = scmp.ge.s32.totalorder %s2155_s23, 1 }
  0x13   : > { %s2616_s28 = scalar_select %p2296_p4, 1, 0 }
  0x14   : > { %p370_p7 = scmp.eq.s32.totalorder %s367_s29, 0  ;;  %p2303_p8 = por %p389_p5, %p388_p3 }
  0x15   : > { %p396_p9 = scmp.lt.s32.totalorder %s2155_s23, 3  ;;  %p2315_p11 = scmp.eq.s32.totalorder %s1639_s24, 0 }
  0x16   : > { %s2617_s30 = scalar_select %p2303_p8, 1, 0 }
  0x17   : > { %s2309_s16 = scalar_select %p370_p7, %s2143_s20, %s372_s27  }
  0x18   : > { %2618 = sst [smem:[#allocation23_spill]] %s2617_s30  ;;  %p2311_p10 = pnand %p1641_p6, %p396_p9 }
  0x19   : > { %2619 = sst [smem:[#allocation24_spill]] %s2309_s16  ;;  %s2157_s25 = smov [#allocation8]  }
  0x1a   : > { %s2620_s17 = scalar_select %p2311_p10, 1, 0 }
  0x1b   : > { %s2621_s18 = scalar_select %p2315_p11, 1, 0 }
  0x1c   : > { %p1837_p12 = pneg %p2311_p10  ;;  %s440_s29 = sshll.u32 %s2157_s25, 4  ;;  %s441_s29 = int_to_ptr.vmem [resolvable:$true] %s440_s29 }
  0x1d   : > { %s2158_s27 = smov [#allocation5]   ;;  %s1974_s24 = scalar_lea.vmem %s441_s29, 16 }
  0x1e   : > { %p2323_p13 = pnand %p2315_p11, %p1837_p12  ;;  %s420_s22 = sshll.u32 %s2158_s27, 4  ;;  %s421_s22 = int_to_ptr.vmem [resolvable:$true] %s420_s22 }
  0x1f   : > { %p1975_p1 = scmp.ne.s32.totalorder %s441_s29, %s1974_s24  ;;  %s1981_s25 = scalar_lea.vmem %s441_s29, 32 }
  0x20   : > { %p1965_p0 = pneg %p2323_p13  ;;  %p1982_p5 = scmp.lt.s32.totalorder %s441_s29, %s441_s29 }
  0x21   : > { %p1983_p6 = scmp.lt.s32.totalorder %s1981_s25, %s1974_s24 }
  0x22   : > { %p1977_p2 = pnand %p1975_p1, %p1965_p0 }
  0x23   : > { %p1984_p7 = por %p1983_p6, %p1982_p5 }
  0x24   : > { %p1978_p3 = pneg %p1977_p2 }
  0x26   : > { %p1985_p9 = pnand %p1984_p7, %p1978_p3 }
  0x28   : > { %1988 = shalt.err (!%p1985_p9)
}
  0x29   : > { %s2623_s8 = sld [smem:[#allocation25_spill]]  ;;  %s2000_s27 = scalar_lea.vmem %s421_s22, 256 }
  0x2a   : > { %p2001_p12 = scmp.ne.s32.totalorder %s421_s22, %s2000_s27  ;;  %p2008_p2 = scmp.lt.s32.totalorder %s421_s22, %s421_s22 }
  0x2b   : > { %p2009_p4 = scmp.lt.s32.totalorder %s2000_s27, %s2000_s27 }
  0x2c   : > { %p2003_p8 = pnand %p2001_p12, %p1965_p0 }
  0x2d   : > { %p2010_p11 = por %p2009_p4, %p2008_p2 }
  0x2e   : > { %p2004_p1 = pneg %p2003_p8 }
  0x2f   : > { %1843 = dma.hbm_to_vmem [thread:$0]  (!%p2323_p13), %s2623_s8, 16, %s441_s29, [#allocation9]  }
  0x30   : > { %p2011_p10 = pnand %p2010_p11, %p2004_p1 }
  0x32   : > { %2014 = shalt.err (!%p2011_p10)
}
  0x33   : > { %s2159_s24 = smov 64   ;;  %s2160_s25 = smov 4  }
  0x34   : > { %1840 = dma.hbm_to_vmem [thread:$0]  (!%p2323_p13), %s2586_s5, 256, %s421_s22, [#allocation6], %s2159_s24, %s2159_s24, %s2160_s25  }
  0x35   : > { %s2161_s16 = smov [#allocation10]   ;;  %s2162_s8 = smov [#allocation11]  }
  0x36   : > { %s450_s29 = sshll.u32 %s2161_s16, 4  ;;  %s464_s23 = sshll.u32 %s2162_s8, 4  ;;  %s451_s29 = int_to_ptr.vmem [resolvable:$true] %s450_s29  ;;  %s465_s23 = int_to_ptr.vmem [resolvable:$true] %s464_s23 }
  0x37   : > { %s2026_s15 = scalar_lea.vmem %s451_s29, 256  ;;  %p2034_p11 = scmp.lt.s32.totalorder %s451_s29, %s451_s29 }
  0x38   : > { %p2027_p8 = scmp.ne.s32.totalorder %s451_s29, %s2026_s15  ;;  %p2035_p3 = scmp.lt.s32.totalorder %s2026_s15, %s2026_s15 }
  0x3a   : > { %p2029_p4 = pnand %p2027_p8, %p1965_p0  ;;  %p2036_p5 = por %p2035_p3, %p2034_p11 }
  0x3c   : > { %p2030_p10 = pneg %p2029_p4 }
  0x3e   : > { %p2037_p6 = pnand %p2036_p5, %p2030_p10 }
  0x40   : > { %2040 = shalt.err (!%p2037_p6)
}
  0x41   : > { %1846 = dma.hbm_to_vmem [thread:$0]  (!%p2323_p13), %s2590_s9, 256, %s451_s29, [#allocation9], %s2159_s24, %s2159_s24, %s2160_s25  }
  0x42   : > { %s2052_s8 = scalar_lea.vmem %s465_s23, 16  ;;  %s2059_s27 = scalar_lea.vmem %s465_s23, 32 }
  0x43   : > { %p2053_p7 = scmp.ne.s32.totalorder %s465_s23, %s2052_s8  ;;  %p2060_p1 = scmp.lt.s32.totalorder %s465_s23, %s465_s23 }
  0x44   : > { %p2061_p2 = scmp.lt.s32.totalorder %s2059_s27, %s2052_s8 }
  0x45   : > { %p2055_p9 = pnand %p2053_p7, %p1965_p0 }
  0x46   : > { %p2062_p8 = por %p2061_p2, %p2060_p1 }
  0x47   : > { %p2056_p12 = pneg %p2055_p9 }
  0x49   : > { %p2063_p4 = pnand %p2062_p8, %p2056_p12 }
  0x4b   : > { %2066 = shalt.err (!%p2063_p4)
}
  0x4c   : > { %1849 = dma.hbm_to_vmem [thread:$0]  (!%p2323_p13), %s2591_s10, 16, %s465_s23, [#allocation12]  }
  0x4d   : > { %p2624_p10 = scmp.ne.s32.totalorder %s2620_s17, 0 }
  0x4e   : > { %p2625_p11 = scmp.ne.s32.totalorder (!%p2624_p10), %s2621_s18, 0 }
  0x4f   : > { %496 = sbr.rel (%p2624_p10) target bundleno = 2341 (0x925), region = 80 }
  0x54   : > { %2118 = dma.done.wait (%p2625_p11), [#allocation6], 256  }
  0x55   : > { %2120 = vsyncadd (%p2625_p11), [#allocation6], 4294967040 }
  0x56   : > { %2122 = dma.done.wait (%p2625_p11), [#allocation9], 272  }
  0x57   : > { %2124 = vsyncadd (%p2625_p11), [#allocation9], 4294967024 }
  0x58   : > { %2126 = dma.done.wait (%p2625_p11), [#allocation12], 16  }
  0x59   : > { %2128 = vsyncadd (%p2625_p11), [#allocation12], 4294967280  ;;  %p555_p13 = scmp.lt.s32.totalorder %s2147_s21, 1  ;;  %vm567_vm0 = vcmask 261120   ;;  %v1929_v12 = vld [vmem:[%s2584_s3 + $0x8] sm:$0xff]   ;;  %v2163_v13 = vmov 0.0  }
  0x5a   : > { %1727 = vmatprep.subr.bf16.mxu1 %v2163_v13  ;;  %vm2164_vm1 = vmmov 0   ;;  %v1930_v14 = vld [vmem:[%s2584_s3] sm:$0xff]   ;;  %1743 = vmatprep.subr.bf16.mxu0 %v2163_v13  ;;  %v1693_v24 = vld [vmem:[#allocation8] ss:$0 sm:$0xff]  ;;  %v1931_v29 = vld [vmem:[%s2582_s1 + $0x8] sm:$0xff]   ;;  %vm664_vm2 = vcmask 60416  }
  0x5b   : > { %s556_s23 = scalar_select %p555_p13, %s2147_s21, 1  ;;  %1731 = vmatprep.mubr.msk.bf16.mxu1 %vm2164_vm1, %v2163_v13  ;;  %1728 = vmatpush3.bf16.msra.mxu1 %v1929_v12  ;;  %v1692_v22 = vld [vmem:[%s2588_s7] ss:$0 sm:$0xff]  ;;  %vm803_vm3 = vcmask 64512   ;;  %vm864_vm4 = vcmask 1043456   ;;  %vm1027_vm5 = vcmask 130112  }
  0x5c   : > { %1729 = vmatprep.subr.bf16.mxu1 %v2163_v13  ;;  %1745 = vmatprep.mubr.msk.bf16.mxu0 %vm2164_vm1, %v2163_v13  ;;  %v1932_v32 = vld [vmem:[%s2582_s1] sm:$0xff]   ;;  %s2165_s24 = smov 112   ;;  %s2167_s29 = smov 104   ;;  %vm1144_vm6 = vcmask 195712   ;;  %vm1261_vm7 = vcmask 261312   ;;  %vm1469_vm8 = vcmask 523264  }
  0x5d   : > { %s1653_s26 = sshll.u32 %s556_s23, 3  ;;  %v1654_v35 = vld [vmem:[%s2585_s4] ss:$0 sm:$0xff]  ;;  %s2168_s30 = smov 88  }
  0x5e   : > { %s558_s25 = scalar_lea.vmem %s2581_s0, %s1653_s26  ;;  %v1659_v42 = vld [vmem:[%s2583_s2] ss:$0 sm:$0xff]  ;;  %s2169_s22 = smov 96  }
  0x5f   : > { %v2380_v0 = vld [vmem:[%s558_s25] sm:$0xff]  ;;  %1730 = vmatpush3.bf16.msra.mxu1 %v1930_v14  ;;  %s2166_s25 = smov 120   ;;  %s2170_s8 = smov 80  }
  0x60   : > { %v568_v1 = vsel %vm567_vm0, %v2380_v0, 0.0  ;;  %1735 = vmatprep.subr.bf16.mxu1 %v2163_v13  ;;  %s2171_s27 = smov 72   ;;  %s2172_s15 = smov 8  }
  0x61   : > { %569 = vadd.xlane.f32.xlu0 %v568_v1  ;;  %s2173_s20 = smov 16   ;;  %s2174_s23 = smov 24  }
  0x62   : > { %s552_s26 = sand.u32 1, %s2139_s19   ;;  %s1688_s18 = sshll.u32 %s2147_s21, 7 }
  0x63   : > { %s1652_s17 = sshll.u32 %s552_s26, 3  ;;  %s1516_s21 = scalar_lea.sflag [#allocation7], %s552_s26 }
  0x64   : > { %s554_s16 = scalar_lea.vmem [#allocation13], %s1652_s17  ;;  %p2627_p3 = scmp.ne.s32.totalorder %s2616_s28, 0 }
  0x65   : > { %706 = vadd.xlane.f32.xlu0 %v568_v1 }
  0xea   : > { %v570_v2 = vpop.xlane.xlu0 %569 }
  0xeb   : > { %v572_v3 = vmul.f32 0.03125, %v570_v2 }
  0xed   : > { %v573_v4 = vsub.f32 %v2380_v0, %v572_v3 }
  0xee   : > { %v707_v5 = vpop.xlane.xlu0 %706 }
  0xef   : > { %v709_v6 = vmul.f32 0.03125, %v707_v5  ;;  %v574_v7 = vmul.f32 %v573_v4, %v573_v4 }
  0xf1   : > { %v710_v8 = vsub.f32 %v2380_v0, %v709_v6  ;;  %v575_v9 = vsel %vm567_vm0, %v574_v7, 0.0 }
  0xf2   : > { %576 = vadd.xlane.f32.xlu1 %v575_v9 }
  0xf3   : > { %v711_v10 = vmul.f32 %v710_v8, %v710_v8 }
  0xf5   : > { %v712_v11 = vsel %vm567_vm0, %v711_v10, 0.0 }
  0xf6   : > { %713 = vadd.xlane.f32.xlu1 %v712_v11 }
 0x17b   : > { %v577_v15 = vpop.xlane.xlu1 %576 }
 0x17c   : > { %v578_v16 = vmul.f32 0.03125, %v577_v15 }
 0x17e   : > { %v579_v17 = vadd.f32 1e-05, %v578_v16 }
 0x17f   : > { %v714_v18 = vpop.xlane.xlu1 %713 }
 0x180   : > { %1941 = vrsqrt.f32 %v579_v17  ;;  %v715_v19 = vmul.f32 0.03125, %v714_v18 }
 0x182   : > { %v716_v20 = vadd.f32 1e-05, %v715_v19 }
 0x184   : > { %1943 = vrsqrt.f32 %v716_v20 }
 0x18d   : > { %v1942_v21 = vpop.eup %1941 }
 0x18e   : > { %v581_v23 = vmul.f32 %v1942_v21, %v573_v4 }
 0x190   : > { %v588_v25 = vmul.f32 %v1692_v22, %v581_v23 }
 0x191   : > { %v1944_v26 = vpop.eup %1943 }
 0x192   : > { %v595_v27 = vadd.f32 %v1693_v24, %v588_v25  ;;  %v718_v28 = vmul.f32 %v1944_v26, %v710_v8 }
 0x194   : > { %v596_v30 = vpack.c.bf16 %v595_v27, %v595_v27  ;;  %v725_v31 = vmul.f32 %v1692_v22, %v718_v28 }
 0x196   : > { %1732 = vmatmul.mubr.msk.bf16.vlgmr.msra.gmra.mxu1 %vm567_vm0, %v596_v30  ;;  %v732_v33 = vadd.f32 %v1693_v24, %v725_v31 }
 0x197   : > { %1736 = vmatpush3.bf16.msra.mxu1 %v1931_v29  ;;  %1739 = vmatprep.mubr.msk.bf16.mxu1 %vm2164_vm1, %v2163_v13 }
 0x198   : > { %1737 = vmatprep.subr.bf16.mxu1 %v2163_v13  ;;  %v733_v34 = vpack.c.bf16 %v732_v33, %v732_v33 }
 0x19b   : > { %1738 = vmatpush3.bf16.msra.mxu1 %v1932_v32 }
 0x19c   : > { %1749 = vmatprep.subr.bf16.mxu1 %v2163_v13 }
 0x19e   : > { %1740 = vmatmul.mubr.msk.bf16.vlgmr.msra.gmra.mxu1 %vm567_vm0, %v733_v34 }
 0x19f   : > { %1751 = vmatprep.mubr.msk.bf16.mxu1 %vm2164_vm1, %v2163_v13 }
 0x256   : > { %v657_v36 = vpop.f32.mrf.mxu1 }
 0x257   : > { %v658_v37 = vadd.f32 %v1654_v35, %v657_v36 }
 0x258   : > { %v1733_v38 = vpop.f32.mrf.mxu1 }
 0x259   : > { %v2422_v39 = vpack.c.bf16 %v658_v37, %v658_v37 }
 0x25a   : > { %v660_v40 = vpop.f32.mrf.mxu1 }
 0x25b   : > { %665 = vst.msk [vmem:[#allocation2] sm:$0xf] %vm664_vm2, %v2422_v39  ;;  %683 = vrot.lane.b32.xlu1 %v2422_v39, %s2165_s24  ;;  %673 = vrot.lane.b32.xlu0 %v2422_v39, %s2166_s25 }
 0x25c   : > { %v1734_v41 = vpop.f32.mrf.mxu1 }
 0x25e   : > { %v794_v43 = vpop.f32.mrf.mxu1 }
 0x25f   : > { %v795_v44 = vadd.f32 %v1659_v42, %v794_v43  ;;  %693 = vrot.lane.b32.xlu1 %v2422_v39, %s2167_s29 }
 0x260   : > { %v1741_v45 = vpop.f32.mrf.mxu1 }
 0x261   : > { %v800_v46 = vpack.c.bf16 %v795_v44, %v795_v44 }
 0x262   : > { %v797_v47 = vpop.f32.mrf.mxu1  ;;  %v801_v48 = vld [vmem:[#allocation2] sm:$0xf] }
 0x263   : > { %1033 = vrot.lane.b32.xlu0 %v800_v46, %s2165_s24  ;;  %916 = vrot.lane.b32.xlu1 %v800_v46, %s2166_s25  ;;  %v808_v49 = vsel %vm803_vm3, %v801_v48, 0 }
 0x264   : > { %v1742_v50 = vpop.f32.mrf.mxu1  ;;  %1744 = vmatpush3.bf16.xpose.msra.mxu0 %v808_v49 }
 0x265   : > { %1755 = vmatprep.subr.bf16.mxu0 %v2163_v13 }
 0x267   : > { %1150 = vrot.lane.b32.xlu1 %v800_v46, %s2167_s29  ;;  %s1530_s29 = sshll.u32 %s554_s16, 4  ;;  %s2536_s29 = int_to_ptr.vmem [resolvable:$true] %s1530_s29 }
 0x26b   : > { %678 = vrot.lane.b32.xlu1 %v2422_v39, %s2168_s30  ;;  %1746 = vmatmul.mubr.msk.bf16.vlgmr.msra.gmra.mxu0 %vm803_vm3, %v800_v46 }
 0x26c   : > { %1757 = vmatprep.mubr.msk.bf16.mxu0 %vm2164_vm1, %v2163_v13 }
 0x2cd   : > { %v684_v51 = vpop.permute.xlu1 %683  ;;  %v674_v52 = vpop.permute.xlu0 %673 }
 0x2ce   : > { %687 = vst.msk [vmem:[#allocation2 + $0x8] sm:$0xf] %vm664_vm2, %v684_v51  ;;  %677 = vst.msk [vmem:[#allocation2 + $0x4] sm:$0xf] %vm664_vm2, %v674_v52 }
 0x2d1   : > { %v694_v53 = vpop.permute.xlu1 %693 }
 0x2d2   : > { %697 = vst.msk [vmem:[#allocation2 + $0xc] sm:$0xf] %vm664_vm2, %v694_v53 }
 0x2d5   : > { %v917_v54 = vpop.permute.xlu1 %916  ;;  %v912_v55 = vld [vmem:[#allocation2 + $0x4] sm:$0xf]  ;;  %v1030_v58 = vld [vmem:[#allocation2 + $0x8] sm:$0xf]  ;;  %v1034_v62 = vpop.permute.xlu0 %1033 }
 0x2d6   : > { %v922_v56 = vsel %vm803_vm3, %v912_v55, 0  ;;  %v1039_v60 = vsel %vm803_vm3, %v1030_v58, 0 }
 0x2d7   : > { %1756 = vmatpush3.bf16.xpose.msra.mxu0 %v922_v56 }
 0x2d8   : > { %1767 = vmatprep.subr.bf16.mxu0 %v2163_v13 }
 0x2d9   : > { %v1151_v57 = vpop.permute.xlu1 %1150  ;;  %v1147_v61 = vld [vmem:[#allocation2 + $0xc] sm:$0xf] }
 0x2da   : > { %v1156_v63 = vsel %vm803_vm3, %v1147_v61, 0 }
 0x2dd   : > { %v679_v59 = vpop.permute.xlu1 %678 }
 0x2de   : > { %682 = vst.msk [vmem:[#allocation3 + $0x4] sm:$0xf] %vm664_vm2, %v679_v59  ;;  %1758 = vmatmul.mubr.msk.bf16.vlgmr.msra.gmra.mxu0 %vm803_vm3, %v917_v54 }
 0x2df   : > { %1768 = vmatpush3.bf16.xpose.msra.mxu0 %v1039_v60  ;;  %1769 = vmatprep.mubr.msk.bf16.mxu0 %vm2164_vm1, %v2163_v13 }
 0x2e0   : > { %1779 = vmatprep.subr.bf16.mxu0 %v2163_v13 }
 0x2e5   : > { %v914_v33 = vld [vmem:[#allocation3 + $0x4] sm:$0xf] }
 0x2e6   : > { %1770 = vmatmul.mubr.msk.bf16.vlgmr.msra.gmra.mxu0 %vm803_vm3, %v1034_v62  ;;  %v979_v35 = vsel %vm864_vm4, %v914_v33, 0 }
 0x2e7   : > { %1780 = vmatpush3.bf16.xpose.msra.mxu0 %v1156_v63  ;;  %1781 = vmatprep.mubr.msk.bf16.mxu0 %vm2164_vm1, %v2163_v13 }
 0x2e8   : > { %1791 = vmatprep.subr.bf16.mxu0 %v2163_v13 }
 0x2ee   : > { %1782 = vmatmul.mubr.msk.bf16.vlgmr.msra.gmra.mxu0 %vm803_vm3, %v1151_v57 }
 0x2ef   : > { %1795 = vmatprep.mubr.msk.bf16.mxu0 %vm2164_vm1, %v2163_v13 }
 0x32b   : > { %v844_v1 = vpop.f32.mrf.mxu0 }
 0x32c   : > { %v850_v2 = vmul.f32 0.35355338, %v844_v1 }
 0x32d   : > { %v1747_v3 = vpop.f32.mrf.mxu0 }
 0x32e   : > { %v851_v4 = vsel %vm803_vm3, %v850_v2, -inf }
 0x32f   : > { %852 = vmax.xlane.f32.xlu0 %v851_v4  ;;  %v847_v5 = vpop.f32.mrf.mxu0 }
 0x331   : > { %v1748_v6 = vpop.f32.mrf.mxu0 }
 0x345   : > { %669 = vrot.lane.b32.xlu0 %v2422_v39, %s2169_s22 }
 0x39e   : > { %v958_v7 = vpop.f32.mrf.mxu0 }
 0x39f   : > { %v964_v8 = vmul.f32 0.35355338, %v958_v7 }
 0x3a0   : > { %v1759_v9 = vpop.f32.mrf.mxu0 }
 0x3a1   : > { %v965_v10 = vsel %vm803_vm3, %v964_v8, -inf }
 0x3a2   : > { %966 = vmax.xlane.f32.xlu1 %v965_v10  ;;  %v961_v11 = vpop.f32.mrf.mxu0 }
 0x3a4   : > { %v1760_v12 = vpop.f32.mrf.mxu0 }
 0x3a6   : > { %v1075_v14 = vpop.f32.mrf.mxu0 }
 0x3a7   : > { %v1081_v15 = vmul.f32 0.35355338, %v1075_v14 }
 0x3a8   : > { %v1771_v16 = vpop.f32.mrf.mxu0 }
 0x3a9   : > { %v1082_v17 = vsel %vm803_vm3, %v1081_v15, -inf }
 0x3aa   : > { %1083 = vmax.xlane.f32.xlu0 %v1082_v17  ;;  %v1078_v18 = vpop.f32.mrf.mxu0 }
 0x3ab   : > { %v1934_v18 = vld [vmem:[#allocation5] sm:$0xff]  }
 0x3ac   : > { %v1772_v19 = vpop.f32.mrf.mxu0 }
 0x3ae   : > { %v1192_v20 = vpop.f32.mrf.mxu0 }
 0x3af   : > { %v1198_v21 = vmul.f32 0.35355338, %v1192_v20 }
 0x3b0   : > { %v1783_v22 = vpop.f32.mrf.mxu0 }
 0x3b1   : > { %v1199_v23 = vsel %vm803_vm3, %v1198_v21, -inf }
 0x3b2   : > { %1200 = vmax.xlane.f32.xlu1 %v1199_v23  ;;  %v1195_v24 = vpop.f32.mrf.mxu0 }
 0x3b4   : > { %v1784_v25 = vpop.f32.mrf.mxu0 }
 0x3b8   : > { %v853_v26 = vpop.xlane.xlu0 %852 }
 0x3b9   : > { %v854_v27 = vsub.f32 %v850_v2, %v853_v26 }
 0x3bb   : > { %v855_v28 = vmul.f32 1.442695, %v854_v27 }
 0x3bc   : > { %v670_v29 = vpop.permute.xlu0 %669 }
 0x3bd   : > { %1945 = vpow2.f32 %v855_v28  ;;  %672 = vst.msk [vmem:[#allocation3] sm:$0xf] %vm664_vm2, %v670_v29 }
 0x3c0   : > { %688 = vrot.lane.b32.xlu0 %v2422_v39, %s2170_s8  ;;  %s2626_s8 = sld [smem:[#allocation26_spill]] }
 0x3c3   : > { %698 = vrot.lane.b32.xlu1 %v2422_v39, %s2171_s27 }
 0x3c4   : > { %v802_v30 = vld [vmem:[#allocation3] sm:$0xf] }
 0x3c5   : > { %v866_v31 = vsel %vm864_vm4, %v802_v30, 0 }
 0x3c6   : > { %1750 = vmatpush3.bf16.msra.mxu1 %v866_v31  ;;  %s2534_s27 = scalar_lea.hbm %s2626_s8, %s1688_s18 }
 0x3c7   : > { %1761 = vmatprep.subr.bf16.mxu1 %v2163_v13 }
 0x3ca   : > { %v1946_v32 = vpop.eup %1945 }
 0x3cb   : > { %v860_v34 = vpack.c.bf16 %v1946_v32, %v1946_v32  ;;  %v857_v60 = vsel %vm803_vm3, %v1946_v32, 0.0 }
 0x3cd   : > { %1752 = vmatmul.mubr.msk.bf16.vlgmr.msra.gmra.mxu1 %vm803_vm3, %v860_v34  ;;  %v1671_v34 = vld [vmem:[%s2587_s6] ss:$0 sm:$0xff] }
 0x3ce   : > { %1762 = vmatpush3.bf16.msra.mxu1 %v979_v35  ;;  %1763 = vmatprep.mubr.msk.bf16.mxu1 %vm2164_vm1, %v2163_v13 }
 0x3cf   : > { %1773 = vmatprep.subr.bf16.mxu1 %v2163_v13 }
 0x42b   : > { %v967_v36 = vpop.xlane.xlu1 %966 }
 0x42c   : > { %v968_v37 = vsub.f32 %v964_v8, %v967_v36 }
 0x42e   : > { %v969_v38 = vmul.f32 1.442695, %v968_v37 }
 0x430   : > { %1947 = vpow2.f32 %v969_v38 }
 0x433   : > { %v1084_v39 = vpop.xlane.xlu0 %1083 }
 0x434   : > { %v1085_v40 = vsub.f32 %v1081_v15, %v1084_v39  ;;  %v1933_v15 = vld [vmem:[#allocation5 + $0x8] sm:$0xff]  }
 0x435   : > { %1792 = vmatpush3.bf16.msra.mxu0 %v1933_v15 }
 0x436   : > { %v1086_v41 = vmul.f32 1.442695, %v1085_v40  ;;  %1793 = vmatprep.subr.bf16.mxu0 %v2163_v13 }
 0x437   : > { %v689_v42 = vpop.permute.xlu0 %688 }
 0x438   : > { %1949 = vpow2.f32 %v1086_v41  ;;  %692 = vst.msk [vmem:[#allocation3 + $0x8] sm:$0xf] %vm664_vm2, %v689_v42 }
 0x439   : > { %1794 = vmatpush3.bf16.msra.mxu0 %v1934_v18 }
 0x43a   : > { %1807 = vmatprep.subr.bf16.mxu0 %v2163_v13 }
 0x43b   : > { %v1201_v43 = vpop.xlane.xlu1 %1200 }
 0x43c   : > { %v1202_v44 = vsub.f32 %v1198_v21, %v1201_v43 }
 0x43d   : > { %v1948_v45 = vpop.eup %1947 }
 0x43e   : > { %v1203_v46 = vmul.f32 1.442695, %v1202_v44  ;;  %v971_v47 = vsel %vm803_vm3, %v1948_v45, 0.0  ;;  %v974_v48 = vpack.c.bf16 %v1948_v45, %v1948_v45 }
 0x43f   : > { %972 = vadd.xlane.f32.xlu0 %v971_v47  ;;  %v699_v49 = vpop.permute.xlu1 %698  ;;  %v1032_v50 = vld [vmem:[#allocation3 + $0x8] sm:$0xf]  ;;  %v1935_v47 = vld [vmem:[#allocation10 + $0x8] sm:$0xff]  }
 0x440   : > { %1951 = vpow2.f32 %v1203_v46  ;;  %702 = vst.msk [vmem:[#allocation3 + $0xc] sm:$0xf] %vm664_vm2, %v699_v49  ;;  %1764 = vmatmul.mubr.msk.bf16.vlgmr.msra.gmra.mxu1 %vm803_vm3, %v974_v48  ;;  %v1096_v51 = vsel %vm864_vm4, %v1032_v50, 0  ;;  %v1936_v48 = vld [vmem:[#allocation10] sm:$0xff]   ;;  %v1938_v49 = vld [vmem:[%s2592_s11 + $0x10] sm:$0xff]  }
 0x441   : > { %1774 = vmatpush3.bf16.msra.mxu1 %v1096_v51  ;;  %1775 = vmatprep.mubr.msk.bf16.mxu1 %vm2164_vm1, %v2163_v13 }
 0x442   : > { %1785 = vmatprep.subr.bf16.mxu1 %v2163_v13 }
 0x445   : > { %v1950_v52 = vpop.eup %1949 }
 0x446   : > { %v1088_v53 = vsel %vm803_vm3, %v1950_v52, 0.0  ;;  %v1091_v54 = vpack.c.bf16 %v1950_v52, %v1950_v52 }
 0x447   : > { %1089 = vadd.xlane.f32.xlu1 %v1088_v53  ;;  %v1149_v55 = vld [vmem:[#allocation3 + $0xc] sm:$0xf] }
 0x448   : > { %1776 = vmatmul.mubr.msk.bf16.vlgmr.msra.gmra.mxu1 %vm803_vm3, %v1091_v54  ;;  %v1213_v56 = vsel %vm864_vm4, %v1149_v55, 0  ;;  %v1675_v54 = vld [vmem:[%s2594_s13] ss:$0 sm:$0xff] }
 0x449   : > { %1786 = vmatpush3.bf16.msra.mxu1 %v1213_v56  ;;  %1787 = vmatprep.mubr.msk.bf16.mxu1 %vm2164_vm1, %v2163_v13  ;;  %v1676_v56 = vld [vmem:[%s2595_s14] ss:$0 sm:$0xff] }
 0x44a   : > { %1799 = vmatprep.subr.bf16.mxu1 %v2163_v13 }
 0x44d   : > { %v1952_v57 = vpop.eup %1951 }
 0x44e   : > { %v1205_v58 = vsel %vm803_vm3, %v1952_v57, 0.0  ;;  %v1208_v59 = vpack.c.bf16 %v1952_v57, %v1952_v57 }
 0x44f   : > { %1206 = vadd.xlane.f32.xlu0 %v1205_v58 }
 0x450   : > { %1788 = vmatmul.mubr.msk.bf16.vlgmr.msra.gmra.mxu1 %vm803_vm3, %v1208_v59 }
 0x451   : > { %1803 = vmatprep.mubr.msk.bf16.mxu1 %vm2164_vm1, %v2163_v13  ;;  %1800 = vmatpush3.bf16.msra.mxu1 %v1935_v47 }
 0x452   : > { %1801 = vmatprep.subr.bf16.mxu1 %v2163_v13 }
 0x453   : > { %858 = vadd.xlane.f32.xlu0 %v857_v60  ;;  %v1939_v60 = vld [vmem:[%s2592_s11 + $0x8] sm:$0xff]  }
 0x455   : > { %1802 = vmatpush3.bf16.msra.mxu1 %v1936_v48 }
 0x48d   : > { %v902_v61 = vpop.f32.mrf.mxu1 }
 0x48f   : > { %v1753_v62 = vpop.f32.mrf.mxu1 }
 0x490   : > { %v1677_v62 = vld [vmem:[#allocation11] ss:$0 sm:$0xff] }
 0x491   : > { %v905_v63 = vpop.f32.mrf.mxu1 }
 0x493   : > { %v1754_v1 = vpop.f32.mrf.mxu1 }
 0x4c8   : > { %v973_v2 = vpop.xlane.xlu0 %972 }
 0x4d0   : > { %v1090_v7 = vpop.xlane.xlu1 %1089 }
 0x4d8   : > { %v1207_v3 = vpop.xlane.xlu0 %1206 }
 0x4dc   : > { %v859_v4 = vpop.xlane.xlu0 %858 }
 0x4dd   : > { %1953 = vrcp.f32 %v859_v4 }
 0x4de   : > { %1955 = vrcp.f32 %v973_v2 }
 0x4df   : > { %1957 = vrcp.f32 %v1090_v7 }
 0x4e0   : > { %1959 = vrcp.f32 %v1207_v3 }
 0x4ea   : > { %v1954_v5 = vpop.eup %1953 }
 0x4eb   : > { %v909_v6 = vmul.f32 %v1954_v5, %v902_v61  ;;  %v1956_v8 = vpop.eup %1955  ;;  %v1940_v61 = vld [vmem:[%s2592_s11] sm:$0xff]  }
 0x4ec   : > { %v1958_v16 = vpop.eup %1957 }
 0x4ed   : > { %910 = vst.msk [vmem:[#allocation4] sm:$0xff] %vm803_vm3, %v909_v6  ;;  %v1960_v23 = vpop.eup %1959 }
 0x500   : > { %v1015_v9 = vpop.f32.mrf.mxu1 }
 0x501   : > { %v1022_v10 = vmul.f32 %v1956_v8, %v1015_v9 }
 0x502   : > { %v1765_v11 = vpop.f32.mrf.mxu1 }
 0x503   : > { %1024 = vrot.lane.b32.xlu0 %v1022_v10, %s2172_s15  ;;  %s2067_s15 = scalar_lea.vmem %s2536_s29, 128 }
 0x504   : > { %v1018_v12 = vpop.f32.mrf.mxu1  ;;  %p2068_p0 = scmp.ne.s32.totalorder %s2536_s29, %s2067_s15 }
 0x506   : > { %v1766_v14 = vpop.f32.mrf.mxu1  ;;  %p2069_p5 = pnand %p2068_p0, %p2627_p3 }
 0x508   : > { %v1132_v17 = vpop.f32.mrf.mxu1  ;;  %p2070_p6 = pneg %p2069_p5 }
 0x509   : > { %v1139_v19 = vmul.f32 %v1958_v16, %v1132_v17 }
 0x50a   : > { %v1777_v20 = vpop.f32.mrf.mxu1 }
 0x50b   : > { %1141 = vrot.lane.b32.xlu1 %v1139_v19, %s2173_s20  ;;  %s2175_s20 = smov [#allocation13]  }
 0x50c   : > { %v1135_v21 = vpop.f32.mrf.mxu1 }
 0x50e   : > { %v1778_v22 = vpop.f32.mrf.mxu1 }
 0x510   : > { %v1249_v24 = vpop.f32.mrf.mxu1 }
 0x511   : > { %v1256_v25 = vmul.f32 %v1960_v23, %v1249_v24 }
 0x512   : > { %v1789_v26 = vpop.f32.mrf.mxu1 }
 0x513   : > { %1258 = vrot.lane.b32.xlu1 %v1256_v25, %s2174_s23  ;;  %s2071_s23 = sshll.u32 %s2175_s20, 4  ;;  %s2072_s23 = int_to_ptr.vmem [resolvable:$false] %s2071_s23 }
 0x514   : > { %v1252_v27 = vpop.f32.mrf.mxu1  ;;  %s2073_s17 = scalar_lea.vmem %s2072_s23, 256  ;;  %p2074_p7 = scmp.lt.s32.totalorder %s2536_s29, %s2072_s23 }
 0x515   : > { %p2075_p9 = scmp.lt.s32.totalorder %s2073_s17, %s2067_s15 }
 0x516   : > { %v1790_v28 = vpop.f32.mrf.mxu1 }
 0x517   : > { %p2076_p12 = por %p2075_p9, %p2074_p7 }
 0x519   : > { %p2077_p1 = pnand %p2076_p12, %p2070_p6 }
 0x575   : > { %v1025_v29 = vpop.permute.xlu0 %1024 }
 0x576   : > { %1028 = vst.msk [vmem:[#allocation4] sm:$0xff] %vm1027_vm5, %v1025_v29 }
 0x57d   : > { %v1142_v30 = vpop.permute.xlu1 %1141 }
 0x57e   : > { %1145 = vst.msk [vmem:[#allocation4] sm:$0xff] %vm1144_vm6, %v1142_v30 }
 0x585   : > { %v1259_v31 = vpop.permute.xlu1 %1258 }
 0x586   : > { %1262 = vst.msk [vmem:[#allocation4] sm:$0xff] %vm1261_vm7, %v1259_v31 }
 0x58d   : > { %v1263_v32 = vld [vmem:[#allocation4] sm:$0xff] }
 0x58e   : > { %v1264_v33 = vpack.c.bf16 %v1263_v32, %v1263_v32 }
 0x590   : > { %1796 = vmatmul.mubr.msk.bf16.vlgmr.msra.gmra.mxu0 %vm567_vm0, %v1264_v33 }
 0x591   : > { %1815 = vmatprep.mubr.msk.bf16.mxu0 %vm2164_vm1, %v2163_v13 }
 0x650   : > { %v1325_v35 = vpop.f32.mrf.mxu0 }
 0x651   : > { %v1326_v36 = vadd.f32 %v1671_v34, %v1325_v35 }
 0x652   : > { %v1797_v37 = vpop.f32.mrf.mxu0 }
 0x653   : > { %v1331_v38 = vadd.f32 %v1326_v36, %v2380_v0  ;;  %v1937_v0 = vld [vmem:[%s2592_s11 + $0x18] sm:$0xff]  }
 0x654   : > { %v1328_v39 = vpop.f32.mrf.mxu0  ;;  %1808 = vmatpush3.bf16.msra.mxu0 %v1937_v0 }
 0x655   : > { %v1334_v40 = vsel %vm567_vm0, %v1331_v38, 0.0  ;;  %1809 = vmatprep.subr.bf16.mxu0 %v2163_v13 }
 0x656   : > { %1335 = vadd.xlane.f32.xlu1 %v1334_v40  ;;  %v1798_v41 = vpop.f32.mrf.mxu0 }
 0x658   : > { %1810 = vmatpush3.bf16.msra.mxu0 %v1938_v49 }
 0x659   : > { %1811 = vmatprep.subr.bf16.mxu0 %v2163_v13 }
 0x65c   : > { %1812 = vmatpush3.bf16.msra.mxu0 %v1939_v60 }
 0x65d   : > { %1813 = vmatprep.subr.bf16.mxu0 %v2163_v13  ;;  %v1681_v13 = vld [vmem:[%s2593_s12] ss:$0 sm:$0xff] }
 0x660   : > { %1814 = vmatpush3.bf16.msra.mxu0 %v1940_v61 }
 0x6df   : > { %v1336_v42 = vpop.xlane.xlu1 %1335 }
 0x6e0   : > { %v1337_v43 = vmul.f32 0.03125, %v1336_v42 }
 0x6e2   : > { %v1338_v44 = vsub.f32 %v1331_v38, %v1337_v43 }
 0x6e4   : > { %v1339_v45 = vmul.f32 %v1338_v44, %v1338_v44 }
 0x6e6   : > { %v1340_v46 = vsel %vm567_vm0, %v1339_v45, 0.0 }
 0x6e7   : > { %1341 = vadd.xlane.f32.xlu0 %v1340_v46 }
 0x770   : > { %v1342_v50 = vpop.xlane.xlu0 %1341 }
 0x771   : > { %v1343_v51 = vmul.f32 0.03125, %v1342_v50 }
 0x773   : > { %v1344_v52 = vadd.f32 1e-05, %v1343_v51 }
 0x775   : > { %1961 = vrsqrt.f32 %v1344_v52 }
 0x782   : > { %v1962_v53 = vpop.eup %1961 }
 0x783   : > { %v1346_v55 = vmul.f32 %v1962_v53, %v1338_v44 }
 0x785   : > { %v1353_v57 = vmul.f32 %v1675_v54, %v1346_v55 }
 0x787   : > { %v1360_v58 = vadd.f32 %v1676_v56, %v1353_v57 }
 0x789   : > { %v1361_v59 = vpack.c.bf16 %v1360_v58, %v1360_v58 }
 0x78b   : > { %1804 = vmatmul.mubr.msk.bf16.vlgmr.msra.gmra.mxu1 %vm567_vm0, %v1361_v59 }
 0x84b   : > { %v1422_v63 = vpop.f32.mrf.mxu1 }
 0x84c   : > { %v1423_v1 = vadd.f32 %v1677_v62, %v1422_v63 }
 0x84d   : > { %v1805_v2 = vpop.f32.mrf.mxu1 }
 0x84e   : > { %v1428_v3 = vmax.f32 %v1423_v1, 0.0 }
 0x84f   : > { %v1425_v4 = vpop.f32.mrf.mxu1 }
 0x850   : > { %v1429_v5 = vpack.c.bf16 %v1428_v3, %v1428_v3 }
 0x851   : > { %v1806_v6 = vpop.f32.mrf.mxu1 }
 0x852   : > { %1816 = vmatmul.mubr.msk.bf16.vlgmr.msra.gmra.mxu0 %vm1469_vm8, %v1429_v5 }
 0x912   : > { %v1507_v7 = vpop.f32.mrf.mxu0 }
 0x913   : > { %v1508_v8 = vadd.f32 %v1681_v13, %v1507_v7 }
 0x914   : > { %v1817_v9 = vpop.f32.mrf.mxu0 }
 0x915   : > { %v1513_v10 = vadd.f32 %v1508_v8, %v1331_v38 }
 0x916   : > { %v1510_v11 = vpop.f32.mrf.mxu0 }
 0x917   : > { %1514 = vst.msk [vmem:[%s554_s16] sm:$0xff] %vm567_vm0, %v1513_v10 }
 0x918   : > { %v1818_v12 = vpop.f32.mrf.mxu0 }
 0x919   : > { %2080 = shalt.err (!%p2077_p1)
}
 0x91a   : > { %s2081_s24 = scalar_lea.hbm %s2534_s27, 128  ;;  %s2085_s18 = scalar_lea.hbm %s2626_s8, 256 }
 0x91b   : > { %p2082_p2 = scmp.ne.s32.totalorder %s2534_s27, %s2081_s24  ;;  %p2086_p10 = scmp.lt.s32.totalorder %s2534_s27, %s2626_s8 }
 0x91c   : > { %p2087_p11 = scmp.lt.s32.totalorder %s2085_s18, %s2081_s24 }
 0x91d   : > { %p2083_p8 = pnand %p2082_p2, %p2627_p3 }
 0x91e   : > { %p2088_p13 = por %p2087_p11, %p2086_p10 }
 0x91f   : > { %p2084_p4 = pneg %p2083_p8 }
 0x921   : > { %p2089_p0 = pnand %p2088_p13, %p2084_p4 }
 0x923   : > { %2092 = shalt.err (!%p2089_p0)
}
 0x924   : > { %1835 = dma.vmem_to_hbm [thread:$0]  (%p2627_p3), %s2536_s29, 128, %s2534_s27, %s1516_s21  }
 0x925 PF: > { %s2628_s22 = sld [smem:[#allocation21_spill]] }
 0x926   : > { %s2629_s15 = sld [smem:[#allocation18_spill]] }
 0x927   : > { %s2630_s20 = sld [smem:[#allocation23_spill]] }
 0x92b   : > { %p1862_p5 = scmp.ge.s32.totalorder %s2628_s22, 2 }
 0x92c   : > { %s1542_s23 = sand.u32 1, %s2629_s15  }
 0x92d   : > { %p2631_p6 = scmp.ne.s32.totalorder %s2630_s20, 0  ;;  %s1543_s17 = scalar_lea.sflag [#allocation7], %s1542_s23 }
 0x92f   : > { %p1851_p7 = pnand %p1862_p5, %p2631_p6 }
 0x931   : > { %p1852_p9 = pneg %p1851_p7 }
 0x933   : > { %2130 = dma.done.wait (%p1852_p9), %s1543_s17, 128  }
 0x934   : > { %2132 = vsyncadd (%p1852_p9), %s1543_s17, 4294967168  ;;  %s31_s23 = sadd.s32 1, %s2628_s22   ;;  %s2632_s28 = sld [smem:[#allocation19_spill]] }
 0x935   : > { %p28_p12 = scmp.ge.s32.totalorder %s31_s23, 4   ;;  %s2633_s20 = sld [smem:[#allocation24_spill]] }
 0x936   : > { %s2634_s21 = sld [smem:[#allocation20_spill]]  ;;  %s2636_s18 = smov %s2139_s19 }
 0x937   : > { %s2635_s22 = sld [smem:[#allocation22_spill]]  ;;  %30 = sbr.rel (!%p28_p12) target bundleno = 10 (0xa), region = 148 }
 0x93a   : > { %s2637_s19 = smov %s2632_s28 }
 0x93c   :  { %1548 = vsyncpa [#allocation6], 1 }
 0x93d   :  { %1550 = vsyncpa [#allocation6 + $0x1], 1 }
 0x93e   :  { %1551 = vsyncpa [#allocation9], 1 }
 0x93f   :  { %1552 = vsyncpa [#allocation12], 1 }
 0x940   :  { %1553 = vsyncpa [#allocation7], 1 }
 0x941   :  { %1555 = vsyncpa [#allocation7 + $0x1], 1 }

// kernel: tpu_custom_call.1
= control target key start
LH: loop header
LB: loop body
LE: loop exit
PB: predicated region body
PF: predicated region fallthrough
CT: control target
= control target key end

     0   :  { %s2581_s0 = inlined_call_operand.vmem [shape: f32[2,8,32], index: 0, kind: input, shape index: {}]   ;;  %s2582_s1 = inlined_call_operand.vmem [shape: bf16[32,32], index: 1, kind: input, shape index: {}]   ;;  %s2583_s2 = inlined_call_operand.vmem [shape: f32[1,32], index: 2, kind: input, shape index: {}]   ;;  %s2584_s3 = inlined_call_operand.vmem [shape: bf16[32,64], index: 3, kind: input, shape index: {}]   ;;  %s2585_s4 = inlined_call_operand.vmem [shape: f32[1,64], index: 4, kind: input, shape index: {}]   ;;  %s2586_s5 = inlined_call_operand.hbm [shape: bf16[32,32], index: 5, kind: input, shape index: {}]   ;;  %s2587_s6 = inlined_call_operand.vmem [shape: f32[1,32], index: 6, kind: input, shape index: {}]   ;;  %s2588_s7 = inlined_call_operand.vmem [shape: f32[1,32], index: 7, kind: input, shape index: {}]   ;;  %s2589_s8 = inlined_call_operand.hbm [shape: f32[1,32], index: 8, kind: input, shape index: {}]   ;;  %s2590_s9 = inlined_call_operand.hbm [shape: bf16[32,64], index: 9, kind: input, shape index: {}]   ;;  %s2591_s10 = inlined_call_operand.hbm [shape: f32[1,64], index: 10, kind: input, shape index: {}]   ;;  %s2592_s11 = inlined_call_operand.vmem [shape: bf16[64,32], index: 11, kind: input, shape index: {}]   ;;  %s2593_s12 = inlined_call_operand.vmem [shape: f32[1,32], index: 12, kind: input, shape index: {}]   ;;  %s2594_s13 = inlined_call_operand.vmem [shape: f32[1,32], index: 13, kind: input, shape index: {}]   ;;  %s2595_s14 = inlined_call_operand.vmem [shape: f32[1,32], index: 14, kind: input, shape index: {}]   ;;  %s2596_s15 = inlined_call_operand.hbm [shape: f32[2,8,32], index: 15, kind: output, shape index: {}]  }
   0x1   :  { %2609 = sst [smem:[#allocation25_spill]] %s2589_s8 }
   0x2   :  { %2610 = sst [smem:[#allocation26_spill]] %s2596_s15 }
   0x3   :  { %20 = vsyncpa [#allocation6], 0 }
   0x4   :  { %21 = vsyncpa [#allocation9], 0 }
   0x5   :  { %22 = vsyncpa [#allocation12], 0 }
   0x6   :  { %23 = vsyncpa [#allocation7], 0 }
   0x7   :  { %25 = vsyncpa [#allocation7 + $0x1], 0  ;;  %s2256_s18 = smov 0   ;;  %s2258_s19 = smov 0  }
   0x8   :  { %s2260_s20 = smov 0   ;;  %s2262_s21 = smov 0  }
   0x9   :  { %s2264_s22 = smov 0   ;;  %s2266_s23 = smov 0  }
   0xa LB: > { %2611 = sst [smem:[#allocation18_spill]] %s2135_s18  ;;  %s1639_s24 = sadd.s32 4294967295, %s2155_s23   ;;  %s2155_s23 = sphi %s2266_s23, %s31_s23   ;;  %s2151_s22 = sphi %s2264_s22, %s2635_s22   ;;  %s2147_s21 = sphi %s2262_s21, %s2634_s21   ;;  %s2143_s20 = sphi %s2260_s20, %s2633_s20   ;;  %s2139_s19 = sphi %s2258_s19, %s2637_s19   ;;  %s2135_s18 = sphi %s2256_s18, %s2636_s18  }
   0xb   : > { %2612 = sst [smem:[#allocation19_spill]] %s2143_s20  ;;  %s1640_s25 = sadd.s32 4294967294, %s2155_s23  }
   0xc   : > { %2613 = sst [smem:[#allocation20_spill]] %s2151_s22  ;;  %s43_s26 = sadd.s32 1, %s2151_s22 }
   0xd   : > { %2614 = sst [smem:[#allocation21_spill]] %s2155_s23  ;;  %s372_s27 = sadd.s32 1, %s2143_s20 }
   0xe   : > { %p45_p0 = scmp.ge.s32.totalorder %s43_s26, 2  ;;  %p382_p1 = scmp.ne.s32.totalorder %s2143_s20, %s2139_s19 }
   0xf   : > { %p383_p2 = scmp.eq.s32.totalorder %s1639_s24, 1  ;;  %p388_p3 = scmp.ne.s32.totalorder %s2139_s19, %s2135_s18 }
  0x10   : > { %s2639_s26 = smov (%p45_p0, %s43_s26), 0  ;;  %p389_p5 = scmp.eq.s32.totalorder %s1640_s25, 1 }
  0x11   : > { %2615 = sst [smem:[#allocation22_spill]] %s2639_s26  ;;  %p2296_p4 = por %p383_p2, %p382_p1 }
  0x12   : > { %s367_s29 = ssub.s32 %s2151_s22, %s2639_s26  ;;  %p1641_p6 = scmp.ge.s32.totalorder %s2155_s23, 1 }
  0x13   : > { %s2616_s28 = scalar_select %p2296_p4, 1, 0 }
  0x14   : > { %p370_p7 = scmp.eq.s32.totalorder %s367_s29, 0  ;;  %p2303_p8 = por %p389_p5, %p388_p3 }
  0x15   : > { %p396_p9 = scmp.lt.s32.totalorder %s2155_s23, 3  ;;  %p2315_p11 = scmp.eq.s32.totalorder %s1639_s24, 0 }
  0x16   : > { %s2617_s30 = scalar_select %p2303_p8, 1, 0 }
  0x17   : > { %s2309_s16 = scalar_select %p370_p7, %s2143_s20, %s372_s27  }
  0x18   : > { %2618 = sst [smem:[#allocation23_spill]] %s2617_s30  ;;  %p2311_p10 = pnand %p1641_p6, %p396_p9 }
  0x19   : > { %2619 = sst [smem:[#allocation24_spill]] %s2309_s16  ;;  %s2157_s25 = smov [#allocation8]  }
  0x1a   : > { %s2620_s17 = scalar_select %p2311_p10, 1, 0 }
  0x1b   : > { %s2621_s18 = scalar_select %p2315_p11, 1, 0 }
  0x1c   : > { %p1837_p12 = pneg %p2311_p10  ;;  %s440_s29 = sshll.u32 %s2157_s25, 4  ;;  %s441_s29 = int_to_ptr.vmem [resolvable:$true] %s440_s29 }
  0x1d   : > { %s2158_s27 = smov [#allocation5]   ;;  %s1974_s24 = scalar_lea.vmem %s441_s29, 16 }
  0x1e   : > { %p2323_p13 = pnand %p2315_p11, %p1837_p12  ;;  %s420_s22 = sshll.u32 %s2158_s27, 4  ;;  %s421_s22 = int_to_ptr.vmem [resolvable:$true] %s420_s22 }
  0x1f   : > { %p1975_p1 = scmp.ne.s32.totalorder %s441_s29, %s1974_s24  ;;  %s1981_s25 = scalar_lea.vmem %s441_s29, 32 }
  0x20   : > { %p1965_p0 = pneg %p2323_p13  ;;  %p1982_p5 = scmp.lt.s32.totalorder %s441_s29, %s441_s29 }
  0x21   : > { %p1983_p6 = scmp.lt.s32.totalorder %s1981_s25, %s1974_s24 }
  0x22   : > { %p1977_p2 = pnand %p1975_p1, %p1965_p0 }
  0x23   : > { %p1984_p7 = por %p1983_p6, %p1982_p5 }
  0x24   : > { %p1978_p3 = pneg %p1977_p2 }
  0x26   : > { %p1985_p9 = pnand %p1984_p7, %p1978_p3 }
  0x28   : > { %1988 = shalt.err (!%p1985_p9)
}
  0x29   : > { %s2623_s8 = sld [smem:[#allocation25_spill]]  ;;  %s2000_s27 = scalar_lea.vmem %s421_s22, 256 }
  0x2a   : > { %p2001_p12 = scmp.ne.s32.totalorder %s421_s22, %s2000_s27  ;;  %p2008_p2 = scmp.lt.s32.totalorder %s421_s22, %s421_s22 }
  0x2b   : > { %p2009_p4 = scmp.lt.s32.totalorder %s2000_s27, %s2000_s27 }
  0x2c   : > { %p2003_p8 = pnand %p2001_p12, %p1965_p0 }
  0x2d   : > { %p2010_p11 = por %p2009_p4, %p2008_p2 }
  0x2e   : > { %p2004_p1 = pneg %p2003_p8 }
  0x2f   : > { %1843 = dma.hbm_to_vmem [thread:$0]  (!%p2323_p13), %s2623_s8, 16, %s441_s29, [#allocation9]  }
  0x30   : > { %p2011_p10 = pnand %p2010_p11, %p2004_p1 }
  0x32   : > { %2014 = shalt.err (!%p2011_p10)
}
  0x33   : > { %s2159_s24 = smov 64   ;;  %s2160_s25 = smov 4  }
  0x34   : > { %1840 = dma.hbm_to_vmem [thread:$0]  (!%p2323_p13), %s2586_s5, 256, %s421_s22, [#allocation6], %s2159_s24, %s2159_s24, %s2160_s25  }
  0x35   : > { %s2161_s16 = smov [#allocation10]   ;;  %s2162_s8 = smov [#allocation11]  }
  0x36   : > { %s450_s29 = sshll.u32 %s2161_s16, 4  ;;  %s464_s23 = sshll.u32 %s2162_s8, 4  ;;  %s451_s29 = int_to_ptr.vmem [resolvable:$true] %s450_s29  ;;  %s465_s23 = int_to_ptr.vmem [resolvable:$true] %s464_s23 }
  0x37   : > { %s2026_s15 = scalar_lea.vmem %s451_s29, 256  ;;  %p2034_p11 = scmp.lt.s32.totalorder %s451_s29, %s451_s29 }
  0x38   : > { %p2027_p8 = scmp.ne.s32.totalorder %s451_s29, %s2026_s15  ;;  %p2035_p3 = scmp.lt.s32.totalorder %s2026_s15, %s2026_s15 }
  0x3a   : > { %p2029_p4 = pnand %p2027_p8, %p1965_p0  ;;  %p2036_p5 = por %p2035_p3, %p2034_p11 }
  0x3c   : > { %p2030_p10 = pneg %p2029_p4 }
  0x3e   : > { %p2037_p6 = pnand %p2036_p5, %p2030_p10 }
  0x40   : > { %2040 = shalt.err (!%p2037_p6)
}
  0x41   : > { %1846 = dma.hbm_to_vmem [thread:$0]  (!%p2323_p13), %s2590_s9, 256, %s451_s29, [#allocation9], %s2159_s24, %s2159_s24, %s2160_s25  }
  0x42   : > { %s2052_s8 = scalar_lea.vmem %s465_s23, 16  ;;  %s2059_s27 = scalar_lea.vmem %s465_s23, 32 }
  0x43   : > { %p2053_p7 = scmp.ne.s32.totalorder %s465_s23, %s2052_s8  ;;  %p2060_p1 = scmp.lt.s32.totalorder %s465_s23, %s465_s23 }
  0x44   : > { %p2061_p2 = scmp.lt.s32.totalorder %s2059_s27, %s2052_s8 }
  0x45   : > { %p2055_p9 = pnand %p2053_p7, %p1965_p0 }
  0x46   : > { %p2062_p8 = por %p2061_p2, %p2060_p1 }
  0x47   : > { %p2056_p12 = pneg %p2055_p9 }
  0x49   : > { %p2063_p4 = pnand %p2062_p8, %p2056_p12 }
  0x4b   : > { %2066 = shalt.err (!%p2063_p4)
}
  0x4c   : > { %1849 = dma.hbm_to_vmem [thread:$0]  (!%p2323_p13), %s2591_s10, 16, %s465_s23, [#allocation12]  }
  0x4d   : > { %p2624_p10 = scmp.ne.s32.totalorder %s2620_s17, 0 }
  0x4e   : > { %p2625_p11 = scmp.ne.s32.totalorder (!%p2624_p10), %s2621_s18, 0 }
  0x4f   : > { %496 = sbr.rel (%p2624_p10) target bundleno = 2341 (0x925), region = 80 }
  0x54   : > { %2118 = dma.done.wait (%p2625_p11), [#allocation6], 256  }
  0x55   : > { %2120 = vsyncadd (%p2625_p11), [#allocation6], 4294967040 }
  0x56   : > { %2122 = dma.done.wait (%p2625_p11), [#allocation9], 272  }
  0x57   : > { %2124 = vsyncadd (%p2625_p11), [#allocation9], 4294967024 }
  0x58   : > { %2126 = dma.done.wait (%p2625_p11), [#allocation12], 16  }
  0x59   : > { %2128 = vsyncadd (%p2625_p11), [#allocation12], 4294967280  ;;  %p555_p13 = scmp.lt.s32.totalorder %s2147_s21, 1  ;;  %vm567_vm0 = vcmask 261120   ;;  %v1929_v12 = vld [vmem:[%s2584_s3 + $0x8] sm:$0xff]   ;;  %v2163_v13 = vmov 0.0  }
  0x5a   : > { %1727 = vmatprep.subr.bf16.mxu1 %v2163_v13  ;;  %vm2164_vm1 = vmmov 0   ;;  %v1930_v14 = vld [vmem:[%s2584_s3] sm:$0xff]   ;;  %1743 = vmatprep.subr.bf16.mxu0 %v2163_v13  ;;  %v1693_v24 = vld [vmem:[#allocation8] ss:$0 sm:$0xff]  ;;  %v1931_v29 = vld [vmem:[%s2582_s1 + $0x8] sm:$0xff]   ;;  %vm664_vm2 = vcmask 60416  }
  0x5b   : > { %s556_s23 = scalar_select %p555_p13, %s2147_s21, 1  ;;  %1731 = vmatprep.mubr.msk.bf16.mxu1 %vm2164_vm1, %v2163_v13  ;;  %1728 = vmatpush3.bf16.msra.mxu1 %v1929_v12  ;;  %v1692_v22 = vld [vmem:[%s2588_s7] ss:$0 sm:$0xff]  ;;  %vm803_vm3 = vcmask 64512   ;;  %vm864_vm4 = vcmask 1043456   ;;  %vm1027_vm5 = vcmask 130112  }
  0x5c   : > { %1729 = vmatprep.subr.bf16.mxu1 %v2163_v13  ;;  %1745 = vmatprep.mubr.msk.bf16.mxu0 %vm2164_vm1, %v2163_v13  ;;  %v1932_v32 = vld [vmem:[%s2582_s1] sm:$0xff]   ;;  %s2165_s24 = smov 112   ;;  %s2167_s29 = smov 104   ;;  %vm1144_vm6 = vcmask 195712   ;;  %vm1261_vm7 = vcmask 261312   ;;  %vm1469_vm8 = vcmask 523264  }
  0x5d   : > { %s1653_s26 = sshll.u32 %s556_s23, 3  ;;  %v1654_v35 = vld [vmem:[%s2585_s4] ss:$0 sm:$0xff]  ;;  %s2168_s30 = smov 88  }
  0x5e   : > { %s558_s25 = scalar_lea.vmem %s2581_s0, %s1653_s26  ;;  %v1659_v42 = vld [vmem:[%s2583_s2] ss:$0 sm:$0xff]  ;;  %s2169_s22 = smov 96  }
  0x5f   : > { %v2380_v0 = vld [vmem:[%s558_s25] sm:$0xff]  ;;  %1730 = vmatpush3.bf16.msra.mxu1 %v1930_v14  ;;  %s2166_s25 = smov 120   ;;  %s2170_s8 = smov 80  }
  0x60   : > { %v568_v1 = vsel %vm567_vm0, %v2380_v0, 0.0  ;;  %1735 = vmatprep.subr.bf16.mxu1 %v2163_v13  ;;  %s2171_s27 = smov 72   ;;  %s2172_s15 = smov 8  }
  0x61   : > { %569 = vadd.xlane.f32.xlu0 %v568_v1  ;;  %s2173_s20 = smov 16   ;;  %s2174_s23 = smov 24  }
  0x62   : > { %s552_s26 = sand.u32 1, %s2139_s19   ;;  %s1688_s18 = sshll.u32 %s2147_s21, 7 }
  0x63   : > { %s1652_s17 = sshll.u32 %s552_s26, 3  ;;  %s1516_s21 = scalar_lea.sflag [#allocation7], %s552_s26 }
  0x64   : > { %s554_s16 = scalar_lea.vmem [#allocation13], %s1652_s17  ;;  %p2627_p3 = scmp.ne.s32.totalorder %s2616_s28, 0 }
  0x65   : > { %706 = vadd.xlane.f32.xlu0 %v568_v1 }
  0xea   : > { %v570_v2 = vpop.xlane.xlu0 %569 }
  0xeb   : > { %v572_v3 = vmul.f32 0.03125, %v570_v2 }
  0xed   : > { %v573_v4 = vsub.f32 %v2380_v0, %v572_v3 }
  0xee   : > { %v707_v5 = vpop.xlane.xlu0 %706 }
  0xef   : > { %v709_v6 = vmul.f32 0.03125, %v707_v5  ;;  %v574_v7 = vmul.f32 %v573_v4, %v573_v4 }
  0xf1   : > { %v710_v8 = vsub.f32 %v2380_v0, %v709_v6  ;;  %v575_v9 = vsel %vm567_vm0, %v574_v7, 0.0 }
  0xf2   : > { %576 = vadd.xlane.f32.xlu1 %v575_v9 }
  0xf3   : > { %v711_v10 = vmul.f32 %v710_v8, %v710_v8 }
  0xf5   : > { %v712_v11 = vsel %vm567_vm0, %v711_v10, 0.0 }
  0xf6   : > { %713 = vadd.xlane.f32.xlu1 %v712_v11 }
 0x17b   : > { %v577_v15 = vpop.xlane.xlu1 %576 }
 0x17c   : > { %v578_v16 = vmul.f32 0.03125, %v577_v15 }
 0x17e   : > { %v579_v17 = vadd.f32 1e-05, %v578_v16 }
 0x17f   : > { %v714_v18 = vpop.xlane.xlu1 %713 }
 0x180   : > { %1941 = vrsqrt.f32 %v579_v17  ;;  %v715_v19 = vmul.f32 0.03125, %v714_v18 }
 0x182   : > { %v716_v20 = vadd.f32 1e-05, %v715_v19 }
 0x184   : > { %1943 = vrsqrt.f32 %v716_v20 }
 0x18d   : > { %v1942_v21 = vpop.eup %1941 }
 0x18e   : > { %v581_v23 = vmul.f32 %v1942_v21, %v573_v4 }
 0x190   : > { %v588_v25 = vmul.f32 %v1692_v22, %v581_v23 }
 0x191   : > { %v1944_v26 = vpop.eup %1943 }
 0x192   : > { %v595_v27 = vadd.f32 %v1693_v24, %v588_v25  ;;  %v718_v28 = vmul.f32 %v1944_v26, %v710_v8 }
 0x194   : > { %v596_v30 = vpack.c.bf16 %v595_v27, %v595_v27  ;;  %v725_v31 = vmul.f32 %v1692_v22, %v718_v28 }
 0x196   : > { %1732 = vmatmul.mubr.msk.bf16.vlgmr.msra.gmra.mxu1 %vm567_vm0, %v596_v30  ;;  %v732_v33 = vadd.f32 %v1693_v24, %v725_v31 }
 0x197   : > { %1736 = vmatpush3.bf16.msra.mxu1 %v1931_v29  ;;  %1739 = vmatprep.mubr.msk.bf16.mxu1 %vm2164_vm1, %v2163_v13 }
 0x198   : > { %1737 = vmatprep.subr.bf16.mxu1 %v2163_v13  ;;  %v733_v34 = vpack.c.bf16 %v732_v33, %v732_v33 }
 0x19b   : > { %1738 = vmatpush3.bf16.msra.mxu1 %v1932_v32 }
 0x19c   : > { %1749 = vmatprep.subr.bf16.mxu1 %v2163_v13 }
 0x19e   : > { %1740 = vmatmul.mubr.msk.bf16.vlgmr.msra.gmra.mxu1 %vm567_vm0, %v733_v34 }
 0x19f   : > { %1751 = vmatprep.mubr.msk.bf16.mxu1 %vm2164_vm1, %v2163_v13 }
 0x256   : > { %v657_v36 = vpop.f32.mrf.mxu1 }
 0x257   : > { %v658_v37 = vadd.f32 %v1654_v35, %v657_v36 }
 0x258   : > { %v1733_v38 = vpop.f32.mrf.mxu1 }
 0x259   : > { %v2422_v39 = vpack.c.bf16 %v658_v37, %v658_v37 }
 0x25a   : > { %v660_v40 = vpop.f32.mrf.mxu1 }
 0x25b   : > { %665 = vst.msk [vmem:[#allocation2] sm:$0xf] %vm664_vm2, %v2422_v39  ;;  %683 = vrot.lane.b32.xlu1 %v2422_v39, %s2165_s24  ;;  %673 = vrot.lane.b32.xlu0 %v2422_v39, %s2166_s25 }
 0x25c   : > { %v1734_v41 = vpop.f32.mrf.mxu1 }
 0x25e   : > { %v794_v43 = vpop.f32.mrf.mxu1 }
 0x25f   : > { %v795_v44 = vadd.f32 %v1659_v42, %v794_v43  ;;  %693 = vrot.lane.b32.xlu1 %v2422_v39, %s2167_s29 }
 0x260   : > { %v1741_v45 = vpop.f32.mrf.mxu1 }
 0x261   : > { %v800_v46 = vpack.c.bf16 %v795_v44, %v795_v44 }
 0x262   : > { %v797_v47 = vpop.f32.mrf.mxu1  ;;  %v801_v48 = vld [vmem:[#allocation2] sm:$0xf] }
 0x263   : > { %1033 = vrot.lane.b32.xlu0 %v800_v46, %s2165_s24  ;;  %916 = vrot.lane.b32.xlu1 %v800_v46, %s2166_s25  ;;  %v808_v49 = vsel %vm803_vm3, %v801_v48, 0 }
 0x264   : > { %v1742_v50 = vpop.f32.mrf.mxu1  ;;  %1744 = vmatpush3.bf16.xpose.msra.mxu0 %v808_v49 }
 0x265   : > { %1755 = vmatprep.subr.bf16.mxu0 %v2163_v13 }
 0x267   : > { %1150 = vrot.lane.b32.xlu1 %v800_v46, %s2167_s29  ;;  %s1530_s29 = sshll.u32 %s554_s16, 4  ;;  %s2536_s29 = int_to_ptr.vmem [resolvable:$true] %s1530_s29 }
 0x26b   : > { %678 = vrot.lane.b32.xlu1 %v2422_v39, %s2168_s30  ;;  %1746 = vmatmul.mubr.msk.bf16.vlgmr.msra.gmra.mxu0 %vm803_vm3, %v800_v46 }
 0x26c   : > { %1757 = vmatprep.mubr.msk.bf16.mxu0 %vm2164_vm1, %v2163_v13 }
 0x2cd   : > { %v684_v51 = vpop.permute.xlu1 %683  ;;  %v674_v52 = vpop.permute.xlu0 %673 }
 0x2ce   : > { %687 = vst.msk [vmem:[#allocation2 + $0x8] sm:$0xf] %vm664_vm2, %v684_v51  ;;  %677 = vst.msk [vmem:[#allocation2 + $0x4] sm:$0xf] %vm664_vm2, %v674_v52 }
 0x2d1   : > { %v694_v53 = vpop.permute.xlu1 %693 }
 0x2d2   : > { %697 = vst.msk [vmem:[#allocation2 + $0xc] sm:$0xf] %vm664_vm2, %v694_v53 }
 0x2d5   : > { %v917_v54 = vpop.permute.xlu1 %916  ;;  %v912_v55 = vld [vmem:[#allocation2 + $0x4] sm:$0xf]  ;;  %v1030_v58 = vld [vmem:[#allocation2 + $0x8] sm:$0xf]  ;;  %v1034_v62 = vpop.permute.xlu0 %1033 }
 0x2d6   : > { %v922_v56 = vsel %vm803_vm3, %v912_v55, 0  ;;  %v1039_v60 = vsel %vm803_vm3, %v1030_v58, 0 }
 0x2d7   : > { %1756 = vmatpush3.bf16.xpose.msra.mxu0 %v922_v56 }
 0x2d8   : > { %1767 = vmatprep.subr.bf16.mxu0 %v2163_v13 }
 0x2d9   : > { %v1151_v57 = vpop.permute.xlu1 %1150  ;;  %v1147_v61 = vld [vmem:[#allocation2 + $0xc] sm:$0xf] }
 0x2da   : > { %v1156_v63 = vsel %vm803_vm3, %v1147_v61, 0 }
 0x2dd   : > { %v679_v59 = vpop.permute.xlu1 %678 }
 0x2de   : > { %682 = vst.msk [vmem:[#allocation3 + $0x4] sm:$0xf] %vm664_vm2, %v679_v59  ;;  %1758 = vmatmul.mubr.msk.bf16.vlgmr.msra.gmra.mxu0 %vm803_vm3, %v917_v54 }
 0x2df   : > { %1768 = vmatpush3.bf16.xpose.msra.mxu0 %v1039_v60  ;;  %1769 = vmatprep.mubr.msk.bf16.mxu0 %vm2164_vm1, %v2163_v13 }
 0x2e0   : > { %1779 = vmatprep.subr.bf16.mxu0 %v2163_v13 }
 0x2e5   : > { %v914_v33 = vld [vmem:[#allocation3 + $0x4] sm:$0xf] }
 0x2e6   : > { %1770 = vmatmul.mubr.msk.bf16.vlgmr.msra.gmra.mxu0 %vm803_vm3, %v1034_v62  ;;  %v979_v35 = vsel %vm864_vm4, %v914_v33, 0 }
 0x2e7   : > { %1780 = vmatpush3.bf16.xpose.msra.mxu0 %v1156_v63  ;;  %1781 = vmatprep.mubr.msk.bf16.mxu0 %vm2164_vm1, %v2163_v13 }
 0x2e8   : > { %1791 = vmatprep.subr.bf16.mxu0 %v2163_v13 }
 0x2ee   : > { %1782 = vmatmul.mubr.msk.bf16.vlgmr.msra.gmra.mxu0 %vm803_vm3, %v1151_v57 }
 0x2ef   : > { %1795 = vmatprep.mubr.msk.bf16.mxu0 %vm2164_vm1, %v2163_v13 }
 0x32b   : > { %v844_v1 = vpop.f32.mrf.mxu0 }
 0x32c   : > { %v850_v2 = vmul.f32 0.35355338, %v844_v1 }
 0x32d   : > { %v1747_v3 = vpop.f32.mrf.mxu0 }
 0x32e   : > { %v851_v4 = vsel %vm803_vm3, %v850_v2, -inf }
 0x32f   : > { %852 = vmax.xlane.f32.xlu0 %v851_v4  ;;  %v847_v5 = vpop.f32.mrf.mxu0 }
 0x331   : > { %v1748_v6 = vpop.f32.mrf.mxu0 }
 0x345   : > { %669 = vrot.lane.b32.xlu0 %v2422_v39, %s2169_s22 }
 0x39e   : > { %v958_v7 = vpop.f32.mrf.mxu0 }
 0x39f   : > { %v964_v8 = vmul.f32 0.35355338, %v958_v7 }
 0x3a0   : > { %v1759_v9 = vpop.f32.mrf.mxu0 }
 0x3a1   : > { %v965_v10 = vsel %vm803_vm3, %v964_v8, -inf }
 0x3a2   : > { %966 = vmax.xlane.f32.xlu1 %v965_v10  ;;  %v961_v11 = vpop.f32.mrf.mxu0 }
 0x3a4   : > { %v1760_v12 = vpop.f32.mrf.mxu0 }
 0x3a6   : > { %v1075_v14 = vpop.f32.mrf.mxu0 }
 0x3a7   : > { %v1081_v15 = vmul.f32 0.35355338, %v1075_v14 }
 0x3a8   : > { %v1771_v16 = vpop.f32.mrf.mxu0 }
 0x3a9   : > { %v1082_v17 = vsel %vm803_vm3, %v1081_v15, -inf }
 0x3aa   : > { %1083 = vmax.xlane.f32.xlu0 %v1082_v17  ;;  %v1078_v18 = vpop.f32.mrf.mxu0 }
 0x3ab   : > { %v1934_v18 = vld [vmem:[#allocation5] sm:$0xff]  }
 0x3ac   : > { %v1772_v19 = vpop.f32.mrf.mxu0 }
 0x3ae   : > { %v1192_v20 = vpop.f32.mrf.mxu0 }
 0x3af   : > { %v1198_v21 = vmul.f32 0.35355338, %v1192_v20 }
 0x3b0   : > { %v1783_v22 = vpop.f32.mrf.mxu0 }
 0x3b1   : > { %v1199_v23 = vsel %vm803_vm3, %v1198_v21, -inf }
 0x3b2   : > { %1200 = vmax.xlane.f32.xlu1 %v1199_v23  ;;  %v1195_v24 = vpop.f32.mrf.mxu0 }
 0x3b4   : > { %v1784_v25 = vpop.f32.mrf.mxu0 }
 0x3b8   : > { %v853_v26 = vpop.xlane.xlu0 %852 }
 0x3b9   : > { %v854_v27 = vsub.f32 %v850_v2, %v853_v26 }
 0x3bb   : > { %v855_v28 = vmul.f32 1.442695, %v854_v27 }
 0x3bc   : > { %v670_v29 = vpop.permute.xlu0 %669 }
 0x3bd   : > { %1945 = vpow2.f32 %v855_v28  ;;  %672 = vst.msk [vmem:[#allocation3] sm:$0xf] %vm664_vm2, %v670_v29 }
 0x3c0   : > { %688 = vrot.lane.b32.xlu0 %v2422_v39, %s2170_s8  ;;  %s2626_s8 = sld [smem:[#allocation26_spill]] }
 0x3c3   : > { %698 = vrot.lane.b32.xlu1 %v2422_v39, %s2171_s27 }
 0x3c4   : > { %v802_v30 = vld [vmem:[#allocation3] sm:$0xf] }
 0x3c5   : > { %v866_v31 = vsel %vm864_vm4, %v802_v30, 0 }
 0x3c6   : > { %1750 = vmatpush3.bf16.msra.mxu1 %v866_v31  ;;  %s2534_s27 = scalar_lea.hbm %s2626_s8, %s1688_s18 }
 0x3c7   : > { %1761 = vmatprep.subr.bf16.mxu1 %v2163_v13 }
 0x3ca   : > { %v1946_v32 = vpop.eup %1945 }
 0x3cb   : > { %v860_v34 = vpack.c.bf16 %v1946_v32, %v1946_v32  ;;  %v857_v60 = vsel %vm803_vm3, %v1946_v32, 0.0 }
 0x3cd   : > { %1752 = vmatmul.mubr.msk.bf16.vlgmr.msra.gmra.mxu1 %vm803_vm3, %v860_v34  ;;  %v1671_v34 = vld [vmem:[%s2587_s6] ss:$0 sm:$0xff] }
 0x3ce   : > { %1762 = vmatpush3.bf16.msra.mxu1 %v979_v35  ;;  %1763 = vmatprep.mubr.msk.bf16.mxu1 %vm2164_vm1, %v2163_v13 }
 0x3cf   : > { %1773 = vmatprep.subr.bf16.mxu1 %v2163_v13 }
 0x42b   : > { %v967_v36 = vpop.xlane.xlu1 %966 }
 0x42c   : > { %v968_v37 = vsub.f32 %v964_v8, %v967_v36 }
 0x42e   : > { %v969_v38 = vmul.f32 1.442695, %v968_v37 }
 0x430   : > { %1947 = vpow2.f32 %v969_v38 }
 0x433   : > { %v1084_v39 = vpop.xlane.xlu0 %1083 }
 0x434   : > { %v1085_v40 = vsub.f32 %v1081_v15, %v1084_v39  ;;  %v1933_v15 = vld [vmem:[#allocation5 + $0x8] sm:$0xff]  }
 0x435   : > { %1792 = vmatpush3.bf16.msra.mxu0 %v1933_v15 }
 0x436   : > { %v1086_v41 = vmul.f32 1.442695, %v1085_v40  ;;  %1793 = vmatprep.subr.bf16.mxu0 %v2163_v13 }
 0x437   : > { %v689_v42 = vpop.permute.xlu0 %688 }
 0x438   : > { %1949 = vpow2.f32 %v1086_v41  ;;  %692 = vst.msk [vmem:[#allocation3 + $0x8] sm:$0xf] %vm664_vm2, %v689_v42 }
 0x439   : > { %1794 = vmatpush3.bf16.msra.mxu0 %v1934_v18 }
 0x43a   : > { %1807 = vmatprep.subr.bf16.mxu0 %v2163_v13 }
 0x43b   : > { %v1201_v43 = vpop.xlane.xlu1 %1200 }
 0x43c   : > { %v1202_v44 = vsub.f32 %v1198_v21, %v1201_v43 }
 0x43d   : > { %v1948_v45 = vpop.eup %1947 }
 0x43e   : > { %v1203_v46 = vmul.f32 1.442695, %v1202_v44  ;;  %v971_v47 = vsel %vm803_vm3, %v1948_v45, 0.0  ;;  %v974_v48 = vpack.c.bf16 %v1948_v45, %v1948_v45 }
 0x43f   : > { %972 = vadd.xlane.f32.xlu0 %v971_v47  ;;  %v699_v49 = vpop.permute.xlu1 %698  ;;  %v1032_v50 = vld [vmem:[#allocation3 + $0x8] sm:$0xf]  ;;  %v1935_v47 = vld [vmem:[#allocation10 + $0x8] sm:$0xff]  }
 0x440   : > { %1951 = vpow2.f32 %v1203_v46  ;;  %702 = vst.msk [vmem:[#allocation3 + $0xc] sm:$0xf] %vm664_vm2, %v699_v49  ;;  %1764 = vmatmul.mubr.msk.bf16.vlgmr.msra.gmra.mxu1 %vm803_vm3, %v974_v48  ;;  %v1096_v51 = vsel %vm864_vm4, %v1032_v50, 0  ;;  %v1936_v48 = vld [vmem:[#allocation10] sm:$0xff]   ;;  %v1938_v49 = vld [vmem:[%s2592_s11 + $0x10] sm:$0xff]  }
 0x441   : > { %1774 = vmatpush3.bf16.msra.mxu1 %v1096_v51  ;;  %1775 = vmatprep.mubr.msk.bf16.mxu1 %vm2164_vm1, %v2163_v13 }
 0x442   : > { %1785 = vmatprep.subr.bf16.mxu1 %v2163_v13 }
 0x445   : > { %v1950_v52 = vpop.eup %1949 }
 0x446   : > { %v1088_v53 = vsel %vm803_vm3, %v1950_v52, 0.0  ;;  %v1091_v54 = vpack.c.bf16 %v1950_v52, %v1950_v52 }
 0x447   : > { %1089 = vadd.xlane.f32.xlu1 %v1088_v53  ;;  %v1149_v55 = vld [vmem:[#allocation3 + $0xc] sm:$0xf] }
 0x448   : > { %1776 = vmatmul.mubr.msk.bf16.vlgmr.msra.gmra.mxu1 %vm803_vm3, %v1091_v54  ;;  %v1213_v56 = vsel %vm864_vm4, %v1149_v55, 0  ;;  %v1675_v54 = vld [vmem:[%s2594_s13] ss:$0 sm:$0xff] }
 0x449   : > { %1786 = vmatpush3.bf16.msra.mxu1 %v1213_v56  ;;  %1787 = vmatprep.mubr.msk.bf16.mxu1 %vm2164_vm1, %v2163_v13  ;;  %v1676_v56 = vld [vmem:[%s2595_s14] ss:$0 sm:$0xff] }
 0x44a   : > { %1799 = vmatprep.subr.bf16.mxu1 %v2163_v13 }
 0x44d   : > { %v1952_v57 = vpop.eup %1951 }
 0x44e   : > { %v1205_v58 = vsel %vm803_vm3, %v1952_v57, 0.0  ;;  %v1208_v59 = vpack.c.bf16 %v1952_v57, %v1952_v57 }
 0x44f   : > { %1206 = vadd.xlane.f32.xlu0 %v1205_v58 }
 0x450   : > { %1788 = vmatmul.mubr.msk.bf16.vlgmr.msra.gmra.mxu1 %vm803_vm3, %v1208_v59 }
 0x451   : > { %1803 = vmatprep.mubr.msk.bf16.mxu1 %vm2164_vm1, %v2163_v13  ;;  %1800 = vmatpush3.bf16.msra.mxu1 %v1935_v47 }
 0x452   : > { %1801 = vmatprep.subr.bf16.mxu1 %v2163_v13 }
 0x453   : > { %858 = vadd.xlane.f32.xlu0 %v857_v60  ;;  %v1939_v60 = vld [vmem:[%s2592_s11 + $0x8] sm:$0xff]  }
 0x455   : > { %1802 = vmatpush3.bf16.msra.mxu1 %v1936_v48 }
 0x48d   : > { %v902_v61 = vpop.f32.mrf.mxu1 }
 0x48f   : > { %v1753_v62 = vpop.f32.mrf.mxu1 }
 0x490   : > { %v1677_v62 = vld [vmem:[#allocation11] ss:$0 sm:$0xff] }
 0x491   : > { %v905_v63 = vpop.f32.mrf.mxu1 }
 0x493   : > { %v1754_v1 = vpop.f32.mrf.mxu1 }
 0x4c8   : > { %v973_v2 = vpop.xlane.xlu0 %972 }
 0x4d0   : > { %v1090_v7 = vpop.xlane.xlu1 %1089 }
 0x4d8   : > { %v1207_v3 = vpop.xlane.xlu0 %1206 }
 0x4dc   : > { %v859_v4 = vpop.xlane.xlu0 %858 }
 0x4dd   : > { %1953 = vrcp.f32 %v859_v4 }
 0x4de   : > { %1955 = vrcp.f32 %v973_v2 }
 0x4df   : > { %1957 = vrcp.f32 %v1090_v7 }
 0x4e0   : > { %1959 = vrcp.f32 %v1207_v3 }
 0x4ea   : > { %v1954_v5 = vpop.eup %1953 }
 0x4eb   : > { %v909_v6 = vmul.f32 %v1954_v5, %v902_v61  ;;  %v1956_v8 = vpop.eup %1955  ;;  %v1940_v61 = vld [vmem:[%s2592_s11] sm:$0xff]  }
 0x4ec   : > { %v1958_v16 = vpop.eup %1957 }
 0x4ed   : > { %910 = vst.msk [vmem:[#allocation4] sm:$0xff] %vm803_vm3, %v909_v6  ;;  %v1960_v23 = vpop.eup %1959 }
 0x500   : > { %v1015_v9 = vpop.f32.mrf.mxu1 }
 0x501   : > { %v1022_v10 = vmul.f32 %v1956_v8, %v1015_v9 }
 0x502   : > { %v1765_v11 = vpop.f32.mrf.mxu1 }
 0x503   : > { %1024 = vrot.lane.b32.xlu0 %v1022_v10, %s2172_s15  ;;  %s2067_s15 = scalar_lea.vmem %s2536_s29, 128 }
 0x504   : > { %v1018_v12 = vpop.f32.mrf.mxu1  ;;  %p2068_p0 = scmp.ne.s32.totalorder %s2536_s29, %s2067_s15 }
 0x506   : > { %v1766_v14 = vpop.f32.mrf.mxu1  ;;  %p2069_p5 = pnand %p2068_p0, %p2627_p3 }
 0x508   : > { %v1132_v17 = vpop.f32.mrf.mxu1  ;;  %p2070_p6 = pneg %p2069_p5 }
 0x509   : > { %v1139_v19 = vmul.f32 %v1958_v16, %v1132_v17 }
 0x50a   : > { %v1777_v20 = vpop.f32.mrf.mxu1 }
 0x50b   : > { %1141 = vrot.lane.b32.xlu1 %v1139_v19, %s2173_s20  ;;  %s2175_s20 = smov [#allocation13]  }
 0x50c   : > { %v1135_v21 = vpop.f32.mrf.mxu1 }
 0x50e   : > { %v1778_v22 = vpop.f32.mrf.mxu1 }
 0x510   : > { %v1249_v24 = vpop.f32.mrf.mxu1 }
 0x511   : > { %v1256_v25 = vmul.f32 %v1960_v23, %v1249_v24 }
 0x512   : > { %v1789_v26 = vpop.f32.mrf.mxu1 }
 0x513   : > { %1258 = vrot.lane.b32.xlu1 %v1256_v25, %s2174_s23  ;;  %s2071_s23 = sshll.u32 %s2175_s20, 4  ;;  %s2072_s23 = int_to_ptr.vmem [resolvable:$false] %s2071_s23 }
 0x514   : > { %v1252_v27 = vpop.f32.mrf.mxu1  ;;  %s2073_s17 = scalar_lea.vmem %s2072_s23, 256  ;;  %p2074_p7 = scmp.lt.s32.totalorder %s2536_s29, %s2072_s23 }
 0x515   : > { %p2075_p9 = scmp.lt.s32.totalorder %s2073_s17, %s2067_s15 }
 0x516   : > { %v1790_v28 = vpop.f32.mrf.mxu1 }
 0x517   : > { %p2076_p12 = por %p2075_p9, %p2074_p7 }
 0x519   : > { %p2077_p1 = pnand %p2076_p12, %p2070_p6 }
 0x575   : > { %v1025_v29 = vpop.permute.xlu0 %1024 }
 0x576   : > { %1028 = vst.msk [vmem:[#allocation4] sm:$0xff] %vm1027_vm5, %v1025_v29 }
 0x57d   : > { %v1142_v30 = vpop.permute.xlu1 %1141 }
 0x57e   : > { %1145 = vst.msk [vmem:[#allocation4] sm:$0xff] %vm1144_vm6, %v1142_v30 }
 0x585   : > { %v1259_v31 = vpop.permute.xlu1 %1258 }
 0x586   : > { %1262 = vst.msk [vmem:[#allocation4] sm:$0xff] %vm1261_vm7, %v1259_v31 }
 0x58d   : > { %v1263_v32 = vld [vmem:[#allocation4] sm:$0xff] }
 0x58e   : > { %v1264_v33 = vpack.c.bf16 %v1263_v32, %v1263_v32 }
 0x590   : > { %1796 = vmatmul.mubr.msk.bf16.vlgmr.msra.gmra.mxu0 %vm567_vm0, %v1264_v33 }
 0x591   : > { %1815 = vmatprep.mubr.msk.bf16.mxu0 %vm2164_vm1, %v2163_v13 }
 0x650   : > { %v1325_v35 = vpop.f32.mrf.mxu0 }
 0x651   : > { %v1326_v36 = vadd.f32 %v1671_v34, %v1325_v35 }
 0x652   : > { %v1797_v37 = vpop.f32.mrf.mxu0 }
 0x653   : > { %v1331_v38 = vadd.f32 %v1326_v36, %v2380_v0  ;;  %v1937_v0 = vld [vmem:[%s2592_s11 + $0x18] sm:$0xff]  }
 0x654   : > { %v1328_v39 = vpop.f32.mrf.mxu0  ;;  %1808 = vmatpush3.bf16.msra.mxu0 %v1937_v0 }
 0x655   : > { %v1334_v40 = vsel %vm567_vm0, %v1331_v38, 0.0  ;;  %1809 = vmatprep.subr.bf16.mxu0 %v2163_v13 }
 0x656   : > { %1335 = vadd.xlane.f32.xlu1 %v1334_v40  ;;  %v1798_v41 = vpop.f32.mrf.mxu0 }
 0x658   : > { %1810 = vmatpush3.bf16.msra.mxu0 %v1938_v49 }
 0x659   : > { %1811 = vmatprep.subr.bf16.mxu0 %v2163_v13 }
 0x65c   : > { %1812 = vmatpush3.bf16.msra.mxu0 %v1939_v60 }
 0x65d   : > { %1813 = vmatprep.subr.bf16.mxu0 %v2163_v13  ;;  %v1681_v13 = vld [vmem:[%s2593_s12] ss:$0 sm:$0xff] }
 0x660   : > { %1814 = vmatpush3.bf16.msra.mxu0 %v1940_v61 }
 0x6df   : > { %v1336_v42 = vpop.xlane.xlu1 %1335 }
 0x6e0   : > { %v1337_v43 = vmul.f32 0.03125, %v1336_v42 }
 0x6e2   : > { %v1338_v44 = vsub.f32 %v1331_v38, %v1337_v43 }
 0x6e4   : > { %v1339_v45 = vmul.f32 %v1338_v44, %v1338_v44 }
 0x6e6   : > { %v1340_v46 = vsel %vm567_vm0, %v1339_v45, 0.0 }
 0x6e7   : > { %1341 = vadd.xlane.f32.xlu0 %v1340_v46 }
 0x770   : > { %v1342_v50 = vpop.xlane.xlu0 %1341 }
 0x771   : > { %v1343_v51 = vmul.f32 0.03125, %v1342_v50 }
 0x773   : > { %v1344_v52 = vadd.f32 1e-05, %v1343_v51 }
 0x775   : > { %1961 = vrsqrt.f32 %v1344_v52 }
 0x782   : > { %v1962_v53 = vpop.eup %1961 }
 0x783   : > { %v1346_v55 = vmul.f32 %v1962_v53, %v1338_v44 }
 0x785   : > { %v1353_v57 = vmul.f32 %v1675_v54, %v1346_v55 }
 0x787   : > { %v1360_v58 = vadd.f32 %v1676_v56, %v1353_v57 }
 0x789   : > { %v1361_v59 = vpack.c.bf16 %v1360_v58, %v1360_v58 }
 0x78b   : > { %1804 = vmatmul.mubr.msk.bf16.vlgmr.msra.gmra.mxu1 %vm567_vm0, %v1361_v59 }
 0x84b   : > { %v1422_v63 = vpop.f32.mrf.mxu1 }
 0x84c   : > { %v1423_v1 = vadd.f32 %v1677_v62, %v1422_v63 }
 0x84d   : > { %v1805_v2 = vpop.f32.mrf.mxu1 }
 0x84e   : > { %v1428_v3 = vmax.f32 %v1423_v1, 0.0 }
 0x84f   : > { %v1425_v4 = vpop.f32.mrf.mxu1 }
 0x850   : > { %v1429_v5 = vpack.c.bf16 %v1428_v3, %v1428_v3 }
 0x851   : > { %v1806_v6 = vpop.f32.mrf.mxu1 }
 0x852   : > { %1816 = vmatmul.mubr.msk.bf16.vlgmr.msra.gmra.mxu0 %vm1469_vm8, %v1429_v5 }
 0x912   : > { %v1507_v7 = vpop.f32.mrf.mxu0 }
 0x913   : > { %v1508_v8 = vadd.f32 %v1681_v13, %v1507_v7 }
 0x914   : > { %v1817_v9 = vpop.f32.mrf.mxu0 }
 0x915   : > { %v1513_v10 = vadd.f32 %v1508_v8, %v1331_v38 }
 0x916   : > { %v1510_v11 = vpop.f32.mrf.mxu0 }
 0x917   : > { %1514 = vst.msk [vmem:[%s554_s16] sm:$0xff] %vm567_vm0, %v1513_v10 }
 0x918   : > { %v1818_v12 = vpop.f32.mrf.mxu0 }
 0x919   : > { %2080 = shalt.err (!%p2077_p1)
}
 0x91a   : > { %s2081_s24 = scalar_lea.hbm %s2534_s27, 128  ;;  %s2085_s18 = scalar_lea.hbm %s2626_s8, 256 }
 0x91b   : > { %p2082_p2 = scmp.ne.s32.totalorder %s2534_s27, %s2081_s24  ;;  %p2086_p10 = scmp.lt.s32.totalorder %s2534_s27, %s2626_s8 }
 0x91c   : > { %p2087_p11 = scmp.lt.s32.totalorder %s2085_s18, %s2081_s24 }
 0x91d   : > { %p2083_p8 = pnand %p2082_p2, %p2627_p3 }
 0x91e   : > { %p2088_p13 = por %p2087_p11, %p2086_p10 }
 0x91f   : > { %p2084_p4 = pneg %p2083_p8 }
 0x921   : > { %p2089_p0 = pnand %p2088_p13, %p2084_p4 }
 0x923   : > { %2092 = shalt.err (!%p2089_p0)
}
 0x924   : > { %1835 = dma.vmem_to_hbm [thread:$0]  (%p2627_p3), %s2536_s29, 128, %s2534_s27, %s1516_s21  }
 0x925 PF: > { %s2628_s22 = sld [smem:[#allocation21_spill]] }
 0x926   : > { %s2629_s15 = sld [smem:[#allocation18_spill]] }
 0x927   : > { %s2630_s20 = sld [smem:[#allocation23_spill]] }
 0x92b   : > { %p1862_p5 = scmp.ge.s32.totalorder %s2628_s22, 2 }
 0x92c   : > { %s1542_s23 = sand.u32 1, %s2629_s15  }
 0x92d   : > { %p2631_p6 = scmp.ne.s32.totalorder %s2630_s20, 0  ;;  %s1543_s17 = scalar_lea.sflag [#allocation7], %s1542_s23 }
 0x92f   : > { %p1851_p7 = pnand %p1862_p5, %p2631_p6 }
 0x931   : > { %p1852_p9 = pneg %p1851_p7 }
 0x933   : > { %2130 = dma.done.wait (%p1852_p9), %s1543_s17, 128  }
 0x934   : > { %2132 = vsyncadd (%p1852_p9), %s1543_s17, 4294967168  ;;  %s31_s23 = sadd.s32 1, %s2628_s22   ;;  %s2632_s28 = sld [smem:[#allocation19_spill]] }
 0x935   : > { %p28_p12 = scmp.ge.s32.totalorder %s31_s23, 4   ;;  %s2633_s20 = sld [smem:[#allocation24_spill]] }
 0x936   : > { %s2634_s21 = sld [smem:[#allocation20_spill]]  ;;  %s2636_s18 = smov %s2139_s19 }
 0x937   : > { %s2635_s22 = sld [smem:[#allocation22_spill]]  ;;  %30 = sbr.rel (!%p28_p12) target bundleno = 10 (0xa), region = 148 }
 0x93a   : > { %s2637_s19 = smov %s2632_s28 }
 0x93c   :  { %1548 = vsyncpa [#allocation6], 1 }
 0x93d   :  { %1550 = vsyncpa [#allocation6 + $0x1], 1 }
 0x93e   :  { %1551 = vsyncpa [#allocation9], 1 }
 0x93f   :  { %1552 = vsyncpa [#allocation12], 1 }
 0x940   :  { %1553 = vsyncpa [#allocation7], 1 }
 0x941   :  { %1555 = vsyncpa [#allocation7 + $0x1], 1 }

// kernel: tpu_custom_call.1
= control target key start
LH: loop header
LB: loop body
LE: loop exit
PB: predicated region body
PF: predicated region fallthrough
CT: control target
= control target key end

     0   :  { %s2797_s0 = inlined_call_operand.hbm [shape: f32[2,8,32], index: 0, kind: input, shape index: {}]   ;;  %s2798_s1 = inlined_call_operand.vmem [shape: f32[32,32], index: 1, kind: input, shape index: {}]   ;;  %s2799_s2 = inlined_call_operand.vmem [shape: f32[1,32], index: 2, kind: input, shape index: {}]   ;;  %s2800_s3 = inlined_call_operand.vmem [shape: f32[32,64], index: 3, kind: input, shape index: {}]   ;;  %s2801_s4 = inlined_call_operand.vmem [shape: f32[1,64], index: 4, kind: input, shape index: {}]   ;;  %s2802_s5 = inlined_call_operand.vmem [shape: f32[32,32], index: 5, kind: input, shape index: {}]   ;;  %s2803_s6 = inlined_call_operand.vmem [shape: f32[1,32], index: 6, kind: input, shape index: {}]   ;;  %s2804_s7 = inlined_call_operand.vmem [shape: f32[1,32], index: 7, kind: input, shape index: {}]   ;;  %s2805_s8 = inlined_call_operand.vmem [shape: f32[1,32], index: 8, kind: input, shape index: {}]   ;;  %s2806_s9 = inlined_call_operand.hbm [shape: f32[32,64], index: 9, kind: input, shape index: {}]   ;;  %s2807_s10 = inlined_call_operand.vmem [shape: f32[1,64], index: 10, kind: input, shape index: {}]   ;;  %s2808_s11 = inlined_call_operand.vmem [shape: f32[64,32], index: 11, kind: input, shape index: {}]   ;;  %s2809_s12 = inlined_call_operand.vmem [shape: f32[1,32], index: 12, kind: input, shape index: {}]   ;;  %s2810_s13 = inlined_call_operand.vmem [shape: f32[1,32], index: 13, kind: input, shape index: {}]   ;;  %s2811_s14 = inlined_call_operand.vmem [shape: f32[1,32], index: 14, kind: input, shape index: {}]   ;;  %s2812_s15 = inlined_call_operand.hbm [shape: f32[2,8,32], index: 15, kind: output, shape index: {}]  }
   0x1   :  { %2820 = sst [smem:[#allocation19_spill]] %s2806_s9 }
   0x2   :  { %2821 = sst [smem:[#allocation20_spill]] %s2807_s10 }
   0x3   :  { %2822 = sst [smem:[#allocation21_spill]] %s2808_s11 }
   0x4   :  { %2823 = sst [smem:[#allocation22_spill]] %s2809_s12 }
   0x5   :  { %2824 = sst [smem:[#allocation23_spill]] %s2810_s13 }
   0x6   :  { %2825 = sst [smem:[#allocation24_spill]] %s2811_s14 }
   0x7   :  { %2826 = sst [smem:[#allocation25_spill]] %s2812_s15 }
   0x8   :  { %20 = vsyncpa [#allocation6], 0 }
   0x9   :  { %22 = vsyncpa [#allocation6 + $0x1], 0 }
   0xa   :  { %23 = vsyncpa [#allocation9], 0 }
   0xb   :  { %24 = vsyncpa [#allocation7], 0 }
   0xc   :  { %26 = vsyncpa [#allocation7 + $0x1], 0  ;;  %s2421_s18 = smov 0   ;;  %s2423_s19 = smov 0  }
   0xd   :  { %s2425_s20 = smov 0   ;;  %s2427_s21 = smov 0  }
   0xe   :  { %s2429_s22 = smov 0   ;;  %s2431_s23 = smov 0  }
   0xf LB: > { %2827 = sst [smem:[#allocation14_spill]] %s2302_s18  ;;  %s1886_s24 = sadd.s32 4294967295, %s2322_s23   ;;  %s2322_s23 = sphi %s2431_s23, %s32_s23   ;;  %s2318_s22 = sphi %s2429_s22, %s2856_s22   ;;  %s2314_s21 = sphi %s2427_s21, %s2855_s21   ;;  %s2310_s20 = sphi %s2425_s20, %s2859_s20   ;;  %s2306_s19 = sphi %s2423_s19, %s2858_s19   ;;  %s2302_s18 = sphi %s2421_s18, %s2857_s18  }
  0x10   : > { %2828 = sst [smem:[#allocation15_spill]] %s2314_s21  ;;  %s1887_s25 = sadd.s32 4294967294, %s2322_s23  }
  0x11   : > { %2829 = sst [smem:[#allocation16_spill]] %s2318_s22  ;;  %p64_p0 = scmp.ne.s32.totalorder %s2306_s19, %s2302_s18 }
  0x12   : > { %p2455_p1 = scmp.eq.s32.totalorder %s1886_s24, 0  ;;  %p2459_p2 = scmp.eq.s32.totalorder %s1886_s24, 1 }
  0x13   : > { %p390_p3 = scmp.eq.s32.totalorder %s1887_s25, 1  ;;  %p1888_p5 = scmp.ge.s32.totalorder %s2322_s23, 1 }
  0x14   : > { %p2465_p4 = por %p2455_p1, %p64_p0  ;;  %p397_p7 = scmp.lt.s32.totalorder %s2322_s23, 3 }
  0x15   : > { %p2470_p6 = por %p390_p3, %p64_p0  ;;  %s2324_s16 = smov [#allocation8]  }
  0x16   : > { %s2832_s28 = scalar_select %p2465_p4, 1, 0 }
  0x17   : > { %s2833_s29 = scalar_select %p2470_p6, 1, 0 }
  0x18   : > { %p2475_p8 = pnand %p1888_p5, %p397_p7  ;;  %s433_s17 = sshll.u32 %s2324_s16, 4  ;;  %s434_s17 = int_to_ptr.vmem [resolvable:$true] %s433_s17 }
  0x19   : > { %2834 = sst [smem:[#allocation17_spill]] %s2833_s29  ;;  %s44_s25 = sadd.s32 1, %s2318_s22 }
  0x1a   : > { %p2083_p9 = pneg %p2475_p8  ;;  %s2195_s29 = scalar_lea.vmem %s434_s17, 512 }
  0x1b   : > { %p2196_p13 = scmp.ne.s32.totalorder %s434_s17, %s2195_s29  ;;  %p2203_p5 = scmp.lt.s32.totalorder %s434_s17, %s434_s17 }
  0x1c   : > { %p2484_p11 = pnand %p2083_p9, %p2455_p1  ;;  %p2204_p7 = scmp.lt.s32.totalorder %s2195_s29, %s2195_s29 }
  0x1e   : > { %p2186_p12 = pneg %p2484_p11  ;;  %p2205_p6 = por %p2204_p7, %p2203_p5 }
  0x20   : > { %p2198_p0 = pnand %p2196_p13, %p2186_p12 }
  0x22   : > { %p2199_p3 = pneg %p2198_p0 }
  0x24   : > { %p2206_p4 = pnand %p2205_p6, %p2199_p3 }
  0x26   : > { %2209 = shalt.err (!%p2206_p4)
}
  0x27   : > { %s2325_s16 = smov 128   ;;  %s2326_s18 = smov 8  }
  0x28   : > { %s2837_s9 = sld [smem:[#allocation19_spill]]  ;;  %p46_p6 = scmp.ge.s32.totalorder %s44_s25, 2 }
  0x29   : > { %s51_s29 = sadd.s32 1, %s2310_s20  ;;  %p58_p4 = scmp.ne.s32.totalorder %s2310_s20, %s2306_s19 }
  0x2a   : > { %p59_p9 = scmp.eq.s32.totalorder %s2322_s23, 0  ;;  %s2861_s25 = smov (%p46_p6, %s44_s25), 0 }
  0x2b   : > { %2838 = sst [smem:[#allocation18_spill]] %s2861_s25  ;;  %p2508_p13 = por %p2459_p2, %p58_p4 }
  0x2c   : > { %p2502_p12 = por %p59_p9, %p58_p4  ;;  %s48_s24 = ssub.s32 %s2318_s22, %s2861_s25 }
  0x2d   : > { %p2096_p0 = scmp.lt.s32.totalorder %s2322_s23, 2  ;;  %s462_s12 = sand.u32 1, %s2310_s20  }
  0x2e   : > { %2086 = dma.hbm_to_vmem [thread:$0]  (!%p2484_p11), %s2837_s9, 512, %s434_s17, [#allocation9], %s2325_s16, %s2325_s16, %s2326_s18  }
  0x2f   : > { %p49_p11 = scmp.eq.s32.totalorder %s48_s24, 0  ;;  %s1891_s15 = sshll.u32 %s462_s12, 3 }
  0x30   : > { %s1892_s17 = sshll.u32 %s2318_s22, 7  ;;  %s466_s13 = scalar_lea.vmem [#allocation5], %s1891_s15 }
  0x31   : > { %s2517_s18 = scalar_select %p49_p11, %s2310_s20, %s51_s29  }
  0x32   : > { %s471_s14 = scalar_lea.hbm %s2797_s0, %s1892_s17  ;;  %s473_s11 = sshll.u32 %s466_s13, 4  ;;  %s474_s11 = int_to_ptr.vmem [resolvable:$true] %s473_s11 }
  0x33   : > { %p2525_p2 = pnand %p2096_p0, %p2502_p12  ;;  %s463_s25 = scalar_lea.sflag [#allocation6], %s462_s12 }
  0x34   : > { %s2223_s24 = scalar_lea.vmem %s474_s11, 128  ;;  %s2327_s29 = smov [#allocation5]  }
  0x35   : > { %p2212_p3 = pneg %p2525_p2  ;;  %p2224_p5 = scmp.ne.s32.totalorder %s474_s11, %s2223_s24 }
  0x36   : > { %s2228_s22 = sshll.u32 %s2327_s29, 4  ;;  %s2229_s22 = int_to_ptr.vmem [resolvable:$false] %s2228_s22 }
  0x37   : > { %p2226_p7 = pnand %p2224_p5, %p2212_p3  ;;  %s2230_s9 = scalar_lea.vmem %s2229_s22, 256 }
  0x38   : > { %p2231_p4 = scmp.lt.s32.totalorder %s474_s11, %s2229_s22  ;;  %p2232_p9 = scmp.lt.s32.totalorder %s2230_s9, %s2223_s24 }
  0x39   : > { %p2227_p6 = pneg %p2226_p7 }
  0x3a   : > { %p2233_p11 = por %p2232_p9, %p2231_p4 }
  0x3c   : > { %p2234_p10 = pnand %p2233_p11, %p2227_p6 }
  0x3e   : > { %2237 = shalt.err (!%p2234_p10)
}
  0x3f   : > { %2090 = dma.hbm_to_vmem [thread:$0]  (!%p2525_p2), %s471_s14, 128, %s474_s11, %s463_s25  }
  0x40   : > { %482 = sbr.rel (%p2475_p8) target bundleno = 2299 (0x8fb), region = 80  ;;  %s2536_s10 = sand.u32 (!%p2475_p8), 1, %s2306_s19  }
  0x41   : > { %s1894_s13 = sshll.u32 (!%p2475_p8), %s2536_s10, 3  ;;  %s485_s12 = scalar_lea.sflag (!%p2475_p8), [#allocation6], %s2536_s10 }
  0x42   : > { %s488_s22 = scalar_lea.vmem (!%p2475_p8), [#allocation5], %s1894_s13  ;;  %p2842_p12 = scmp.ne.s32.totalorder (!%p2475_p8), %s2832_s28, 0 }
  0x45   : > { %2289 = dma.done.wait (%p2842_p12), %s485_s12, 128  }
  0x46   : > { %2291 = vsyncadd (%p2842_p12), %s485_s12, 4294967168 }
  0x47   : > { %2293 = dma.done.wait (%p2455_p1), [#allocation9], 512  }
  0x48   : > { %2295 = vsyncadd (%p2455_p1), [#allocation9], 4294966784  ;;  %vm546_vm0 = vcmask 261120   ;;  %v2550_v0 = vld [vmem:[%s488_s22] sm:$0xff]  ;;  %v578_v12 = vld [vmem:[%s2800_s3 + $0x18] sm:$0xff]  ;;  %v2328_v13 = vmov 0.0  }
  0x49   : > { %v547_v1 = vsel %vm546_vm0, %v2550_v0, 0.0  ;;  %1972 = vmatprep.subr.mxu1 %v2328_v13  ;;  %v577_v14 = vld [vmem:[%s2800_s3 + $0x10] sm:$0xff]  ;;  %vm2329_vm1 = vmmov 0   ;;  %1994 = vmatprep.subr.mxu0 %v2328_v13  ;;  %v576_v15 = vld [vmem:[%s2800_s3 + $0x8] sm:$0xff]  ;;  %v575_v16 = vld [vmem:[%s2800_s3] sm:$0xff]  ;;  %vm659_vm2 = vcmask 64512  }
  0x4a   : > { %548 = vadd.xlane.f32.xlu0 %v547_v1  ;;  %1980 = vmatprep.mubr.msk.f32.mxu1 %vm2329_vm1, %v2328_v13  ;;  %v1925_v24 = vld [vmem:[%s2804_s7] ss:$0 sm:$0xff]  ;;  %v729_v31 = vld [vmem:[%s2798_s1 + $0x18] sm:$0xff]  ;;  %v728_v32 = vld [vmem:[%s2798_s1 + $0x10] sm:$0xff]  ;;  %s2330_s17 = smov 112   ;;  %s2331_s16 = smov 120  }
  0x4b   : > { %1973 = vmatpush3.msra.mxu1 %v578_v12  ;;  %1996 = vmatprep.mubr.msk.f32.mxu0 %vm2329_vm1, %v2328_v13  ;;  %v1926_v26 = vld [vmem:[%s2805_s8] ss:$0 sm:$0xff]  ;;  %v727_v34 = vld [vmem:[%s2798_s1 + $0x8] sm:$0xff]  ;;  %s2332_s29 = smov 104   ;;  %s2333_s9 = smov 88   ;;  %vm1145_vm3 = vcmask 130112  }
  0x4c   : > { %1974 = vmatprep.subr.mxu1 %v2328_v13  ;;  %v726_v35 = vld [vmem:[%s2798_s1] sm:$0xff]  ;;  %s2334_s12 = smov 80   ;;  %s2335_s22 = smov 72   ;;  %vm1317_vm4 = vcmask 195712   ;;  %vm1489_vm5 = vcmask 261312   ;;  %vm1706_vm6 = vcmask 523264  }
  0x4d   : > { %1975 = vmatpush3.msra.mxu1 %v577_v14  ;;  %v1897_v37 = vld [vmem:[%s2801_s4] ss:$0 sm:$0xff]  ;;  %s2336_s11 = smov 96   ;;  %s2337_s27 = smov 8  }
  0x4e   : > { %699 = vadd.xlane.f32.xlu0 %v547_v1  ;;  %1976 = vmatprep.subr.mxu1 %v2328_v13  ;;  %v1899_v41 = vld [vmem:[%s2799_s2] ss:$0 sm:$0xff]  ;;  %s2338_s24 = smov 16   ;;  %s2843_s14 = sld [smem:[#allocation21_spill]] }
  0x4f   : > { %1977 = vmatpush3.msra.mxu1 %v576_v15  ;;  %s2846_s30 = sld [smem:[#allocation15_spill]]  ;;  %s538_s26 = scalar_lea.vmem [#allocation10], %s1894_s13 }
  0x50   : > { %1978 = vmatprep.subr.mxu1 %v2328_v13  ;;  %s1797_s28 = sshll.u32 %s538_s26, 4  ;;  %s1798_s28 = int_to_ptr.vmem [resolvable:$true] %s1797_s28 }
  0x51   : > { %1979 = vmatpush3.msra.mxu1 %v575_v16 }
  0x52   : > { %1983 = vmatprep.subr.mxu1 %v2328_v13 }
  0xd3   : > { %v549_v2 = vpop.xlane.xlu0 %548 }
  0xd4   : > { %v551_v3 = vmul.f32 0.03125, %v549_v2 }
  0xd6   : > { %v552_v4 = vsub.f32 %v2550_v0, %v551_v3 }
  0xd7   : > { %v700_v5 = vpop.xlane.xlu0 %699 }
  0xd8   : > { %v702_v6 = vmul.f32 0.03125, %v700_v5  ;;  %v553_v7 = vmul.f32 %v552_v4, %v552_v4 }
  0xda   : > { %v703_v8 = vsub.f32 %v2550_v0, %v702_v6  ;;  %v554_v9 = vsel %vm546_vm0, %v553_v7, 0.0 }
  0xdb   : > { %555 = vadd.xlane.f32.xlu1 %v554_v9 }
  0xdc   : > { %v704_v10 = vmul.f32 %v703_v8, %v703_v8 }
  0xde   : > { %v705_v11 = vsel %vm546_vm0, %v704_v10, 0.0 }
  0xdf   : > { %706 = vadd.xlane.f32.xlu1 %v705_v11 }
 0x164   : > { %v556_v17 = vpop.xlane.xlu1 %555 }
 0x165   : > { %v557_v18 = vmul.f32 0.03125, %v556_v17 }
 0x167   : > { %v558_v19 = vadd.f32 1e-05, %v557_v18 }
 0x168   : > { %v707_v20 = vpop.xlane.xlu1 %706 }
 0x169   : > { %2162 = vrsqrt.f32 %v558_v19  ;;  %v708_v21 = vmul.f32 0.03125, %v707_v20 }
 0x16b   : > { %v709_v22 = vadd.f32 1e-05, %v708_v21 }
 0x16d   : > { %2164 = vrsqrt.f32 %v709_v22 }
 0x176   : > { %v2163_v23 = vpop.eup %2162 }
 0x177   : > { %v560_v25 = vmul.f32 %v2163_v23, %v552_v4 }
 0x179   : > { %v567_v27 = vmul.f32 %v1925_v24, %v560_v25 }
 0x17a   : > { %v2165_v28 = vpop.eup %2164 }
 0x17b   : > { %v574_v29 = vadd.f32 %v1926_v26, %v567_v27  ;;  %v711_v30 = vmul.f32 %v2165_v28, %v703_v8 }
 0x17d   : > { %1981 = vmatmul.mubr.msk.f32.vlgmr.msra.gmra.mxu1 %vm546_vm0, %v574_v29  ;;  %v718_v33 = vmul.f32 %v1925_v24, %v711_v30 }
 0x17e   : > { %1984 = vmatpush3.msra.mxu1 %v729_v31  ;;  %1991 = vmatprep.mubr.msk.f32.mxu1 %vm2329_vm1, %v2328_v13 }
 0x17f   : > { %1985 = vmatprep.subr.mxu1 %v2328_v13  ;;  %v725_v36 = vadd.f32 %v1926_v26, %v718_v33 }
 0x180   : > { %1986 = vmatpush3.msra.mxu1 %v728_v32 }
 0x181   : > { %1987 = vmatprep.subr.mxu1 %v2328_v13 }
 0x182   : > { %1988 = vmatpush3.msra.mxu1 %v727_v34 }
 0x183   : > { %1989 = vmatprep.subr.mxu1 %v2328_v13 }
 0x184   : > { %1990 = vmatpush3.msra.mxu1 %v726_v35 }
 0x185   : > { %1992 = vmatmul.mubr.msk.f32.vlgmr.msra.gmra.mxu1 %vm546_vm0, %v725_v36  ;;  %1999 = vmatprep.subr.mxu1 %v2328_v13 }
 0x186   : > { %2001 = vmatprep.mubr.msk.f32.mxu1 %vm2329_vm1, %v2328_v13 }
 0x23d   : > { %v655_v38 = vpop.f32.mrf.mxu1 }
 0x23e   : > { %v2611_v39 = vadd.f32 %v1897_v37, %v655_v38 }
 0x23f   : > { %v1982_v40 = vpop.f32.mrf.mxu1 }
 0x240   : > { %660 = vst.msk [vmem:[#allocation2] sm:$0xff] %vm659_vm2, %v2611_v39  ;;  %676 = vrot.lane.b32.xlu1 %v2611_v39, %s2330_s17  ;;  %666 = vrot.lane.b32.xlu0 %v2611_v39, %s2331_s16 }
 0x244   : > { %686 = vrot.lane.b32.xlu1 %v2611_v39, %s2332_s29 }
 0x245   : > { %v806_v42 = vpop.f32.mrf.mxu1 }
 0x246   : > { %v807_v43 = vadd.f32 %v1899_v41, %v806_v42 }
 0x247   : > { %v1993_v44 = vpop.f32.mrf.mxu1  ;;  %v810_v45 = vld [vmem:[#allocation2] sm:$0xff] }
 0x248   : > { %1151 = vrot.lane.b32.xlu0 %v807_v43, %s2330_s17  ;;  %1995 = vmatpush3.xpose.msk.msra.mxu0 %vm659_vm2, %v810_v45  ;;  %v1495_v45 = vld [vmem:[%s2802_s5 + $0x18] sm:$0xff]  ;;  %s2849_s17 = sld [smem:[#allocation25_spill]] }
 0x249   : > { %979 = vrot.lane.b32.xlu1 %v807_v43, %s2331_s16  ;;  %2004 = vmatprep.subr.mxu0 %v2328_v13 }
 0x24b   : > { %1997 = vmatmul.mubr.msk.f32.vlgmr.msra.gmra.mxu0 %vm659_vm2, %v807_v43 }
 0x24c   : > { %2006 = vmatprep.mubr.msk.f32.mxu0 %vm2329_vm1, %v2328_v13 }
 0x24d   : > { %1323 = vrot.lane.b32.xlu1 %v807_v43, %s2332_s29  ;;  %s2339_s29 = smov 24  }
 0x2b2   : > { %v677_v46 = vpop.permute.xlu1 %676  ;;  %v667_v47 = vpop.permute.xlu0 %666 }
 0x2b3   : > { %680 = vst.msk [vmem:[#allocation2 + $0x10] sm:$0xff] %vm659_vm2, %v677_v46  ;;  %670 = vst.msk [vmem:[#allocation2 + $0x8] sm:$0xff] %vm659_vm2, %v667_v47  ;;  %v1494_v46 = vld [vmem:[%s2802_s5 + $0x10] sm:$0xff] }
 0x2b6   : > { %v687_v48 = vpop.permute.xlu1 %686 }
 0x2b7   : > { %690 = vst.msk [vmem:[#allocation2 + $0x18] sm:$0xff] %vm659_vm2, %v687_v48 }
 0x2ba   : > { %v976_v49 = vld [vmem:[#allocation2 + $0x8] sm:$0xff]  ;;  %v1148_v51 = vld [vmem:[#allocation2 + $0x10] sm:$0xff]  ;;  %v1152_v52 = vpop.permute.xlu0 %1151 }
 0x2bb   : > { %2005 = vmatpush3.xpose.msk.msra.mxu0 %vm659_vm2, %v976_v49  ;;  %v980_v50 = vpop.permute.xlu1 %979  ;;  %v1493_v49 = vld [vmem:[%s2802_s5 + $0x8] sm:$0xff] }
 0x2bc   : > { %2014 = vmatprep.subr.mxu0 %v2328_v13 }
 0x2be   : > { %2007 = vmatmul.mubr.msk.f32.vlgmr.msra.gmra.mxu0 %vm659_vm2, %v980_v50  ;;  %v1320_v53 = vld [vmem:[#allocation2 + $0x18] sm:$0xff] }
 0x2bf   : > { %2015 = vmatpush3.xpose.msk.msra.mxu0 %vm659_vm2, %v1148_v51  ;;  %2016 = vmatprep.mubr.msk.f32.mxu0 %vm2329_vm1, %v2328_v13  ;;  %v1324_v54 = vpop.permute.xlu1 %1323 }
 0x2c0   : > { %2024 = vmatprep.subr.mxu0 %v2328_v13 }
 0x2c2   : > { %2017 = vmatmul.mubr.msk.f32.vlgmr.msra.gmra.mxu0 %vm659_vm2, %v1152_v52  ;;  %v1492_v52 = vld [vmem:[%s2802_s5] sm:$0xff] }
 0x2c3   : > { %2025 = vmatpush3.xpose.msk.msra.mxu0 %vm659_vm2, %v1320_v53  ;;  %2026 = vmatprep.mubr.msk.f32.mxu0 %vm2329_vm1, %v2328_v13 }
 0x2c4   : > { %2034 = vmatprep.subr.mxu0 %v2328_v13 }
 0x2c6   : > { %2027 = vmatmul.mubr.msk.f32.vlgmr.msra.gmra.mxu0 %vm659_vm2, %v1324_v54 }
 0x2c7   : > { %2042 = vmatprep.mubr.msk.f32.mxu0 %vm2329_vm1, %v2328_v13  ;;  %2035 = vmatpush3.msra.mxu0 %v1495_v45 }
 0x2c8   : > { %2036 = vmatprep.subr.mxu0 %v2328_v13 }
 0x2c9   : > { %2037 = vmatpush3.msra.mxu0 %v1494_v46 }
 0x2ca   : > { %2038 = vmatprep.subr.mxu0 %v2328_v13 }
 0x2cb   : > { %2039 = vmatpush3.msra.mxu0 %v1493_v49 }
 0x2cc   : > { %2040 = vmatprep.subr.mxu0 %v2328_v13 }
 0x2cd   : > { %2041 = vmatpush3.msra.mxu0 %v1492_v52 }
 0x2ce   : > { %2056 = vmatprep.subr.mxu0 %v2328_v13 }
 0x30b   : > { %v885_v55 = vpop.f32.mrf.mxu0 }
 0x30c   : > { %v889_v56 = vmul.f32 0.35355338, %v885_v55 }
 0x30d   : > { %v1998_v57 = vpop.f32.mrf.mxu0 }
 0x30e   : > { %v890_v58 = vsel %vm659_vm2, %v889_v56, -inf }
 0x30f   : > { %891 = vmax.xlane.f32.xlu0 %v890_v58 }
 0x37e   : > { %v1052_v59 = vpop.f32.mrf.mxu0 }
 0x37f   : > { %v1056_v60 = vmul.f32 0.35355338, %v1052_v59 }
 0x380   : > { %v2008_v61 = vpop.f32.mrf.mxu0 }
 0x381   : > { %v1057_v62 = vsel %vm659_vm2, %v1056_v60, -inf }
 0x382   : > { %1058 = vmax.xlane.f32.xlu1 %v1057_v62  ;;  %v1224_v63 = vpop.f32.mrf.mxu0 }
 0x383   : > { %v1228_v1 = vmul.f32 0.35355338, %v1224_v63 }
 0x384   : > { %v2018_v2 = vpop.f32.mrf.mxu0 }
 0x385   : > { %v1229_v3 = vsel %vm659_vm2, %v1228_v1, -inf  ;;  %v1913_v2 = vld [vmem:[%s2803_s6] ss:$0 sm:$0xff] }
 0x386   : > { %1230 = vmax.xlane.f32.xlu0 %v1229_v3  ;;  %v1396_v4 = vpop.f32.mrf.mxu0 }
 0x387   : > { %v1400_v5 = vmul.f32 0.35355338, %v1396_v4 }
 0x388   : > { %v2028_v6 = vpop.f32.mrf.mxu0 }
 0x389   : > { %v1401_v7 = vsel %vm659_vm2, %v1400_v5, -inf }
 0x38a   : > { %1402 = vmax.xlane.f32.xlu0 %v1401_v7 }
 0x393   : > { %671 = vrot.lane.b32.xlu1 %v2611_v39, %s2333_s9  ;;  %s2844_s9 = sld [smem:[#allocation23_spill]] }
 0x397   : > { %681 = vrot.lane.b32.xlu1 %v2611_v39, %s2334_s12 }
 0x398   : > { %v892_v8 = vpop.xlane.xlu0 %891 }
 0x399   : > { %v893_v9 = vsub.f32 %v889_v56, %v892_v8 }
 0x39b   : > { %691 = vrot.lane.b32.xlu1 %v2611_v39, %s2335_s22  ;;  %v894_v14 = vmul.f32 1.442695, %v893_v9  ;;  %s2848_s22 = sld [smem:[#allocation22_spill]] }
 0x3a0   : > { %662 = vrot.lane.b32.xlu0 %v2611_v39, %s2336_s11  ;;  %s2845_s11 = sld [smem:[#allocation24_spill]] }
 0x40b   : > { %v1059_v10 = vpop.xlane.xlu1 %1058 }
 0x40c   : > { %v1060_v11 = vsub.f32 %v1056_v60, %v1059_v10 }
 0x40e   : > { %v1061_v12 = vmul.f32 1.442695, %v1060_v11 }
 0x40f   : > { %v672_v15 = vpop.permute.xlu1 %671  ;;  %v1231_v16 = vpop.xlane.xlu0 %1230 }
 0x410   : > { %2166 = vpow2.f32 %v1061_v12  ;;  %675 = vst.msk [vmem:[#allocation3 + $0x8] sm:$0xff] %vm659_vm2, %v672_v15  ;;  %v1232_v17 = vsub.f32 %v1228_v1, %v1231_v16  ;;  %v1608_v15 = vld [vmem:[#allocation8 + $0x10] sm:$0xff]  ;;  %v1607_v16 = vld [vmem:[#allocation8 + $0x8] sm:$0xff] }
 0x411   : > { %2168 = vpow2.f32 %v894_v14  ;;  %v1609_v14 = vld [vmem:[#allocation8 + $0x18] sm:$0xff] }
 0x412   : > { %v1233_v18 = vmul.f32 1.442695, %v1232_v17  ;;  %v1698_v17 = vld [vmem:[%s2843_s14 + $0x38] sm:$0xff] }
 0x413   : > { %v682_v19 = vpop.permute.xlu1 %681  ;;  %v1403_v20 = vpop.xlane.xlu0 %1402 }
 0x414   : > { %2170 = vpow2.f32 %v1233_v18  ;;  %685 = vst.msk [vmem:[#allocation3 + $0x10] sm:$0xff] %vm659_vm2, %v682_v19  ;;  %v1404_v21 = vsub.f32 %v1400_v5, %v1403_v20  ;;  %v1697_v18 = vld [vmem:[%s2843_s14 + $0x30] sm:$0xff]  ;;  %v1696_v19 = vld [vmem:[%s2843_s14 + $0x28] sm:$0xff]  ;;  %v1695_v20 = vld [vmem:[%s2843_s14 + $0x20] sm:$0xff] }
 0x416   : > { %v1405_v22 = vmul.f32 1.442695, %v1404_v21  ;;  %v1694_v21 = vld [vmem:[%s2843_s14 + $0x18] sm:$0xff] }
 0x417   : > { %v692_v23 = vpop.permute.xlu1 %691  ;;  %v663_v24 = vpop.permute.xlu0 %662  ;;  %v978_v30 = vld [vmem:[#allocation3 + $0x8] sm:$0xff] }
 0x418   : > { %2172 = vpow2.f32 %v1405_v22  ;;  %695 = vst.msk [vmem:[#allocation3 + $0x18] sm:$0xff] %vm659_vm2, %v692_v23  ;;  %665 = vst.msk [vmem:[#allocation3] sm:$0xff] %vm659_vm2, %v663_v24 }
 0x41b   : > { %v1150_v33 = vld [vmem:[#allocation3 + $0x10] sm:$0xff] }
 0x41d   : > { %v2167_v25 = vpop.eup %2166 }
 0x41e   : > { %v1063_v26 = vsel %vm659_vm2, %v2167_v25, 0.0  ;;  %v2169_v28 = vpop.eup %2168 }
 0x41f   : > { %1064 = vadd.xlane.f32.xlu0 %v1063_v26  ;;  %v811_v27 = vld [vmem:[#allocation3] sm:$0xff]  ;;  %v1322_v35 = vld [vmem:[#allocation3 + $0x18] sm:$0xff]  ;;  %v896_v36 = vsel %vm659_vm2, %v2169_v28, 0.0 }
 0x420   : > { %2000 = vmatpush3.msra.mxu1 %v811_v27  ;;  %v1915_v26 = vld [vmem:[%s2844_s9] ss:$0 sm:$0xff] }
 0x421   : > { %v2171_v29 = vpop.eup %2170  ;;  %2002 = vmatmul.mubr.msk.f32.vlgmr.msra.gmra.mxu1 %vm659_vm2, %v2169_v28  ;;  %2009 = vmatprep.subr.mxu1 %v2328_v13  ;;  %v1916_v28 = vld [vmem:[%s2845_s11] ss:$0 sm:$0xff]  ;;  %s1922_s11 = sshll.u32 %s2846_s30, 7  ;;  %s2340_s30 = smov [#allocation10]  }
 0x422   : > { %2010 = vmatpush3.msra.mxu1 %v978_v30  ;;  %v1235_v31 = vsel %vm659_vm2, %v2171_v29, 0.0  ;;  %2011 = vmatprep.mubr.msk.f32.mxu1 %vm2329_vm1, %v2328_v13  ;;  %s1795_s16 = scalar_lea.hbm %s2849_s17, %s1922_s11  ;;  %s2242_s13 = sshll.u32 %s2340_s30, 4  ;;  %s2243_s13 = int_to_ptr.vmem [resolvable:$false] %s2242_s13 }
 0x423   : > { %1236 = vadd.xlane.f32.xlu1 %v1235_v31  ;;  %2019 = vmatprep.subr.mxu1 %v2328_v13  ;;  %v1693_v31 = vld [vmem:[%s2843_s14 + $0x10] sm:$0xff]  ;;  %p2245_p0 = scmp.lt.s32.totalorder %s1798_s28, %s2243_s13 }
 0x425   : > { %v2173_v32 = vpop.eup %2172  ;;  %2012 = vmatmul.mubr.msk.f32.vlgmr.msra.gmra.mxu1 %vm659_vm2, %v2167_v25 }
 0x426   : > { %2020 = vmatpush3.msra.mxu1 %v1150_v33  ;;  %v1407_v34 = vsel %vm659_vm2, %v2173_v32, 0.0  ;;  %2021 = vmatprep.mubr.msk.f32.mxu1 %vm2329_vm1, %v2328_v13  ;;  %v1691_v33 = vld [vmem:[%s2843_s14] sm:$0xff] }
 0x427   : > { %1408 = vadd.xlane.f32.xlu0 %v1407_v34  ;;  %2029 = vmatprep.subr.mxu1 %v2328_v13 }
 0x429   : > { %2022 = vmatmul.mubr.msk.f32.vlgmr.msra.gmra.mxu1 %vm659_vm2, %v2171_v29 }
 0x42a   : > { %2030 = vmatpush3.msra.mxu1 %v1322_v35  ;;  %2031 = vmatprep.mubr.msk.f32.mxu1 %vm2329_vm1, %v2328_v13 }
 0x42b   : > { %897 = vadd.xlane.f32.xlu0 %v896_v36  ;;  %2045 = vmatprep.subr.mxu1 %v2328_v13 }
 0x42d   : > { %2032 = vmatmul.mubr.msk.f32.vlgmr.msra.gmra.mxu1 %vm659_vm2, %v2173_v32  ;;  %v1692_v32 = vld [vmem:[%s2843_s14 + $0x8] sm:$0xff] }
 0x42e   : > { %2053 = vmatprep.mubr.msk.f32.mxu1 %vm2329_vm1, %v2328_v13  ;;  %2046 = vmatpush3.msra.mxu1 %v1609_v14 }
 0x42f   : > { %2047 = vmatprep.subr.mxu1 %v2328_v13 }
 0x430   : > { %2048 = vmatpush3.msra.mxu1 %v1608_v15 }
 0x431   : > { %2049 = vmatprep.subr.mxu1 %v2328_v13 }
 0x432   : > { %2050 = vmatpush3.msra.mxu1 %v1607_v16 }
 0x433   : > { %2051 = vmatprep.subr.mxu1 %v2328_v13 }
 0x4a8   : > { %v1065_v37 = vpop.xlane.xlu0 %1064 }
 0x4ac   : > { %v1237_v40 = vpop.xlane.xlu1 %1236 }
 0x4b0   : > { %v1409_v38 = vpop.xlane.xlu0 %1408 }
 0x4b4   : > { %v898_v39 = vpop.xlane.xlu0 %897 }
 0x4b5   : > { %2174 = vrcp.f32 %v898_v39  ;;  %v1919_v39 = vld [vmem:[%s2848_s22] ss:$0 sm:$0xff] }
 0x4b6   : > { %2176 = vrcp.f32 %v1065_v37 }
 0x4b7   : > { %2178 = vrcp.f32 %v1237_v40 }
 0x4b8   : > { %2180 = vrcp.f32 %v1409_v38 }
 0x4c2   : > { %v2175_v41 = vpop.eup %2174 }
 0x4c3   : > { %v2177_v47 = vpop.eup %2176 }
 0x4c4   : > { %v2179_v53 = vpop.eup %2178 }
 0x4c5   : > { %v2181_v57 = vpop.eup %2180 }
 0x4e1   : > { %v968_v42 = vpop.f32.mrf.mxu1 }
 0x4e2   : > { %v973_v43 = vmul.f32 %v2175_v41, %v968_v42 }
 0x4e3   : > { %v2003_v44 = vpop.f32.mrf.mxu1 }
 0x4e4   : > { %974 = vst.msk [vmem:[#allocation4] sm:$0xff] %vm659_vm2, %v973_v43 }
 0x4e5   : > { %v1135_v48 = vpop.f32.mrf.mxu1 }
 0x4e6   : > { %v1140_v50 = vmul.f32 %v2177_v47, %v1135_v48 }
 0x4e7   : > { %v2013_v51 = vpop.f32.mrf.mxu1 }
 0x4e8   : > { %1142 = vrot.lane.b32.xlu0 %v1140_v50, %s2337_s27  ;;  %s1783_s27 = scalar_lea.sflag [#allocation7], %s2536_s10 }
 0x4e9   : > { %v1307_v54 = vpop.f32.mrf.mxu1 }
 0x4ea   : > { %v1312_v55 = vmul.f32 %v2179_v53, %v1307_v54 }
 0x4eb   : > { %v2023_v56 = vpop.f32.mrf.mxu1 }
 0x4ec   : > { %1314 = vrot.lane.b32.xlu1 %v1312_v55, %s2338_s24  ;;  %s2238_s24 = scalar_lea.vmem %s1798_s28, 128 }
 0x4ed   : > { %v1479_v58 = vpop.f32.mrf.mxu1  ;;  %p2239_p1 = scmp.ne.s32.totalorder %s1798_s28, %s2238_s24 }
 0x4ee   : > { %v1484_v59 = vmul.f32 %v2181_v57, %v1479_v58 }
 0x4ef   : > { %v2033_v60 = vpop.f32.mrf.mxu1  ;;  %p2240_p8 = pnand %p2239_p1, %p2508_p13 }
 0x4f0   : > { %1486 = vrot.lane.b32.xlu1 %v1484_v59, %s2339_s29  ;;  %s2847_s29 = sld [smem:[#allocation20_spill]] }
 0x4f1   : > { %p2241_p10 = pneg %p2240_p8 }
 0x4f6   : > { %v1917_v34 = vld [vmem:[%s2847_s29] ss:$0 sm:$0xff]  ;;  %s2244_s29 = scalar_lea.vmem %s2243_s13, 256 }
 0x4f7   : > { %p2246_p2 = scmp.lt.s32.totalorder %s2244_s29, %s2238_s24 }
 0x4f9   : > { %p2247_p3 = por %p2246_p2, %p2245_p0 }
 0x4fb   : > { %p2248_p5 = pnand %p2247_p3, %p2241_p10 }
 0x55a   : > { %v1143_v61 = vpop.permute.xlu0 %1142 }
 0x55b   : > { %1146 = vst.msk [vmem:[#allocation4] sm:$0xff] %vm1145_vm3, %v1143_v61 }
 0x55e   : > { %v1315_v62 = vpop.permute.xlu1 %1314 }
 0x55f   : > { %1318 = vst.msk [vmem:[#allocation4] sm:$0xff] %vm1317_vm4, %v1315_v62 }
 0x562   : > { %v1487_v63 = vpop.permute.xlu1 %1486 }
 0x563   : > { %1490 = vst.msk [vmem:[#allocation4] sm:$0xff] %vm1489_vm5, %v1487_v63 }
 0x56a   : > { %v1491_v1 = vld [vmem:[#allocation4] sm:$0xff] }
 0x56b   : > { %2043 = vmatmul.mubr.msk.f32.vlgmr.msra.gmra.mxu0 %vm546_vm0, %v1491_v1 }
 0x56c   : > { %2072 = vmatprep.mubr.msk.f32.mxu0 %vm2329_vm1, %v2328_v13  ;;  %2057 = vmatpush3.msra.mxu0 %v1698_v17 }
 0x56d   : > { %2058 = vmatprep.subr.mxu0 %v2328_v13 }
 0x56e   : > { %2059 = vmatpush3.msra.mxu0 %v1697_v18 }
 0x56f   : > { %2060 = vmatprep.subr.mxu0 %v2328_v13 }
 0x570   : > { %2061 = vmatpush3.msra.mxu0 %v1696_v19 }
 0x571   : > { %2062 = vmatprep.subr.mxu0 %v2328_v13 }
 0x572   : > { %2063 = vmatpush3.msra.mxu0 %v1695_v20 }
 0x573   : > { %2064 = vmatprep.subr.mxu0 %v2328_v13 }
 0x574   : > { %2065 = vmatpush3.msra.mxu0 %v1694_v21 }
 0x575   : > { %2066 = vmatprep.subr.mxu0 %v2328_v13 }
 0x576   : > { %2067 = vmatpush3.msra.mxu0 %v1693_v31 }
 0x577   : > { %2068 = vmatprep.subr.mxu0 %v2328_v13 }
 0x578   : > { %2069 = vmatpush3.msra.mxu0 %v1692_v32 }
 0x579   : > { %2070 = vmatprep.subr.mxu0 %v2328_v13 }
 0x57a   : > { %2071 = vmatpush3.msra.mxu0 %v1691_v33 }
 0x62b   : > { %v1572_v3 = vpop.f32.mrf.mxu0 }
 0x62c   : > { %v1573_v4 = vadd.f32 %v1913_v2, %v1572_v3 }
 0x62d   : > { %v2044_v5 = vpop.f32.mrf.mxu0 }
 0x62e   : > { %v2700_v6 = vadd.f32 %v1573_v4, %v2550_v0  ;;  %v1606_v0 = vld [vmem:[#allocation8] sm:$0xff] }
 0x62f   : > { %2052 = vmatpush3.msra.mxu1 %v1606_v0 }
 0x630   : > { %v1579_v7 = vsel %vm546_vm0, %v2700_v6, 0.0 }
 0x631   : > { %1580 = vadd.xlane.f32.xlu1 %v1579_v7 }
 0x6ba   : > { %v1581_v8 = vpop.xlane.xlu1 %1580 }
 0x6bb   : > { %v1582_v9 = vmul.f32 0.03125, %v1581_v8 }
 0x6bd   : > { %v1583_v10 = vsub.f32 %v2700_v6, %v1582_v9 }
 0x6bf   : > { %v1584_v11 = vmul.f32 %v1583_v10, %v1583_v10 }
 0x6c1   : > { %v1585_v12 = vsel %vm546_vm0, %v1584_v11, 0.0 }
 0x6c2   : > { %1586 = vadd.xlane.f32.xlu0 %v1585_v12 }
 0x74b   : > { %v1587_v22 = vpop.xlane.xlu0 %1586 }
 0x74c   : > { %v1588_v23 = vmul.f32 0.03125, %v1587_v22 }
 0x74e   : > { %v1589_v24 = vadd.f32 1e-05, %v1588_v23 }
 0x750   : > { %2182 = vrsqrt.f32 %v1589_v24 }
 0x75d   : > { %v2183_v25 = vpop.eup %2182 }
 0x75e   : > { %v1591_v27 = vmul.f32 %v2183_v25, %v1583_v10 }
 0x760   : > { %v1598_v29 = vmul.f32 %v1915_v26, %v1591_v27 }
 0x762   : > { %v1605_v30 = vadd.f32 %v1916_v28, %v1598_v29 }
 0x764   : > { %2054 = vmatmul.mubr.msk.f32.vlgmr.msra.gmra.mxu1 %vm546_vm0, %v1605_v30 }
 0x824   : > { %v1686_v35 = vpop.f32.mrf.mxu1 }
 0x825   : > { %v1687_v36 = vadd.f32 %v1917_v34, %v1686_v35 }
 0x826   : > { %v2055_v37 = vpop.f32.mrf.mxu1 }
 0x827   : > { %v1690_v38 = vmax.f32 %v1687_v36, 0.0 }
 0x829   : > { %2073 = vmatmul.mubr.msk.f32.vlgmr.msra.gmra.mxu0 %vm1706_vm6, %v1690_v38 }
 0x8e9   : > { %v1776_v40 = vpop.f32.mrf.mxu0 }
 0x8ea   : > { %v1777_v13 = vadd.f32 %v1919_v39, %v1776_v40 }
 0x8eb   : > { %v2074_v41 = vpop.f32.mrf.mxu0 }
 0x8ec   : > { %v1780_v42 = vadd.f32 %v1777_v13, %v2700_v6 }
 0x8ee   : > { %1781 = vst.msk [vmem:[%s538_s26] sm:$0xff] %vm546_vm0, %v1780_v42 }
 0x8ef   : > { %2251 = shalt.err (!%p2248_p5)
}
 0x8f0   : > { %s2252_s9 = scalar_lea.hbm %s1795_s16, 128  ;;  %s2256_s22 = scalar_lea.hbm %s2849_s17, 256 }
 0x8f1   : > { %p2253_p7 = scmp.ne.s32.totalorder %s1795_s16, %s2252_s9  ;;  %p2257_p9 = scmp.lt.s32.totalorder %s1795_s16, %s2849_s17 }
 0x8f2   : > { %p2258_p11 = scmp.lt.s32.totalorder %s2256_s22, %s2252_s9 }
 0x8f3   : > { %p2254_p6 = pnand %p2253_p7, %p2508_p13 }
 0x8f4   : > { %p2259_p12 = por %p2258_p11, %p2257_p9 }
 0x8f5   : > { %p2255_p4 = pneg %p2254_p6 }
 0x8f7   : > { %p2260_p1 = pnand %p2259_p12, %p2255_p4 }
 0x8f9   : > { %2263 = shalt.err (!%p2260_p1)
}
 0x8fa   : > { %2081 = dma.vmem_to_hbm [thread:$0]  (%p2508_p13), %s1798_s28, 128, %s1795_s16, %s1783_s27  }
 0x8fb PF: > { %s2850_s25 = sld [smem:[#allocation14_spill]]  ;;  %p2853_p10 = scmp.ge.s32.totalorder %s2322_s23, 2 }
 0x8fc   : > { %s2851_s15 = sld [smem:[#allocation17_spill]] }
 0x901   : > { %s1809_s24 = sand.u32 1, %s2850_s25  }
 0x902   : > { %p2852_p8 = scmp.ne.s32.totalorder %s2851_s15, 0  ;;  %s1810_s30 = scalar_lea.sflag [#allocation7], %s1809_s24 }
 0x904   : > { %p2092_p0 = pnand %p2853_p10, %p2852_p8 }
 0x906   : > { %p2093_p2 = pneg %p2092_p0 }
 0x908   : > { %2297 = dma.done.wait (%p2093_p2), %s1810_s30, 128  }
 0x909   : > { %2299 = vsyncadd (%p2093_p2), %s1810_s30, 4294967168  ;;  %s32_s23 = sadd.s32 1, %s2322_s23   ;;  %s2854_s13 = smov %s2517_s18 }
 0x90a   : > { %p29_p3 = scmp.ge.s32.totalorder %s32_s23, 4   ;;  %s2855_s21 = sld [smem:[#allocation16_spill]] }
 0x90b   : > { %s2856_s22 = sld [smem:[#allocation18_spill]]  ;;  %s2857_s18 = smov %s2306_s19 }
 0x90c   : > { %s2858_s19 = smov %s2310_s20  ;;  %s2859_s20 = smov %s2854_s13 }
 0x90d   :  { %31 = sbr.rel (!%p29_p3) target bundleno = 15 (0xf), region = 145 }
 0x912   :  { %1815 = vsyncpa [#allocation6], 1 }
 0x913   :  { %1817 = vsyncpa [#allocation6 + $0x1], 1 }
 0x914   :  { %1818 = vsyncpa [#allocation9], 1 }
 0x915   :  { %1819 = vsyncpa [#allocation7], 1 }
 0x916   :  { %1821 = vsyncpa [#allocation7 + $0x1], 1 }

</bundles_post_ra>
